<compile_context>
chip_gen: v7x
topology: tpu7x:2x2x1
jax: 0.10.0
libtpu: 0.0.40
codegen_flags: <defaults>
</compile_context>

<pallas_src>
import functools

import jax
import jax.numpy as jnp
from jax.experimental import pallas as pl
from jax.experimental.pallas import tpu as pltpu


# ----------------------------------------------------------------------------
# Kernel 1: fused  Y = [relu](X @ W + b)   (conv layers via packed im2col)
#   X tile: (tm, K) bf16   W: (K, N) bf16 (resident)   b: (1, N) f32
# ----------------------------------------------------------------------------
def _matmul_bias_relu_kernel(x_ref, w_ref, b_ref, o_ref, *, relu):
    y = jnp.dot(x_ref[...], w_ref[...], preferred_element_type=jnp.float32)
    y = y + b_ref[...]                     # (1, N) broadcasts over (tm, N)
    if relu:
        y = jnp.maximum(y, 0.0)
    o_ref[...] = y.astype(o_ref.dtype)


def _row_tile(m, tile_max):
    # Full array if it fits, otherwise a fixed multiple-of-8 tile; the cdiv
    # grid handles the partial last block (padded reads / masked writes).
    return m if m <= tile_max else tile_max


def fused_linear(x, w, b2d, *, relu, out_dtype, tile_max=512):
    """y = [relu](x @ w + b).  x: (M, K) bf16, w: (K, N) bf16, b2d: (1, N) f32."""
    m, k = x.shape
    k2, n = w.shape
    assert k == k2 and b2d.shape == (1, n)
    tm = _row_tile(m, tile_max)
    cost = pl.CostEstimate(
        flops=2 * m * k * n,
        transcendentals=0,
        bytes_accessed=(m * k * x.dtype.itemsize + k * n * 2 + n * 4
                        + m * n * jnp.dtype(out_dtype).itemsize),
    )
    return pl.pallas_call(
        functools.partial(_matmul_bias_relu_kernel, relu=relu),
        out_shape=jax.ShapeDtypeStruct((m, n), out_dtype),
        grid=(pl.cdiv(m, tm),),
        in_specs=[
            pl.BlockSpec((tm, k), lambda i: (i, 0)),
            pl.BlockSpec((k, n), lambda i: (0, 0)),    # weight stays resident
            pl.BlockSpec((1, n), lambda i: (0, 0)),
        ],
        out_specs=pl.BlockSpec((tm, n), lambda i: (i, 0)),
        compiler_params=pltpu.CompilerParams(
            dimension_semantics=("parallel",)),
        cost_estimate=cost,
    )(x, w, b2d)


# ----------------------------------------------------------------------------
# Kernel 2: fused FC head  out = (relu(x @ w4 + b4)) @ w5 + b5
# Tiled over M; weights at constant block index (VMEM-resident).  The (tm,512)
# hidden activation never leaves VMEM; logits written lane-dense (n_pad=128k).
# ----------------------------------------------------------------------------
def _fc_head_kernel(x_ref, w4_ref, b4_ref, w5_ref, b5_ref, o_ref):
    h = jnp.dot(x_ref[...], w4_ref[...], preferred_element_type=jnp.float32)
    h = jnp.maximum(h + b4_ref[...], 0.0)
    y = jnp.dot(h.astype(jnp.bfloat16), w5_ref[...],
                preferred_element_type=jnp.float32)
    o_ref[...] = y + b5_ref[...]


def fc_head(x, w4, b4, w5p, b5p, *, tile_max=256):
    """x: (M, 3136) bf16, w4: (3136,512) bf16, w5p: (512, n_pad) bf16."""
    m, k = x.shape
    hdim = w4.shape[1]
    n_pad = w5p.shape[1]
    tm = _row_tile(m, tile_max)
    cost = pl.CostEstimate(
        flops=2 * m * k * hdim + 2 * m * hdim * n_pad,
        transcendentals=0,
        bytes_accessed=(m * k * 2 + w4.size * 2 + w5p.size * 2
                        + b4.size * 4 + b5p.size * 4 + m * n_pad * 4),
    )
    return pl.pallas_call(
        _fc_head_kernel,
        out_shape=jax.ShapeDtypeStruct((m, n_pad), jnp.float32),
        grid=(pl.cdiv(m, tm),),
        in_specs=[
            pl.BlockSpec((tm, k), lambda i: (i, 0)),
            pl.BlockSpec((k, hdim), lambda i: (0, 0)),
            pl.BlockSpec((1, hdim), lambda i: (0, 0)),
            pl.BlockSpec((hdim, n_pad), lambda i: (0, 0)),
            pl.BlockSpec((1, n_pad), lambda i: (0, 0)),
        ],
        out_specs=pl.BlockSpec((tm, n_pad), lambda i: (i, 0)),
        compiler_params=pltpu.CompilerParams(
            dimension_semantics=("parallel",)),
        cost_estimate=cost,
    )(x, w4, b4, w5p, b5p)


# ----------------------------------------------------------------------------
# Conv2d (valid padding, square kernel/stride) via NHWC im2col (bf16) +
# patch-packed fused matmul (lane-dense 128-wide outputs).
# ----------------------------------------------------------------------------
def _im2col_nhwc(x, k, s):
    # x: (N, H, W, C) -> patches (N*oh*ow, k*k*C) in (kh, kw, C) column order.
    n, h, w, c = x.shape
    oh = (h - k) // s + 1
    ow = (w - k) // s + 1
    cols = []
    for i in range(k):
        for j in range(k):
            cols.append(x[:, i:i + s * oh:s, j:j + s * ow:s, :])  # (N,oh,ow,C)
    p = jnp.stack(cols, axis=3)                     # (N, oh, ow, k*k, C)
    return p.reshape(n * oh * ow, k * k * c), oh, ow


def conv2d_relu(x_nhwc, wp, bp, *, ksize, stride, out_c, pack):
    """x_nhwc: (N,H,W,C) bf16; wp: block-diag (pack*K, pack*out_c) bf16;
    bp: (1, pack*out_c) f32.  Returns (N, oh, ow, out_c) bf16 (NHWC)."""
    n = x_nhwc.shape[0]
    patches, oh, ow = _im2col_nhwc(x_nhwc, ksize, stride)   # (m, K) bf16
    m, k = patches.shape
    pad = (-m) % pack
    if pad:                                   # rare (odd batch); keeps packing valid
        patches = jnp.pad(patches, ((0, pad), (0, 0)))
    xp = patches.reshape((m + pad) // pack, pack * k)        # free reshape
    y = fused_linear(xp, wp, bp, relu=True, out_dtype=jnp.bfloat16)
    y = y.reshape(m + pad, out_c)                            # free reshape
    if pad:
        y = y[:m]
    return y.reshape(n, oh, ow, out_c)                       # stays NHWC


# ----------------------------------------------------------------------------
# Parameter init (PyTorch layout) and one-time prep into kernel layout.
# ----------------------------------------------------------------------------
def init_params(key, input_channels, output_dim):
    ks = jax.random.split(key, 10)

    def u(k, shape, fan_in):
        bound = 1.0 / jnp.sqrt(fan_in)
        return jax.random.uniform(k, shape, jnp.float32, -bound, bound)

    p = {}
    p["w1"] = u(ks[0], (32, input_channels, 8, 8), input_channels * 64)
    p["b1"] = u(ks[1], (32,), input_channels * 64)
    p["w2"] = u(ks[2], (64, 32, 4, 4), 32 * 16)
    p["b2"] = u(ks[3], (64,), 32 * 16)
    p["w3"] = u(ks[4], (64, 64, 3, 3), 64 * 9)
    p["b3"] = u(ks[5], (64,), 64 * 9)
    p["w4"] = u(ks[6], (512, 3136), 3136)
    p["b4"] = u(ks[7], (512,), 3136)
    p["w5"] = u(ks[8], (output_dim, 512), 512)
    p["b5"] = u(ks[9], (output_dim,), 512)
    return p


# pack factors: 4 patches/row for out_c=32 (conv1), 2 for out_c=64 (conv2/3)
# -> every conv matmul output is exactly 128 lanes wide.
_CONV_PACK = {1: 4, 2: 2, 3: 2}


def prepare_params(p, output_dim):
    """One-time transforms: NHWC weight layout, block-diag patch packing,
    bf16 matmul weights, (h,w,c)-ordered w4 columns, lane-dense w5/b5."""
    n_pad = max(128, ((output_dim + 127) // 128) * 128)
    q = {}
    for i in (1, 2, 3):
        w = p[f"w{i}"]                                        # (O, C, kh, kw)
        o, c, kh, kw = w.shape
        pack = _CONV_PACK[i]
        w2d = jnp.transpose(w, (2, 3, 1, 0)).reshape(kh * kw * c, o)
        wp = jnp.kron(jnp.eye(pack, dtype=w2d.dtype), w2d)   # block-diagonal
        q[f"w{i}"] = wp.astype(jnp.bfloat16)                  # (pack*K, pack*O)
        q[f"b{i}"] = jnp.tile(p[f"b{i}"], pack).reshape(1, pack * o)
    # w4 columns: PyTorch flatten order (c, h, w) -> our NHWC order (h, w, c).
    w4 = p["w4"].reshape(512, 64, 7, 7).transpose(0, 2, 3, 1).reshape(512, 3136)
    q["w4"] = w4.T.astype(jnp.bfloat16)                       # (3136, 512)
    q["b4"] = p["b4"].reshape(1, 512)
    w5 = p["w5"].T                                            # (512, out)
    q["w5"] = jnp.pad(w5, ((0, 0), (0, n_pad - output_dim))).astype(jnp.bfloat16)
    q["b5"] = jnp.pad(p["b5"], (0, n_pad - output_dim)).reshape(1, n_pad)
    return q


# ----------------------------------------------------------------------------
# Forward pass (public input stays NCHW f32, matching PyTorch).
# ----------------------------------------------------------------------------
@functools.partial(jax.jit, static_argnames=("output_dim",))
def network_forward(params, state, *, output_dim):
    # NCHW -> NHWC once, and drop to bf16 for the whole conv stack.
    x = jnp.transpose(state, (0, 2, 3, 1)).astype(jnp.bfloat16)
    x = conv2d_relu(x, params["w1"], params["b1"],
                    ksize=8, stride=4, out_c=32, pack=_CONV_PACK[1])  # (N,20,20,32)
    x = conv2d_relu(x, params["w2"], params["b2"],
                    ksize=4, stride=2, out_c=64, pack=_CONV_PACK[2])  # (N, 9, 9,64)
    x = conv2d_relu(x, params["w3"], params["b3"],
                    ksize=3, stride=1, out_c=64, pack=_CONV_PACK[3])  # (N, 7, 7,64)
    x = x.reshape(x.shape[0], -1)                 # (N,3136) bf16, (h,w,c) order
    logits = fc_head(x, params["w4"], params["b4"],
                     params["w5"], params["b5"])  # (N, 128) f32, lane-dense
    return logits[:, :output_dim]


# ----------------------------------------------------------------------------
# Pure-JAX f32 reference (PyTorch layout) for a correctness sanity check.
# ----------------------------------------------------------------------------
def reference_forward(p, state):
    def conv(x, w, b, s):
        y = jax.lax.conv_general_dilated(
            x, w, window_strides=(s, s), padding="VALID",
            dimension_numbers=("NCHW", "OIHW", "NCHW"))
        return jax.nn.relu(y + b[None, :, None, None])

    x = conv(state, p["w1"], p["b1"], 4)
    x = conv(x, p["w2"], p["b2"], 2)
    x = conv(x, p["w3"], p["b3"], 1)
    x = x.reshape(x.shape[0], -1)                 # PyTorch (c,h,w) flatten
    x = jax.nn.relu(x @ p["w4"].T + p["b4"])
    return x @ p["w5"].T + p["b5"]


if __name__ == "__main__":
    key = jax.random.PRNGKey(0)
    k_param, k_in = jax.random.split(key)

    batch, input_channels, output_dim = 2, 4, 6
    # Spatial size is forced to 84x84 by Linear(3136, 512) in the module.
    x = jax.random.normal(k_in, (batch, input_channels, 84, 84), jnp.float32)

    torch_layout_params = init_params(k_param, input_channels, output_dim)
    params = prepare_params(torch_layout_params, output_dim)

    out = network_forward(params, x, output_dim=output_dim)
    jax.block_until_ready(out)
    assert out.shape == (batch, output_dim), out.shape
    assert bool(jnp.all(jnp.isfinite(out)))

    # bf16-tolerance check against the f32 reference.
    ref = reference_forward(torch_layout_params, x)
    err = float(jnp.max(jnp.abs(out - ref)))
    scale = float(jnp.max(jnp.abs(ref))) + 1e-6
    assert err < 0.1 * scale + 0.05, (err, scale)

    print("KERNEL_OK")
</pallas_src>

<mosaic_0001>
module attributes {stable_mosaic.version = 11 : i64} {
  func.func @_matmul_bias_relu_kernel(%arg0: i32, %arg1: memref<200x1024xbf16, #tpu.memory_space<vmem>>, %arg2: memref<1024x128xbf16, #tpu.memory_space<vmem>>, %arg3: memref<1x128xf32, #tpu.memory_space<vmem>>, %arg4: memref<200x128xbf16, #tpu.memory_space<vmem>>) attributes {dimension_semantics = [#tpu.dimension_semantics<parallel>], iteration_bounds = array<i64: 1>, scalar_prefetch = 0 : i64, scratch_operands = 0 : i64, tpu.core_type = #tpu.core_type<tc>, window_params = [{transform_indices = @transform_0, window_bounds = array<i64: 200, 1024>}, {pipeline_mode = #tpu.pipeline_mode<synchronous>, transform_indices = @transform_1, window_bounds = array<i64: 1024, 128>}, {pipeline_mode = #tpu.pipeline_mode<synchronous>, transform_indices = @transform_2, window_bounds = array<i64: 1, 128>}, {transform_indices = @transform_3, window_bounds = array<i64: 200, 128>}]} {
    %c0 = arith.constant 0 : index
    %c0_0 = arith.constant 0 : index
    %0 = vector.load %arg1[%c0, %c0_0] : memref<200x1024xbf16, #tpu.memory_space<vmem>>, vector<200x1024xbf16>
    %c0_1 = arith.constant 0 : index
    %c0_2 = arith.constant 0 : index
    %1 = vector.load %arg2[%c0_1, %c0_2] : memref<1024x128xbf16, #tpu.memory_space<vmem>>, vector<1024x128xbf16>
    %cst = arith.constant dense<0.000000e+00> : vector<200x128xf32>
    %2 = tpu.matmul %0, %1, %cst {dimension_numbers = #tpu.dot_dimension_numbers<[1], [0], [0], [1], [0, 0, 1, 1], [], []>} : vector<200x1024xbf16>, vector<1024x128xbf16>, vector<200x128xf32> -> vector<200x128xf32>
    %c0_3 = arith.constant 0 : index
    %c0_4 = arith.constant 0 : index
    %3 = vector.load %arg3[%c0_3, %c0_4] : memref<1x128xf32, #tpu.memory_space<vmem>>, vector<1x128xf32>
    %4 = vector.broadcast %3 : vector<1x128xf32> to vector<200x128xf32>
    %5 = arith.addf %2, %4 : vector<200x128xf32>
    %cst_5 = arith.constant 0.000000e+00 : f32
    %6 = vector.broadcast %cst_5 : f32 to vector<200x128xf32>
    %7 = arith.maximumf %5, %6 : vector<200x128xf32>
    %8 = arith.truncf %7 : vector<200x128xf32> to vector<200x128xbf16>
    %c0_6 = arith.constant 0 : index
    %c0_7 = arith.constant 0 : index
    %9 = vector.load %arg4[%c0_6, %c0_7] : memref<200x128xbf16, #tpu.memory_space<vmem>>, vector<200x128xbf16>
    tpu.vector_store %arg4[%c0_6, %c0_7], %8 {strides = array<i32>} : memref<200x128xbf16, #tpu.memory_space<vmem>>, vector<200x128xbf16>,
    return
  }
  func.func @transform_0(%arg0: i32) -> (i32, i32) {
    %c0_i32 = arith.constant 0 : i32
    %c0_i32_0 = arith.constant 0 : i32
    return %arg0, %c0_i32 : i32, i32
  }
  func.func @transform_1(%arg0: i32) -> (i32, i32) {
    %c0_i32 = arith.constant 0 : i32
    %c0_i32_0 = arith.constant 0 : i32
    %c0_i32_1 = arith.constant 0 : i32
    return %c0_i32, %c0_i32_0 : i32, i32
  }
  func.func @transform_2(%arg0: i32) -> (i32, i32) {
    %c0_i32 = arith.constant 0 : i32
    %c0_i32_0 = arith.constant 0 : i32
    %c0_i32_1 = arith.constant 0 : i32
    return %c0_i32, %c0_i32_0 : i32, i32
  }
  func.func @transform_3(%arg0: i32) -> (i32, i32) {
    %c0_i32 = arith.constant 0 : i32
    %c0_i32_0 = arith.constant 0 : i32
    return %arg0, %c0_i32 : i32, i32
  }
}

module attributes {stable_mosaic.version = 11 : i64} {
  func.func @_matmul_bias_relu_kernel(%arg0: i32, %arg1: memref<81x1024xbf16, #tpu.memory_space<vmem>>, %arg2: memref<1024x128xbf16, #tpu.memory_space<vmem>>, %arg3: memref<1x128xf32, #tpu.memory_space<vmem>>, %arg4: memref<81x128xbf16, #tpu.memory_space<vmem>>) attributes {dimension_semantics = [#tpu.dimension_semantics<parallel>], iteration_bounds = array<i64: 1>, scalar_prefetch = 0 : i64, scratch_operands = 0 : i64, tpu.core_type = #tpu.core_type<tc>, window_params = [{transform_indices = @transform_0, window_bounds = array<i64: 81, 1024>}, {pipeline_mode = #tpu.pipeline_mode<synchronous>, transform_indices = @transform_1, window_bounds = array<i64: 1024, 128>}, {pipeline_mode = #tpu.pipeline_mode<synchronous>, transform_indices = @transform_2, window_bounds = array<i64: 1, 128>}, {transform_indices = @transform_3, window_bounds = array<i64: 81, 128>}]} {
    %c0 = arith.constant 0 : index
    %c0_0 = arith.constant 0 : index
    %0 = vector.load %arg1[%c0, %c0_0] : memref<81x1024xbf16, #tpu.memory_space<vmem>>, vector<81x1024xbf16>
    %c0_1 = arith.constant 0 : index
    %c0_2 = arith.constant 0 : index
    %1 = vector.load %arg2[%c0_1, %c0_2] : memref<1024x128xbf16, #tpu.memory_space<vmem>>, vector<1024x128xbf16>
    %cst = arith.constant dense<0.000000e+00> : vector<81x128xf32>
    %2 = tpu.matmul %0, %1, %cst {dimension_numbers = #tpu.dot_dimension_numbers<[1], [0], [0], [1], [0, 0, 1, 1], [], []>} : vector<81x1024xbf16>, vector<1024x128xbf16>, vector<81x128xf32> -> vector<81x128xf32>
    %c0_3 = arith.constant 0 : index
    %c0_4 = arith.constant 0 : index
    %3 = vector.load %arg3[%c0_3, %c0_4] : memref<1x128xf32, #tpu.memory_space<vmem>>, vector<1x128xf32>
    %4 = vector.broadcast %3 : vector<1x128xf32> to vector<81x128xf32>
    %5 = arith.addf %2, %4 : vector<81x128xf32>
    %cst_5 = arith.constant 0.000000e+00 : f32
    %6 = vector.broadcast %cst_5 : f32 to vector<81x128xf32>
    %7 = arith.maximumf %5, %6 : vector<81x128xf32>
    %8 = arith.truncf %7 : vector<81x128xf32> to vector<81x128xbf16>
    %c0_6 = arith.constant 0 : index
    %c0_7 = arith.constant 0 : index
    %9 = vector.load %arg4[%c0_6, %c0_7] : memref<81x128xbf16, #tpu.memory_space<vmem>>, vector<81x128xbf16>
    tpu.vector_store %arg4[%c0_6, %c0_7], %8 {strides = array<i32>} : memref<81x128xbf16, #tpu.memory_space<vmem>>, vector<81x128xbf16>,
    return
  }
  func.func @transform_0(%arg0: i32) -> (i32, i32) {
    %c0_i32 = arith.constant 0 : i32
    %c0_i32_0 = arith.constant 0 : i32
    return %arg0, %c0_i32 : i32, i32
  }
  func.func @transform_1(%arg0: i32) -> (i32, i32) {
    %c0_i32 = arith.constant 0 : i32
    %c0_i32_0 = arith.constant 0 : i32
    %c0_i32_1 = arith.constant 0 : i32
    return %c0_i32, %c0_i32_0 : i32, i32
  }
  func.func @transform_2(%arg0: i32) -> (i32, i32) {
    %c0_i32 = arith.constant 0 : i32
    %c0_i32_0 = arith.constant 0 : i32
    %c0_i32_1 = arith.constant 0 : i32
    return %c0_i32, %c0_i32_0 : i32, i32
  }
  func.func @transform_3(%arg0: i32) -> (i32, i32) {
    %c0_i32 = arith.constant 0 : i32
    %c0_i32_0 = arith.constant 0 : i32
    return %arg0, %c0_i32 : i32, i32
  }
}

module attributes {stable_mosaic.version = 11 : i64} {
  func.func @_matmul_bias_relu_kernel(%arg0: i32, %arg1: memref<49x1152xbf16, #tpu.memory_space<vmem>>, %arg2: memref<1152x128xbf16, #tpu.memory_space<vmem>>, %arg3: memref<1x128xf32, #tpu.memory_space<vmem>>, %arg4: memref<49x128xbf16, #tpu.memory_space<vmem>>) attributes {dimension_semantics = [#tpu.dimension_semantics<parallel>], iteration_bounds = array<i64: 1>, scalar_prefetch = 0 : i64, scratch_operands = 0 : i64, tpu.core_type = #tpu.core_type<tc>, window_params = [{transform_indices = @transform_0, window_bounds = array<i64: 49, 1152>}, {pipeline_mode = #tpu.pipeline_mode<synchronous>, transform_indices = @transform_1, window_bounds = array<i64: 1152, 128>}, {pipeline_mode = #tpu.pipeline_mode<synchronous>, transform_indices = @transform_2, window_bounds = array<i64: 1, 128>}, {transform_indices = @transform_3, window_bounds = array<i64: 49, 128>}]} {
    %c0 = arith.constant 0 : index
    %c0_0 = arith.constant 0 : index
    %0 = vector.load %arg1[%c0, %c0_0] : memref<49x1152xbf16, #tpu.memory_space<vmem>>, vector<49x1152xbf16>
    %c0_1 = arith.constant 0 : index
    %c0_2 = arith.constant 0 : index
    %1 = vector.load %arg2[%c0_1, %c0_2] : memref<1152x128xbf16, #tpu.memory_space<vmem>>, vector<1152x128xbf16>
    %cst = arith.constant dense<0.000000e+00> : vector<49x128xf32>
    %2 = tpu.matmul %0, %1, %cst {dimension_numbers = #tpu.dot_dimension_numbers<[1], [0], [0], [1], [0, 0, 1, 1], [], []>} : vector<49x1152xbf16>, vector<1152x128xbf16>, vector<49x128xf32> -> vector<49x128xf32>
    %c0_3 = arith.constant 0 : index
    %c0_4 = arith.constant 0 : index
    %3 = vector.load %arg3[%c0_3, %c0_4] : memref<1x128xf32, #tpu.memory_space<vmem>>, vector<1x128xf32>
    %4 = vector.broadcast %3 : vector<1x128xf32> to vector<49x128xf32>
    %5 = arith.addf %2, %4 : vector<49x128xf32>
    %cst_5 = arith.constant 0.000000e+00 : f32
    %6 = vector.broadcast %cst_5 : f32 to vector<49x128xf32>
    %7 = arith.maximumf %5, %6 : vector<49x128xf32>
    %8 = arith.truncf %7 : vector<49x128xf32> to vector<49x128xbf16>
    %c0_6 = arith.constant 0 : index
    %c0_7 = arith.constant 0 : index
    %9 = vector.load %arg4[%c0_6, %c0_7] : memref<49x128xbf16, #tpu.memory_space<vmem>>, vector<49x128xbf16>
    tpu.vector_store %arg4[%c0_6, %c0_7], %8 {strides = array<i32>} : memref<49x128xbf16, #tpu.memory_space<vmem>>, vector<49x128xbf16>,
    return
  }
  func.func @transform_0(%arg0: i32) -> (i32, i32) {
    %c0_i32 = arith.constant 0 : i32
    %c0_i32_0 = arith.constant 0 : i32
    return %arg0, %c0_i32 : i32, i32
  }
  func.func @transform_1(%arg0: i32) -> (i32, i32) {
    %c0_i32 = arith.constant 0 : i32
    %c0_i32_0 = arith.constant 0 : i32
    %c0_i32_1 = arith.constant 0 : i32
    return %c0_i32, %c0_i32_0 : i32, i32
  }
  func.func @transform_2(%arg0: i32) -> (i32, i32) {
    %c0_i32 = arith.constant 0 : i32
    %c0_i32_0 = arith.constant 0 : i32
    %c0_i32_1 = arith.constant 0 : i32
    return %c0_i32, %c0_i32_0 : i32, i32
  }
  func.func @transform_3(%arg0: i32) -> (i32, i32) {
    %c0_i32 = arith.constant 0 : i32
    %c0_i32_0 = arith.constant 0 : i32
    return %arg0, %c0_i32 : i32, i32
  }
}

module attributes {stable_mosaic.version = 11 : i64} {
  func.func @_fc_head_kernel(%arg0: i32, %arg1: memref<2x3136xbf16, #tpu.memory_space<vmem>>, %arg2: memref<3136x512xbf16, #tpu.memory_space<vmem>>, %arg3: memref<1x512xf32, #tpu.memory_space<vmem>>, %arg4: memref<512x128xbf16, #tpu.memory_space<vmem>>, %arg5: memref<1x128xf32, #tpu.memory_space<vmem>>, %arg6: memref<2x128xf32, #tpu.memory_space<vmem>>) attributes {dimension_semantics = [#tpu.dimension_semantics<parallel>], iteration_bounds = array<i64: 1>, scalar_prefetch = 0 : i64, scratch_operands = 0 : i64, tpu.core_type = #tpu.core_type<tc>, window_params = [{transform_indices = @transform_0, window_bounds = array<i64: 2, 3136>}, {pipeline_mode = #tpu.pipeline_mode<synchronous>, transform_indices = @transform_1, window_bounds = array<i64: 3136, 512>}, {pipeline_mode = #tpu.pipeline_mode<synchronous>, transform_indices = @transform_2, window_bounds = array<i64: 1, 512>}, {pipeline_mode = #tpu.pipeline_mode<synchronous>, transform_indices = @transform_3, window_bounds = array<i64: 512, 128>}, {pipeline_mode = #tpu.pipeline_mode<synchronous>, transform_indices = @transform_4, window_bounds = array<i64: 1, 128>}, {transform_indices = @transform_5, window_bounds = array<i64: 2, 128>}]} {
    %c0 = arith.constant 0 : index
    %c0_0 = arith.constant 0 : index
    %0 = vector.load %arg1[%c0, %c0_0] : memref<2x3136xbf16, #tpu.memory_space<vmem>>, vector<2x3136xbf16>
    %c0_1 = arith.constant 0 : index
    %c0_2 = arith.constant 0 : index
    %1 = vector.load %arg2[%c0_1, %c0_2] : memref<3136x512xbf16, #tpu.memory_space<vmem>>, vector<3136x512xbf16>
    %cst = arith.constant dense<0.000000e+00> : vector<2x512xf32>
    %2 = tpu.matmul %0, %1, %cst {dimension_numbers = #tpu.dot_dimension_numbers<[1], [0], [0], [1], [0, 0, 1, 1], [], []>} : vector<2x3136xbf16>, vector<3136x512xbf16>, vector<2x512xf32> -> vector<2x512xf32>
    %c0_3 = arith.constant 0 : index
    %c0_4 = arith.constant 0 : index
    %3 = vector.load %arg3[%c0_3, %c0_4] : memref<1x512xf32, #tpu.memory_space<vmem>>, vector<1x512xf32>
    %4 = vector.broadcast %3 : vector<1x512xf32> to vector<2x512xf32>
    %5 = arith.addf %2, %4 : vector<2x512xf32>
    %cst_5 = arith.constant 0.000000e+00 : f32
    %6 = vector.broadcast %cst_5 : f32 to vector<2x512xf32>
    %7 = arith.maximumf %5, %6 : vector<2x512xf32>
    %8 = arith.truncf %7 : vector<2x512xf32> to vector<2x512xbf16>
    %c0_6 = arith.constant 0 : index
    %c0_7 = arith.constant 0 : index
    %9 = vector.load %arg4[%c0_6, %c0_7] : memref<512x128xbf16, #tpu.memory_space<vmem>>, vector<512x128xbf16>
    %cst_8 = arith.constant dense<0.000000e+00> : vector<2x128xf32>
    %10 = tpu.matmul %8, %9, %cst_8 {dimension_numbers = #tpu.dot_dimension_numbers<[1], [0], [0], [1], [0, 0, 1, 1], [], []>} : vector<2x512xbf16>, vector<512x128xbf16>, vector<2x128xf32> -> vector<2x128xf32>
    %c0_9 = arith.constant 0 : index
    %c0_10 = arith.constant 0 : index
    %11 = vector.load %arg5[%c0_9, %c0_10] : memref<1x128xf32, #tpu.memory_space<vmem>>, vector<1x128xf32>
    %12 = vector.broadcast %11 : vector<1x128xf32> to vector<2x128xf32>
    %13 = arith.addf %10, %12 : vector<2x128xf32>
    %c0_11 = arith.constant 0 : index
    %c0_12 = arith.constant 0 : index
    %14 = vector.load %arg6[%c0_11, %c0_12] : memref<2x128xf32, #tpu.memory_space<vmem>>, vector<2x128xf32>
    tpu.vector_store %arg6[%c0_11, %c0_12], %13 {strides = array<i32>} : memref<2x128xf32, #tpu.memory_space<vmem>>, vector<2x128xf32>,
    return
  }
  func.func @transform_0(%arg0: i32) -> (i32, i32) {
    %c0_i32 = arith.constant 0 : i32
    %c0_i32_0 = arith.constant 0 : i32
    return %arg0, %c0_i32 : i32, i32
  }
  func.func @transform_1(%arg0: i32) -> (i32, i32) {
    %c0_i32 = arith.constant 0 : i32
    %c0_i32_0 = arith.constant 0 : i32
    %c0_i32_1 = arith.constant 0 : i32
    return %c0_i32, %c0_i32_0 : i32, i32
  }
  func.func @transform_2(%arg0: i32) -> (i32, i32) {
    %c0_i32 = arith.constant 0 : i32
    %c0_i32_0 = arith.constant 0 : i32
    %c0_i32_1 = arith.constant 0 : i32
    return %c0_i32, %c0_i32_0 : i32, i32
  }
  func.func @transform_3(%arg0: i32) -> (i32, i32) {
    %c0_i32 = arith.constant 0 : i32
    %c0_i32_0 = arith.constant 0 : i32
    %c0_i32_1 = arith.constant 0 : i32
    return %c0_i32, %c0_i32_0 : i32, i32
  }
  func.func @transform_4(%arg0: i32) -> (i32, i32) {
    %c0_i32 = arith.constant 0 : i32
    %c0_i32_0 = arith.constant 0 : i32
    %c0_i32_1 = arith.constant 0 : i32
    return %c0_i32, %c0_i32_0 : i32, i32
  }
  func.func @transform_5(%arg0: i32) -> (i32, i32) {
    %c0_i32 = arith.constant 0 : i32
    %c0_i32_0 = arith.constant 0 : i32
    return %arg0, %c0_i32 : i32, i32
  }
}

</mosaic_0001>

<bundles_post_ra>
// kernel: network_forward.4
= control target key start
LH: loop header
LB: loop body
LE: loop exit
PB: predicated region body
PF: predicated region fallthrough
CT: control target
= control target key end

     0   :  { %s3235_s1 = inlined_call_operand.vmem [shape: bf16[1024,128], index: 1, kind: input, shape index: {}]   ;;  %s3236_s0 = inlined_call_operand.vmem [shape: bf16[200,1024], index: 0, kind: input, shape index: {}]   ;;  %s3237_s2 = inlined_call_operand.vmem [shape: f32[1,128], index: 2, kind: input, shape index: {}]   ;;  %s3238_s3 = inlined_call_operand.vmem [shape: bf16[200,128], index: 3, kind: output, shape index: {}]  }
   0x1   :  { %v2507_v0 = vld [vmem:[%s3235_s1 + $0x40] sm:$0xff]   ;;  %v2511_v4 = vld [vmem:[%s3235_s1 + $0x48] sm:$0xff]   ;;  %v2515_v8 = vld [vmem:[%s3235_s1 + $0x50] sm:$0xff]  }
   0x2   :  { %v2508_v1 = vld [vmem:[%s3235_s1 + $0xc0] sm:$0xff]   ;;  %2131 = vmatprep.subr.bf16.mxu0 %v2507_v0  ;;  %v2512_v5 = vld [vmem:[%s3235_s1 + $0xc8] sm:$0xff]   ;;  %v2516_v9 = vld [vmem:[%s3235_s1 + $0xd0] sm:$0xff]  }
   0x3   :  { %v2509_v2 = vld [vmem:[%s3235_s1] sm:$0xff]   ;;  %2225 = vmatprep.subr.bf16.mxu1 %v2508_v1  ;;  %v2513_v6 = vld [vmem:[%s3235_s1 + $0x8] sm:$0xff]   ;;  %v2517_v10 = vld [vmem:[%s3235_s1 + $0x10] sm:$0xff]  }
   0x4   :  { %v2510_v3 = vld [vmem:[%s3235_s1 + $0x80] sm:$0xff]   ;;  %2132 = vmatpush3.bf16.msra.mxu0 %v2509_v2  ;;  %v2514_v7 = vld [vmem:[%s3235_s1 + $0x88] sm:$0xff]   ;;  %v2518_v11 = vld [vmem:[%s3235_s1 + $0x90] sm:$0xff]  }
   0x5   :  { %2226 = vmatpush3.bf16.msra.mxu1 %v2510_v3  ;;  %2133 = vmatprep.subr.bf16.mxu0 %v2511_v4  ;;  %v2519_v12 = vld [vmem:[%s3235_s1 + $0x58] sm:$0xff]   ;;  %v2523_v16 = vld [vmem:[%s3235_s1 + $0x60] sm:$0xff]   ;;  %v2527_v20 = vld [vmem:[%s3235_s1 + $0x68] sm:$0xff]  }
   0x6   :  { %2227 = vmatprep.subr.bf16.mxu1 %v2512_v5  ;;  %v2520_v13 = vld [vmem:[%s3235_s1 + $0xd8] sm:$0xff]   ;;  %v2524_v17 = vld [vmem:[%s3235_s1 + $0xe0] sm:$0xff]   ;;  %v2528_v21 = vld [vmem:[%s3235_s1 + $0xe8] sm:$0xff]  }
   0x7   :  { %v2521_v14 = vld [vmem:[%s3235_s1 + $0x18] sm:$0xff]   ;;  %v2525_v18 = vld [vmem:[%s3235_s1 + $0x20] sm:$0xff]   ;;  %v2529_v22 = vld [vmem:[%s3235_s1 + $0x28] sm:$0xff]  }
   0x8   :  { %2134 = vmatpush3.bf16.msra.mxu0 %v2513_v6  ;;  %v2522_v15 = vld [vmem:[%s3235_s1 + $0x98] sm:$0xff]   ;;  %v2526_v19 = vld [vmem:[%s3235_s1 + $0xa0] sm:$0xff]   ;;  %v2530_v23 = vld [vmem:[%s3235_s1 + $0xa8] sm:$0xff]  }
   0x9   :  { %2228 = vmatpush3.bf16.msra.mxu1 %v2514_v7  ;;  %2135 = vmatprep.subr.bf16.mxu0 %v2515_v8  ;;  %v2531_v24 = vld [vmem:[%s3235_s1 + $0x70] sm:$0xff]   ;;  %v2535_v28 = vld [vmem:[%s3235_s1 + $0x78] sm:$0xff]   ;;  %v15_v32 = vld [vmem:[%s3236_s0] sm:$0xff] }
   0xa   :  { %2229 = vmatprep.subr.bf16.mxu1 %v2516_v9  ;;  %v2532_v25 = vld [vmem:[%s3235_s1 + $0xf0] sm:$0xff]   ;;  %v2536_v29 = vld [vmem:[%s3235_s1 + $0xf8] sm:$0xff]   ;;  %v19_v33 = vld [vmem:[%s3236_s0 + $0x20] sm:$0xff] }
   0xb   :  { %v2533_v26 = vld [vmem:[%s3235_s1 + $0x30] sm:$0xff]   ;;  %v2537_v30 = vld [vmem:[%s3235_s1 + $0x38] sm:$0xff]   ;;  %v16_v34 = vld [vmem:[%s3236_s0 + $0x8] sm:$0xff]  ;;  %v1842_v35 = vcombine.low %v15_v32, %v19_v33  ;;  %v1843_v36 = vcombine.high %v15_v32, %v19_v33 }
   0xc   :  { %2136 = vmatpush3.bf16.msra.mxu0 %v2517_v10  ;;  %v2534_v27 = vld [vmem:[%s3235_s1 + $0xb0] sm:$0xff]   ;;  %v2538_v31 = vld [vmem:[%s3235_s1 + $0xb8] sm:$0xff]   ;;  %v20_v37 = vld [vmem:[%s3236_s0 + $0x28] sm:$0xff] }
   0xd   :  { %2230 = vmatpush3.bf16.msra.mxu1 %v2518_v11  ;;  %2137 = vmatprep.subr.bf16.mxu0 %v2519_v12  ;;  %v1844_v38 = vcombine.low %v16_v34, %v20_v37  ;;  %v1845_v39 = vcombine.high %v16_v34, %v20_v37  ;;  %v2539_v40 = vld [vmem:[%s3235_s1 + $0x140] sm:$0xff]   ;;  %v24_v47 = vld [vmem:[%s3236_s0 + $0x48] sm:$0xff]  ;;  %v2547_v2 = vld [vmem:[%s3235_s1 + $0x150] sm:$0xff]  }
   0xe   :  { %2231 = vmatprep.subr.bf16.mxu1 %v2520_v13  ;;  %1174 = vmatprep.mubr.bf16.mxu0 %v1843_v36  ;;  %v2540_v41 = vld [vmem:[%s3235_s1 + $0x100] sm:$0xff]   ;;  %v28_v48 = vld [vmem:[%s3236_s0 + $0x68] sm:$0xff]  ;;  %v2548_v3 = vld [vmem:[%s3235_s1 + $0x110] sm:$0xff]  }
   0xf   :  { %1310 = vmatprep.mubr.bf16.mxu1 %v1845_v39  ;;  %v2541_v42 = vld [vmem:[%s3235_s1 + $0x1c0] sm:$0xff]   ;;  %v1853_v49 = vcombine.high %v24_v47, %v28_v48  ;;  %v2543_v50 = vld [vmem:[%s3235_s1 + $0x148] sm:$0xff]   ;;  %v1852_v54 = vcombine.low %v24_v47, %v28_v48  ;;  %v2549_v5 = vld [vmem:[%s3235_s1 + $0x1d0] sm:$0xff]  }
  0x10   :  { %2138 = vmatpush3.bf16.msra.mxu0 %v2521_v14  ;;  %v2542_v43 = vld [vmem:[%s3235_s1 + $0x180] sm:$0xff]   ;;  %v2544_v52 = vld [vmem:[%s3235_s1 + $0x108] sm:$0xff]   ;;  %v2550_v8 = vld [vmem:[%s3235_s1 + $0x190] sm:$0xff]  }
  0x11   :  { %2232 = vmatpush3.bf16.msra.mxu1 %v2522_v15  ;;  %2139 = vmatprep.subr.bf16.mxu0 %v2523_v16  ;;  %v23_v44 = vld [vmem:[%s3236_s0 + $0x40] sm:$0xff]  ;;  %v32_v56 = vld [vmem:[%s3236_s0 + $0x88] sm:$0xff]  ;;  %v2551_v12 = vld [vmem:[%s3235_s1 + $0x158] sm:$0xff]  }
  0x12   :  { %2233 = vmatprep.subr.bf16.mxu1 %v2524_v17  ;;  %v27_v45 = vld [vmem:[%s3236_s0 + $0x60] sm:$0xff]  ;;  %v36_v57 = vld [vmem:[%s3236_s0 + $0xa8] sm:$0xff]  ;;  %v2552_v15 = vld [vmem:[%s3235_s1 + $0x118] sm:$0xff]  }
  0x13   :  { %v1851_v46 = vcombine.high %v23_v44, %v27_v45  ;;  %v1850_v51 = vcombine.low %v23_v44, %v27_v45  ;;  %v31_v53 = vld [vmem:[%s3236_s0 + $0x80] sm:$0xff]  ;;  %v1861_v59 = vcombine.high %v32_v56, %v36_v57  ;;  %v2545_v60 = vld [vmem:[%s3235_s1 + $0x1c8] sm:$0xff]   ;;  %v1860_v6 = vcombine.low %v32_v56, %v36_v57  ;;  %v2553_v16 = vld [vmem:[%s3235_s1 + $0x1d8] sm:$0xff]  }
  0x14   :  { %2140 = vmatpush3.bf16.msra.mxu0 %v2525_v18  ;;  %v35_v55 = vld [vmem:[%s3236_s0 + $0xa0] sm:$0xff]  ;;  %v2546_v61 = vld [vmem:[%s3235_s1 + $0x188] sm:$0xff]   ;;  %v2554_v17 = vld [vmem:[%s3235_s1 + $0x198] sm:$0xff]  }
  0x15   :  { %2234 = vmatpush3.bf16.msra.mxu1 %v2526_v19  ;;  %2141 = vmatprep.subr.bf16.mxu0 %v2527_v20  ;;  %v1859_v58 = vcombine.high %v31_v53, %v35_v55  ;;  %v39_v62 = vld [vmem:[%s3236_s0 + $0xc0] sm:$0xff]  ;;  %v40_v0 = vld [vmem:[%s3236_s0 + $0xc8] sm:$0xff]  ;;  %v1858_v4 = vcombine.low %v31_v53, %v35_v55  ;;  %v2564_v44 = vld [vmem:[%s3235_s1 + $0x130] sm:$0xff]  }
  0x16   :  { %2235 = vmatprep.subr.bf16.mxu1 %v2528_v21  ;;  %v43_v63 = vld [vmem:[%s3236_s0 + $0xe0] sm:$0xff]  ;;  %v44_v1 = vld [vmem:[%s3236_s0 + $0xe8] sm:$0xff]  ;;  %v2565_v47 = vld [vmem:[%s3235_s1 + $0x1f0] sm:$0xff]  }
  0x17   :  { %v1867_v7 = vcombine.high %v39_v62, %v43_v63  ;;  %v1869_v9 = vcombine.high %v40_v0, %v44_v1  ;;  %v47_v10 = vld [vmem:[%s3236_s0 + $0x100] sm:$0xff]  ;;  %v48_v13 = vld [vmem:[%s3236_s0 + $0x108] sm:$0xff]  ;;  %v1866_v18 = vcombine.low %v39_v62, %v43_v63  ;;  %v1868_v19 = vcombine.low %v40_v0, %v44_v1  ;;  %v2568_v55 = vld [vmem:[%s3235_s1 + $0x138] sm:$0xff]  }
  0x18   :  { %2142 = vmatpush3.bf16.msra.mxu0 %v2529_v22  ;;  %v51_v11 = vld [vmem:[%s3236_s0 + $0x120] sm:$0xff]  ;;  %v52_v14 = vld [vmem:[%s3236_s0 + $0x128] sm:$0xff]  ;;  %v2569_v56 = vld [vmem:[%s3235_s1 + $0x1f8] sm:$0xff]  }
  0x19   :  { %2236 = vmatpush3.bf16.msra.mxu1 %v2530_v23  ;;  %2143 = vmatprep.subr.bf16.mxu0 %v2531_v24  ;;  %v1875_v20 = vcombine.high %v47_v10, %v51_v11  ;;  %v1877_v21 = vcombine.high %v48_v13, %v52_v14  ;;  %v2555_v22 = vld [vmem:[%s3235_s1 + $0x160] sm:$0xff]   ;;  %v1876_v32 = vcombine.low %v48_v13, %v52_v14  ;;  %v2560_v34 = vld [vmem:[%s3235_s1 + $0x128] sm:$0xff]   ;;  %v2570_v57 = vld [vmem:[%s3235_s1 + $0x1b8] sm:$0xff]  }
  0x1a   :  { %2237 = vmatprep.subr.bf16.mxu1 %v2532_v25  ;;  %v2556_v23 = vld [vmem:[%s3235_s1 + $0x120] sm:$0xff]   ;;  %v2561_v36 = vld [vmem:[%s3235_s1 + $0x1e8] sm:$0xff]  }
  0x1b   :  { %v2557_v24 = vld [vmem:[%s3235_s1 + $0x1e0] sm:$0xff]   ;;  %v2562_v37 = vld [vmem:[%s3235_s1 + $0x1a8] sm:$0xff]  }
  0x1c   :  { %2144 = vmatpush3.bf16.msra.mxu0 %v2533_v26  ;;  %v55_v25 = vld [vmem:[%s3236_s0 + $0x140] sm:$0xff]  ;;  %v72_v53 = vld [vmem:[%s3236_s0 + $0x1c8] sm:$0xff] }
  0x1d   :  { %2238 = vmatpush3.bf16.msra.mxu1 %v2534_v27  ;;  %2145 = vmatprep.subr.bf16.mxu0 %v2535_v28  ;;  %v59_v26 = vld [vmem:[%s3236_s0 + $0x160] sm:$0xff]  ;;  %v56_v28 = vld [vmem:[%s3236_s0 + $0x148] sm:$0xff] }
  0x1e   :  { %2239 = vmatprep.subr.bf16.mxu1 %v2536_v29  ;;  %v2558_v27 = vld [vmem:[%s3235_s1 + $0x1a0] sm:$0xff]   ;;  %v60_v29 = vld [vmem:[%s3236_s0 + $0x168] sm:$0xff]  ;;  %v1883_v33 = vcombine.high %v55_v25, %v59_v26 }
  0x1f   :  { %v67_v39 = vld [vmem:[%s3236_s0 + $0x1a0] sm:$0xff]  ;;  %v1884_v45 = vcombine.low %v56_v28, %v60_v29  ;;  %v80_v0 = vld [vmem:[%s3236_s0 + $0x208] sm:$0xff] }
  0x20   :  { %2146 = vmatpush3.bf16.msra.mxu0 %v2537_v30  ;;  %v1874_v30 = vcombine.low %v47_v10, %v51_v11  ;;  %v79_v62 = vld [vmem:[%s3236_s0 + $0x200] sm:$0xff]  ;;  %v84_v1 = vld [vmem:[%s3236_s0 + $0x228] sm:$0xff] }
  0x21   :  { %2240 = vmatpush3.bf16.msra.mxu1 %v2538_v31  ;;  %2319 = vmatprep.subr.bf16.mxu0 %v2539_v40  ;;  %v2559_v31 = vld [vmem:[%s3235_s1 + $0x168] sm:$0xff]   ;;  %v2563_v40 = vld [vmem:[%s3235_s1 + $0x170] sm:$0xff]   ;;  %v83_v63 = vld [vmem:[%s3236_s0 + $0x220] sm:$0xff]  ;;  %v1908_v11 = vcombine.low %v80_v0, %v84_v1 }
  0x22   :  { %2413 = vmatprep.subr.bf16.mxu1 %v2541_v42  ;;  %v68_v42 = vld [vmem:[%s3236_s0 + $0x1a8] sm:$0xff]  ;;  %v1906_v10 = vcombine.low %v79_v62, %v83_v63  ;;  %v95_v14 = vld [vmem:[%s3236_s0 + $0x280] sm:$0xff] }
  0x23   :  { %1175 = vmatmul.mubr.bf16.vlgmr.msra.gmra.mrb[0].mxu0 %v1842_v35  ;;  %v1885_v35 = vcombine.high %v56_v28, %v60_v29 }
  0x24   :  { %1311 = vmatmul.mubr.bf16.vlgmr.msra.gmra.mrb[0].mxu1 %v1844_v38  ;;  %2320 = vmatpush3.bf16.msra.mxu0 %v2540_v41  ;;  %v63_v38 = vld [vmem:[%s3236_s0 + $0x180] sm:$0xff]  ;;  %v64_v41 = vld [vmem:[%s3236_s0 + $0x188] sm:$0xff] }
  0x25   :  { %2414 = vmatpush3.bf16.msra.mxu1 %v2542_v43  ;;  %1182 = vmatprep.mubr.bf16.mxu0 %v1851_v46  ;;  %v1882_v43 = vcombine.low %v55_v25, %v59_v26  ;;  %v1891_v46 = vcombine.high %v63_v38, %v67_v39  ;;  %v1893_v48 = vcombine.high %v64_v41, %v68_v42  ;;  %v108_v25 = vld [vmem:[%s3236_s0 + $0x2e8] sm:$0xff] }
  0x26   :  { %1318 = vmatprep.mubr.bf16.mxu1 %v1853_v49  ;;  %2321 = vmatprep.subr.bf16.mxu0 %v2543_v50  ;;  %v2566_v49 = vld [vmem:[%s3235_s1 + $0x1b0] sm:$0xff]   ;;  %v71_v50 = vld [vmem:[%s3236_s0 + $0x1c0] sm:$0xff] }
  0x27   :  { %2415 = vmatprep.subr.bf16.mxu1 %v2545_v60 }
  0x28   :  { %2322 = vmatpush3.bf16.msra.mxu0 %v2544_v52  ;;  %v2567_v52 = vld [vmem:[%s3235_s1 + $0x178] sm:$0xff]  }
  0x29   :  { %2416 = vmatpush3.bf16.msra.mxu1 %v2546_v61  ;;  %2323 = vmatprep.subr.bf16.mxu0 %v2547_v2 }
  0x2a   :  { %2417 = vmatprep.subr.bf16.mxu1 %v2549_v5  ;;  %v1909_v5 = vcombine.high %v80_v0, %v84_v1 }
  0x2b   :  { %1183 = vmatmul.mubr.bf16.gmra.mrb[4].mxu0 %v1850_v51  ;;  %v75_v51 = vld [vmem:[%s3236_s0 + $0x1e0] sm:$0xff] }
  0x2c   :  { %1319 = vmatmul.mubr.bf16.gmra.mrb[4].mxu1 %v1852_v54  ;;  %1190 = vmatprep.mubr.bf16.mxu0 %v1859_v58  ;;  %v76_v54 = vld [vmem:[%s3236_s0 + $0x1e8] sm:$0xff]  ;;  %v1890_v58 = vcombine.low %v63_v38, %v67_v39  ;;  %v1899_v60 = vcombine.high %v71_v50, %v75_v51  ;;  %v1898_v2 = vcombine.low %v71_v50, %v75_v51  ;;  %v18_v38 = vld [vmem:[%s3236_s0 + $0x18] sm:$0xff] }
  0x2d   :  { %1326 = vmatprep.mubr.bf16.mxu1 %v1861_v59  ;;  %2324 = vmatpush3.bf16.msra.mxu0 %v2548_v3  ;;  %v1892_v59 = vcombine.low %v64_v41, %v68_v42  ;;  %v1901_v61 = vcombine.high %v72_v53, %v76_v54  ;;  %v1900_v3 = vcombine.low %v72_v53, %v76_v54  ;;  %v22_v39 = vld [vmem:[%s3236_s0 + $0x38] sm:$0xff]  ;;  %v37_v53 = vld [vmem:[%s3236_s0 + $0xb0] sm:$0xff] }
  0x2e   :  { %2418 = vmatpush3.bf16.msra.mxu1 %v2550_v8  ;;  %2325 = vmatprep.subr.bf16.mxu0 %v2551_v12  ;;  %v88_v8 = vld [vmem:[%s3236_s0 + $0x248] sm:$0xff]  ;;  %v34_v54 = vld [vmem:[%s3236_s0 + $0x98] sm:$0xff] }
  0x2f   :  { %2419 = vmatprep.subr.bf16.mxu1 %v2553_v16  ;;  %v96_v16 = vld [vmem:[%s3236_s0 + $0x288] sm:$0xff] }
  0x31   :  { %2326 = vmatpush3.bf16.msra.mxu0 %v2552_v15  ;;  %v99_v15 = vld [vmem:[%s3236_s0 + $0x2a0] sm:$0xff] }
  0x32   :  { %2420 = vmatpush3.bf16.msra.mxu1 %v2554_v17  ;;  %2327 = vmatprep.subr.bf16.mxu0 %v2555_v22  ;;  %v100_v17 = vld [vmem:[%s3236_s0 + $0x2a8] sm:$0xff]  ;;  %v103_v22 = vld [vmem:[%s3236_s0 + $0x2c0] sm:$0xff]  ;;  %v1922_v26 = vcombine.low %v95_v14, %v99_v15 }
  0x33   :  { %1191 = vmatmul.mubr.bf16.gmra.mrb[8].mxu0 %v1858_v4  ;;  %2421 = vmatprep.subr.bf16.mxu1 %v2557_v24  ;;  %v1907_v4 = vcombine.high %v79_v62, %v83_v63  ;;  %v104_v24 = vld [vmem:[%s3236_s0 + $0x2c8] sm:$0xff]  ;;  %v42_v62 = vld [vmem:[%s3236_s0 + $0xd8] sm:$0xff] }
  0x34   :  { %1327 = vmatmul.mubr.bf16.gmra.mrb[8].mxu1 %v1860_v6  ;;  %1198 = vmatprep.mubr.bf16.mxu0 %v1867_v7  ;;  %v87_v6 = vld [vmem:[%s3236_s0 + $0x240] sm:$0xff]  ;;  %v1933_v29 = vcombine.high %v104_v24, %v108_v25  ;;  %v46_v63 = vld [vmem:[%s3236_s0 + $0xf8] sm:$0xff] }
  0x35   :  { %1334 = vmatprep.mubr.bf16.mxu1 %v1869_v9  ;;  %2328 = vmatpush3.bf16.msra.mxu0 %v2556_v23  ;;  %v91_v7 = vld [vmem:[%s3236_s0 + $0x260] sm:$0xff]  ;;  %v92_v9 = vld [vmem:[%s3236_s0 + $0x268] sm:$0xff] }
  0x36   :  { %2422 = vmatpush3.bf16.msra.mxu1 %v2558_v27  ;;  %2329 = vmatprep.subr.bf16.mxu0 %v2559_v31  ;;  %v1915_v12 = vcombine.high %v87_v6, %v91_v7  ;;  %v1917_v13 = vcombine.high %v88_v8, %v92_v9  ;;  %v107_v23 = vld [vmem:[%s3236_s0 + $0x2e0] sm:$0xff]  ;;  %v1924_v27 = vcombine.low %v96_v16, %v100_v17  ;;  %v112_v31 = vld [vmem:[%s3236_s0 + $0x308] sm:$0xff] }
  0x37   :  { %2423 = vmatprep.subr.bf16.mxu1 %v2561_v36  ;;  %v1931_v28 = vcombine.high %v103_v22, %v107_v23  ;;  %v17_v36 = vld [vmem:[%s3236_s0 + $0x10] sm:$0xff]  ;;  %v1940_v41 = vcombine.low %v112_v31, %v112_v31 }
  0x39   :  { %2330 = vmatpush3.bf16.msra.mxu0 %v2560_v34 }
  0x3a   :  { %2424 = vmatpush3.bf16.msra.mxu1 %v2562_v37  ;;  %2331 = vmatprep.subr.bf16.mxu0 %v2563_v40  ;;  %v21_v37 = vld [vmem:[%s3236_s0 + $0x30] sm:$0xff] }
  0x3b   :  { %1199 = vmatmul.mubr.bf16.gmra.mrb[12].mxu0 %v1866_v18  ;;  %2425 = vmatprep.subr.bf16.mxu1 %v2565_v47  ;;  %v1914_v18 = vcombine.low %v87_v6, %v91_v7  ;;  %v1847_v42 = vcombine.high %v17_v36, %v21_v37  ;;  %v30_v47 = vld [vmem:[%s3236_s0 + $0x78] sm:$0xff] }
  0x3c   :  { %1335 = vmatmul.mubr.bf16.gmra.mrb[12].mxu1 %v1868_v19  ;;  %1206 = vmatprep.mubr.bf16.mxu0 %v1875_v20  ;;  %v1916_v19 = vcombine.low %v88_v8, %v92_v9  ;;  %v1923_v20 = vcombine.high %v95_v14, %v99_v15  ;;  %v50_v6 = vld [vmem:[%s3236_s0 + $0x118] sm:$0xff]  ;;  %v1872_v9 = vcombine.low %v42_v62, %v46_v63 }
  0x3d   :  { %1342 = vmatprep.mubr.bf16.mxu1 %v1877_v21  ;;  %2332 = vmatpush3.bf16.msra.mxu0 %v2564_v44  ;;  %v1925_v21 = vcombine.high %v96_v16, %v100_v17  ;;  %v25_v44 = vld [vmem:[%s3236_s0 + $0x50] sm:$0xff]  ;;  %v54_v7 = vld [vmem:[%s3236_s0 + $0x138] sm:$0xff] }
  0x3e   :  { %2426 = vmatpush3.bf16.msra.mxu1 %v2566_v49  ;;  %2333 = vmatprep.subr.bf16.mxu0 %v2567_v52  ;;  %v1848_v49 = vcombine.low %v18_v38, %v22_v39  ;;  %v33_v52 = vld [vmem:[%s3236_s0 + $0x90] sm:$0xff]  ;;  %v58_v14 = vld [vmem:[%s3236_s0 + $0x158] sm:$0xff]  ;;  %v1880_v17 = vcombine.low %v50_v6, %v54_v7 }
  0x3f   :  { %2427 = vmatprep.subr.bf16.mxu1 %v2569_v56  ;;  %v1862_v0 = vcombine.low %v33_v52, %v37_v53  ;;  %v62_v15 = vld [vmem:[%s3236_s0 + $0x178] sm:$0xff] }
  0x41   :  { %2334 = vmatpush3.bf16.msra.mxu0 %v2568_v55  ;;  %v38_v55 = vld [vmem:[%s3236_s0 + $0xb8] sm:$0xff] }
  0x42   :  { %2428 = vmatpush3.bf16.msra.mxu1 %v2570_v57  ;;  %v1864_v1 = vcombine.low %v34_v54, %v38_v55 }
  0x43   :  { %1207 = vmatmul.mubr.bf16.gmra.mrb[16].mxu0 %v1874_v30  ;;  %v111_v30 = vld [vmem:[%s3236_s0 + $0x300] sm:$0xff] }
  0x44   :  { %1343 = vmatmul.mubr.bf16.gmra.mrb[16].mxu1 %v1876_v32  ;;  %1214 = vmatprep.mubr.bf16.mxu0 %v1883_v33  ;;  %v1930_v32 = vcombine.low %v103_v22, %v107_v23  ;;  %v1932_v33 = vcombine.low %v104_v24, %v108_v25  ;;  %v1939_v34 = vcombine.high %v111_v30, %v111_v30  ;;  %v66_v22 = vld [vmem:[%s3236_s0 + $0x198] sm:$0xff] }
  0x45   :  { %1350 = vmatprep.mubr.bf16.mxu1 %v1885_v35  ;;  %v1941_v35 = vcombine.high %v112_v31, %v112_v31  ;;  %v1938_v40 = vcombine.low %v111_v30, %v111_v30  ;;  %v70_v23 = vld [vmem:[%s3236_s0 + $0x1b8] sm:$0xff]  ;;  %v1888_v25 = vcombine.low %v58_v14, %v62_v15 }
  0x46   :  { %v74_v30 = vld [vmem:[%s3236_s0 + $0x1d8] sm:$0xff] }
  0x47   :  { %v78_v31 = vld [vmem:[%s3236_s0 + $0x1f8] sm:$0xff] }
  0x4b   :  { %1215 = vmatmul.mubr.bf16.gmra.mrb[20].mxu0 %v1882_v43  ;;  %v1849_v43 = vcombine.high %v18_v38, %v22_v39  ;;  %v82_v38 = vld [vmem:[%s3236_s0 + $0x218] sm:$0xff] }
  0x4c   :  { %1351 = vmatmul.mubr.bf16.gmra.mrb[20].mxu1 %v1884_v45  ;;  %1222 = vmatprep.mubr.bf16.mxu0 %v1891_v46  ;;  %v29_v45 = vld [vmem:[%s3236_s0 + $0x70] sm:$0xff]  ;;  %v26_v46 = vld [vmem:[%s3236_s0 + $0x58] sm:$0xff] }
  0x4d   :  { %1358 = vmatprep.mubr.bf16.mxu1 %v1893_v48  ;;  %v1846_v48 = vcombine.low %v17_v36, %v21_v37  ;;  %v1855_v50 = vcombine.high %v25_v44, %v29_v45  ;;  %v1857_v51 = vcombine.high %v26_v46, %v30_v47  ;;  %v1854_v56 = vcombine.low %v25_v44, %v29_v45  ;;  %v81_v36 = vld [vmem:[%s3236_s0 + $0x210] sm:$0xff]  ;;  %v86_v39 = vld [vmem:[%s3236_s0 + $0x238] sm:$0xff] }
  0x4e   :  { %v1856_v57 = vcombine.low %v26_v46, %v30_v47  ;;  %v85_v37 = vld [vmem:[%s3236_s0 + $0x230] sm:$0xff]  ;;  %v90_v46 = vld [vmem:[%s3236_s0 + $0x258] sm:$0xff] }
  0x4f   :  { %v89_v44 = vld [vmem:[%s3236_s0 + $0x250] sm:$0xff]  ;;  %v94_v47 = vld [vmem:[%s3236_s0 + $0x278] sm:$0xff] }
  0x50   :  { %v93_v45 = vld [vmem:[%s3236_s0 + $0x270] sm:$0xff] }
  0x53   :  { %1223 = vmatmul.mubr.bf16.gmra.mrb[24].mxu0 %v1890_v58  ;;  %v1863_v58 = vcombine.high %v33_v52, %v37_v53  ;;  %v97_v52 = vld [vmem:[%s3236_s0 + $0x290] sm:$0xff] }
  0x54   :  { %1359 = vmatmul.mubr.bf16.gmra.mrb[24].mxu1 %v1892_v59  ;;  %1230 = vmatprep.mubr.bf16.mxu0 %v1899_v60  ;;  %v1865_v59 = vcombine.high %v34_v54, %v38_v55  ;;  %v41_v60 = vld [vmem:[%s3236_s0 + $0xd0] sm:$0xff]  ;;  %v98_v54 = vld [vmem:[%s3236_s0 + $0x298] sm:$0xff] }
  0x55   :  { %1366 = vmatprep.mubr.bf16.mxu1 %v1901_v61  ;;  %v45_v61 = vld [vmem:[%s3236_s0 + $0xf0] sm:$0xff]  ;;  %v102_v55 = vld [vmem:[%s3236_s0 + $0x2b8] sm:$0xff] }
  0x56   :  { %v1870_v8 = vcombine.low %v41_v60, %v45_v61  ;;  %v101_v53 = vld [vmem:[%s3236_s0 + $0x2b0] sm:$0xff] }
  0x5b   :  { %1231 = vmatmul.mubr.bf16.gmra.mrb[28].mxu0 %v1898_v2  ;;  %v1871_v2 = vcombine.high %v41_v60, %v45_v61  ;;  %v105_v60 = vld [vmem:[%s3236_s0 + $0x2d0] sm:$0xff] }
  0x5c   :  { %1367 = vmatmul.mubr.bf16.gmra.mrb[28].mxu1 %v1900_v3  ;;  %1238 = vmatprep.mubr.bf16.mxu0 %v1907_v4  ;;  %v1873_v3 = vcombine.high %v42_v62, %v46_v63  ;;  %v49_v4 = vld [vmem:[%s3236_s0 + $0x110] sm:$0xff]  ;;  %v106_v62 = vld [vmem:[%s3236_s0 + $0x2d8] sm:$0xff] }
  0x5d   :  { %1374 = vmatprep.mubr.bf16.mxu1 %v1909_v5  ;;  %v53_v5 = vld [vmem:[%s3236_s0 + $0x130] sm:$0xff]  ;;  %v110_v63 = vld [vmem:[%s3236_s0 + $0x2f8] sm:$0xff] }
  0x5e   :  { %v1878_v16 = vcombine.low %v49_v4, %v53_v5  ;;  %v109_v61 = vld [vmem:[%s3236_s0 + $0x2f0] sm:$0xff] }
  0x63   :  { %1239 = vmatmul.mubr.bf16.gmra.mrb[32].mxu0 %v1906_v10  ;;  %v1879_v10 = vcombine.high %v49_v4, %v53_v5  ;;  %v113_v4 = vld [vmem:[%s3236_s0 + $0x310] sm:$0xff]  ;;  %v114_v5 = vld [vmem:[%s3236_s0 + $0x318] sm:$0xff] }
  0x64   :  { %1375 = vmatmul.mubr.bf16.gmra.mrb[32].mxu1 %v1908_v11  ;;  %1246 = vmatprep.mubr.bf16.mxu0 %v1915_v12  ;;  %v1881_v11 = vcombine.high %v50_v6, %v54_v7  ;;  %v57_v12 = vld [vmem:[%s3236_s0 + $0x150] sm:$0xff]  ;;  %v1934_v6 = vcombine.low %v105_v60, %v109_v61  ;;  %v1936_v7 = vcombine.low %v106_v62, %v110_v63 }
  0x65   :  { %1382 = vmatprep.mubr.bf16.mxu1 %v1917_v13  ;;  %v61_v13 = vld [vmem:[%s3236_s0 + $0x170] sm:$0xff] }
  0x66   :  { %v1886_v24 = vcombine.low %v57_v12, %v61_v13 }
  0x6b   :  { %1247 = vmatmul.mubr.bf16.gmra.mrb[36].mxu0 %v1914_v18  ;;  %v1887_v18 = vcombine.high %v57_v12, %v61_v13 }
  0x6c   :  { %1383 = vmatmul.mubr.bf16.gmra.mrb[36].mxu1 %v1916_v19  ;;  %1254 = vmatprep.mubr.bf16.mxu0 %v1923_v20  ;;  %v1889_v19 = vcombine.high %v58_v14, %v62_v15  ;;  %v65_v20 = vld [vmem:[%s3236_s0 + $0x190] sm:$0xff]  ;;  %v3094_v14 = vld [vmem:[%s3237_s2] ss:$0 sm:$0xff] }
  0x6d   :  { %1390 = vmatprep.mubr.bf16.mxu1 %v1925_v21  ;;  %v69_v21 = vld [vmem:[%s3236_s0 + $0x1b0] sm:$0xff] }
  0x73   :  { %1255 = vmatmul.mubr.bf16.gmra.mrb[40].mxu0 %v1922_v26  ;;  %v1895_v26 = vcombine.high %v65_v20, %v69_v21 }
  0x74   :  { %1391 = vmatmul.mubr.bf16.gmra.mrb[40].mxu1 %v1924_v27  ;;  %1262 = vmatprep.mubr.bf16.mxu0 %v1931_v28  ;;  %v1897_v27 = vcombine.high %v66_v22, %v70_v23  ;;  %v73_v28 = vld [vmem:[%s3236_s0 + $0x1d0] sm:$0xff] }
  0x75   :  { %1398 = vmatprep.mubr.bf16.mxu1 %v1933_v29  ;;  %v77_v29 = vld [vmem:[%s3236_s0 + $0x1f0] sm:$0xff] }
  0x7b   :  { %1263 = vmatmul.mubr.bf16.gmra.mrb[44].mxu0 %v1930_v32  ;;  %v1894_v32 = vcombine.low %v65_v20, %v69_v21 }
  0x7c   :  { %1399 = vmatmul.mubr.bf16.gmra.mrb[44].mxu1 %v1932_v33  ;;  %1270 = vmatprep.mubr.bf16.mxu0 %v1939_v34  ;;  %v1896_v33 = vcombine.low %v66_v22, %v70_v23  ;;  %v1903_v34 = vcombine.high %v73_v28, %v77_v29 }
  0x7d   :  { %1406 = vmatprep.mubr.bf16.mxu1 %v1941_v35  ;;  %v1905_v35 = vcombine.high %v74_v30, %v78_v31 }
  0x83   :  { %1271 = vmatmul.mubr.bf16.gmra.mrb[48].mxu0 %v1938_v40  ;;  %v1902_v40 = vcombine.low %v73_v28, %v77_v29 }
  0x84   :  { %1407 = vmatmul.mubr.bf16.gmra.mrb[48].mxu1 %v1940_v41  ;;  %1446 = vmatprep.mubr.bf16.mxu0 %v1847_v42  ;;  %v1904_v41 = vcombine.low %v74_v30, %v78_v31  ;;  %v1911_v42 = vcombine.high %v81_v36, %v85_v37 }
  0x85   :  { %1582 = vmatprep.mubr.bf16.mxu1 %v1849_v43  ;;  %v1913_v43 = vcombine.high %v82_v38, %v86_v39 }
  0x8b   :  { %1447 = vmatmul.mubr.bf16.vlgmr.msra.gmra.mrb[52].mxu0 %v1846_v48  ;;  %v1910_v48 = vcombine.low %v81_v36, %v85_v37 }
  0x8c   :  { %1583 = vmatmul.mubr.bf16.vlgmr.msra.gmra.mrb[52].mxu1 %v1848_v49  ;;  %1454 = vmatprep.mubr.bf16.mxu0 %v1855_v50  ;;  %v1912_v49 = vcombine.low %v82_v38, %v86_v39  ;;  %v1919_v50 = vcombine.high %v89_v44, %v93_v45 }
  0x8d   :  { %1590 = vmatprep.mubr.bf16.mxu1 %v1857_v51  ;;  %v1921_v51 = vcombine.high %v90_v46, %v94_v47 }
  0x93   :  { %1455 = vmatmul.mubr.bf16.gmra.mrb[56].mxu0 %v1854_v56  ;;  %v1918_v56 = vcombine.low %v89_v44, %v93_v45 }
  0x94   :  { %1591 = vmatmul.mubr.bf16.gmra.mrb[56].mxu1 %v1856_v57  ;;  %1462 = vmatprep.mubr.bf16.mxu0 %v1863_v58  ;;  %v1920_v57 = vcombine.low %v90_v46, %v94_v47  ;;  %v1927_v58 = vcombine.high %v97_v52, %v101_v53 }
  0x95   :  { %1598 = vmatprep.mubr.bf16.mxu1 %v1865_v59  ;;  %v1929_v59 = vcombine.high %v98_v54, %v102_v55 }
  0x9b   :  { %1463 = vmatmul.mubr.bf16.gmra.mrb[60].mxu0 %v1862_v0  ;;  %v1926_v0 = vcombine.low %v97_v52, %v101_v53 }
  0x9c   :  { %1599 = vmatmul.mubr.bf16.gmra.mrb[60].mxu1 %v1864_v1  ;;  %1470 = vmatprep.mubr.bf16.mxu0 %v1871_v2  ;;  %v1928_v1 = vcombine.low %v98_v54, %v102_v55  ;;  %v1935_v2 = vcombine.high %v105_v60, %v109_v61 }
  0x9d   :  { %1606 = vmatprep.mubr.bf16.mxu1 %v1873_v3  ;;  %v1937_v3 = vcombine.high %v106_v62, %v110_v63 }
  0xa3   :  { %1471 = vmatmul.mubr.bf16.gmra.mrb[64].mxu0 %v1870_v8  ;;  %v1943_v8 = vcombine.high %v113_v4, %v113_v4 }
  0xa4   :  { %1607 = vmatmul.mubr.bf16.gmra.mrb[64].mxu1 %v1872_v9  ;;  %1478 = vmatprep.mubr.bf16.mxu0 %v1879_v10  ;;  %v1945_v9 = vcombine.high %v114_v5, %v114_v5  ;;  %v1942_v10 = vcombine.low %v113_v4, %v113_v4 }
  0xa5   :  { %1614 = vmatprep.mubr.bf16.mxu1 %v1881_v11  ;;  %v1944_v11 = vcombine.low %v114_v5, %v114_v5 }
  0xab   :  { %1479 = vmatmul.mubr.bf16.gmra.mrb[68].mxu0 %v1878_v16 }
  0xac   :  { %1615 = vmatmul.mubr.bf16.gmra.mrb[68].mxu1 %v1880_v17  ;;  %1486 = vmatprep.mubr.bf16.mxu0 %v1887_v18 }
  0xad   :  { %1622 = vmatprep.mubr.bf16.mxu1 %v1889_v19 }
  0xb3   :  { %1487 = vmatmul.mubr.bf16.gmra.mrb[72].mxu0 %v1886_v24 }
  0xb4   :  { %1623 = vmatmul.mubr.bf16.gmra.mrb[72].mxu1 %v1888_v25  ;;  %1494 = vmatprep.mubr.bf16.mxu0 %v1895_v26 }
  0xb5   :  { %1630 = vmatprep.mubr.bf16.mxu1 %v1897_v27 }
  0xbb   :  { %1495 = vmatmul.mubr.bf16.gmra.mrb[76].mxu0 %v1894_v32 }
  0xbc   :  { %1631 = vmatmul.mubr.bf16.gmra.mrb[76].mxu1 %v1896_v33  ;;  %1502 = vmatprep.mubr.bf16.mxu0 %v1903_v34 }
  0xbd   :  { %1638 = vmatprep.mubr.bf16.mxu1 %v1905_v35 }
  0xc3   :  { %1503 = vmatmul.mubr.bf16.gmra.mrb[80].mxu0 %v1902_v40 }
  0xc4   :  { %1639 = vmatmul.mubr.bf16.gmra.mrb[80].mxu1 %v1904_v41  ;;  %1510 = vmatprep.mubr.bf16.mxu0 %v1911_v42 }
  0xc5   :  { %1646 = vmatprep.mubr.bf16.mxu1 %v1913_v43 }
  0xcb   :  { %1511 = vmatmul.mubr.bf16.gmra.mrb[84].mxu0 %v1910_v48 }
  0xcc   :  { %1647 = vmatmul.mubr.bf16.gmra.mrb[84].mxu1 %v1912_v49  ;;  %1518 = vmatprep.mubr.bf16.mxu0 %v1919_v50 }
  0xcd   :  { %1654 = vmatprep.mubr.bf16.mxu1 %v1921_v51 }
  0xd3   :  { %1519 = vmatmul.mubr.bf16.gmra.mrb[88].mxu0 %v1918_v56 }
  0xd4   :  { %1655 = vmatmul.mubr.bf16.gmra.mrb[88].mxu1 %v1920_v57  ;;  %1526 = vmatprep.mubr.bf16.mxu0 %v1927_v58 }
  0xd5   :  { %1662 = vmatprep.mubr.bf16.mxu1 %v1929_v59 }
  0xdb   :  { %1527 = vmatmul.mubr.bf16.gmra.mrb[92].mxu0 %v1926_v0 }
  0xdc   :  { %1663 = vmatmul.mubr.bf16.gmra.mrb[92].mxu1 %v1928_v1  ;;  %1534 = vmatprep.mubr.bf16.mxu0 %v1935_v2 }
  0xdd   :  { %1670 = vmatprep.mubr.bf16.mxu1 %v1937_v3 }
  0xe3   :  { %1535 = vmatmul.mubr.bf16.gmra.mrb[96].mxu0 %v1934_v6 }
  0xe4   :  { %1671 = vmatmul.mubr.bf16.gmra.mrb[96].mxu1 %v1936_v7  ;;  %1542 = vmatprep.mubr.bf16.mxu0 %v1943_v8 }
  0xe5   :  { %1678 = vmatprep.mubr.bf16.mxu1 %v1945_v9 }
  0xeb   :  { %1543 = vmatmul.mubr.bf16.gmra.mrb[100].mxu0 %v1942_v10 }
  0xec   :  { %1679 = vmatmul.mubr.bf16.gmra.mrb[100].mxu1 %v1944_v11 }
  0xf6   :  { %v2147_v12 = vpop.f32.mrb[0].mxu0 }
  0xf7   :  { %v2241_v13 = vpop.f32.mrb[0].mxu1  ;;  %v2148_v15 = vpop.f32.mrb[1].mxu0 }
  0xf8   :  { %v2149_v16 = vadd.f32 %v2148_v15, %v2147_v12  ;;  %v2242_v17 = vpop.f32.mrb[1].mxu1  ;;  %v2150_v18 = vpop.f32.mrb[2].mxu0 }
  0xf9   :  { %v2243_v19 = vadd.f32 %v2242_v17, %v2241_v13  ;;  %v2244_v20 = vpop.f32.mrb[2].mxu1  ;;  %v2151_v21 = vpop.f32.mrb[3].mxu0 }
  0xfa   :  { %v1177_v22 = vadd.f32 %v2149_v16, %v3094_v14  ;;  %v2152_v23 = vadd.f32 %v2151_v21, %v2150_v18  ;;  %v2245_v24 = vpop.f32.mrb[3].mxu1 }
  0xfb   :  { %v2246_v25 = vadd.f32 %v2245_v24, %v2244_v20 }
  0xfc   :  { %v3097_v26 = vadd.f32 %v2243_v19, %v1177_v22  ;;  %v1180_v27 = vadd.f32 %v2152_v23, %v3094_v14 }
  0xfe   :  { %v3100_v28 = vadd.f32 %v2246_v25, %v1180_v27  ;;  %v2153_v29 = vpop.f32.mrb[4].mxu0 }
  0xff   :  { %v2247_v30 = vpop.f32.mrb[4].mxu1  ;;  %v2154_v31 = vpop.f32.mrb[5].mxu0 }
 0x100   :  { %v2155_v32 = vadd.f32 %v2154_v31, %v2153_v29  ;;  %v2248_v33 = vpop.f32.mrb[5].mxu1  ;;  %v2156_v34 = vpop.f32.mrb[6].mxu0 }
 0x101   :  { %v2249_v35 = vadd.f32 %v2248_v33, %v2247_v30  ;;  %v2250_v36 = vpop.f32.mrb[6].mxu1  ;;  %v2157_v37 = vpop.f32.mrb[7].mxu0 }
 0x102   :  { %v1185_v38 = vadd.f32 %v2155_v32, %v3094_v14  ;;  %v2158_v39 = vadd.f32 %v2157_v37, %v2156_v34  ;;  %v2251_v40 = vpop.f32.mrb[7].mxu1 }
 0x103   :  { %v2252_v41 = vadd.f32 %v2251_v40, %v2250_v36 }
 0x104   :  { %v3103_v42 = vadd.f32 %v2249_v35, %v1185_v38  ;;  %v1188_v43 = vadd.f32 %v2158_v39, %v3094_v14 }
 0x106   :  { %v3106_v44 = vadd.f32 %v2252_v41, %v1188_v43  ;;  %v2159_v45 = vpop.f32.mrb[8].mxu0 }
 0x107   :  { %v2253_v46 = vpop.f32.mrb[8].mxu1  ;;  %v2160_v47 = vpop.f32.mrb[9].mxu0 }
 0x108   :  { %v2161_v48 = vadd.f32 %v2160_v47, %v2159_v45  ;;  %v2254_v49 = vpop.f32.mrb[9].mxu1  ;;  %v2162_v50 = vpop.f32.mrb[10].mxu0 }
 0x109   :  { %v2255_v51 = vadd.f32 %v2254_v49, %v2253_v46  ;;  %v2256_v52 = vpop.f32.mrb[10].mxu1  ;;  %v2163_v53 = vpop.f32.mrb[11].mxu0 }
 0x10a   :  { %v1193_v54 = vadd.f32 %v2161_v48, %v3094_v14  ;;  %v2164_v55 = vadd.f32 %v2163_v53, %v2162_v50  ;;  %v2257_v56 = vpop.f32.mrb[11].mxu1 }
 0x10b   :  { %v2258_v57 = vadd.f32 %v2257_v56, %v2256_v52 }
 0x10c   :  { %v3109_v58 = vadd.f32 %v2255_v51, %v1193_v54  ;;  %v1196_v59 = vadd.f32 %v2164_v55, %v3094_v14 }
 0x10e   :  { %v3112_v60 = vadd.f32 %v2258_v57, %v1196_v59  ;;  %v2165_v61 = vpop.f32.mrb[12].mxu0 }
 0x10f   :  { %v2259_v62 = vpop.f32.mrb[12].mxu1  ;;  %v2166_v63 = vpop.f32.mrb[13].mxu0 }
 0x110   :  { %v2167_v0 = vadd.f32 %v2166_v63, %v2165_v61  ;;  %v2260_v1 = vpop.f32.mrb[13].mxu1  ;;  %v2168_v2 = vpop.f32.mrb[14].mxu0 }
 0x111   :  { %v2261_v3 = vadd.f32 %v2260_v1, %v2259_v62  ;;  %v2262_v4 = vpop.f32.mrb[14].mxu1  ;;  %v2169_v5 = vpop.f32.mrb[15].mxu0 }
 0x112   :  { %v1201_v6 = vadd.f32 %v2167_v0, %v3094_v14  ;;  %v2170_v7 = vadd.f32 %v2169_v5, %v2168_v2  ;;  %v2263_v8 = vpop.f32.mrb[15].mxu1 }
 0x113   :  { %v2264_v9 = vadd.f32 %v2263_v8, %v2262_v4 }
 0x114   :  { %v3115_v10 = vadd.f32 %v2261_v3, %v1201_v6  ;;  %v1204_v11 = vadd.f32 %v2170_v7, %v3094_v14 }
 0x116   :  { %v3118_v12 = vadd.f32 %v2264_v9, %v1204_v11  ;;  %v2171_v13 = vpop.f32.mrb[16].mxu0 }
 0x117   :  { %v2265_v15 = vpop.f32.mrb[16].mxu1  ;;  %v2172_v16 = vpop.f32.mrb[17].mxu0 }
 0x118   :  { %v2173_v17 = vadd.f32 %v2172_v16, %v2171_v13  ;;  %v2266_v18 = vpop.f32.mrb[17].mxu1  ;;  %v2174_v19 = vpop.f32.mrb[18].mxu0 }
 0x119   :  { %v2267_v20 = vadd.f32 %v2266_v18, %v2265_v15  ;;  %v2268_v21 = vpop.f32.mrb[18].mxu1  ;;  %v2175_v22 = vpop.f32.mrb[19].mxu0 }
 0x11a   :  { %v1209_v23 = vadd.f32 %v2173_v17, %v3094_v14  ;;  %v2176_v24 = vadd.f32 %v2175_v22, %v2174_v19  ;;  %v2269_v25 = vpop.f32.mrb[19].mxu1 }
 0x11b   :  { %v2270_v27 = vadd.f32 %v2269_v25, %v2268_v21 }
 0x11c   :  { %v3121_v29 = vadd.f32 %v2267_v20, %v1209_v23  ;;  %v1212_v30 = vadd.f32 %v2176_v24, %v3094_v14 }
 0x11e   :  { %v3124_v31 = vadd.f32 %v2270_v27, %v1212_v30  ;;  %v2177_v32 = vpop.f32.mrb[20].mxu0 }
 0x11f   :  { %v2271_v33 = vpop.f32.mrb[20].mxu1  ;;  %v2178_v34 = vpop.f32.mrb[21].mxu0 }
 0x120   :  { %v2179_v35 = vadd.f32 %v2178_v34, %v2177_v32  ;;  %v2272_v36 = vpop.f32.mrb[21].mxu1  ;;  %v2180_v37 = vpop.f32.mrb[22].mxu0 }
 0x121   :  { %v2273_v38 = vadd.f32 %v2272_v36, %v2271_v33  ;;  %v2274_v39 = vpop.f32.mrb[22].mxu1  ;;  %v2181_v40 = vpop.f32.mrb[23].mxu0 }
 0x122   :  { %v1217_v41 = vadd.f32 %v2179_v35, %v3094_v14  ;;  %v2182_v43 = vadd.f32 %v2181_v40, %v2180_v37  ;;  %v2275_v45 = vpop.f32.mrb[23].mxu1 }
 0x123   :  { %v2276_v46 = vadd.f32 %v2275_v45, %v2274_v39 }
 0x124   :  { %v3127_v47 = vadd.f32 %v2273_v38, %v1217_v41  ;;  %v1220_v48 = vadd.f32 %v2182_v43, %v3094_v14 }
 0x126   :  { %v3130_v49 = vadd.f32 %v2276_v46, %v1220_v48  ;;  %v2183_v50 = vpop.f32.mrb[24].mxu0 }
 0x127   :  { %v2277_v51 = vpop.f32.mrb[24].mxu1  ;;  %v2184_v52 = vpop.f32.mrb[25].mxu0 }
 0x128   :  { %v2185_v53 = vadd.f32 %v2184_v52, %v2183_v50  ;;  %v2278_v54 = vpop.f32.mrb[25].mxu1  ;;  %v2186_v55 = vpop.f32.mrb[26].mxu0 }
 0x129   :  { %v2279_v56 = vadd.f32 %v2278_v54, %v2277_v51  ;;  %v2280_v57 = vpop.f32.mrb[26].mxu1  ;;  %v2187_v59 = vpop.f32.mrb[27].mxu0 }
 0x12a   :  { %v1225_v61 = vadd.f32 %v2185_v53, %v3094_v14  ;;  %v2188_v62 = vadd.f32 %v2187_v59, %v2186_v55  ;;  %v2281_v63 = vpop.f32.mrb[27].mxu1 }
 0x12b   :  { %v2282_v0 = vadd.f32 %v2281_v63, %v2280_v57 }
 0x12c   :  { %v3133_v1 = vadd.f32 %v2279_v56, %v1225_v61  ;;  %v1228_v2 = vadd.f32 %v2188_v62, %v3094_v14 }
 0x12e   :  { %v3136_v3 = vadd.f32 %v2282_v0, %v1228_v2  ;;  %v2189_v4 = vpop.f32.mrb[28].mxu0 }
 0x12f   :  { %v2283_v5 = vpop.f32.mrb[28].mxu1  ;;  %v2190_v6 = vpop.f32.mrb[29].mxu0 }
 0x130   :  { %v2191_v7 = vadd.f32 %v2190_v6, %v2189_v4  ;;  %v2284_v8 = vpop.f32.mrb[29].mxu1  ;;  %v2192_v9 = vpop.f32.mrb[30].mxu0 }
 0x131   :  { %v2285_v11 = vadd.f32 %v2284_v8, %v2283_v5  ;;  %v2286_v13 = vpop.f32.mrb[30].mxu1  ;;  %v2193_v15 = vpop.f32.mrb[31].mxu0 }
 0x132   :  { %v1233_v16 = vadd.f32 %v2191_v7, %v3094_v14  ;;  %v2194_v17 = vadd.f32 %v2193_v15, %v2192_v9  ;;  %v2287_v18 = vpop.f32.mrb[31].mxu1 }
 0x133   :  { %v2288_v19 = vadd.f32 %v2287_v18, %v2286_v13 }
 0x134   :  { %v3139_v20 = vadd.f32 %v2285_v11, %v1233_v16  ;;  %v1236_v21 = vadd.f32 %v2194_v17, %v3094_v14 }
 0x136   :  { %v3142_v22 = vadd.f32 %v2288_v19, %v1236_v21  ;;  %v2195_v23 = vpop.f32.mrb[32].mxu0 }
 0x137   :  { %v2289_v24 = vpop.f32.mrb[32].mxu1  ;;  %v2196_v25 = vpop.f32.mrb[33].mxu0 }
 0x138   :  { %v2197_v27 = vadd.f32 %v2196_v25, %v2195_v23  ;;  %v2290_v30 = vpop.f32.mrb[33].mxu1  ;;  %v2198_v32 = vpop.f32.mrb[34].mxu0 }
 0x139   :  { %v2291_v33 = vadd.f32 %v2290_v30, %v2289_v24  ;;  %v2292_v34 = vpop.f32.mrb[34].mxu1  ;;  %v2199_v35 = vpop.f32.mrb[35].mxu0 }
 0x13a   :  { %v1241_v36 = vadd.f32 %v2197_v27, %v3094_v14  ;;  %v2200_v37 = vadd.f32 %v2199_v35, %v2198_v32  ;;  %v2293_v38 = vpop.f32.mrb[35].mxu1 }
 0x13b   :  { %v2294_v39 = vadd.f32 %v2293_v38, %v2292_v34 }
 0x13c   :  { %v3145_v40 = vadd.f32 %v2291_v33, %v1241_v36  ;;  %v1244_v41 = vadd.f32 %v2200_v37, %v3094_v14 }
 0x13e   :  { %v3148_v43 = vadd.f32 %v2294_v39, %v1244_v41  ;;  %v2201_v45 = vpop.f32.mrb[36].mxu0 }
 0x13f   :  { %v2295_v46 = vpop.f32.mrb[36].mxu1  ;;  %v2202_v48 = vpop.f32.mrb[37].mxu0 }
 0x140   :  { %v2203_v50 = vadd.f32 %v2202_v48, %v2201_v45  ;;  %v2296_v51 = vpop.f32.mrb[37].mxu1  ;;  %v2204_v52 = vpop.f32.mrb[38].mxu0 }
 0x141   :  { %v2297_v53 = vadd.f32 %v2296_v51, %v2295_v46  ;;  %v2298_v54 = vpop.f32.mrb[38].mxu1  ;;  %v2205_v55 = vpop.f32.mrb[39].mxu0 }
 0x142   :  { %v1249_v56 = vadd.f32 %v2203_v50, %v3094_v14  ;;  %v2206_v57 = vadd.f32 %v2205_v55, %v2204_v52  ;;  %v2299_v59 = vpop.f32.mrb[39].mxu1 }
 0x143   :  { %v2300_v61 = vadd.f32 %v2299_v59, %v2298_v54 }
 0x144   :  { %v3151_v62 = vadd.f32 %v2297_v53, %v1249_v56  ;;  %v1252_v63 = vadd.f32 %v2206_v57, %v3094_v14 }
 0x146   :  { %v3154_v0 = vadd.f32 %v2300_v61, %v1252_v63  ;;  %v2207_v2 = vpop.f32.mrb[40].mxu0 }
 0x147   :  { %v2301_v4 = vpop.f32.mrb[40].mxu1  ;;  %v2208_v5 = vpop.f32.mrb[41].mxu0 }
 0x148   :  { %v2209_v6 = vadd.f32 %v2208_v5, %v2207_v2  ;;  %v2302_v7 = vpop.f32.mrb[41].mxu1  ;;  %v2210_v8 = vpop.f32.mrb[42].mxu0 }
 0x149   :  { %v2303_v9 = vadd.f32 %v2302_v7, %v2301_v4  ;;  %v2304_v11 = vpop.f32.mrb[42].mxu1  ;;  %v2211_v13 = vpop.f32.mrb[43].mxu0 }
 0x14a   :  { %v1257_v15 = vadd.f32 %v2209_v6, %v3094_v14  ;;  %v2212_v16 = vadd.f32 %v2211_v13, %v2210_v8  ;;  %v2305_v17 = vpop.f32.mrb[43].mxu1 }
 0x14b   :  { %v2306_v18 = vadd.f32 %v2305_v17, %v2304_v11 }
 0x14c   :  { %v3157_v19 = vadd.f32 %v2303_v9, %v1257_v15  ;;  %v1260_v21 = vadd.f32 %v2212_v16, %v3094_v14 }
 0x14e   :  { %v3160_v23 = vadd.f32 %v2306_v18, %v1260_v21  ;;  %v2213_v24 = vpop.f32.mrb[44].mxu0 }
 0x14f   :  { %v2307_v25 = vpop.f32.mrb[44].mxu1  ;;  %v2214_v27 = vpop.f32.mrb[45].mxu0 }
 0x150   :  { %v2215_v30 = vadd.f32 %v2214_v27, %v2213_v24  ;;  %v2308_v32 = vpop.f32.mrb[45].mxu1  ;;  %v2216_v33 = vpop.f32.mrb[46].mxu0 }
 0x151   :  { %v2309_v34 = vadd.f32 %v2308_v32, %v2307_v25  ;;  %v2310_v35 = vpop.f32.mrb[46].mxu1  ;;  %v2217_v36 = vpop.f32.mrb[47].mxu0 }
 0x152   :  { %v1265_v37 = vadd.f32 %v2215_v30, %v3094_v14  ;;  %v2218_v38 = vadd.f32 %v2217_v36, %v2216_v33  ;;  %v2311_v39 = vpop.f32.mrb[47].mxu1 }
 0x153   :  { %v2312_v41 = vadd.f32 %v2311_v39, %v2310_v35 }
 0x154   :  { %v3163_v45 = vadd.f32 %v2309_v34, %v1265_v37  ;;  %v1268_v46 = vadd.f32 %v2218_v38, %v3094_v14 }
 0x156   :  { %v3166_v48 = vadd.f32 %v2312_v41, %v1268_v46  ;;  %v2219_v50 = vpop.f32.mrb[48].mxu0 }
 0x157   :  { %v2313_v51 = vpop.f32.mrb[48].mxu1  ;;  %v2220_v52 = vpop.f32.mrb[49].mxu0 }
 0x158   :  { %v2221_v53 = vadd.f32 %v2220_v52, %v2219_v50  ;;  %v2314_v54 = vpop.f32.mrb[49].mxu1  ;;  %v2222_v55 = vpop.f32.mrb[50].mxu0 }
 0x159   :  { %v2315_v56 = vadd.f32 %v2314_v54, %v2313_v51  ;;  %v2316_v57 = vpop.f32.mrb[50].mxu1  ;;  %v2223_v59 = vpop.f32.mrb[51].mxu0 }
 0x15a   :  { %v1273_v61 = vadd.f32 %v2221_v53, %v3094_v14  ;;  %v2317_v63 = vpop.f32.mrb[51].mxu1 }
 0x15c   :  { %v3169_v2 = vadd.f32 %v2315_v56, %v1273_v61 }
 0x15e   :  { %v2335_v4 = vpop.f32.mrb[52].mxu0 }
 0x15f   :  { %v2429_v5 = vpop.f32.mrb[52].mxu1  ;;  %v2336_v6 = vpop.f32.mrb[53].mxu0 }
 0x160   :  { %v2337_v7 = vadd.f32 %v2336_v6, %v2335_v4  ;;  %v2430_v8 = vpop.f32.mrb[53].mxu1  ;;  %v2338_v9 = vpop.f32.mrb[54].mxu0 }
 0x161   :  { %v2431_v11 = vadd.f32 %v2430_v8, %v2429_v5  ;;  %v2432_v13 = vpop.f32.mrb[54].mxu1  ;;  %v2339_v15 = vpop.f32.mrb[55].mxu0 }
 0x162   :  { %v1449_v16 = vadd.f32 %v2337_v7, %v3097_v26  ;;  %v2340_v17 = vadd.f32 %v2339_v15, %v2338_v9  ;;  %v2433_v18 = vpop.f32.mrb[55].mxu1 }
 0x163   :  { %v2434_v21 = vadd.f32 %v2433_v18, %v2432_v13 }
 0x164   :  { %v1585_v24 = vadd.f32 %v2431_v11, %v1449_v16  ;;  %v1452_v14 = vadd.f32 %v2340_v17, %v3100_v28 }
 0x166   :  { %v1588_v25 = vadd.f32 %v2434_v21, %v1452_v14  ;;  %v2341_v27 = vpop.f32.mrb[56].mxu0  ;;  %v1686_v33 = vmax.f32 %v1585_v24, 0.0 }
 0x167   :  { %v2435_v30 = vpop.f32.mrb[56].mxu1  ;;  %v2342_v32 = vpop.f32.mrb[57].mxu0 }
 0x168   :  { %v1687_v34 = vmax.f32 %v1588_v25, 0.0  ;;  %v2343_v35 = vadd.f32 %v2342_v32, %v2341_v27  ;;  %v2436_v36 = vpop.f32.mrb[57].mxu1  ;;  %v2344_v37 = vpop.f32.mrb[58].mxu0 }
 0x169   :  { %v2437_v38 = vadd.f32 %v2436_v36, %v2435_v30  ;;  %v2438_v39 = vpop.f32.mrb[58].mxu1  ;;  %v2345_v41 = vpop.f32.mrb[59].mxu0 }
 0x16a   :  { %v2063_v46 = vpack.c.bf16 %v1687_v34, %v1686_v33  ;;  %v1457_v26 = vadd.f32 %v2343_v35, %v3103_v42  ;;  %v2346_v50 = vadd.f32 %v2345_v41, %v2344_v37  ;;  %v2439_v51 = vpop.f32.mrb[59].mxu1 }
 0x16b   :  { %v2440_v52 = vadd.f32 %v2439_v51, %v2438_v39 }
 0x16c   :  { %2064 = vst [vmem:[%s3238_s3] sm:$0xff] %v2063_v46   ;;  %v1593_v28 = vadd.f32 %v2437_v38, %v1457_v26  ;;  %v1460_v53 = vadd.f32 %v2346_v50, %v3106_v44 }
 0x16e   :  { %v1596_v54 = vadd.f32 %v2440_v52, %v1460_v53  ;;  %v2347_v55 = vpop.f32.mrb[60].mxu0  ;;  %v1688_v59 = vmax.f32 %v1593_v28, 0.0 }
 0x16f   :  { %v2441_v56 = vpop.f32.mrb[60].mxu1  ;;  %v2348_v57 = vpop.f32.mrb[61].mxu0 }
 0x170   :  { %v1689_v61 = vmax.f32 %v1596_v54, 0.0  ;;  %v2349_v63 = vadd.f32 %v2348_v57, %v2347_v55  ;;  %v2442_v4 = vpop.f32.mrb[61].mxu1  ;;  %v2350_v5 = vpop.f32.mrb[62].mxu0 }
 0x171   :  { %v2443_v42 = vadd.f32 %v2442_v4, %v2441_v56  ;;  %v2444_v6 = vpop.f32.mrb[62].mxu1  ;;  %v2351_v7 = vpop.f32.mrb[63].mxu0 }
 0x172   :  { %v2068_v8 = vpack.c.bf16 %v1689_v61, %v1688_v59  ;;  %v1465_v9 = vadd.f32 %v2349_v63, %v3109_v58  ;;  %v2352_v11 = vadd.f32 %v2351_v7, %v2350_v5  ;;  %v2445_v13 = vpop.f32.mrb[63].mxu1 }
 0x173   :  { %v2446_v15 = vadd.f32 %v2445_v13, %v2444_v6 }
 0x174   :  { %2120 = vst [vmem:[%s3238_s3 + $0x8] sm:$0xff] %v2068_v8   ;;  %v1601_v44 = vadd.f32 %v2443_v42, %v1465_v9  ;;  %v1468_v16 = vadd.f32 %v2352_v11, %v3112_v60 }
 0x176   :  { %v1604_v17 = vadd.f32 %v2446_v15, %v1468_v16  ;;  %v2353_v18 = vpop.f32.mrb[64].mxu0  ;;  %v1690_v14 = vmax.f32 %v1601_v44, 0.0 }
 0x177   :  { %v2447_v21 = vpop.f32.mrb[64].mxu1  ;;  %v2354_v24 = vpop.f32.mrb[65].mxu0 }
 0x178   :  { %v1691_v25 = vmax.f32 %v1604_v17, 0.0  ;;  %v2355_v27 = vadd.f32 %v2354_v24, %v2353_v18  ;;  %v2448_v30 = vpop.f32.mrb[65].mxu1  ;;  %v2356_v32 = vpop.f32.mrb[66].mxu0 }
 0x179   :  { %v2449_v58 = vadd.f32 %v2448_v30, %v2447_v21  ;;  %v2450_v33 = vpop.f32.mrb[66].mxu1  ;;  %v2357_v34 = vpop.f32.mrb[67].mxu0 }
 0x17a   :  { %v2073_v35 = vpack.c.bf16 %v1691_v25, %v1690_v14  ;;  %v1473_v36 = vadd.f32 %v2355_v27, %v3115_v10  ;;  %v2358_v37 = vadd.f32 %v2357_v34, %v2356_v32  ;;  %v2451_v38 = vpop.f32.mrb[67].mxu1 }
 0x17b   :  { %v2452_v39 = vadd.f32 %v2451_v38, %v2450_v33 }
 0x17c   :  { %2121 = vst [vmem:[%s3238_s3 + $0x10] sm:$0xff] %v2073_v35   ;;  %v1609_v60 = vadd.f32 %v2449_v58, %v1473_v36  ;;  %v1476_v41 = vadd.f32 %v2358_v37, %v3118_v12 }
 0x17e   :  { %v1612_v46 = vadd.f32 %v2452_v39, %v1476_v41  ;;  %v2359_v26 = vpop.f32.mrb[68].mxu0  ;;  %v1692_v52 = vmax.f32 %v1609_v60, 0.0 }
 0x17f   :  { %v2453_v50 = vpop.f32.mrb[68].mxu1  ;;  %v2360_v51 = vpop.f32.mrb[69].mxu0 }
 0x180   :  { %v1693_v28 = vmax.f32 %v1612_v46, 0.0  ;;  %v2361_v53 = vadd.f32 %v2360_v51, %v2359_v26  ;;  %v2454_v54 = vpop.f32.mrb[69].mxu1  ;;  %v2362_v55 = vpop.f32.mrb[70].mxu0 }
 0x181   :  { %v2455_v10 = vadd.f32 %v2454_v54, %v2453_v50  ;;  %v2456_v56 = vpop.f32.mrb[70].mxu1  ;;  %v2363_v57 = vpop.f32.mrb[71].mxu0 }
 0x182   :  { %v2078_v59 = vpack.c.bf16 %v1693_v28, %v1692_v52  ;;  %v1481_v61 = vadd.f32 %v2361_v53, %v3121_v29  ;;  %v2364_v63 = vadd.f32 %v2363_v57, %v2362_v55  ;;  %v2457_v4 = vpop.f32.mrb[71].mxu1 }
 0x183   :  { %v2458_v5 = vadd.f32 %v2457_v4, %v2456_v56 }
 0x184   :  { %2122 = vst [vmem:[%s3238_s3 + $0x18] sm:$0xff] %v2078_v59   ;;  %v1617_v12 = vadd.f32 %v2455_v10, %v1481_v61  ;;  %v1484_v42 = vadd.f32 %v2364_v63, %v3124_v31 }
 0x186   :  { %v1620_v6 = vadd.f32 %v2458_v5, %v1484_v42  ;;  %v2365_v7 = vpop.f32.mrb[72].mxu0  ;;  %v1694_v11 = vmax.f32 %v1617_v12, 0.0 }
 0x187   :  { %v2459_v8 = vpop.f32.mrb[72].mxu1  ;;  %v2366_v9 = vpop.f32.mrb[73].mxu0 }
 0x188   :  { %v1695_v13 = vmax.f32 %v1620_v6, 0.0  ;;  %v2367_v15 = vadd.f32 %v2366_v9, %v2365_v7  ;;  %v2460_v44 = vpop.f32.mrb[73].mxu1  ;;  %v2368_v16 = vpop.f32.mrb[74].mxu0 }
 0x189   :  { %v2461_v29 = vadd.f32 %v2460_v44, %v2459_v8  ;;  %v2462_v17 = vpop.f32.mrb[74].mxu1  ;;  %v2369_v18 = vpop.f32.mrb[75].mxu0 }
 0x18a   :  { %v2083_v21 = vpack.c.bf16 %v1695_v13, %v1694_v11  ;;  %v1489_v24 = vadd.f32 %v2367_v15, %v3127_v47  ;;  %v2370_v14 = vadd.f32 %v2369_v18, %v2368_v16  ;;  %v2463_v25 = vpop.f32.mrb[75].mxu1 }
 0x18b   :  { %v2464_v27 = vadd.f32 %v2463_v25, %v2462_v17 }
 0x18c   :  { %2123 = vst [vmem:[%s3238_s3 + $0x20] sm:$0xff] %v2083_v21   ;;  %v1625_v31 = vadd.f32 %v2461_v29, %v1489_v24  ;;  %v1492_v30 = vadd.f32 %v2370_v14, %v3130_v49 }
 0x18e   :  { %v1628_v32 = vadd.f32 %v2464_v27, %v1492_v30  ;;  %v2371_v58 = vpop.f32.mrb[76].mxu0  ;;  %v1696_v35 = vmax.f32 %v1625_v31, 0.0 }
 0x18f   :  { %v2465_v33 = vpop.f32.mrb[76].mxu1  ;;  %v2372_v34 = vpop.f32.mrb[77].mxu0 }
 0x190   :  { %v1697_v36 = vmax.f32 %v1628_v32, 0.0  ;;  %v2373_v37 = vadd.f32 %v2372_v34, %v2371_v58  ;;  %v2466_v38 = vpop.f32.mrb[77].mxu1  ;;  %v2374_v39 = vpop.f32.mrb[78].mxu0 }
 0x191   :  { %v2467_v47 = vadd.f32 %v2466_v38, %v2465_v33  ;;  %v2468_v60 = vpop.f32.mrb[78].mxu1  ;;  %v2375_v41 = vpop.f32.mrb[79].mxu0 }
 0x192   :  { %v2088_v46 = vpack.c.bf16 %v1697_v36, %v1696_v35  ;;  %v1497_v26 = vadd.f32 %v2373_v37, %v3133_v1  ;;  %v2376_v50 = vadd.f32 %v2375_v41, %v2374_v39  ;;  %v2469_v51 = vpop.f32.mrb[79].mxu1 }
 0x193   :  { %v2470_v52 = vadd.f32 %v2469_v51, %v2468_v60 }
 0x194   :  { %2124 = vst [vmem:[%s3238_s3 + $0x28] sm:$0xff] %v2088_v46   ;;  %v1633_v49 = vadd.f32 %v2467_v47, %v1497_v26  ;;  %v1500_v28 = vadd.f32 %v2376_v50, %v3136_v3 }
 0x196   :  { %v1636_v53 = vadd.f32 %v2470_v52, %v1500_v28  ;;  %v2377_v54 = vpop.f32.mrb[80].mxu0  ;;  %v1698_v56 = vmax.f32 %v1633_v49, 0.0 }
 0x197   :  { %v2471_v55 = vpop.f32.mrb[80].mxu1  ;;  %v2378_v10 = vpop.f32.mrb[81].mxu0 }
 0x198   :  { %v1699_v57 = vmax.f32 %v1636_v53, 0.0  ;;  %v2379_v59 = vadd.f32 %v2378_v10, %v2377_v54  ;;  %v2472_v61 = vpop.f32.mrb[81].mxu1  ;;  %v2380_v63 = vpop.f32.mrb[82].mxu0 }
 0x199   :  { %v2473_v1 = vadd.f32 %v2472_v61, %v2471_v55  ;;  %v2474_v4 = vpop.f32.mrb[82].mxu1  ;;  %v2381_v5 = vpop.f32.mrb[83].mxu0 }
 0x19a   :  { %v2093_v12 = vpack.c.bf16 %v1699_v57, %v1698_v56  ;;  %v1505_v42 = vadd.f32 %v2379_v59, %v3139_v20  ;;  %v2382_v6 = vadd.f32 %v2381_v5, %v2380_v63  ;;  %v2475_v7 = vpop.f32.mrb[83].mxu1 }
 0x19b   :  { %v2476_v8 = vadd.f32 %v2475_v7, %v2474_v4 }
 0x19c   :  { %2125 = vst [vmem:[%s3238_s3 + $0x30] sm:$0xff] %v2093_v12   ;;  %v1641_v3 = vadd.f32 %v2473_v1, %v1505_v42  ;;  %v1508_v9 = vadd.f32 %v2382_v6, %v3142_v22 }
 0x19e   :  { %v1644_v11 = vadd.f32 %v2476_v8, %v1508_v9  ;;  %v2383_v13 = vpop.f32.mrb[84].mxu0  ;;  %v1700_v16 = vmax.f32 %v1641_v3, 0.0 }
 0x19f   :  { %v2477_v15 = vpop.f32.mrb[84].mxu1  ;;  %v2384_v44 = vpop.f32.mrb[85].mxu0 }
 0x1a0   :  { %v1701_v29 = vmax.f32 %v1644_v11, 0.0  ;;  %v2385_v17 = vadd.f32 %v2384_v44, %v2383_v13  ;;  %v2478_v18 = vpop.f32.mrb[85].mxu1  ;;  %v2386_v21 = vpop.f32.mrb[86].mxu0 }
 0x1a1   :  { %v2479_v20 = vadd.f32 %v2478_v18, %v2477_v15  ;;  %v2480_v24 = vpop.f32.mrb[86].mxu1  ;;  %v2387_v14 = vpop.f32.mrb[87].mxu0 }
 0x1a2   :  { %v2098_v25 = vpack.c.bf16 %v1701_v29, %v1700_v16  ;;  %v1513_v27 = vadd.f32 %v2385_v17, %v3145_v40  ;;  %v2388_v31 = vadd.f32 %v2387_v14, %v2386_v21  ;;  %v2481_v30 = vpop.f32.mrb[87].mxu1 }
 0x1a3   :  { %v2482_v32 = vadd.f32 %v2481_v30, %v2480_v24 }
 0x1a4   :  { %2126 = vst [vmem:[%s3238_s3 + $0x38] sm:$0xff] %v2098_v25   ;;  %v1649_v22 = vadd.f32 %v2479_v20, %v1513_v27  ;;  %v1516_v58 = vadd.f32 %v2388_v31, %v3148_v43 }
 0x1a6   :  { %v1652_v33 = vadd.f32 %v2482_v32, %v1516_v58  ;;  %v2389_v34 = vpop.f32.mrb[88].mxu0  ;;  %v1702_v37 = vmax.f32 %v1649_v22, 0.0 }
 0x1a7   :  { %v2483_v35 = vpop.f32.mrb[88].mxu1  ;;  %v2390_v36 = vpop.f32.mrb[89].mxu0 }
 0x1a8   :  { %v1703_v38 = vmax.f32 %v1652_v33, 0.0  ;;  %v2391_v39 = vadd.f32 %v2390_v36, %v2389_v34  ;;  %v2484_v47 = vpop.f32.mrb[89].mxu1  ;;  %v2392_v60 = vpop.f32.mrb[90].mxu0 }
 0x1a9   :  { %v2485_v40 = vadd.f32 %v2484_v47, %v2483_v35  ;;  %v2486_v41 = vpop.f32.mrb[90].mxu1  ;;  %v2393_v46 = vpop.f32.mrb[91].mxu0 }
 0x1aa   :  { %v2103_v26 = vpack.c.bf16 %v1703_v38, %v1702_v37  ;;  %v1521_v50 = vadd.f32 %v2391_v39, %v3151_v62  ;;  %v2394_v51 = vadd.f32 %v2393_v46, %v2392_v60  ;;  %v2487_v52 = vpop.f32.mrb[91].mxu1 }
 0x1ab   :  { %v2488_v49 = vadd.f32 %v2487_v52, %v2486_v41 }
 0x1ac   :  { %2127 = vst [vmem:[%s3238_s3 + $0x40] sm:$0xff] %v2103_v26   ;;  %v1657_v43 = vadd.f32 %v2485_v40, %v1521_v50  ;;  %v1524_v28 = vadd.f32 %v2394_v51, %v3154_v0 }
 0x1ae   :  { %v1660_v53 = vadd.f32 %v2488_v49, %v1524_v28  ;;  %v2395_v54 = vpop.f32.mrb[92].mxu0  ;;  %v1704_v56 = vmax.f32 %v1657_v43, 0.0 }
 0x1af   :  { %v2489_v55 = vpop.f32.mrb[92].mxu1  ;;  %v2396_v10 = vpop.f32.mrb[93].mxu0 }
 0x1b0   :  { %v1705_v57 = vmax.f32 %v1660_v53, 0.0  ;;  %v2397_v59 = vadd.f32 %v2396_v10, %v2395_v54  ;;  %v2490_v61 = vpop.f32.mrb[93].mxu1  ;;  %v2398_v63 = vpop.f32.mrb[94].mxu0 }
 0x1b1   :  { %v2491_v62 = vadd.f32 %v2490_v61, %v2489_v55  ;;  %v2492_v1 = vpop.f32.mrb[94].mxu1  ;;  %v2399_v4 = vpop.f32.mrb[95].mxu0 }
 0x1b2   :  { %v2108_v5 = vpack.c.bf16 %v1705_v57, %v1704_v56  ;;  %v1529_v12 = vadd.f32 %v2397_v59, %v3157_v19  ;;  %v2400_v42 = vadd.f32 %v2399_v4, %v2398_v63  ;;  %v2493_v6 = vpop.f32.mrb[95].mxu1 }
 0x1b3   :  { %v2494_v7 = vadd.f32 %v2493_v6, %v2492_v1 }
 0x1b4   :  { %2128 = vst [vmem:[%s3238_s3 + $0x48] sm:$0xff] %v2108_v5   ;;  %v1665_v0 = vadd.f32 %v2491_v62, %v1529_v12  ;;  %v1532_v8 = vadd.f32 %v2400_v42, %v3160_v23 }
 0x1b6   :  { %v1668_v3 = vadd.f32 %v2494_v7, %v1532_v8  ;;  %v2401_v9 = vpop.f32.mrb[96].mxu0  ;;  %v1706_v15 = vmax.f32 %v1665_v0, 0.0 }
 0x1b7   :  { %v2495_v11 = vpop.f32.mrb[96].mxu1  ;;  %v2402_v13 = vpop.f32.mrb[97].mxu0 }
 0x1b8   :  { %v1707_v44 = vmax.f32 %v1668_v3, 0.0  ;;  %v2403_v16 = vadd.f32 %v2402_v13, %v2401_v9  ;;  %v2496_v29 = vpop.f32.mrb[97].mxu1  ;;  %v2404_v17 = vpop.f32.mrb[98].mxu0 }
 0x1b9   :  { %v2497_v19 = vadd.f32 %v2496_v29, %v2495_v11  ;;  %v2498_v18 = vpop.f32.mrb[98].mxu1  ;;  %v2405_v21 = vpop.f32.mrb[99].mxu0 }
 0x1ba   :  { %v2113_v20 = vpack.c.bf16 %v1707_v44, %v1706_v15  ;;  %v1537_v24 = vadd.f32 %v2403_v16, %v3163_v45  ;;  %v2406_v14 = vadd.f32 %v2405_v21, %v2404_v17  ;;  %v2499_v25 = vpop.f32.mrb[99].mxu1 }
 0x1bb   :  { %v2500_v27 = vadd.f32 %v2499_v25, %v2498_v18 }
 0x1bc   :  { %2129 = vst [vmem:[%s3238_s3 + $0x50] sm:$0xff] %v2113_v20   ;;  %v1673_v23 = vadd.f32 %v2497_v19, %v1537_v24  ;;  %v1540_v31 = vadd.f32 %v2406_v14, %v3166_v48 }
 0x1be   :  { %v1676_v30 = vadd.f32 %v2500_v27, %v1540_v31  ;;  %v2407_v32 = vpop.f32.mrb[100].mxu0  ;;  %v1708_v33 = vmax.f32 %v1673_v23, 0.0 }
 0x1bf   :  { %v2501_v22 = vpop.f32.mrb[100].mxu1  ;;  %v2408_v58 = vpop.f32.mrb[101].mxu0 }
 0x1c0   :  { %v1709_v34 = vmax.f32 %v1676_v30, 0.0  ;;  %v2409_v35 = vadd.f32 %v2408_v58, %v2407_v32  ;;  %v2502_v36 = vpop.f32.mrb[101].mxu1  ;;  %v2410_v37 = vpop.f32.mrb[102].mxu0 }
 0x1c1   :  { %v2503_v45 = vadd.f32 %v2502_v36, %v2501_v22  ;;  %v2504_v38 = vpop.f32.mrb[102].mxu1  ;;  %v2411_v39 = vpop.f32.mrb[103].mxu0 }
 0x1c2   :  { %v2118_v47 = vpack.c.bf16 %v1709_v34, %v1708_v33  ;;  %v1545_v60 = vadd.f32 %v2409_v35, %v3169_v2  ;;  %v2505_v40 = vpop.f32.mrb[103].mxu1 }
 0x1c4   :  { %2130 = vst [vmem:[%s3238_s3 + $0x58] sm:$0xff] %v2118_v47   ;;  %v1681_v48 = vadd.f32 %v2503_v45, %v1545_v60 }
 0x1c6   :  { %v1710_v41 = vmax.f32 %v1681_v48, 0.0 }
 0x1c8   :  { %v2059_v46 = vpack.c.bf16 %v1710_v41, %v1710_v41 }
 0x1ca   :  { %1836 = vst [vmem:[%s3238_s3 + $0x60] sm:$0xf] %v2059_v46 }

// kernel: network_forward.5
= control target key start
LH: loop header
LB: loop body
LE: loop exit
PB: predicated region body
PF: predicated region fallthrough
CT: control target
= control target key end

     0   :  { %vm1192_vm0 = vcmask 1040384   ;;  %vm1193_vm1 = vsmask.f32 256  ;;  %s2060_s1 = inlined_call_operand.vmem [shape: bf16[1024,128], index: 1, kind: input, shape index: {}]   ;;  %s2061_s0 = inlined_call_operand.vmem [shape: bf16[81,1024], index: 0, kind: input, shape index: {}]   ;;  %s2062_s2 = inlined_call_operand.vmem [shape: f32[1,128], index: 2, kind: input, shape index: {}]   ;;  %s2063_s3 = inlined_call_operand.vmem [shape: bf16[81,128], index: 3, kind: output, shape index: {}]  }
   0x1   :  { %v1574_v0 = vld [vmem:[%s2060_s1 + $0x40] sm:$0xff]   ;;  %v1578_v4 = vld [vmem:[%s2060_s1 + $0x48] sm:$0xff]   ;;  %v1582_v8 = vld [vmem:[%s2060_s1 + $0x50] sm:$0xff]  }
   0x2   :  { %v1575_v1 = vld [vmem:[%s2060_s1 + $0xc0] sm:$0xff]   ;;  %1366 = vmatprep.subr.bf16.mxu0 %v1574_v0  ;;  %v1579_v5 = vld [vmem:[%s2060_s1 + $0xc8] sm:$0xff]   ;;  %v1583_v9 = vld [vmem:[%s2060_s1 + $0xd0] sm:$0xff]  }
   0x3   :  { %v1576_v2 = vld [vmem:[%s2060_s1] sm:$0xff]   ;;  %1418 = vmatprep.subr.bf16.mxu1 %v1575_v1  ;;  %v1580_v6 = vld [vmem:[%s2060_s1 + $0x8] sm:$0xff]   ;;  %v1584_v10 = vld [vmem:[%s2060_s1 + $0x10] sm:$0xff]  }
   0x4   :  { %v1577_v3 = vld [vmem:[%s2060_s1 + $0x80] sm:$0xff]   ;;  %1367 = vmatpush3.bf16.msra.mxu0 %v1576_v2  ;;  %v1581_v7 = vld [vmem:[%s2060_s1 + $0x88] sm:$0xff]   ;;  %v1585_v11 = vld [vmem:[%s2060_s1 + $0x90] sm:$0xff]  }
   0x5   :  { %1419 = vmatpush3.bf16.msra.mxu1 %v1577_v3  ;;  %1368 = vmatprep.subr.bf16.mxu0 %v1578_v4  ;;  %v1586_v12 = vld [vmem:[%s2060_s1 + $0x58] sm:$0xff]   ;;  %v1590_v16 = vld [vmem:[%s2060_s1 + $0x60] sm:$0xff]   ;;  %v1594_v20 = vld [vmem:[%s2060_s1 + $0x68] sm:$0xff]  }
   0x6   :  { %1420 = vmatprep.subr.bf16.mxu1 %v1579_v5  ;;  %v1587_v13 = vld [vmem:[%s2060_s1 + $0xd8] sm:$0xff]   ;;  %v1591_v17 = vld [vmem:[%s2060_s1 + $0xe0] sm:$0xff]   ;;  %v1595_v21 = vld [vmem:[%s2060_s1 + $0xe8] sm:$0xff]  }
   0x7   :  { %v1588_v14 = vld [vmem:[%s2060_s1 + $0x18] sm:$0xff]   ;;  %v1592_v18 = vld [vmem:[%s2060_s1 + $0x20] sm:$0xff]   ;;  %v1596_v22 = vld [vmem:[%s2060_s1 + $0x28] sm:$0xff]  }
   0x8   :  { %1369 = vmatpush3.bf16.msra.mxu0 %v1580_v6  ;;  %v1589_v15 = vld [vmem:[%s2060_s1 + $0x98] sm:$0xff]   ;;  %v1593_v19 = vld [vmem:[%s2060_s1 + $0xa0] sm:$0xff]   ;;  %v1597_v23 = vld [vmem:[%s2060_s1 + $0xa8] sm:$0xff]  }
   0x9   :  { %1421 = vmatpush3.bf16.msra.mxu1 %v1581_v7  ;;  %1370 = vmatprep.subr.bf16.mxu0 %v1582_v8  ;;  %v1598_v24 = vld [vmem:[%s2060_s1 + $0x70] sm:$0xff]   ;;  %v1602_v28 = vld [vmem:[%s2060_s1 + $0x78] sm:$0xff]   ;;  %v15_v32 = vld [vmem:[%s2061_s0] sm:$0xff] }
   0xa   :  { %1422 = vmatprep.subr.bf16.mxu1 %v1583_v9  ;;  %v1599_v25 = vld [vmem:[%s2060_s1 + $0xf0] sm:$0xff]   ;;  %v1603_v29 = vld [vmem:[%s2060_s1 + $0xf8] sm:$0xff]   ;;  %v19_v33 = vld [vmem:[%s2061_s0 + $0x20] sm:$0xff] }
   0xb   :  { %v1600_v26 = vld [vmem:[%s2060_s1 + $0x30] sm:$0xff]   ;;  %v1604_v30 = vld [vmem:[%s2060_s1 + $0x38] sm:$0xff]   ;;  %v16_v34 = vld [vmem:[%s2061_s0 + $0x8] sm:$0xff]  ;;  %v1203_v35 = vcombine.low %v15_v32, %v19_v33  ;;  %v1204_v36 = vcombine.high %v15_v32, %v19_v33 }
   0xc   :  { %1371 = vmatpush3.bf16.msra.mxu0 %v1584_v10  ;;  %v1601_v27 = vld [vmem:[%s2060_s1 + $0xb0] sm:$0xff]   ;;  %v1605_v31 = vld [vmem:[%s2060_s1 + $0xb8] sm:$0xff]   ;;  %v20_v37 = vld [vmem:[%s2061_s0 + $0x28] sm:$0xff] }
   0xd   :  { %1423 = vmatpush3.bf16.msra.mxu1 %v1585_v11  ;;  %1372 = vmatprep.subr.bf16.mxu0 %v1586_v12  ;;  %v1205_v38 = vcombine.low %v16_v34, %v20_v37  ;;  %v1206_v39 = vcombine.high %v16_v34, %v20_v37  ;;  %v1606_v40 = vld [vmem:[%s2060_s1 + $0x140] sm:$0xff]   ;;  %v1610_v44 = vld [vmem:[%s2060_s1 + $0x148] sm:$0xff]   ;;  %v1614_v56 = vld [vmem:[%s2060_s1 + $0x150] sm:$0xff]  }
   0xe   :  { %1424 = vmatprep.subr.bf16.mxu1 %v1587_v13  ;;  %838 = vmatprep.mubr.bf16.mxu0 %v1204_v36  ;;  %v1607_v41 = vld [vmem:[%s2060_s1 + $0x100] sm:$0xff]   ;;  %v24_v48 = vld [vmem:[%s2061_s0 + $0x48] sm:$0xff]  ;;  %v1615_v57 = vld [vmem:[%s2060_s1 + $0x110] sm:$0xff]  }
   0xf   :  { %918 = vmatprep.mubr.bf16.mxu1 %v1206_v39  ;;  %v1608_v42 = vld [vmem:[%s2060_s1 + $0x1c0] sm:$0xff]   ;;  %v28_v49 = vld [vmem:[%s2061_s0 + $0x68] sm:$0xff]  ;;  %v1616_v58 = vld [vmem:[%s2060_s1 + $0x1d0] sm:$0xff]  }
  0x10   :  { %1373 = vmatpush3.bf16.msra.mxu0 %v1588_v14  ;;  %v1609_v43 = vld [vmem:[%s2060_s1 + $0x180] sm:$0xff]   ;;  %v1214_v50 = vcombine.high %v24_v48, %v28_v49  ;;  %v1611_v51 = vld [vmem:[%s2060_s1 + $0x108] sm:$0xff]   ;;  %v1213_v53 = vcombine.low %v24_v48, %v28_v49  ;;  %v1617_v1 = vld [vmem:[%s2060_s1 + $0x190] sm:$0xff]  }
  0x11   :  { %1425 = vmatpush3.bf16.msra.mxu1 %v1589_v15  ;;  %1374 = vmatprep.subr.bf16.mxu0 %v1590_v16  ;;  %v23_v45 = vld [vmem:[%s2061_s0 + $0x40] sm:$0xff]  ;;  %v1612_v54 = vld [vmem:[%s2060_s1 + $0x1c8] sm:$0xff]   ;;  %v1618_v3 = vld [vmem:[%s2060_s1 + $0x158] sm:$0xff]  }
  0x12   :  { %1426 = vmatprep.subr.bf16.mxu1 %v1591_v17  ;;  %v27_v46 = vld [vmem:[%s2061_s0 + $0x60] sm:$0xff]  ;;  %v1613_v55 = vld [vmem:[%s2060_s1 + $0x188] sm:$0xff]   ;;  %v1619_v5 = vld [vmem:[%s2060_s1 + $0x118] sm:$0xff]  }
  0x13   :  { %v1212_v47 = vcombine.high %v23_v45, %v27_v46  ;;  %v1211_v52 = vcombine.low %v23_v45, %v27_v46  ;;  %v31_v59 = vld [vmem:[%s2061_s0 + $0x80] sm:$0xff]  ;;  %v32_v61 = vld [vmem:[%s2061_s0 + $0x88] sm:$0xff]  ;;  %v1620_v6 = vld [vmem:[%s2060_s1 + $0x1d8] sm:$0xff]  }
  0x14   :  { %1375 = vmatpush3.bf16.msra.mxu0 %v1592_v18  ;;  %v35_v60 = vld [vmem:[%s2061_s0 + $0xa0] sm:$0xff]  ;;  %v36_v62 = vld [vmem:[%s2061_s0 + $0xa8] sm:$0xff]  ;;  %v1621_v7 = vld [vmem:[%s2060_s1 + $0x198] sm:$0xff]  }
  0x15   :  { %1427 = vmatpush3.bf16.msra.mxu1 %v1593_v19  ;;  %1376 = vmatprep.subr.bf16.mxu0 %v1594_v20  ;;  %v1220_v63 = vcombine.high %v31_v59, %v35_v60  ;;  %v1222_v0 = vcombine.high %v32_v61, %v36_v62  ;;  %v1219_v2 = vcombine.low %v31_v59, %v35_v60  ;;  %v39_v8 = vld [vmem:[%s2061_s0 + $0xc0] sm:$0xff]  ;;  %v40_v10 = vld [vmem:[%s2061_s0 + $0xc8] sm:$0xff]  ;;  %v1631_v32 = vld [vmem:[%s2060_s1 + $0x130] sm:$0xff]  }
  0x16   :  { %1428 = vmatprep.subr.bf16.mxu1 %v1595_v21  ;;  %v1221_v4 = vcombine.low %v32_v61, %v36_v62  ;;  %v43_v9 = vld [vmem:[%s2061_s0 + $0xe0] sm:$0xff]  ;;  %v44_v12 = vld [vmem:[%s2061_s0 + $0xe8] sm:$0xff]  ;;  %v1632_v34 = vld [vmem:[%s2060_s1 + $0x1f0] sm:$0xff]  }
  0x17   :  { %v1228_v11 = vcombine.high %v39_v8, %v43_v9  ;;  %v1230_v13 = vcombine.high %v40_v10, %v44_v12  ;;  %v1622_v14 = vld [vmem:[%s2060_s1 + $0x160] sm:$0xff]   ;;  %v1227_v16 = vcombine.low %v39_v8, %v43_v9  ;;  %v1229_v18 = vcombine.low %v40_v10, %v44_v12  ;;  %v1626_v20 = vld [vmem:[%s2060_s1 + $0x168] sm:$0xff]   ;;  %v1635_v39 = vld [vmem:[%s2060_s1 + $0x1b0] sm:$0xff]  }
  0x18   :  { %1377 = vmatpush3.bf16.msra.mxu0 %v1596_v22  ;;  %v1623_v15 = vld [vmem:[%s2060_s1 + $0x120] sm:$0xff]   ;;  %v56_v37 = vld [vmem:[%s2061_s0 + $0x148] sm:$0x11]  ;;  %v21_v45 = vld [vmem:[%s2061_s0 + $0x30] sm:$0xff] }
  0x19   :  { %1429 = vmatpush3.bf16.msra.mxu1 %v1597_v23  ;;  %1378 = vmatprep.subr.bf16.mxu0 %v1598_v24  ;;  %v1624_v17 = vld [vmem:[%s2060_s1 + $0x1e0] sm:$0xff]   ;;  %v48_v24 = vld [vmem:[%s2061_s0 + $0x108] sm:$0xff]  ;;  %v22_v48 = vld [vmem:[%s2061_s0 + $0x38] sm:$0xff]  ;;  %v1245_v49 = vcombine.low %v56_v37, %v56_v37 }
  0x1a   :  { %1430 = vmatprep.subr.bf16.mxu1 %v1599_v25  ;;  %v1625_v19 = vld [vmem:[%s2060_s1 + $0x1a0] sm:$0xff]   ;;  %v52_v25 = vld [vmem:[%s2061_s0 + $0x128] sm:$0xff]  ;;  %v33_v60 = vld [vmem:[%s2061_s0 + $0x90] sm:$0xff] }
  0x1b   :  { %v47_v21 = vld [vmem:[%s2061_s0 + $0x100] sm:$0xff]  ;;  %v1237_v33 = vcombine.low %v48_v24, %v52_v25  ;;  %v37_v61 = vld [vmem:[%s2061_s0 + $0xb0] sm:$0xff]  ;;  %v34_v62 = vld [vmem:[%s2061_s0 + $0x98] sm:$0xff] }
  0x1c   :  { %1379 = vmatpush3.bf16.msra.mxu0 %v1600_v26  ;;  %v51_v22 = vld [vmem:[%s2061_s0 + $0x120] sm:$0xff]  ;;  %v1238_v26 = vcombine.high %v48_v24, %v52_v25  ;;  %v1223_v8 = vcombine.low %v33_v60, %v37_v61  ;;  %v49_v12 = vld [vmem:[%s2061_s0 + $0x110] sm:$0xff]  ;;  %vm1194_vm2 = vmand %vm1192_vm0, %vm1193_vm1 }
  0x1d   :  { %1431 = vmatpush3.bf16.msra.mxu1 %v1601_v27  ;;  %1380 = vmatprep.subr.bf16.mxu0 %v1602_v28  ;;  %v1236_v23 = vcombine.high %v47_v21, %v51_v22  ;;  %v1627_v27 = vld [vmem:[%s2060_s1 + $0x128] sm:$0xff]  }
  0x1e   :  { %1432 = vmatprep.subr.bf16.mxu1 %v1603_v29  ;;  %v1628_v28 = vld [vmem:[%s2060_s1 + $0x1e8] sm:$0xff]  }
  0x1f   :  { %v1629_v29 = vld [vmem:[%s2060_s1 + $0x1a8] sm:$0xff]  }
  0x20   :  { %1381 = vmatpush3.bf16.msra.mxu0 %v1604_v30  ;;  %v1630_v30 = vld [vmem:[%s2060_s1 + $0x170] sm:$0xff]  }
  0x21   :  { %1433 = vmatpush3.bf16.msra.mxu1 %v1605_v31  ;;  %1470 = vmatprep.subr.bf16.mxu0 %v1606_v40  ;;  %v1235_v31 = vcombine.low %v47_v21, %v51_v22  ;;  %v1638_v40 = vld [vmem:[%s2060_s1 + $0x178] sm:$0xff]  }
  0x22   :  { %1522 = vmatprep.subr.bf16.mxu1 %v1608_v42  ;;  %v1640_v42 = vld [vmem:[%s2060_s1 + $0x1f8] sm:$0xff]  }
  0x23   :  { %839 = vmatmul.mubr.bf16.vlgmr.msra.gmra.mrb[0].mxu0 %v1203_v35  ;;  %v55_v35 = vld [vmem:[%s2061_s0 + $0x140] sm:$0x11]  ;;  %v58_v21 = vld [vmem:[%s2061_s0 + $0x158] sm:$0x11] }
  0x24   :  { %919 = vmatmul.mubr.bf16.vlgmr.msra.gmra.mrb[0].mxu1 %v1205_v38  ;;  %1471 = vmatpush3.bf16.msra.mxu0 %v1607_v41  ;;  %v1244_v36 = vcombine.high %v55_v35, %v55_v35  ;;  %v1246_v38 = vcombine.high %v56_v37, %v56_v37  ;;  %v1639_v41 = vld [vmem:[%s2060_s1 + $0x138] sm:$0xff]   ;;  %v1243_v46 = vcombine.low %v55_v35, %v55_v35 }
  0x25   :  { %1523 = vmatpush3.bf16.msra.mxu1 %v1609_v43  ;;  %1472 = vmatprep.subr.bf16.mxu0 %v1610_v44  ;;  %v1641_v43 = vld [vmem:[%s2060_s1 + $0x1b8] sm:$0xff]   ;;  %v17_v44 = vld [vmem:[%s2061_s0 + $0x10] sm:$0xff]  ;;  %v1250_v25 = vcombine.high %v58_v21, %v58_v21 }
  0x26   :  { %846 = vmatprep.mubr.bf16.mxu0 %v1212_v47  ;;  %926 = vmatprep.mubr.bf16.mxu1 %v1214_v50  ;;  %v18_v47 = vld [vmem:[%s2061_s0 + $0x18] sm:$0xff]  ;;  %v1208_v50 = vcombine.high %v17_v44, %v21_v45 }
  0x27   :  { %1524 = vmatprep.subr.bf16.mxu1 %v1612_v54  ;;  %v26_v54 = vld [vmem:[%s2061_s0 + $0x58] sm:$0xff] }
  0x28   :  { %1473 = vmatpush3.bf16.msra.mxu0 %v1611_v51  ;;  %v1210_v51 = vcombine.high %v18_v47, %v22_v48 }
  0x29   :  { %1525 = vmatpush3.bf16.msra.mxu1 %v1613_v55  ;;  %1474 = vmatprep.subr.bf16.mxu0 %v1614_v56  ;;  %v30_v55 = vld [vmem:[%s2061_s0 + $0x78] sm:$0xff]  ;;  %v1207_v56 = vcombine.low %v17_v44, %v21_v45 }
  0x2a   :  { %1526 = vmatprep.subr.bf16.mxu1 %v1616_v58  ;;  %v1218_v59 = vcombine.high %v26_v54, %v30_v55 }
  0x2b   :  { %847 = vmatmul.mubr.bf16.gmra.mrb[4].mxu0 %v1211_v52  ;;  %v25_v52 = vld [vmem:[%s2061_s0 + $0x50] sm:$0xff] }
  0x2c   :  { %927 = vmatmul.mubr.bf16.gmra.mrb[4].mxu1 %v1213_v53  ;;  %1475 = vmatpush3.bf16.msra.mxu0 %v1615_v57  ;;  %v29_v53 = vld [vmem:[%s2061_s0 + $0x70] sm:$0xff]  ;;  %v1209_v57 = vcombine.low %v18_v47, %v22_v48 }
  0x2d   :  { %854 = vmatprep.mubr.bf16.mxu0 %v1220_v63  ;;  %934 = vmatprep.mubr.bf16.mxu1 %v1222_v0  ;;  %v1216_v58 = vcombine.high %v25_v52, %v29_v53  ;;  %v38_v63 = vld [vmem:[%s2061_s0 + $0xb8] sm:$0xff]  ;;  %v1215_v0 = vcombine.low %v25_v52, %v29_v53 }
  0x2e   :  { %1527 = vmatpush3.bf16.msra.mxu1 %v1617_v1  ;;  %1476 = vmatprep.subr.bf16.mxu0 %v1618_v3  ;;  %v1217_v1 = vcombine.low %v26_v54, %v30_v55  ;;  %v1226_v3 = vcombine.high %v34_v62, %v38_v63  ;;  %v1225_v9 = vcombine.low %v34_v62, %v38_v63 }
  0x2f   :  { %1528 = vmatprep.subr.bf16.mxu1 %v1620_v6  ;;  %v42_v6 = vld [vmem:[%s2061_s0 + $0xd8] sm:$0xff] }
  0x30   :  { %1477 = vmatpush3.bf16.msra.mxu0 %v1619_v5  ;;  %v45_v5 = vld [vmem:[%s2061_s0 + $0xf0] sm:$0xff] }
  0x31   :  { %1478 = vmatprep.subr.bf16.mxu0 %v1622_v14  ;;  %v50_v14 = vld [vmem:[%s2061_s0 + $0x118] sm:$0xff] }
  0x32   :  { %1529 = vmatpush3.bf16.msra.mxu1 %v1621_v7  ;;  %v46_v7 = vld [vmem:[%s2061_s0 + $0xf8] sm:$0xff] }
  0x33   :  { %855 = vmatmul.mubr.bf16.gmra.mrb[8].mxu0 %v1219_v2  ;;  %1530 = vmatprep.subr.bf16.mxu1 %v1624_v17  ;;  %v1224_v2 = vcombine.high %v33_v60, %v37_v61  ;;  %v1233_v17 = vcombine.low %v42_v6, %v46_v7 }
  0x34   :  { %935 = vmatmul.mubr.bf16.gmra.mrb[8].mxu1 %v1221_v4  ;;  %862 = vmatprep.mubr.bf16.mxu0 %v1228_v11  ;;  %v41_v4 = vld [vmem:[%s2061_s0 + $0xd0] sm:$0xff]  ;;  %v1234_v11 = vcombine.high %v42_v6, %v46_v7 }
  0x35   :  { %942 = vmatprep.mubr.bf16.mxu1 %v1230_v13  ;;  %1479 = vmatpush3.bf16.msra.mxu0 %v1623_v15  ;;  %v1232_v10 = vcombine.high %v41_v4, %v45_v5  ;;  %v53_v13 = vld [vmem:[%s2061_s0 + $0x130] sm:$0xff]  ;;  %v54_v15 = vld [vmem:[%s2061_s0 + $0x138] sm:$0xff] }
  0x36   :  { %1531 = vmatpush3.bf16.msra.mxu1 %v1625_v19  ;;  %1480 = vmatprep.subr.bf16.mxu0 %v1626_v20  ;;  %v1242_v19 = vcombine.high %v50_v14, %v54_v15  ;;  %v57_v20 = vld [vmem:[%s2061_s0 + $0x150] sm:$0x11]  ;;  %v1239_v22 = vcombine.low %v49_v12, %v53_v13 }
  0x37   :  { %1532 = vmatprep.subr.bf16.mxu1 %v1628_v28  ;;  %v1248_v24 = vcombine.high %v57_v20, %v57_v20 }
  0x39   :  { %1481 = vmatpush3.bf16.msra.mxu0 %v1627_v27  ;;  %v1249_v27 = vcombine.low %v58_v21, %v58_v21 }
  0x3a   :  { %1533 = vmatpush3.bf16.msra.mxu1 %v1629_v29  ;;  %1482 = vmatprep.subr.bf16.mxu0 %v1630_v30  ;;  %v1993_v30 = vld [vmem:[%s2062_s2] ss:$0 sm:$0xff] }
  0x3b   :  { %863 = vmatmul.mubr.bf16.gmra.mrb[12].mxu0 %v1227_v16  ;;  %1534 = vmatprep.subr.bf16.mxu1 %v1632_v34  ;;  %v1231_v16 = vcombine.low %v41_v4, %v45_v5 }
  0x3c   :  { %943 = vmatmul.mubr.bf16.gmra.mrb[12].mxu1 %v1229_v18  ;;  %870 = vmatprep.mubr.bf16.mxu0 %v1236_v23  ;;  %v1240_v18 = vcombine.high %v49_v12, %v53_v13  ;;  %v1241_v23 = vcombine.low %v50_v14, %v54_v15 }
  0x3d   :  { %950 = vmatprep.mubr.bf16.mxu1 %v1238_v26  ;;  %1483 = vmatpush3.bf16.msra.mxu0 %v1631_v32  ;;  %v1247_v26 = vcombine.low %v57_v20, %v57_v20 }
  0x3e   :  { %1535 = vmatpush3.bf16.msra.mxu1 %v1635_v39  ;;  %1484 = vmatprep.subr.bf16.mxu0 %v1638_v40 }
  0x3f   :  { %1536 = vmatprep.subr.bf16.mxu1 %v1640_v42 }
  0x41   :  { %1485 = vmatpush3.bf16.msra.mxu0 %v1639_v41 }
  0x42   :  { %1537 = vmatpush3.bf16.msra.mxu1 %v1641_v43 }
  0x43   :  { %871 = vmatmul.mubr.bf16.gmra.mrb[16].mxu0 %v1235_v31 }
  0x44   :  { %951 = vmatmul.mubr.bf16.gmra.mrb[16].mxu1 %v1237_v33  ;;  %878 = vmatprep.mubr.bf16.mxu0 %v1244_v36 }
  0x45   :  { %958 = vmatprep.mubr.bf16.mxu1 %v1246_v38 }
  0x4b   :  { %879 = vmatmul.mubr.bf16.gmra.mrb[20].mxu0 %v1243_v46 }
  0x4c   :  { %959 = vmatmul.mubr.bf16.gmra.mrb[20].mxu1 %v1245_v49  ;;  %998 = vmatprep.mubr.bf16.mxu0 %v1208_v50 }
  0x4d   :  { %1078 = vmatprep.mubr.bf16.mxu1 %v1210_v51 }
  0x53   :  { %999 = vmatmul.mubr.bf16.vlgmr.msra.gmra.mrb[24].mxu0 %v1207_v56 }
  0x54   :  { %1079 = vmatmul.mubr.bf16.vlgmr.msra.gmra.mrb[24].mxu1 %v1209_v57  ;;  %1006 = vmatprep.mubr.bf16.mxu0 %v1216_v58 }
  0x55   :  { %1086 = vmatprep.mubr.bf16.mxu1 %v1218_v59 }
  0x5b   :  { %1007 = vmatmul.mubr.bf16.gmra.mrb[28].mxu0 %v1215_v0 }
  0x5c   :  { %1087 = vmatmul.mubr.bf16.gmra.mrb[28].mxu1 %v1217_v1  ;;  %1014 = vmatprep.mubr.bf16.mxu0 %v1224_v2 }
  0x5d   :  { %1094 = vmatprep.mubr.bf16.mxu1 %v1226_v3 }
  0x63   :  { %1015 = vmatmul.mubr.bf16.gmra.mrb[32].mxu0 %v1223_v8 }
  0x64   :  { %1095 = vmatmul.mubr.bf16.gmra.mrb[32].mxu1 %v1225_v9  ;;  %1022 = vmatprep.mubr.bf16.mxu0 %v1232_v10 }
  0x65   :  { %1102 = vmatprep.mubr.bf16.mxu1 %v1234_v11 }
  0x6b   :  { %1023 = vmatmul.mubr.bf16.gmra.mrb[36].mxu0 %v1231_v16 }
  0x6c   :  { %1103 = vmatmul.mubr.bf16.gmra.mrb[36].mxu1 %v1233_v17  ;;  %1030 = vmatprep.mubr.bf16.mxu0 %v1240_v18 }
  0x6d   :  { %1110 = vmatprep.mubr.bf16.mxu1 %v1242_v19 }
  0x73   :  { %1031 = vmatmul.mubr.bf16.gmra.mrb[40].mxu0 %v1239_v22 }
  0x74   :  { %1111 = vmatmul.mubr.bf16.gmra.mrb[40].mxu1 %v1241_v23  ;;  %1038 = vmatprep.mubr.bf16.mxu0 %v1248_v24 }
  0x75   :  { %1118 = vmatprep.mubr.bf16.mxu1 %v1250_v25 }
  0x7b   :  { %1039 = vmatmul.mubr.bf16.gmra.mrb[44].mxu0 %v1247_v26 }
  0x7c   :  { %1119 = vmatmul.mubr.bf16.gmra.mrb[44].mxu1 %v1249_v27 }
  0xf6   :  { %v1382_v28 = vpop.f32.mrb[0].mxu0 }
  0xf7   :  { %v1434_v29 = vpop.f32.mrb[0].mxu1  ;;  %v1383_v31 = vpop.f32.mrb[1].mxu0 }
  0xf8   :  { %v1384_v32 = vadd.f32 %v1383_v31, %v1382_v28  ;;  %v1435_v33 = vpop.f32.mrb[1].mxu1  ;;  %v1385_v34 = vpop.f32.mrb[2].mxu0 }
  0xf9   :  { %v1436_v35 = vadd.f32 %v1435_v33, %v1434_v29  ;;  %v1437_v36 = vpop.f32.mrb[2].mxu1  ;;  %v1386_v37 = vpop.f32.mrb[3].mxu0 }
  0xfa   :  { %v841_v38 = vadd.f32 %v1384_v32, %v1993_v30  ;;  %v1387_v39 = vadd.f32 %v1386_v37, %v1385_v34  ;;  %v1438_v40 = vpop.f32.mrb[3].mxu1 }
  0xfb   :  { %v1439_v41 = vadd.f32 %v1438_v40, %v1437_v36 }
  0xfc   :  { %v1996_v42 = vadd.f32 %v1436_v35, %v841_v38  ;;  %v844_v43 = vadd.f32 %v1387_v39, %v1993_v30 }
  0xfe   :  { %v1999_v44 = vadd.f32 %v1439_v41, %v844_v43  ;;  %v1388_v45 = vpop.f32.mrb[4].mxu0 }
  0xff   :  { %v1440_v46 = vpop.f32.mrb[4].mxu1  ;;  %v1389_v47 = vpop.f32.mrb[5].mxu0 }
 0x100   :  { %v1390_v48 = vadd.f32 %v1389_v47, %v1388_v45  ;;  %v1441_v49 = vpop.f32.mrb[5].mxu1  ;;  %v1391_v50 = vpop.f32.mrb[6].mxu0 }
 0x101   :  { %v1442_v51 = vadd.f32 %v1441_v49, %v1440_v46  ;;  %v1443_v52 = vpop.f32.mrb[6].mxu1  ;;  %v1392_v53 = vpop.f32.mrb[7].mxu0 }
 0x102   :  { %v849_v54 = vadd.f32 %v1390_v48, %v1993_v30  ;;  %v1393_v55 = vadd.f32 %v1392_v53, %v1391_v50  ;;  %v1444_v56 = vpop.f32.mrb[7].mxu1 }
 0x103   :  { %v1445_v57 = vadd.f32 %v1444_v56, %v1443_v52 }
 0x104   :  { %v2002_v58 = vadd.f32 %v1442_v51, %v849_v54  ;;  %v852_v59 = vadd.f32 %v1393_v55, %v1993_v30 }
 0x106   :  { %v2005_v60 = vadd.f32 %v1445_v57, %v852_v59  ;;  %v1394_v61 = vpop.f32.mrb[8].mxu0 }
 0x107   :  { %v1446_v62 = vpop.f32.mrb[8].mxu1  ;;  %v1395_v63 = vpop.f32.mrb[9].mxu0 }
 0x108   :  { %v1396_v0 = vadd.f32 %v1395_v63, %v1394_v61  ;;  %v1447_v1 = vpop.f32.mrb[9].mxu1  ;;  %v1397_v2 = vpop.f32.mrb[10].mxu0 }
 0x109   :  { %v1448_v3 = vadd.f32 %v1447_v1, %v1446_v62  ;;  %v1449_v4 = vpop.f32.mrb[10].mxu1  ;;  %v1398_v5 = vpop.f32.mrb[11].mxu0 }
 0x10a   :  { %v857_v6 = vadd.f32 %v1396_v0, %v1993_v30  ;;  %v1399_v7 = vadd.f32 %v1398_v5, %v1397_v2  ;;  %v1450_v8 = vpop.f32.mrb[11].mxu1 }
 0x10b   :  { %v1451_v9 = vadd.f32 %v1450_v8, %v1449_v4 }
 0x10c   :  { %v2008_v10 = vadd.f32 %v1448_v3, %v857_v6  ;;  %v860_v11 = vadd.f32 %v1399_v7, %v1993_v30 }
 0x10e   :  { %v2011_v12 = vadd.f32 %v1451_v9, %v860_v11  ;;  %v1400_v13 = vpop.f32.mrb[12].mxu0 }
 0x10f   :  { %v1452_v14 = vpop.f32.mrb[12].mxu1  ;;  %v1401_v15 = vpop.f32.mrb[13].mxu0 }
 0x110   :  { %v1402_v16 = vadd.f32 %v1401_v15, %v1400_v13  ;;  %v1453_v17 = vpop.f32.mrb[13].mxu1  ;;  %v1403_v18 = vpop.f32.mrb[14].mxu0 }
 0x111   :  { %v1454_v19 = vadd.f32 %v1453_v17, %v1452_v14  ;;  %v1455_v20 = vpop.f32.mrb[14].mxu1  ;;  %v1404_v21 = vpop.f32.mrb[15].mxu0 }
 0x112   :  { %v865_v22 = vadd.f32 %v1402_v16, %v1993_v30  ;;  %v1405_v23 = vadd.f32 %v1404_v21, %v1403_v18  ;;  %v1456_v24 = vpop.f32.mrb[15].mxu1 }
 0x113   :  { %v1457_v25 = vadd.f32 %v1456_v24, %v1455_v20 }
 0x114   :  { %v2014_v26 = vadd.f32 %v1454_v19, %v865_v22  ;;  %v868_v27 = vadd.f32 %v1405_v23, %v1993_v30 }
 0x116   :  { %v2017_v28 = vadd.f32 %v1457_v25, %v868_v27  ;;  %v1406_v29 = vpop.f32.mrb[16].mxu0 }
 0x117   :  { %v1458_v31 = vpop.f32.mrb[16].mxu1  ;;  %v1407_v32 = vpop.f32.mrb[17].mxu0 }
 0x118   :  { %v1408_v33 = vadd.f32 %v1407_v32, %v1406_v29  ;;  %v1459_v34 = vpop.f32.mrb[17].mxu1  ;;  %v1409_v35 = vpop.f32.mrb[18].mxu0 }
 0x119   :  { %v1460_v36 = vadd.f32 %v1459_v34, %v1458_v31  ;;  %v1461_v37 = vpop.f32.mrb[18].mxu1  ;;  %v1410_v38 = vpop.f32.mrb[19].mxu0 }
 0x11a   :  { %v873_v39 = vadd.f32 %v1408_v33, %v1993_v30  ;;  %v1411_v40 = vadd.f32 %v1410_v38, %v1409_v35  ;;  %v1462_v41 = vpop.f32.mrb[19].mxu1 }
 0x11b   :  { %v1463_v43 = vadd.f32 %v1462_v41, %v1461_v37 }
 0x11c   :  { %v2020_v45 = vadd.f32 %v1460_v36, %v873_v39  ;;  %v876_v46 = vadd.f32 %v1411_v40, %v1993_v30 }
 0x11e   :  { %v2023_v47 = vadd.f32 %v1463_v43, %v876_v46  ;;  %v1412_v48 = vpop.f32.mrb[20].mxu0 }
 0x11f   :  { %v1464_v49 = vpop.f32.mrb[20].mxu1  ;;  %v1413_v50 = vpop.f32.mrb[21].mxu0 }
 0x120   :  { %v1414_v51 = vadd.f32 %v1413_v50, %v1412_v48  ;;  %v1465_v52 = vpop.f32.mrb[21].mxu1  ;;  %v1415_v53 = vpop.f32.mrb[22].mxu0 }
 0x121   :  { %v1466_v54 = vadd.f32 %v1465_v52, %v1464_v49  ;;  %v1467_v55 = vpop.f32.mrb[22].mxu1  ;;  %v1416_v56 = vpop.f32.mrb[23].mxu0 }
 0x122   :  { %v881_v57 = vadd.f32 %v1414_v51, %v1993_v30  ;;  %v1468_v59 = vpop.f32.mrb[23].mxu1 }
 0x124   :  { %v2026_v61 = vadd.f32 %v1466_v54, %v881_v57 }
 0x126   :  { %v1486_v62 = vpop.f32.mrb[24].mxu0 }
 0x127   :  { %v1538_v63 = vpop.f32.mrb[24].mxu1  ;;  %v1487_v0 = vpop.f32.mrb[25].mxu0 }
 0x128   :  { %v1488_v1 = vadd.f32 %v1487_v0, %v1486_v62  ;;  %v1539_v2 = vpop.f32.mrb[25].mxu1  ;;  %v1489_v3 = vpop.f32.mrb[26].mxu0 }
 0x129   :  { %v1540_v4 = vadd.f32 %v1539_v2, %v1538_v63  ;;  %v1541_v5 = vpop.f32.mrb[26].mxu1  ;;  %v1490_v6 = vpop.f32.mrb[27].mxu0 }
 0x12a   :  { %v1001_v7 = vadd.f32 %v1488_v1, %v1996_v42  ;;  %v1491_v8 = vadd.f32 %v1490_v6, %v1489_v3  ;;  %v1542_v9 = vpop.f32.mrb[27].mxu1 }
 0x12b   :  { %v1543_v11 = vadd.f32 %v1542_v9, %v1541_v5 }
 0x12c   :  { %v1081_v13 = vadd.f32 %v1540_v4, %v1001_v7  ;;  %v1004_v30 = vadd.f32 %v1491_v8, %v1999_v44 }
 0x12e   :  { %v1084_v14 = vadd.f32 %v1543_v11, %v1004_v30  ;;  %v1492_v15 = vpop.f32.mrb[28].mxu0  ;;  %v1126_v18 = vmax.f32 %v1081_v13, 0.0 }
 0x12f   :  { %v1544_v16 = vpop.f32.mrb[28].mxu1  ;;  %v1493_v17 = vpop.f32.mrb[29].mxu0 }
 0x130   :  { %v1127_v19 = vmax.f32 %v1084_v14, 0.0  ;;  %v1494_v20 = vadd.f32 %v1493_v17, %v1492_v15  ;;  %v1545_v21 = vpop.f32.mrb[29].mxu1  ;;  %v1495_v22 = vpop.f32.mrb[30].mxu0 }
 0x131   :  { %v1546_v23 = vadd.f32 %v1545_v21, %v1544_v16  ;;  %v1547_v24 = vpop.f32.mrb[30].mxu1  ;;  %v1496_v25 = vpop.f32.mrb[31].mxu0 }
 0x132   :  { %v1340_v27 = vpack.c.bf16 %v1127_v19, %v1126_v18  ;;  %v1009_v42 = vadd.f32 %v1494_v20, %v2002_v58  ;;  %v1497_v29 = vadd.f32 %v1496_v25, %v1495_v22  ;;  %v1548_v31 = vpop.f32.mrb[31].mxu1 }
 0x133   :  { %v1549_v32 = vadd.f32 %v1548_v31, %v1547_v24 }
 0x134   :  { %1341 = vst [vmem:[%s2063_s3] sm:$0xff] %v1340_v27   ;;  %v1089_v44 = vadd.f32 %v1546_v23, %v1009_v42  ;;  %v1012_v33 = vadd.f32 %v1497_v29, %v2005_v60 }
 0x136   :  { %v1092_v34 = vadd.f32 %v1549_v32, %v1012_v33  ;;  %v1498_v35 = vpop.f32.mrb[32].mxu0  ;;  %v1128_v38 = vmax.f32 %v1089_v44, 0.0 }
 0x137   :  { %v1550_v36 = vpop.f32.mrb[32].mxu1  ;;  %v1499_v37 = vpop.f32.mrb[33].mxu0 }
 0x138   :  { %v1129_v39 = vmax.f32 %v1092_v34, 0.0  ;;  %v1500_v40 = vadd.f32 %v1499_v37, %v1498_v35  ;;  %v1551_v41 = vpop.f32.mrb[33].mxu1  ;;  %v1501_v43 = vpop.f32.mrb[34].mxu0 }
 0x139   :  { %v1552_v58 = vadd.f32 %v1551_v41, %v1550_v36  ;;  %v1553_v46 = vpop.f32.mrb[34].mxu1  ;;  %v1502_v48 = vpop.f32.mrb[35].mxu0 }
 0x13a   :  { %v1345_v49 = vpack.c.bf16 %v1129_v39, %v1128_v38  ;;  %v1017_v50 = vadd.f32 %v1500_v40, %v2008_v10  ;;  %v1503_v51 = vadd.f32 %v1502_v48, %v1501_v43  ;;  %v1554_v52 = vpop.f32.mrb[35].mxu1  ;;  %v1195_v48 = vld [vmem:[%s2063_s3 + $0x28] sm:$0x1] }
 0x13b   :  { %v1555_v53 = vadd.f32 %v1554_v52, %v1553_v46 }
 0x13c   :  { %1362 = vst [vmem:[%s2063_s3 + $0x8] sm:$0xff] %v1345_v49   ;;  %v1097_v60 = vadd.f32 %v1552_v58, %v1017_v50  ;;  %v1020_v54 = vadd.f32 %v1503_v51, %v2011_v12 }
 0x13e   :  { %v1100_v55 = vadd.f32 %v1555_v53, %v1020_v54  ;;  %v1504_v56 = vpop.f32.mrb[36].mxu0  ;;  %v1130_v62 = vmax.f32 %v1097_v60, 0.0 }
 0x13f   :  { %v1556_v57 = vpop.f32.mrb[36].mxu1  ;;  %v1505_v59 = vpop.f32.mrb[37].mxu0 }
 0x140   :  { %v1131_v63 = vmax.f32 %v1100_v55, 0.0  ;;  %v1506_v0 = vadd.f32 %v1505_v59, %v1504_v56  ;;  %v1557_v1 = vpop.f32.mrb[37].mxu1  ;;  %v1507_v2 = vpop.f32.mrb[38].mxu0 }
 0x141   :  { %v1558_v10 = vadd.f32 %v1557_v1, %v1556_v57  ;;  %v1559_v3 = vpop.f32.mrb[38].mxu1  ;;  %v1508_v4 = vpop.f32.mrb[39].mxu0 }
 0x142   :  { %v1350_v5 = vpack.c.bf16 %v1131_v63, %v1130_v62  ;;  %v1025_v6 = vadd.f32 %v1506_v0, %v2014_v26  ;;  %v1509_v7 = vadd.f32 %v1508_v4, %v1507_v2  ;;  %v1560_v8 = vpop.f32.mrb[39].mxu1 }
 0x143   :  { %v1561_v9 = vadd.f32 %v1560_v8, %v1559_v3 }
 0x144   :  { %1363 = vst [vmem:[%s2063_s3 + $0x10] sm:$0xff] %v1350_v5   ;;  %v1105_v12 = vadd.f32 %v1558_v10, %v1025_v6  ;;  %v1028_v11 = vadd.f32 %v1509_v7, %v2017_v28 }
 0x146   :  { %v1108_v13 = vadd.f32 %v1561_v9, %v1028_v11  ;;  %v1510_v30 = vpop.f32.mrb[40].mxu0  ;;  %v1132_v16 = vmax.f32 %v1105_v12, 0.0 }
 0x147   :  { %v1562_v14 = vpop.f32.mrb[40].mxu1  ;;  %v1511_v15 = vpop.f32.mrb[41].mxu0 }
 0x148   :  { %v1133_v17 = vmax.f32 %v1108_v13, 0.0  ;;  %v1512_v18 = vadd.f32 %v1511_v15, %v1510_v30  ;;  %v1563_v19 = vpop.f32.mrb[41].mxu1  ;;  %v1513_v20 = vpop.f32.mrb[42].mxu0 }
 0x149   :  { %v1564_v26 = vadd.f32 %v1563_v19, %v1562_v14  ;;  %v1565_v21 = vpop.f32.mrb[42].mxu1  ;;  %v1514_v22 = vpop.f32.mrb[43].mxu0 }
 0x14a   :  { %v1355_v23 = vpack.c.bf16 %v1133_v17, %v1132_v16  ;;  %v1033_v24 = vadd.f32 %v1512_v18, %v2020_v45  ;;  %v1515_v25 = vadd.f32 %v1514_v22, %v1513_v20  ;;  %v1566_v27 = vpop.f32.mrb[43].mxu1 }
 0x14b   :  { %v1567_v42 = vadd.f32 %v1566_v27, %v1565_v21 }
 0x14c   :  { %1364 = vst [vmem:[%s2063_s3 + $0x18] sm:$0xff] %v1355_v23   ;;  %v1113_v28 = vadd.f32 %v1564_v26, %v1033_v24  ;;  %v1036_v29 = vadd.f32 %v1515_v25, %v2023_v47 }
 0x14e   :  { %v1116_v31 = vadd.f32 %v1567_v42, %v1036_v29  ;;  %v1516_v32 = vpop.f32.mrb[44].mxu0  ;;  %v1134_v34 = vmax.f32 %v1113_v28, 0.0 }
 0x14f   :  { %v1568_v44 = vpop.f32.mrb[44].mxu1  ;;  %v1517_v33 = vpop.f32.mrb[45].mxu0 }
 0x150   :  { %v1135_v35 = vmax.f32 %v1116_v31, 0.0  ;;  %v1518_v36 = vadd.f32 %v1517_v33, %v1516_v32  ;;  %v1569_v37 = vpop.f32.mrb[45].mxu1  ;;  %v1519_v38 = vpop.f32.mrb[46].mxu0 }
 0x151   :  { %v1570_v45 = vadd.f32 %v1569_v37, %v1568_v44  ;;  %v1571_v39 = vpop.f32.mrb[46].mxu1  ;;  %v1520_v40 = vpop.f32.mrb[47].mxu0 }
 0x152   :  { %v1360_v41 = vpack.c.bf16 %v1135_v35, %v1134_v34  ;;  %v1041_v43 = vadd.f32 %v1518_v36, %v2026_v61  ;;  %v1572_v58 = vpop.f32.mrb[47].mxu1 }
 0x154   :  { %1365 = vst [vmem:[%s2063_s3 + $0x20] sm:$0xff] %v1360_v41   ;;  %v1121_v47 = vadd.f32 %v1570_v45, %v1041_v43 }
 0x156   :  { %v1136_v46 = vmax.f32 %v1121_v47, 0.0 }
 0x158   :  { %v1336_v49 = vpack.c.bf16 %v1136_v46, %v1136_v46 }
 0x15a   :  { %v1196_v50 = vsel %vm1194_vm2, %v1336_v49, %v1195_v48 }
 0x15b   :  { %1197 = vst [vmem:[%s2063_s3 + $0x28] sm:$0x1] %v1196_v50 }

// kernel: network_forward.6
= control target key start
LH: loop header
LB: loop body
LE: loop exit
PB: predicated region body
PF: predicated region fallthrough
CT: control target
= control target key end

     0   :  { %vm1165_vm0 = vcmask 1040384   ;;  %vm1166_vm1 = vsmask.f32 256  ;;  %s1997_s1 = inlined_call_operand.vmem [shape: bf16[1152,128], index: 1, kind: input, shape index: {}]   ;;  %s1998_s0 = inlined_call_operand.vmem [shape: bf16[49,1152], index: 0, kind: input, shape index: {}]   ;;  %s1999_s2 = inlined_call_operand.vmem [shape: f32[1,128], index: 2, kind: input, shape index: {}]   ;;  %s2000_s3 = inlined_call_operand.vmem [shape: bf16[49,128], index: 3, kind: output, shape index: {}]  }
   0x1   :  { %v1527_v0 = vld [vmem:[%s1997_s1 + $0x40] sm:$0xff]   ;;  %v1531_v4 = vld [vmem:[%s1997_s1 + $0x48] sm:$0xff]   ;;  %v1535_v8 = vld [vmem:[%s1997_s1 + $0x50] sm:$0xff]  }
   0x2   :  { %v1528_v1 = vld [vmem:[%s1997_s1 + $0xc0] sm:$0xff]   ;;  %1315 = vmatprep.subr.bf16.mxu0 %v1527_v0  ;;  %v1532_v5 = vld [vmem:[%s1997_s1 + $0xc8] sm:$0xff]   ;;  %v1536_v9 = vld [vmem:[%s1997_s1 + $0xd0] sm:$0xff]  }
   0x3   :  { %v1529_v2 = vld [vmem:[%s1997_s1] sm:$0xff]   ;;  %1355 = vmatprep.subr.bf16.mxu1 %v1528_v1  ;;  %v1533_v6 = vld [vmem:[%s1997_s1 + $0x8] sm:$0xff]   ;;  %v1537_v10 = vld [vmem:[%s1997_s1 + $0x10] sm:$0xff]  }
   0x4   :  { %v1530_v3 = vld [vmem:[%s1997_s1 + $0x80] sm:$0xff]   ;;  %1316 = vmatpush3.bf16.msra.mxu0 %v1529_v2  ;;  %v1534_v7 = vld [vmem:[%s1997_s1 + $0x88] sm:$0xff]   ;;  %v1538_v11 = vld [vmem:[%s1997_s1 + $0x90] sm:$0xff]  }
   0x5   :  { %1356 = vmatpush3.bf16.msra.mxu1 %v1530_v3  ;;  %1317 = vmatprep.subr.bf16.mxu0 %v1531_v4  ;;  %v1539_v12 = vld [vmem:[%s1997_s1 + $0x58] sm:$0xff]   ;;  %v1543_v16 = vld [vmem:[%s1997_s1 + $0x60] sm:$0xff]   ;;  %v1547_v20 = vld [vmem:[%s1997_s1 + $0x68] sm:$0xff]  }
   0x6   :  { %1357 = vmatprep.subr.bf16.mxu1 %v1532_v5  ;;  %v1540_v13 = vld [vmem:[%s1997_s1 + $0xd8] sm:$0xff]   ;;  %v1544_v17 = vld [vmem:[%s1997_s1 + $0xe0] sm:$0xff]   ;;  %v1548_v21 = vld [vmem:[%s1997_s1 + $0xe8] sm:$0xff]  }
   0x7   :  { %v1541_v14 = vld [vmem:[%s1997_s1 + $0x18] sm:$0xff]   ;;  %v1545_v18 = vld [vmem:[%s1997_s1 + $0x20] sm:$0xff]   ;;  %v1549_v22 = vld [vmem:[%s1997_s1 + $0x28] sm:$0xff]  }
   0x8   :  { %1318 = vmatpush3.bf16.msra.mxu0 %v1533_v6  ;;  %v1542_v15 = vld [vmem:[%s1997_s1 + $0x98] sm:$0xff]   ;;  %v1546_v19 = vld [vmem:[%s1997_s1 + $0xa0] sm:$0xff]   ;;  %v1550_v23 = vld [vmem:[%s1997_s1 + $0xa8] sm:$0xff]  }
   0x9   :  { %1358 = vmatpush3.bf16.msra.mxu1 %v1534_v7  ;;  %1319 = vmatprep.subr.bf16.mxu0 %v1535_v8  ;;  %v1551_v24 = vld [vmem:[%s1997_s1 + $0x70] sm:$0xff]   ;;  %v1555_v28 = vld [vmem:[%s1997_s1 + $0x78] sm:$0xff]   ;;  %v1559_v32 = vld [vmem:[%s1998_s0] ss:$36 sps:$4 sm:$0xff]  }
   0xa   :  { %1359 = vmatprep.subr.bf16.mxu1 %v1536_v9  ;;  %v1552_v25 = vld [vmem:[%s1997_s1 + $0xf0] sm:$0xff]   ;;  %v1556_v29 = vld [vmem:[%s1997_s1 + $0xf8] sm:$0xff]   ;;  %v1561_v33 = vld [vmem:[%s1998_s0 + $0x4] ss:$36 sps:$4 sm:$0xff]  }
   0xb   :  { %v1553_v26 = vld [vmem:[%s1997_s1 + $0x30] sm:$0xff]   ;;  %v1557_v30 = vld [vmem:[%s1997_s1 + $0x38] sm:$0xff]   ;;  %v1562_v34 = vld [vmem:[%s1998_s0 + $0x8] ss:$36 sps:$4 sm:$0xff]   ;;  %835 = vmatprep.mubr.bf16.mxu0 %v1561_v33 }
   0xc   :  { %1320 = vmatpush3.bf16.msra.mxu0 %v1537_v10  ;;  %v1554_v27 = vld [vmem:[%s1997_s1 + $0xb0] sm:$0xff]   ;;  %v1558_v31 = vld [vmem:[%s1997_s1 + $0xb8] sm:$0xff]   ;;  %v1565_v36 = vld [vmem:[%s1997_s1 + $0x140] sm:$0xff]  }
   0xd   :  { %1360 = vmatpush3.bf16.msra.mxu1 %v1538_v11  ;;  %1321 = vmatprep.subr.bf16.mxu0 %v1539_v12  ;;  %v1564_v35 = vld [vmem:[%s1998_s0 + $0xc] ss:$36 sps:$4 sm:$0xff]   ;;  %v1566_v37 = vld [vmem:[%s1997_s1 + $0x1c0] sm:$0xff]   ;;  %v1575_v45 = vld [vmem:[%s1998_s0 + $0x54] ss:$36 sps:$4 sm:$0xff]  }
   0xe   :  { %1361 = vmatprep.subr.bf16.mxu1 %v1540_v13  ;;  %899 = vmatprep.mubr.bf16.mxu1 %v1564_v35  ;;  %v1567_v38 = vld [vmem:[%s1997_s1 + $0x100] sm:$0xff]   ;;  %v1569_v40 = vld [vmem:[%s1997_s1 + $0x148] sm:$0xff]   ;;  %v1578_v47 = vld [vmem:[%s1998_s0 + $0x50] ss:$36 sps:$4 sm:$0xff]  }
   0xf   :  { %v1568_v39 = vld [vmem:[%s1997_s1 + $0x180] sm:$0xff]   ;;  %v1570_v41 = vld [vmem:[%s1997_s1 + $0x1c8] sm:$0xff]   ;;  %v1579_v48 = vld [vmem:[%s1997_s1 + $0x150] sm:$0xff]  }
  0x10   :  { %1322 = vmatpush3.bf16.msra.mxu0 %v1541_v14  ;;  %v1571_v42 = vld [vmem:[%s1997_s1 + $0x108] sm:$0xff]   ;;  %v1580_v49 = vld [vmem:[%s1997_s1 + $0x1d0] sm:$0xff]   ;;  %v1583_v52 = vld [vmem:[%s1997_s1 + $0x158] sm:$0xff]  }
  0x11   :  { %1362 = vmatpush3.bf16.msra.mxu1 %v1542_v15  ;;  %1323 = vmatprep.subr.bf16.mxu0 %v1543_v16  ;;  %v1572_v43 = vld [vmem:[%s1997_s1 + $0x188] sm:$0xff]   ;;  %v1581_v50 = vld [vmem:[%s1997_s1 + $0x110] sm:$0xff]   ;;  %v1584_v53 = vld [vmem:[%s1997_s1 + $0x1d8] sm:$0xff]  }
  0x12   :  { %1363 = vmatprep.subr.bf16.mxu1 %v1544_v17  ;;  %v1573_v44 = vld [vmem:[%s1998_s0 + $0x4c] ss:$36 sps:$4 sm:$0xff]   ;;  %v1585_v54 = vld [vmem:[%s1997_s1 + $0x118] sm:$0xff]   ;;  %v1593_v60 = vld [vmem:[%s1997_s1 + $0x160] sm:$0xff]  }
  0x13   :  { %v1577_v46 = vld [vmem:[%s1998_s0 + $0x48] ss:$36 sps:$4 sm:$0xff]   ;;  %v1582_v51 = vld [vmem:[%s1997_s1 + $0x190] sm:$0xff]   ;;  %v1586_v55 = vld [vmem:[%s1997_s1 + $0x198] sm:$0xff]  }
  0x14   :  { %1324 = vmatpush3.bf16.msra.mxu0 %v1545_v18  ;;  %v1587_v56 = vld [vmem:[%s1998_s0 + $0x94] ss:$36 sps:$4 sm:$0xff]   ;;  %v1589_v57 = vld [vmem:[%s1998_s0 + $0x9c] ss:$36 sps:$4 sm:$0xff]   ;;  %v1597_v0 = vld [vmem:[%s1997_s1 + $0x168] sm:$0xff]  }
  0x15   :  { %1364 = vmatpush3.bf16.msra.mxu1 %v1546_v19  ;;  %1325 = vmatprep.subr.bf16.mxu0 %v1547_v20  ;;  %v1591_v58 = vld [vmem:[%s1998_s0 + $0x90] ss:$36 sps:$4 sm:$0xff]   ;;  %v1592_v59 = vld [vmem:[%s1998_s0 + $0x98] ss:$36 sps:$4 sm:$0xff]   ;;  %v1594_v61 = vld [vmem:[%s1997_s1 + $0x1e0] sm:$0xff]  }
  0x16   :  { %1365 = vmatprep.subr.bf16.mxu1 %v1548_v21  ;;  %v1595_v62 = vld [vmem:[%s1997_s1 + $0x120] sm:$0xff]   ;;  %v1598_v1 = vld [vmem:[%s1997_s1 + $0x1e8] sm:$0xff]   ;;  %v45_v4 = vld [vmem:[%s1998_s0 + $0xd8] sm:$0x11] }
  0x17   :  { %v1596_v63 = vld [vmem:[%s1997_s1 + $0x1a0] sm:$0xff]   ;;  %v1599_v2 = vld [vmem:[%s1997_s1 + $0x128] sm:$0xff]   ;;  %v1204_v6 = vcombine.high %v45_v4, %v45_v4  ;;  %v1203_v8 = vcombine.low %v45_v4, %v45_v4  ;;  %v1605_v10 = vld [vmem:[%s1997_s1 + $0x170] sm:$0xff]  }
  0x18   :  { %1326 = vmatpush3.bf16.msra.mxu0 %v1549_v22  ;;  %v1600_v3 = vld [vmem:[%s1997_s1 + $0x1a8] sm:$0xff]   ;;  %v46_v5 = vld [vmem:[%s1998_s0 + $0xe0] sm:$0x11]  ;;  %v1606_v11 = vld [vmem:[%s1997_s1 + $0x1f0] sm:$0xff]  }
  0x19   :  { %1366 = vmatpush3.bf16.msra.mxu1 %v1550_v23  ;;  %1327 = vmatprep.subr.bf16.mxu0 %v1551_v24  ;;  %v1206_v7 = vcombine.high %v46_v5, %v46_v5  ;;  %v1205_v9 = vcombine.low %v46_v5, %v46_v5  ;;  %v1607_v12 = vld [vmem:[%s1997_s1 + $0x130] sm:$0xff]   ;;  %v1609_v14 = vld [vmem:[%s1997_s1 + $0x178] sm:$0xff]   ;;  %v1619_v22 = vld [vmem:[%s1997_s1 + $0x200] sm:$0xff]  }
  0x1a   :  { %1367 = vmatprep.subr.bf16.mxu1 %v1552_v25  ;;  %v1608_v13 = vld [vmem:[%s1997_s1 + $0x1b0] sm:$0xff]   ;;  %v1610_v15 = vld [vmem:[%s1997_s1 + $0x1f8] sm:$0xff]   ;;  %v1620_v23 = vld [vmem:[%s1997_s1 + $0x208] sm:$0xff]  }
  0x1b   :  { %v1611_v16 = vld [vmem:[%s1997_s1 + $0x138] sm:$0xff]   ;;  %v1613_v18 = vld [vmem:[%s1998_s0 + $0x10] ss:$36 sps:$4 sm:$0xff]   ;;  %v1623_v25 = vld [vmem:[%s1998_s0 + $0x64] ss:$36 sps:$4 sm:$0xff]  }
  0x1c   :  { %1328 = vmatpush3.bf16.msra.mxu0 %v1553_v26  ;;  %v1612_v17 = vld [vmem:[%s1997_s1 + $0x1b8] sm:$0xff]   ;;  %v47_v33 = vld [vmem:[%s1998_s0 + $0xe8] sm:$0x11]  ;;  %v1633_v35 = vld [vmem:[%s1998_s0 + $0xa0] ss:$36 sps:$4 sm:$0xff]  }
  0x1d   :  { %1368 = vmatpush3.bf16.msra.mxu1 %v1554_v27  ;;  %1329 = vmatprep.subr.bf16.mxu0 %v1555_v28  ;;  %v1615_v19 = vld [vmem:[%s1998_s0 + $0x14] ss:$36 sps:$4 sm:$0xff]   ;;  %v1618_v21 = vld [vmem:[%s1998_s0 + $0x1c] ss:$36 sps:$4 sm:$0xff]   ;;  %vm1167_vm2 = vmand %vm1165_vm0, %vm1166_vm1 }
  0x1e   :  { %1369 = vmatprep.subr.bf16.mxu1 %v1556_v29  ;;  %v1616_v20 = vld [vmem:[%s1998_s0 + $0x18] ss:$36 sps:$4 sm:$0xff]   ;;  %v1627_v27 = vld [vmem:[%s1997_s1 + $0x210] sm:$0xff]   ;;  %v1626_v28 = vld [vmem:[%s1998_s0 + $0x60] ss:$36 sps:$4 sm:$0xff]  }
  0x1f   :  { %v1621_v24 = vld [vmem:[%s1998_s0 + $0x5c] ss:$36 sps:$4 sm:$0xff]   ;;  %v1629_v29 = vld [vmem:[%s1998_s0 + $0xa4] ss:$36 sps:$4 sm:$0xff]  }
  0x20   :  { %1330 = vmatpush3.bf16.msra.mxu0 %v1557_v30  ;;  %v1625_v26 = vld [vmem:[%s1998_s0 + $0x58] ss:$36 sps:$4 sm:$0xff]   ;;  %v1631_v30 = vld [vmem:[%s1998_s0 + $0xac] ss:$36 sps:$4 sm:$0xff]  }
  0x21   :  { %1370 = vmatpush3.bf16.msra.mxu1 %v1558_v31  ;;  %1395 = vmatprep.subr.bf16.mxu0 %v1565_v36  ;;  %v1628_v31 = vld [vmem:[%s1997_s1 + $0x218] sm:$0xff]   ;;  %v1634_v36 = vld [vmem:[%s1998_s0 + $0xa8] ss:$36 sps:$4 sm:$0xff]  }
  0x22   :  { %1435 = vmatprep.subr.bf16.mxu1 %v1566_v37  ;;  %v1208_v37 = vcombine.high %v47_v33, %v47_v33 }
  0x23   :  { %836 = vmatmul.mubr.bf16.vlgmr.msra.gmra.mrb[0].mxu0 %v1559_v32  ;;  %v1635_v32 = vld [vmem:[%s1997_s1 + $0x220] sm:$0xff]  }
  0x24   :  { %900 = vmatmul.mubr.bf16.vlgmr.msra.gmra.mrb[0].mxu1 %v1562_v34  ;;  %1396 = vmatpush3.bf16.msra.mxu0 %v1567_v38  ;;  %v48_v34 = vld [vmem:[%s1998_s0 + $0xf0] sm:$0x11] }
  0x25   :  { %1436 = vmatpush3.bf16.msra.mxu1 %v1568_v39  ;;  %1397 = vmatprep.subr.bf16.mxu0 %v1569_v40  ;;  %v1210_v38 = vcombine.high %v48_v34, %v48_v34  ;;  %v1636_v39 = vld [vmem:[%s1997_s1 + $0x228] sm:$0xff]   ;;  %v1641_v40 = vld [vmem:[%s1997_s1 + $0x230] sm:$0xff]  }
  0x26   :  { %1437 = vmatprep.subr.bf16.mxu1 %v1570_v41  ;;  %843 = vmatprep.mubr.bf16.mxu0 %v1573_v44  ;;  %v1207_v41 = vcombine.low %v47_v33, %v47_v33  ;;  %v1644_v44 = vld [vmem:[%s1998_s0 + $0xb0] ss:$36 sps:$4 sm:$0xff]  }
  0x27   :  { %907 = vmatprep.mubr.bf16.mxu1 %v1575_v45  ;;  %v1642_v45 = vld [vmem:[%s1997_s1 + $0x238] sm:$0xff]  }
  0x28   :  { %1398 = vmatpush3.bf16.msra.mxu0 %v1571_v42  ;;  %v1209_v42 = vcombine.low %v48_v34, %v48_v34 }
  0x29   :  { %1438 = vmatpush3.bf16.msra.mxu1 %v1572_v43  ;;  %1399 = vmatprep.subr.bf16.mxu0 %v1579_v48  ;;  %v1643_v43 = vld [vmem:[%s1998_s0 + $0x20] ss:$36 sps:$4 sm:$0xff]  }
  0x2a   :  { %1439 = vmatprep.subr.bf16.mxu1 %v1580_v49 }
  0x2b   :  { %844 = vmatmul.mubr.bf16.gmra.mrb[4].mxu0 %v1577_v46  ;;  %v1645_v46 = vld [vmem:[%s1998_s0 + $0x68] ss:$36 sps:$4 sm:$0xff]  }
  0x2c   :  { %908 = vmatmul.mubr.bf16.gmra.mrb[4].mxu1 %v1578_v47  ;;  %1400 = vmatpush3.bf16.msra.mxu0 %v1581_v50  ;;  %v1646_v47 = vld [vmem:[%s1998_s0 + $0xf8] ss:$0 sps:$4 sm:$0x11]   ;;  %v1175_v50 = vld [vmem:[%s1999_s2] ss:$0 sm:$0xff] }
  0x2d   :  { %1440 = vmatpush3.bf16.msra.mxu1 %v1582_v51  ;;  %1401 = vmatprep.subr.bf16.mxu0 %v1583_v52 }
  0x2e   :  { %1441 = vmatprep.subr.bf16.mxu1 %v1584_v53  ;;  %851 = vmatprep.mubr.bf16.mxu0 %v1587_v56 }
  0x2f   :  { %915 = vmatprep.mubr.bf16.mxu1 %v1589_v57 }
  0x30   :  { %1402 = vmatpush3.bf16.msra.mxu0 %v1585_v54 }
  0x31   :  { %1442 = vmatpush3.bf16.msra.mxu1 %v1586_v55  ;;  %1403 = vmatprep.subr.bf16.mxu0 %v1593_v60 }
  0x32   :  { %1443 = vmatprep.subr.bf16.mxu1 %v1594_v61 }
  0x33   :  { %852 = vmatmul.mubr.bf16.gmra.mrb[8].mxu0 %v1591_v58 }
  0x34   :  { %916 = vmatmul.mubr.bf16.gmra.mrb[8].mxu1 %v1592_v59  ;;  %1404 = vmatpush3.bf16.msra.mxu0 %v1595_v62 }
  0x35   :  { %1444 = vmatpush3.bf16.msra.mxu1 %v1596_v63  ;;  %1405 = vmatprep.subr.bf16.mxu0 %v1597_v0 }
  0x36   :  { %1445 = vmatprep.subr.bf16.mxu1 %v1598_v1  ;;  %859 = vmatprep.mubr.bf16.mxu0 %v1204_v6 }
  0x37   :  { %923 = vmatprep.mubr.bf16.mxu1 %v1206_v7 }
  0x38   :  { %1406 = vmatpush3.bf16.msra.mxu0 %v1599_v2 }
  0x39   :  { %1446 = vmatpush3.bf16.msra.mxu1 %v1600_v3  ;;  %1407 = vmatprep.subr.bf16.mxu0 %v1605_v10 }
  0x3a   :  { %1447 = vmatprep.subr.bf16.mxu1 %v1606_v11 }
  0x3b   :  { %860 = vmatmul.mubr.bf16.gmra.mrb[12].mxu0 %v1203_v8 }
  0x3c   :  { %924 = vmatmul.mubr.bf16.gmra.mrb[12].mxu1 %v1205_v9  ;;  %1408 = vmatpush3.bf16.msra.mxu0 %v1607_v12 }
  0x3d   :  { %1448 = vmatpush3.bf16.msra.mxu1 %v1608_v13  ;;  %1409 = vmatprep.subr.bf16.mxu0 %v1609_v14 }
  0x3e   :  { %1449 = vmatprep.subr.bf16.mxu1 %v1610_v15  ;;  %963 = vmatprep.mubr.bf16.mxu0 %v1615_v19 }
  0x3f   :  { %1027 = vmatprep.mubr.bf16.mxu1 %v1618_v21 }
  0x40   :  { %1410 = vmatpush3.bf16.msra.mxu0 %v1611_v16 }
  0x41   :  { %1450 = vmatpush3.bf16.msra.mxu1 %v1612_v17  ;;  %1487 = vmatprep.subr.bf16.mxu0 %v1619_v22 }
  0x42   :  { %1511 = vmatprep.subr.bf16.mxu1 %v1619_v22 }
  0x43   :  { %964 = vmatmul.mubr.bf16.vlgmr.msra.gmra.mrb[16].mxu0 %v1613_v18 }
  0x44   :  { %1028 = vmatmul.mubr.bf16.vlgmr.msra.gmra.mrb[16].mxu1 %v1616_v20  ;;  %1488 = vmatpush3.bf16.msra.mxu0 %v1619_v22 }
  0x45   :  { %1519 = vmatpush3.bf16.msra.mxu1 %v1619_v22  ;;  %1489 = vmatprep.subr.bf16.mxu0 %v1620_v23 }
  0x46   :  { %1512 = vmatprep.subr.bf16.mxu1 %v1620_v23  ;;  %971 = vmatprep.mubr.bf16.mxu0 %v1621_v24 }
  0x47   :  { %1035 = vmatprep.mubr.bf16.mxu1 %v1623_v25 }
  0x48   :  { %1490 = vmatpush3.bf16.msra.mxu0 %v1620_v23 }
  0x49   :  { %1520 = vmatpush3.bf16.msra.mxu1 %v1620_v23  ;;  %1491 = vmatprep.subr.bf16.mxu0 %v1627_v27 }
  0x4a   :  { %1513 = vmatprep.subr.bf16.mxu1 %v1627_v27 }
  0x4b   :  { %972 = vmatmul.mubr.bf16.gmra.mrb[20].mxu0 %v1625_v26 }
  0x4c   :  { %1036 = vmatmul.mubr.bf16.gmra.mrb[20].mxu1 %v1626_v28  ;;  %979 = vmatprep.mubr.bf16.mxu0 %v1629_v29 }
  0x4d   :  { %1492 = vmatpush3.bf16.msra.mxu0 %v1627_v27  ;;  %1043 = vmatprep.mubr.bf16.mxu1 %v1631_v30 }
  0x4e   :  { %1521 = vmatpush3.bf16.msra.mxu1 %v1627_v27  ;;  %1493 = vmatprep.subr.bf16.mxu0 %v1628_v31 }
  0x4f   :  { %1514 = vmatprep.subr.bf16.mxu1 %v1628_v31 }
  0x51   :  { %1494 = vmatpush3.bf16.msra.mxu0 %v1628_v31 }
  0x52   :  { %1522 = vmatpush3.bf16.msra.mxu1 %v1628_v31  ;;  %1495 = vmatprep.subr.bf16.mxu0 %v1635_v32 }
  0x53   :  { %980 = vmatmul.mubr.bf16.gmra.mrb[24].mxu0 %v1633_v35  ;;  %1515 = vmatprep.subr.bf16.mxu1 %v1635_v32 }
  0x54   :  { %1044 = vmatmul.mubr.bf16.gmra.mrb[24].mxu1 %v1634_v36  ;;  %987 = vmatprep.mubr.bf16.mxu0 %v1208_v37 }
  0x55   :  { %1496 = vmatpush3.bf16.msra.mxu0 %v1635_v32  ;;  %1051 = vmatprep.mubr.bf16.mxu1 %v1210_v38 }
  0x56   :  { %1523 = vmatpush3.bf16.msra.mxu1 %v1635_v32  ;;  %1497 = vmatprep.subr.bf16.mxu0 %v1636_v39 }
  0x57   :  { %1516 = vmatprep.subr.bf16.mxu1 %v1636_v39 }
  0x59   :  { %1498 = vmatpush3.bf16.msra.mxu0 %v1636_v39 }
  0x5a   :  { %1524 = vmatpush3.bf16.msra.mxu1 %v1636_v39  ;;  %1499 = vmatprep.subr.bf16.mxu0 %v1641_v40 }
  0x5b   :  { %988 = vmatmul.mubr.bf16.gmra.mrb[28].mxu0 %v1207_v41  ;;  %1517 = vmatprep.subr.bf16.mxu1 %v1641_v40 }
  0x5c   :  { %1052 = vmatmul.mubr.bf16.gmra.mrb[28].mxu1 %v1209_v42  ;;  %1503 = vmatprep.mubr.bf16.mxu0 %v1643_v43 }
  0x5d   :  { %1500 = vmatpush3.bf16.msra.mxu0 %v1641_v40  ;;  %1507 = vmatprep.mubr.bf16.mxu1 %v1644_v44 }
  0x5e   :  { %1525 = vmatpush3.bf16.msra.mxu1 %v1641_v40  ;;  %1501 = vmatprep.subr.bf16.mxu0 %v1642_v45 }
  0x5f   :  { %1518 = vmatprep.subr.bf16.mxu1 %v1642_v45 }
  0x61   :  { %1502 = vmatpush3.bf16.msra.mxu0 %v1642_v45 }
  0x62   :  { %1526 = vmatpush3.bf16.msra.mxu1 %v1642_v45 }
  0x64   :  { %1504 = vmatmul.mubr.bf16.vlgmr.msra.gmra.mrb[32].mxu0 %v1645_v46 }
  0x65   :  { %1508 = vmatmul.mubr.bf16.vlgmr.msra.gmra.mrb[32].mxu1 %v1646_v47 }
  0xf6   :  { %v1331_v48 = vpop.f32.mrb[0].mxu0 }
  0xf7   :  { %v1371_v49 = vpop.f32.mrb[0].mxu1  ;;  %v1332_v51 = vpop.f32.mrb[1].mxu0 }
  0xf8   :  { %v1333_v52 = vadd.f32 %v1332_v51, %v1331_v48  ;;  %v1372_v53 = vpop.f32.mrb[1].mxu1  ;;  %v1334_v54 = vpop.f32.mrb[2].mxu0 }
  0xf9   :  { %v1373_v55 = vadd.f32 %v1372_v53, %v1371_v49  ;;  %v1374_v56 = vpop.f32.mrb[2].mxu1  ;;  %v1335_v57 = vpop.f32.mrb[3].mxu0 }
  0xfa   :  { %v838_v58 = vadd.f32 %v1333_v52, %v1175_v50  ;;  %v1336_v59 = vadd.f32 %v1335_v57, %v1334_v54  ;;  %v1375_v60 = vpop.f32.mrb[3].mxu1 }
  0xfb   :  { %v1376_v61 = vadd.f32 %v1375_v60, %v1374_v56 }
  0xfc   :  { %v902_v62 = vadd.f32 %v1373_v55, %v838_v58  ;;  %v841_v63 = vadd.f32 %v1336_v59, %v1175_v50 }
  0xfe   :  { %v905_v0 = vadd.f32 %v1376_v61, %v841_v63  ;;  %v1337_v1 = vpop.f32.mrb[4].mxu0 }
  0xff   :  { %v1377_v2 = vpop.f32.mrb[4].mxu1  ;;  %v1338_v3 = vpop.f32.mrb[5].mxu0 }
 0x100   :  { %v1339_v4 = vadd.f32 %v1338_v3, %v1337_v1  ;;  %v1378_v5 = vpop.f32.mrb[5].mxu1  ;;  %v1340_v6 = vpop.f32.mrb[6].mxu0 }
 0x101   :  { %v1379_v7 = vadd.f32 %v1378_v5, %v1377_v2  ;;  %v1380_v8 = vpop.f32.mrb[6].mxu1  ;;  %v1341_v9 = vpop.f32.mrb[7].mxu0 }
 0x102   :  { %v846_v10 = vadd.f32 %v1339_v4, %v1175_v50  ;;  %v1342_v11 = vadd.f32 %v1341_v9, %v1340_v6  ;;  %v1381_v12 = vpop.f32.mrb[7].mxu1 }
 0x103   :  { %v1382_v13 = vadd.f32 %v1381_v12, %v1380_v8 }
 0x104   :  { %v910_v14 = vadd.f32 %v1379_v7, %v846_v10  ;;  %v849_v15 = vadd.f32 %v1342_v11, %v1175_v50 }
 0x106   :  { %v913_v16 = vadd.f32 %v1382_v13, %v849_v15  ;;  %v1343_v17 = vpop.f32.mrb[8].mxu0 }
 0x107   :  { %v1383_v18 = vpop.f32.mrb[8].mxu1  ;;  %v1344_v19 = vpop.f32.mrb[9].mxu0 }
 0x108   :  { %v1345_v20 = vadd.f32 %v1344_v19, %v1343_v17  ;;  %v1384_v21 = vpop.f32.mrb[9].mxu1  ;;  %v1346_v22 = vpop.f32.mrb[10].mxu0 }
 0x109   :  { %v1385_v23 = vadd.f32 %v1384_v21, %v1383_v18  ;;  %v1386_v24 = vpop.f32.mrb[10].mxu1  ;;  %v1347_v25 = vpop.f32.mrb[11].mxu0 }
 0x10a   :  { %v854_v26 = vadd.f32 %v1345_v20, %v1175_v50  ;;  %v1348_v27 = vadd.f32 %v1347_v25, %v1346_v22  ;;  %v1387_v28 = vpop.f32.mrb[11].mxu1 }
 0x10b   :  { %v1388_v29 = vadd.f32 %v1387_v28, %v1386_v24 }
 0x10c   :  { %v918_v30 = vadd.f32 %v1385_v23, %v854_v26  ;;  %v857_v31 = vadd.f32 %v1348_v27, %v1175_v50 }
 0x10e   :  { %v921_v32 = vadd.f32 %v1388_v29, %v857_v31  ;;  %v1349_v33 = vpop.f32.mrb[12].mxu0 }
 0x10f   :  { %v1389_v34 = vpop.f32.mrb[12].mxu1  ;;  %v1350_v35 = vpop.f32.mrb[13].mxu0 }
 0x110   :  { %v1390_v36 = vpop.f32.mrb[13].mxu1  ;;  %v1351_v37 = vadd.f32 %v1350_v35, %v1349_v33  ;;  %v1352_v39 = vpop.f32.mrb[14].mxu0 }
 0x111   :  { %v1391_v38 = vadd.f32 %v1390_v36, %v1389_v34  ;;  %v1392_v40 = vpop.f32.mrb[14].mxu1  ;;  %v1353_v41 = vpop.f32.mrb[15].mxu0 }
 0x112   :  { %v1393_v42 = vpop.f32.mrb[15].mxu1  ;;  %v862_v43 = vadd.f32 %v1351_v37, %v1175_v50 }
 0x114   :  { %v926_v44 = vadd.f32 %v1391_v38, %v862_v43 }
 0x116   :  { %v1411_v45 = vpop.f32.mrb[16].mxu0 }
 0x117   :  { %v1451_v46 = vpop.f32.mrb[16].mxu1  ;;  %v1412_v47 = vpop.f32.mrb[17].mxu0 }
 0x118   :  { %v1413_v48 = vadd.f32 %v1412_v47, %v1411_v45  ;;  %v1452_v49 = vpop.f32.mrb[17].mxu1  ;;  %v1414_v51 = vpop.f32.mrb[18].mxu0 }
 0x119   :  { %v1453_v52 = vadd.f32 %v1452_v49, %v1451_v46  ;;  %v1454_v53 = vpop.f32.mrb[18].mxu1  ;;  %v1415_v54 = vpop.f32.mrb[19].mxu0 }
 0x11a   :  { %v966_v55 = vadd.f32 %v1413_v48, %v902_v62  ;;  %v1416_v56 = vadd.f32 %v1415_v54, %v1414_v51  ;;  %v1455_v57 = vpop.f32.mrb[19].mxu1 }
 0x11b   :  { %v1456_v58 = vadd.f32 %v1455_v57, %v1454_v53 }
 0x11c   :  { %v969_v59 = vadd.f32 %v1416_v56, %v905_v0  ;;  %v1030_v60 = vadd.f32 %v1453_v52, %v966_v55 }
 0x11e   :  { %v1417_v61 = vpop.f32.mrb[20].mxu0  ;;  %v1033_v63 = vadd.f32 %v1456_v58, %v969_v59  ;;  %v1168_v58 = vld [vmem:[%s2000_s3 + $0x18] sm:$0x1] }
 0x11f   :  { %v1457_v1 = vpop.f32.mrb[20].mxu1  ;;  %v1418_v50 = vpop.f32.mrb[21].mxu0 }
 0x120   :  { %v1419_v2 = vadd.f32 %v1418_v50, %v1417_v61  ;;  %v1458_v3 = vpop.f32.mrb[21].mxu1  ;;  %v1420_v4 = vpop.f32.mrb[22].mxu0 }
 0x121   :  { %v1459_v5 = vadd.f32 %v1458_v3, %v1457_v1  ;;  %v1460_v6 = vpop.f32.mrb[22].mxu1  ;;  %v1421_v7 = vpop.f32.mrb[23].mxu0 }
 0x122   :  { %v974_v8 = vadd.f32 %v1419_v2, %v910_v14  ;;  %v1422_v9 = vadd.f32 %v1421_v7, %v1420_v4  ;;  %v1461_v10 = vpop.f32.mrb[23].mxu1 }
 0x123   :  { %v1462_v11 = vadd.f32 %v1461_v10, %v1460_v6 }
 0x124   :  { %v977_v62 = vadd.f32 %v1422_v9, %v913_v16  ;;  %v1038_v12 = vadd.f32 %v1459_v5, %v974_v8 }
 0x126   :  { %v1423_v13 = vpop.f32.mrb[24].mxu0  ;;  %v1041_v15 = vadd.f32 %v1462_v11, %v977_v62 }
 0x127   :  { %v1463_v0 = vpop.f32.mrb[24].mxu1  ;;  %v1424_v17 = vpop.f32.mrb[25].mxu0 }
 0x128   :  { %v1425_v18 = vadd.f32 %v1424_v17, %v1423_v13  ;;  %v1464_v19 = vpop.f32.mrb[25].mxu1  ;;  %v1426_v20 = vpop.f32.mrb[26].mxu0 }
 0x129   :  { %v1465_v21 = vadd.f32 %v1464_v19, %v1463_v0  ;;  %v1466_v22 = vpop.f32.mrb[26].mxu1  ;;  %v1427_v23 = vpop.f32.mrb[27].mxu0 }
 0x12a   :  { %v982_v24 = vadd.f32 %v1425_v18, %v918_v30  ;;  %v1428_v25 = vadd.f32 %v1427_v23, %v1426_v20  ;;  %v1467_v26 = vpop.f32.mrb[27].mxu1 }
 0x12b   :  { %v1468_v27 = vadd.f32 %v1467_v26, %v1466_v22 }
 0x12c   :  { %v985_v14 = vadd.f32 %v1428_v25, %v921_v32  ;;  %v1046_v28 = vadd.f32 %v1465_v21, %v982_v24 }
 0x12e   :  { %v1429_v29 = vpop.f32.mrb[28].mxu0  ;;  %v1049_v31 = vadd.f32 %v1468_v27, %v985_v14 }
 0x12f   :  { %v1469_v16 = vpop.f32.mrb[28].mxu1  ;;  %v1430_v33 = vpop.f32.mrb[29].mxu0 }
 0x130   :  { %v1431_v34 = vadd.f32 %v1430_v33, %v1429_v29  ;;  %v1470_v35 = vpop.f32.mrb[29].mxu1  ;;  %v1432_v36 = vpop.f32.mrb[30].mxu0 }
 0x131   :  { %v1471_v37 = vadd.f32 %v1470_v35, %v1469_v16  ;;  %v1472_v38 = vpop.f32.mrb[30].mxu1  ;;  %v1433_v39 = vpop.f32.mrb[31].mxu0 }
 0x132   :  { %v990_v40 = vadd.f32 %v1431_v34, %v926_v44  ;;  %v1473_v41 = vpop.f32.mrb[31].mxu1 }
 0x134   :  { %v1054_v42 = vadd.f32 %v1471_v37, %v990_v40 }
 0x137   :  { %v1505_v43 = vpop.f32.mrb[32].mxu0 }
 0x138   :  { %v1102_v30 = vadd.f32 %v1505_v43, %v1038_v12  ;;  %v1509_v45 = vpop.f32.mrb[32].mxu1  ;;  %v1093_v46 = vpop.f32.mrb[33].mxu0 }
 0x139   :  { %v1118_v47 = vadd.f32 %v1509_v45, %v1054_v42  ;;  %v1094_v32 = vadd.f32 %v1093_v46, %v1030_v60  ;;  %v1109_v48 = vpop.f32.mrb[33].mxu1  ;;  %v1506_v49 = vpop.f32.mrb[34].mxu0 }
 0x13a   :  { %v1110_v51 = vadd.f32 %v1109_v48, %v1046_v28  ;;  %v1105_v52 = vadd.f32 %v1506_v49, %v1041_v15  ;;  %v1510_v53 = vpop.f32.mrb[34].mxu1  ;;  %v1096_v54 = vpop.f32.mrb[35].mxu0  ;;  %v1125_v44 = vmax.f32 %v1102_v30, 0.0 }
 0x13b   :  { %v1129_v55 = vmax.f32 %v1118_v47, 0.0  ;;  %v1097_v56 = vadd.f32 %v1096_v54, %v1033_v63  ;;  %v1112_v57 = vpop.f32.mrb[35].mxu1  ;;  %v1123_v50 = vmax.f32 %v1094_v32, 0.0 }
 0x13c   :  { %v1126_v59 = vmax.f32 %v1105_v52, 0.0  ;;  %v1113_v61 = vadd.f32 %v1112_v57, %v1049_v31  ;;  %v1127_v2 = vmax.f32 %v1110_v51, 0.0 }
 0x13d   :  { %v1297_v1 = vpack.c.bf16 %v1129_v55, %v1129_v55  ;;  %v1124_v60 = vmax.f32 %v1097_v56, 0.0 }
 0x13e   :  { %v1306_v3 = vpack.c.bf16 %v1126_v59, %v1125_v44  ;;  %v1128_v4 = vmax.f32 %v1113_v61, 0.0 }
 0x13f   :  { %v1169_v5 = vsel %vm1167_vm2, %v1297_v1, %v1168_v58  ;;  %v1301_v6 = vpack.c.bf16 %v1124_v60, %v1123_v50 }
 0x140   :  { %1170 = vst [vmem:[%s2000_s3 + $0x18] sm:$0x1] %v1169_v5  ;;  %1313 = vst [vmem:[%s2000_s3 + $0x8] sm:$0xff] %v1306_v3   ;;  %v1311_v63 = vpack.c.bf16 %v1128_v4, %v1127_v2 }
 0x141   :  { %1302 = vst [vmem:[%s2000_s3] sm:$0xff] %v1301_v6  }
 0x142   :  { %1314 = vst [vmem:[%s2000_s3 + $0x10] sm:$0xff] %v1311_v63  }

// kernel: network_forward.7
= control target key start
LH: loop header
LB: loop body
LE: loop exit
PB: predicated region body
PF: predicated region fallthrough
CT: control target
= control target key end

     0   :  { %v812_v36 = vlaneseq  ;;  %v8581_v37 = vmov 1966171168   ;;  %s11223_s0 = inlined_call_operand.vmem [shape: bf16[2,3136], index: 0, kind: input, shape index: {}]   ;;  %s11224_s1 = inlined_call_operand.vmem [shape: bf16[3136,512], index: 1, kind: input, shape index: {}]   ;;  %s11225_s2 = inlined_call_operand.vmem [shape: f32[1,512], index: 2, kind: input, shape index: {}]   ;;  %s11226_s3 = inlined_call_operand.vmem [shape: bf16[512,128], index: 3, kind: input, shape index: {}]   ;;  %s11227_s4 = inlined_call_operand.vmem [shape: f32[1,128], index: 4, kind: input, shape index: {}]   ;;  %s11228_s5 = inlined_call_operand.hbm [shape: f32[2,128], index: 5, kind: output, shape index: {}]  }
   0x1   :  { %v7344_v0 = vld [vmem:[%s11224_s1 + $0x4] ss:$16 sps:$4 sm:$0xff]   ;;  %v7346_v1 = vld [vmem:[%s11224_s1 + $0xc] ss:$16 sps:$4 sm:$0xff]   ;;  %v7348_v2 = vld [vmem:[%s11224_s1] ss:$16 sps:$4 sm:$0xff]   ;;  %v838_v38 = vunpack.c.l.s4 %v8581_v37 }
   0x2   :  { %4945 = vmatprep.subr.bf16.mxu0 %v7344_v0  ;;  %v7349_v3 = vld [vmem:[%s11224_s1 + $0x8] ss:$16 sps:$4 sm:$0xff]   ;;  %5478 = vmatprep.subr.bf16.mxu1 %v7346_v1  ;;  %v7350_v4 = vld [vmem:[%s11224_s1 + $0x24] ss:$16 sps:$4 sm:$0xff]   ;;  %v7352_v5 = vld [vmem:[%s11224_s1 + $0x2c] ss:$16 sps:$4 sm:$0xff]  }
   0x3   :  { %4946 = vmatpush1.bf16.msra.mxu0 %v7348_v2  ;;  %5479 = vmatpush1.bf16.msra.mxu1 %v7349_v3  ;;  %v7354_v6 = vld [vmem:[%s11224_s1 + $0x20] ss:$16 sps:$4 sm:$0xff]   ;;  %v7355_v7 = vld [vmem:[%s11224_s1 + $0x28] ss:$16 sps:$4 sm:$0xff]   ;;  %v7356_v8 = vld [vmem:[%s11224_s1 + $0x44] ss:$16 sps:$4 sm:$0xff]   ;;  %v839_v43 = vunpack.c.0.s8 %v838_v38 }
   0x4   :  { %4947 = vmatprep.subr.bf16.mxu0 %v7350_v4  ;;  %5480 = vmatprep.subr.bf16.mxu1 %v7352_v5  ;;  %v7358_v9 = vld [vmem:[%s11224_s1 + $0x4c] ss:$16 sps:$4 sm:$0xff]   ;;  %v7360_v10 = vld [vmem:[%s11224_s1 + $0x40] ss:$16 sps:$4 sm:$0xff]   ;;  %v7361_v11 = vld [vmem:[%s11224_s1 + $0x48] ss:$16 sps:$4 sm:$0xff]  }
   0x5   :  { %v7362_v12 = vld [vmem:[%s11224_s1 + $0x64] ss:$16 sps:$4 sm:$0xff]   ;;  %v7364_v13 = vld [vmem:[%s11224_s1 + $0x6c] ss:$16 sps:$4 sm:$0xff]   ;;  %v7366_v14 = vld [vmem:[%s11224_s1 + $0x60] ss:$16 sps:$4 sm:$0xff]  }
   0x6   :  { %v7367_v15 = vld [vmem:[%s11224_s1 + $0x68] ss:$16 sps:$4 sm:$0xff]   ;;  %v7368_v16 = vld [vmem:[%s11224_s1 + $0x84] ss:$16 sps:$4 sm:$0xff]   ;;  %v7370_v17 = vld [vmem:[%s11224_s1 + $0x8c] ss:$16 sps:$4 sm:$0xff]  }
   0x7   :  { %4948 = vmatpush1.bf16.msra.mxu0 %v7354_v6  ;;  %5481 = vmatpush1.bf16.msra.mxu1 %v7355_v7  ;;  %v7372_v18 = vld [vmem:[%s11224_s1 + $0x80] ss:$16 sps:$4 sm:$0xff]   ;;  %v7373_v19 = vld [vmem:[%s11224_s1 + $0x88] ss:$16 sps:$4 sm:$0xff]   ;;  %v7374_v20 = vld [vmem:[%s11224_s1 + $0xa4] ss:$16 sps:$4 sm:$0xff]  }
   0x8   :  { %4949 = vmatprep.subr.bf16.mxu0 %v7356_v8  ;;  %5482 = vmatprep.subr.bf16.mxu1 %v7358_v9  ;;  %v7376_v21 = vld [vmem:[%s11224_s1 + $0xac] ss:$16 sps:$4 sm:$0xff]   ;;  %v7378_v22 = vld [vmem:[%s11224_s1 + $0xa0] ss:$16 sps:$4 sm:$0xff]   ;;  %v7379_v23 = vld [vmem:[%s11224_s1 + $0xa8] ss:$16 sps:$4 sm:$0xff]  }
   0x9   :  { %v7380_v24 = vld [vmem:[%s11224_s1 + $0xc4] ss:$16 sps:$4 sm:$0xff]   ;;  %v7382_v25 = vld [vmem:[%s11224_s1 + $0xcc] ss:$16 sps:$4 sm:$0xff]   ;;  %v7384_v26 = vld [vmem:[%s11224_s1 + $0xc0] ss:$16 sps:$4 sm:$0xff]  }
   0xa   :  { %v7385_v27 = vld [vmem:[%s11224_s1 + $0xc8] ss:$16 sps:$4 sm:$0xff]   ;;  %v7386_v28 = vld [vmem:[%s11224_s1 + $0xe4] ss:$16 sps:$4 sm:$0xff]   ;;  %v7388_v29 = vld [vmem:[%s11224_s1 + $0xec] ss:$16 sps:$4 sm:$0xff]  }
   0xb   :  { %4950 = vmatpush1.bf16.msra.mxu0 %v7360_v10  ;;  %5483 = vmatpush1.bf16.msra.mxu1 %v7361_v11  ;;  %v7390_v30 = vld [vmem:[%s11224_s1 + $0xe0] ss:$16 sps:$4 sm:$0xff]   ;;  %v7391_v31 = vld [vmem:[%s11224_s1 + $0xe8] ss:$16 sps:$4 sm:$0xff]   ;;  %v7392_v32 = vld [vmem:[%s11224_s1 + $0x104] ss:$16 sps:$4 sm:$0xff]  }
   0xc   :  { %4951 = vmatprep.subr.bf16.mxu0 %v7362_v12  ;;  %5484 = vmatprep.subr.bf16.mxu1 %v7364_v13  ;;  %v7394_v33 = vld [vmem:[%s11224_s1 + $0x10c] ss:$16 sps:$4 sm:$0xff]   ;;  %v7396_v34 = vld [vmem:[%s11224_s1 + $0x100] ss:$16 sps:$4 sm:$0xff]   ;;  %v7397_v35 = vld [vmem:[%s11224_s1 + $0x108] ss:$16 sps:$4 sm:$0xff]  }
   0xd   :  { %v7398_v39 = vld [vmem:[%s11224_s1 + $0x124] ss:$16 sps:$4 sm:$0xff]   ;;  %v7400_v40 = vld [vmem:[%s11224_s1 + $0x12c] ss:$16 sps:$4 sm:$0xff]   ;;  %v7402_v41 = vld [vmem:[%s11224_s1 + $0x120] ss:$16 sps:$4 sm:$0xff]  }
   0xe   :  { %v8731_v42 = vshrl.u32 %v812_v36, 7  ;;  %v7403_v44 = vld [vmem:[%s11224_s1 + $0x128] ss:$16 sps:$4 sm:$0xff]   ;;  %v7404_v45 = vld [vmem:[%s11224_s1 + $0x144] ss:$16 sps:$4 sm:$0xff]  }
   0xf   :  { %4952 = vmatpush1.bf16.msra.mxu0 %v7366_v14  ;;  %5485 = vmatpush1.bf16.msra.mxu1 %v7367_v15  ;;  %v7406_v46 = vld [vmem:[%s11224_s1 + $0x14c] ss:$16 sps:$4 sm:$0xff]   ;;  %v7408_v47 = vld [vmem:[%s11224_s1 + $0x140] ss:$16 sps:$4 sm:$0xff]   ;;  %v7409_v48 = vld [vmem:[%s11224_s1 + $0x148] ss:$16 sps:$4 sm:$0xff]  }
  0x10   :  { %4953 = vmatprep.subr.bf16.mxu0 %v7368_v16  ;;  %5486 = vmatprep.subr.bf16.mxu1 %v7370_v17  ;;  %v8749_v49 = vsub.s32 %v839_v43, %v8731_v42  ;;  %v7410_v50 = vld [vmem:[%s11224_s1 + $0x164] ss:$16 sps:$4 sm:$0xff]   ;;  %v7412_v51 = vld [vmem:[%s11224_s1 + $0x16c] ss:$16 sps:$4 sm:$0xff]   ;;  %v7414_v53 = vld [vmem:[%s11224_s1 + $0x160] ss:$16 sps:$4 sm:$0xff]  }
  0x11   :  { %v8760_v52 = vld [vmem:[%s11223_s0] sm:$0xff]  ;;  %v7415_v55 = vld [vmem:[%s11224_s1 + $0x168] ss:$16 sps:$4 sm:$0xff]   ;;  %v7418_v57 = vld [vmem:[%s11224_s1 + $0x18c] ss:$16 sps:$4 sm:$0xff]  }
  0x12   :  { %v843_v54 = vrot.slane %v8760_v52, %v8749_v49  ;;  %v7416_v56 = vld [vmem:[%s11224_s1 + $0x184] ss:$16 sps:$4 sm:$0xff]   ;;  %v7420_v59 = vld [vmem:[%s11224_s1 + $0x180] ss:$16 sps:$4 sm:$0xff]   ;;  %v7421_v61 = vld [vmem:[%s11224_s1 + $0x188] ss:$16 sps:$4 sm:$0xff]  }
  0x13   :  { %4954 = vmatpush1.bf16.msra.mxu0 %v7372_v18  ;;  %5487 = vmatpush1.bf16.msra.mxu1 %v7373_v19  ;;  %v7422_v62 = vld [vmem:[%s11224_s1 + $0x1a4] ss:$16 sps:$4 sm:$0xff]   ;;  %v7424_v63 = vld [vmem:[%s11224_s1 + $0x1ac] ss:$16 sps:$4 sm:$0xff]   ;;  %v7426_v0 = vld [vmem:[%s11224_s1 + $0x1a0] ss:$16 sps:$4 sm:$0xff]  }
  0x14   :  { %4955 = vmatprep.subr.bf16.mxu0 %v7374_v20  ;;  %5488 = vmatprep.subr.bf16.mxu1 %v7376_v21  ;;  %v851_v58 = vcombine.high %v843_v54, %v843_v54  ;;  %v7427_v1 = vld [vmem:[%s11224_s1 + $0x1a8] ss:$16 sps:$4 sm:$0xff]   ;;  %v7428_v2 = vld [vmem:[%s11224_s1 + $0x1c4] ss:$16 sps:$4 sm:$0xff]   ;;  %v7430_v3 = vld [vmem:[%s11224_s1 + $0x1cc] ss:$16 sps:$4 sm:$0xff]   ;;  %v8829_v13 = vrot.slane %v843_v54, %v8749_v49 }
  0x15   :  { %v7432_v4 = vld [vmem:[%s11224_s1 + $0x1c0] ss:$16 sps:$4 sm:$0xff]   ;;  %v7433_v5 = vld [vmem:[%s11224_s1 + $0x1c8] ss:$16 sps:$4 sm:$0xff]   ;;  %v7434_v6 = vld [vmem:[%s11224_s1 + $0x1e4] ss:$16 sps:$4 sm:$0xff]  }
  0x16   :  { %v873_v60 = vrot.slane %v851_v58, %v8749_v49  ;;  %v7436_v7 = vld [vmem:[%s11224_s1 + $0x1ec] ss:$16 sps:$4 sm:$0xff]   ;;  %v7438_v8 = vld [vmem:[%s11224_s1 + $0x1e0] ss:$16 sps:$4 sm:$0xff]   ;;  %v7439_v9 = vld [vmem:[%s11224_s1 + $0x1e8] ss:$16 sps:$4 sm:$0xff]  }
  0x17   :  { %4956 = vmatpush1.bf16.msra.mxu0 %v7378_v22  ;;  %5489 = vmatpush1.bf16.msra.mxu1 %v7379_v23  ;;  %v7442_v10 = vld [vmem:[%s11224_s1 + $0x204] ss:$16 sps:$4 sm:$0xff]   ;;  %v7445_v11 = vld [vmem:[%s11224_s1 + $0x20c] ss:$16 sps:$4 sm:$0xff]   ;;  %v7440_v12 = vld [vmem:[%s11224_s1 + $0x200] ss:$16 sps:$4 sm:$0xff]  }
  0x18   :  { %4957 = vmatprep.subr.bf16.mxu0 %v7380_v24  ;;  %5490 = vmatprep.subr.bf16.mxu1 %v7382_v25  ;;  %v7443_v14 = vld [vmem:[%s11224_s1 + $0x208] ss:$16 sps:$4 sm:$0xff]   ;;  %v7448_v15 = vld [vmem:[%s11224_s1 + $0x224] ss:$16 sps:$4 sm:$0xff]   ;;  %v7451_v16 = vld [vmem:[%s11224_s1 + $0x22c] ss:$16 sps:$4 sm:$0xff]   ;;  %v883_v17 = vcombine.high %v873_v60, %v873_v60 }
  0x19   :  { %4977 = vmatprep.mubr.bf16.mxu0 %v873_v60  ;;  %5510 = vmatprep.mubr.bf16.mxu1 %v873_v60  ;;  %v7446_v18 = vld [vmem:[%s11224_s1 + $0x220] ss:$16 sps:$4 sm:$0xff]   ;;  %v7449_v19 = vld [vmem:[%s11224_s1 + $0x228] ss:$16 sps:$4 sm:$0xff]   ;;  %v7454_v20 = vld [vmem:[%s11224_s1 + $0x244] ss:$16 sps:$4 sm:$0xff]  }
  0x1a   :  { %v7457_v21 = vld [vmem:[%s11224_s1 + $0x24c] ss:$16 sps:$4 sm:$0xff]   ;;  %v7452_v22 = vld [vmem:[%s11224_s1 + $0x240] ss:$16 sps:$4 sm:$0xff]   ;;  %v7455_v23 = vld [vmem:[%s11224_s1 + $0x248] ss:$16 sps:$4 sm:$0xff]  }
  0x1b   :  { %4958 = vmatpush1.bf16.msra.mxu0 %v7384_v26  ;;  %5491 = vmatpush1.bf16.msra.mxu1 %v7385_v27  ;;  %v7460_v24 = vld [vmem:[%s11224_s1 + $0x264] ss:$16 sps:$4 sm:$0xff]   ;;  %v7463_v25 = vld [vmem:[%s11224_s1 + $0x26c] ss:$16 sps:$4 sm:$0xff]   ;;  %v7458_v26 = vld [vmem:[%s11224_s1 + $0x260] ss:$16 sps:$4 sm:$0xff]  }
  0x1c   :  { %4959 = vmatprep.subr.bf16.mxu0 %v7386_v28  ;;  %5492 = vmatprep.subr.bf16.mxu1 %v7388_v29  ;;  %v7461_v27 = vld [vmem:[%s11224_s1 + $0x268] ss:$16 sps:$4 sm:$0xff]   ;;  %v7466_v28 = vld [vmem:[%s11224_s1 + $0x284] ss:$16 sps:$4 sm:$0xff]   ;;  %v7469_v29 = vld [vmem:[%s11224_s1 + $0x28c] ss:$16 sps:$4 sm:$0xff]  }
  0x1d   :  { %v7478_v36 = vld [vmem:[%s11224_s1 + $0x2c4] ss:$16 sps:$4 sm:$0xff]   ;;  %v7481_v37 = vld [vmem:[%s11224_s1 + $0x2cc] ss:$16 sps:$4 sm:$0xff]   ;;  %v7476_v38 = vld [vmem:[%s11224_s1 + $0x2c0] ss:$16 sps:$4 sm:$0xff]  }
  0x1e   :  { %v7482_v43 = vld [vmem:[%s11224_s1 + $0x2e0] ss:$16 sps:$4 sm:$0xff]   ;;  %v7497_v54 = vld [vmem:[%s11224_s1 + $0x328] ss:$16 sps:$4 sm:$0xff]   ;;  %v7511_v60 = vld [vmem:[%s11224_s1 + $0x36c] ss:$16 sps:$4 sm:$0xff]  }
  0x1f   :  { %4960 = vmatpush1.bf16.msra.mxu0 %v7390_v30  ;;  %5493 = vmatpush1.bf16.msra.mxu1 %v7391_v31  ;;  %v7464_v30 = vld [vmem:[%s11224_s1 + $0x280] ss:$16 sps:$4 sm:$0xff]   ;;  %v7467_v31 = vld [vmem:[%s11224_s1 + $0x288] ss:$16 sps:$4 sm:$0xff]  }
  0x20   :  { %4961 = vmatprep.subr.bf16.mxu0 %v7392_v32  ;;  %5494 = vmatprep.subr.bf16.mxu1 %v7394_v33  ;;  %v7472_v32 = vld [vmem:[%s11224_s1 + $0x2a4] ss:$16 sps:$4 sm:$0xff]   ;;  %v7475_v33 = vld [vmem:[%s11224_s1 + $0x2ac] ss:$16 sps:$4 sm:$0xff]   ;;  %v7503_v58 = vld [vmem:[%s11224_s1 + $0x348] ss:$16 sps:$4 sm:$0xff]  }
  0x23   :  { %4962 = vmatpush1.bf16.msra.mxu0 %v7396_v34  ;;  %5495 = vmatpush1.bf16.msra.mxu1 %v7397_v35  ;;  %v7470_v34 = vld [vmem:[%s11224_s1 + $0x2a0] ss:$16 sps:$4 sm:$0xff]   ;;  %v7473_v35 = vld [vmem:[%s11224_s1 + $0x2a8] ss:$16 sps:$4 sm:$0xff]  }
  0x24   :  { %4963 = vmatprep.subr.bf16.mxu0 %v7398_v39  ;;  %5496 = vmatprep.subr.bf16.mxu1 %v7400_v40  ;;  %v7479_v39 = vld [vmem:[%s11224_s1 + $0x2c8] ss:$16 sps:$4 sm:$0xff]   ;;  %v7484_v40 = vld [vmem:[%s11224_s1 + $0x2e4] ss:$16 sps:$4 sm:$0xff]  }
  0x27   :  { %4964 = vmatpush1.bf16.msra.mxu0 %v7402_v41  ;;  %5497 = vmatpush1.bf16.msra.mxu1 %v7403_v44  ;;  %v7487_v41 = vld [vmem:[%s11224_s1 + $0x2ec] ss:$16 sps:$4 sm:$0xff]   ;;  %v7485_v44 = vld [vmem:[%s11224_s1 + $0x2e8] ss:$16 sps:$4 sm:$0xff]  }
  0x28   :  { %4965 = vmatprep.subr.bf16.mxu0 %v7404_v45  ;;  %5498 = vmatprep.subr.bf16.mxu1 %v7406_v46  ;;  %v7490_v45 = vld [vmem:[%s11224_s1 + $0x304] ss:$16 sps:$4 sm:$0xff]   ;;  %v7493_v46 = vld [vmem:[%s11224_s1 + $0x30c] ss:$16 sps:$4 sm:$0xff]  }
  0x2b   :  { %4966 = vmatpush1.bf16.msra.mxu0 %v7408_v47  ;;  %5499 = vmatpush1.bf16.msra.mxu1 %v7409_v48  ;;  %v7488_v47 = vld [vmem:[%s11224_s1 + $0x300] ss:$16 sps:$4 sm:$0xff]   ;;  %v7491_v48 = vld [vmem:[%s11224_s1 + $0x308] ss:$16 sps:$4 sm:$0xff]  }
  0x2c   :  { %4967 = vmatprep.subr.bf16.mxu0 %v7410_v50  ;;  %5500 = vmatprep.subr.bf16.mxu1 %v7412_v51  ;;  %v7496_v50 = vld [vmem:[%s11224_s1 + $0x324] ss:$16 sps:$4 sm:$0xff]   ;;  %v7499_v51 = vld [vmem:[%s11224_s1 + $0x32c] ss:$16 sps:$4 sm:$0xff]  }
  0x2f   :  { %4968 = vmatpush1.bf16.msra.mxu0 %v7414_v53  ;;  %5501 = vmatpush1.bf16.msra.mxu1 %v7415_v55  ;;  %v7494_v53 = vld [vmem:[%s11224_s1 + $0x320] ss:$16 sps:$4 sm:$0xff]   ;;  %v7502_v55 = vld [vmem:[%s11224_s1 + $0x344] ss:$16 sps:$4 sm:$0xff]  }
  0x30   :  { %4969 = vmatprep.subr.bf16.mxu0 %v7416_v56  ;;  %5502 = vmatprep.subr.bf16.mxu1 %v7418_v57  ;;  %v7505_v56 = vld [vmem:[%s11224_s1 + $0x34c] ss:$16 sps:$4 sm:$0xff]   ;;  %v7500_v57 = vld [vmem:[%s11224_s1 + $0x340] ss:$16 sps:$4 sm:$0xff]  }
  0x33   :  { %4970 = vmatpush1.bf16.msra.mxu0 %v7420_v59  ;;  %5503 = vmatpush1.bf16.msra.mxu1 %v7421_v61  ;;  %v7508_v59 = vld [vmem:[%s11224_s1 + $0x364] ss:$16 sps:$4 sm:$0xff]   ;;  %v7506_v61 = vld [vmem:[%s11224_s1 + $0x360] ss:$16 sps:$4 sm:$0xff]  }
  0x34   :  { %4971 = vmatprep.subr.bf16.mxu0 %v7422_v62  ;;  %5504 = vmatprep.subr.bf16.mxu1 %v7424_v63  ;;  %v7509_v62 = vld [vmem:[%s11224_s1 + $0x368] ss:$16 sps:$4 sm:$0xff]   ;;  %v7514_v63 = vld [vmem:[%s11224_s1 + $0x384] ss:$16 sps:$4 sm:$0xff]  }
  0x37   :  { %4972 = vmatpush1.bf16.msra.mxu0 %v7426_v0  ;;  %5505 = vmatpush1.bf16.msra.mxu1 %v7427_v1  ;;  %v7517_v0 = vld [vmem:[%s11224_s1 + $0x38c] ss:$16 sps:$4 sm:$0xff]   ;;  %v7512_v1 = vld [vmem:[%s11224_s1 + $0x380] ss:$16 sps:$4 sm:$0xff]  }
  0x38   :  { %4973 = vmatprep.subr.bf16.mxu0 %v7428_v2  ;;  %5506 = vmatprep.subr.bf16.mxu1 %v7430_v3  ;;  %v7515_v2 = vld [vmem:[%s11224_s1 + $0x388] ss:$16 sps:$4 sm:$0xff]   ;;  %v7520_v3 = vld [vmem:[%s11224_s1 + $0x3a4] ss:$16 sps:$4 sm:$0xff]  }
  0x3b   :  { %4974 = vmatpush1.bf16.msra.mxu0 %v7432_v4  ;;  %5507 = vmatpush1.bf16.msra.mxu1 %v7433_v5  ;;  %v7523_v4 = vld [vmem:[%s11224_s1 + $0x3ac] ss:$16 sps:$4 sm:$0xff]   ;;  %v7518_v5 = vld [vmem:[%s11224_s1 + $0x3a0] ss:$16 sps:$4 sm:$0xff]  }
  0x3c   :  { %4975 = vmatprep.subr.bf16.mxu0 %v7434_v6  ;;  %5508 = vmatprep.subr.bf16.mxu1 %v7436_v7  ;;  %v7521_v6 = vld [vmem:[%s11224_s1 + $0x3a8] ss:$16 sps:$4 sm:$0xff]   ;;  %v7526_v7 = vld [vmem:[%s11224_s1 + $0x3c4] ss:$16 sps:$4 sm:$0xff]  }
  0x3f   :  { %4976 = vmatpush1.bf16.msra.mxu0 %v7438_v8  ;;  %5509 = vmatpush1.bf16.msra.mxu1 %v7439_v9  ;;  %v7529_v8 = vld [vmem:[%s11224_s1 + $0x3cc] ss:$16 sps:$4 sm:$0xff]   ;;  %v836_v9 = vcombine.high %v8760_v52, %v8760_v52 }
  0x40   :  { %4986 = vmatprep.subr.bf16.mxu0 %v7442_v10  ;;  %5519 = vmatprep.subr.bf16.mxu1 %v7445_v11  ;;  %v7524_v10 = vld [vmem:[%s11224_s1 + $0x3c0] ss:$16 sps:$4 sm:$0xff]   ;;  %v7527_v11 = vld [vmem:[%s11224_s1 + $0x3c8] ss:$16 sps:$4 sm:$0xff]   ;;  %v7535_v52 = vld [vmem:[%s11224_s1 + $0x3ec] ss:$16 sps:$4 sm:$0xff]  }
  0x42   :  { %4978 = vmatmul.mubr.bf16.vlgmr.msra.gmra.mrb[0].mxu0 %v8829_v13  ;;  %5511 = vmatmul.mubr.bf16.vlgmr.msra.gmra.mrb[0].mxu1 %v8829_v13 }
  0x43   :  { %4987 = vmatpush1.bf16.msra.mxu0 %v7440_v12  ;;  %5520 = vmatpush1.bf16.msra.mxu1 %v7443_v14  ;;  %v7532_v12 = vld [vmem:[%s11224_s1 + $0x3e4] ss:$16 sps:$4 sm:$0xff]   ;;  %v9013_v14 = vrot.slane %v836_v9, %v8749_v49  ;;  %v7611_v9 = vld [vmem:[%s11224_s1 + $0x588] ss:$16 sps:$4 sm:$0xff]  }
  0x44   :  { %4988 = vmatprep.subr.bf16.mxu0 %v7448_v15  ;;  %5521 = vmatprep.subr.bf16.mxu1 %v7451_v16  ;;  %v7530_v15 = vld [vmem:[%s11224_s1 + $0x3e0] ss:$16 sps:$4 sm:$0xff]   ;;  %v7533_v16 = vld [vmem:[%s11224_s1 + $0x3e8] ss:$16 sps:$4 sm:$0xff]  }
  0x45   :  { %5018 = vmatprep.mubr.bf16.mxu0 %v883_v17  ;;  %5551 = vmatprep.mubr.bf16.mxu1 %v883_v17  ;;  %v7538_v17 = vld [vmem:[%s11224_s1 + $0x404] ss:$16 sps:$4 sm:$0xff]  }
  0x47   :  { %4989 = vmatpush1.bf16.msra.mxu0 %v7446_v18  ;;  %5522 = vmatpush1.bf16.msra.mxu1 %v7449_v19  ;;  %v7541_v18 = vld [vmem:[%s11224_s1 + $0x40c] ss:$16 sps:$4 sm:$0xff]   ;;  %v852_v19 = vcombine.high %v9013_v14, %v9013_v14 }
  0x48   :  { %4990 = vmatprep.subr.bf16.mxu0 %v7454_v20  ;;  %5523 = vmatprep.subr.bf16.mxu1 %v7457_v21  ;;  %v7536_v20 = vld [vmem:[%s11224_s1 + $0x400] ss:$16 sps:$4 sm:$0xff]   ;;  %v881_v21 = vcombine.high %v8829_v13, %v8829_v13 }
  0x49   :  { %v7542_v13 = vld [vmem:[%s11224_s1 + $0x420] ss:$16 sps:$4 sm:$0xff]  }
  0x4b   :  { %4991 = vmatpush1.bf16.msra.mxu0 %v7452_v22  ;;  %5524 = vmatpush1.bf16.msra.mxu1 %v7455_v23  ;;  %v7539_v22 = vld [vmem:[%s11224_s1 + $0x408] ss:$16 sps:$4 sm:$0xff]   ;;  %v7544_v23 = vld [vmem:[%s11224_s1 + $0x424] ss:$16 sps:$4 sm:$0xff]  }
  0x4c   :  { %4992 = vmatprep.subr.bf16.mxu0 %v7460_v24  ;;  %5525 = vmatprep.subr.bf16.mxu1 %v7463_v25  ;;  %v7547_v24 = vld [vmem:[%s11224_s1 + $0x42c] ss:$16 sps:$4 sm:$0xff]   ;;  %v9044_v25 = vrot.slane %v852_v19, %v8749_v49  ;;  %v7628_v19 = vld [vmem:[%s11224_s1 + $0x5e4] ss:$16 sps:$4 sm:$0xff]  }
  0x4f   :  { %4993 = vmatpush1.bf16.msra.mxu0 %v7458_v26  ;;  %5526 = vmatpush1.bf16.msra.mxu1 %v7461_v27  ;;  %v7545_v26 = vld [vmem:[%s11224_s1 + $0x428] ss:$16 sps:$4 sm:$0xff]   ;;  %v7550_v27 = vld [vmem:[%s11224_s1 + $0x444] ss:$16 sps:$4 sm:$0xff]  }
  0x50   :  { %4994 = vmatprep.subr.bf16.mxu0 %v7466_v28  ;;  %5527 = vmatprep.subr.bf16.mxu1 %v7469_v29  ;;  %v7553_v28 = vld [vmem:[%s11224_s1 + $0x44c] ss:$16 sps:$4 sm:$0xff]   ;;  %v7548_v29 = vld [vmem:[%s11224_s1 + $0x440] ss:$16 sps:$4 sm:$0xff]  }
  0x53   :  { %4995 = vmatpush1.bf16.msra.mxu0 %v7464_v30  ;;  %5528 = vmatpush1.bf16.msra.mxu1 %v7467_v31  ;;  %v7551_v30 = vld [vmem:[%s11224_s1 + $0x448] ss:$16 sps:$4 sm:$0xff]   ;;  %v7556_v31 = vld [vmem:[%s11224_s1 + $0x464] ss:$16 sps:$4 sm:$0xff]  }
  0x54   :  { %4996 = vmatprep.subr.bf16.mxu0 %v7472_v32  ;;  %5529 = vmatprep.subr.bf16.mxu1 %v7475_v33  ;;  %v7559_v32 = vld [vmem:[%s11224_s1 + $0x46c] ss:$16 sps:$4 sm:$0xff]   ;;  %v7554_v33 = vld [vmem:[%s11224_s1 + $0x460] ss:$16 sps:$4 sm:$0xff]  }
  0x57   :  { %4997 = vmatpush1.bf16.msra.mxu0 %v7470_v34  ;;  %5530 = vmatpush1.bf16.msra.mxu1 %v7473_v35  ;;  %v7557_v34 = vld [vmem:[%s11224_s1 + $0x468] ss:$16 sps:$4 sm:$0xff]   ;;  %v7562_v35 = vld [vmem:[%s11224_s1 + $0x484] ss:$16 sps:$4 sm:$0xff]  }
  0x58   :  { %4998 = vmatprep.subr.bf16.mxu0 %v7478_v36  ;;  %5531 = vmatprep.subr.bf16.mxu1 %v7481_v37  ;;  %v7565_v36 = vld [vmem:[%s11224_s1 + $0x48c] ss:$16 sps:$4 sm:$0xff]   ;;  %v7560_v37 = vld [vmem:[%s11224_s1 + $0x480] ss:$16 sps:$4 sm:$0xff]  }
  0x5b   :  { %4999 = vmatpush1.bf16.msra.mxu0 %v7476_v38  ;;  %5532 = vmatpush1.bf16.msra.mxu1 %v7479_v39  ;;  %v7563_v38 = vld [vmem:[%s11224_s1 + $0x488] ss:$16 sps:$4 sm:$0xff]   ;;  %v7568_v39 = vld [vmem:[%s11224_s1 + $0x4a4] ss:$16 sps:$4 sm:$0xff]  }
  0x5c   :  { %5000 = vmatprep.subr.bf16.mxu0 %v7484_v40  ;;  %5533 = vmatprep.subr.bf16.mxu1 %v7487_v41  ;;  %v7571_v40 = vld [vmem:[%s11224_s1 + $0x4ac] ss:$16 sps:$4 sm:$0xff]   ;;  %v7566_v41 = vld [vmem:[%s11224_s1 + $0x4a0] ss:$16 sps:$4 sm:$0xff]  }
  0x5f   :  { %5001 = vmatpush1.bf16.msra.mxu0 %v7482_v43  ;;  %5534 = vmatpush1.bf16.msra.mxu1 %v7485_v44  ;;  %v7569_v43 = vld [vmem:[%s11224_s1 + $0x4a8] ss:$16 sps:$4 sm:$0xff]   ;;  %v7574_v44 = vld [vmem:[%s11224_s1 + $0x4c4] ss:$16 sps:$4 sm:$0xff]  }
  0x60   :  { %5002 = vmatprep.subr.bf16.mxu0 %v7490_v45  ;;  %5535 = vmatprep.subr.bf16.mxu1 %v7493_v46  ;;  %v7577_v45 = vld [vmem:[%s11224_s1 + $0x4cc] ss:$16 sps:$4 sm:$0xff]   ;;  %v7572_v46 = vld [vmem:[%s11224_s1 + $0x4c0] ss:$16 sps:$4 sm:$0xff]  }
  0x63   :  { %5003 = vmatpush1.bf16.msra.mxu0 %v7488_v47  ;;  %5536 = vmatpush1.bf16.msra.mxu1 %v7491_v48  ;;  %v7575_v47 = vld [vmem:[%s11224_s1 + $0x4c8] ss:$16 sps:$4 sm:$0xff]   ;;  %v7580_v48 = vld [vmem:[%s11224_s1 + $0x4e4] ss:$16 sps:$4 sm:$0xff]  }
  0x64   :  { %5004 = vmatprep.subr.bf16.mxu0 %v7496_v50  ;;  %5537 = vmatprep.subr.bf16.mxu1 %v7499_v51  ;;  %v7583_v50 = vld [vmem:[%s11224_s1 + $0x4ec] ss:$16 sps:$4 sm:$0xff]   ;;  %v7578_v51 = vld [vmem:[%s11224_s1 + $0x4e0] ss:$16 sps:$4 sm:$0xff]  }
  0x67   :  { %5005 = vmatpush1.bf16.msra.mxu0 %v7494_v53  ;;  %5538 = vmatpush1.bf16.msra.mxu1 %v7497_v54  ;;  %v7581_v53 = vld [vmem:[%s11224_s1 + $0x4e8] ss:$16 sps:$4 sm:$0xff]   ;;  %v7586_v54 = vld [vmem:[%s11224_s1 + $0x504] ss:$16 sps:$4 sm:$0xff]  }
  0x68   :  { %5006 = vmatprep.subr.bf16.mxu0 %v7502_v55  ;;  %5539 = vmatprep.subr.bf16.mxu1 %v7505_v56  ;;  %v7589_v55 = vld [vmem:[%s11224_s1 + $0x50c] ss:$16 sps:$4 sm:$0xff]   ;;  %v7584_v56 = vld [vmem:[%s11224_s1 + $0x500] ss:$16 sps:$4 sm:$0xff]  }
  0x6b   :  { %5007 = vmatpush1.bf16.msra.mxu0 %v7500_v57  ;;  %5540 = vmatpush1.bf16.msra.mxu1 %v7503_v58  ;;  %v7587_v57 = vld [vmem:[%s11224_s1 + $0x508] ss:$16 sps:$4 sm:$0xff]   ;;  %v7592_v58 = vld [vmem:[%s11224_s1 + $0x524] ss:$16 sps:$4 sm:$0xff]  }
  0x6c   :  { %5008 = vmatprep.subr.bf16.mxu0 %v7508_v59  ;;  %5541 = vmatprep.subr.bf16.mxu1 %v7511_v60  ;;  %v7595_v59 = vld [vmem:[%s11224_s1 + $0x52c] ss:$16 sps:$4 sm:$0xff]   ;;  %v7590_v60 = vld [vmem:[%s11224_s1 + $0x520] ss:$16 sps:$4 sm:$0xff]  }
  0x6f   :  { %5009 = vmatpush1.bf16.msra.mxu0 %v7506_v61  ;;  %5542 = vmatpush1.bf16.msra.mxu1 %v7509_v62  ;;  %v7593_v61 = vld [vmem:[%s11224_s1 + $0x528] ss:$16 sps:$4 sm:$0xff]   ;;  %v7598_v62 = vld [vmem:[%s11224_s1 + $0x544] ss:$16 sps:$4 sm:$0xff]  }
  0x70   :  { %5010 = vmatprep.subr.bf16.mxu0 %v7514_v63  ;;  %5543 = vmatprep.subr.bf16.mxu1 %v7517_v0  ;;  %v7601_v63 = vld [vmem:[%s11224_s1 + $0x54c] ss:$16 sps:$4 sm:$0xff]   ;;  %v7596_v0 = vld [vmem:[%s11224_s1 + $0x540] ss:$16 sps:$4 sm:$0xff]  }
  0x73   :  { %5011 = vmatpush1.bf16.msra.mxu0 %v7512_v1  ;;  %5544 = vmatpush1.bf16.msra.mxu1 %v7515_v2  ;;  %v7599_v1 = vld [vmem:[%s11224_s1 + $0x548] ss:$16 sps:$4 sm:$0xff]   ;;  %v7604_v2 = vld [vmem:[%s11224_s1 + $0x564] ss:$16 sps:$4 sm:$0xff]  }
  0x74   :  { %5012 = vmatprep.subr.bf16.mxu0 %v7520_v3  ;;  %5545 = vmatprep.subr.bf16.mxu1 %v7523_v4  ;;  %v7607_v3 = vld [vmem:[%s11224_s1 + $0x56c] ss:$16 sps:$4 sm:$0xff]   ;;  %v7602_v4 = vld [vmem:[%s11224_s1 + $0x560] ss:$16 sps:$4 sm:$0xff]  }
  0x77   :  { %5013 = vmatpush1.bf16.msra.mxu0 %v7518_v5  ;;  %5546 = vmatpush1.bf16.msra.mxu1 %v7521_v6  ;;  %v7605_v5 = vld [vmem:[%s11224_s1 + $0x568] ss:$16 sps:$4 sm:$0xff]   ;;  %v7610_v6 = vld [vmem:[%s11224_s1 + $0x584] ss:$16 sps:$4 sm:$0xff]  }
  0x78   :  { %5014 = vmatprep.subr.bf16.mxu0 %v7526_v7  ;;  %5547 = vmatprep.subr.bf16.mxu1 %v7529_v8  ;;  %v7613_v7 = vld [vmem:[%s11224_s1 + $0x58c] ss:$16 sps:$4 sm:$0xff]   ;;  %v7608_v8 = vld [vmem:[%s11224_s1 + $0x580] ss:$16 sps:$4 sm:$0xff]  }
  0x7b   :  { %5015 = vmatpush1.bf16.msra.mxu0 %v7524_v10  ;;  %5548 = vmatpush1.bf16.msra.mxu1 %v7527_v11  ;;  %v7616_v10 = vld [vmem:[%s11224_s1 + $0x5a4] ss:$16 sps:$4 sm:$0xff]   ;;  %v7619_v11 = vld [vmem:[%s11224_s1 + $0x5ac] ss:$16 sps:$4 sm:$0xff]  }
  0x7c   :  { %5016 = vmatprep.subr.bf16.mxu0 %v7532_v12  ;;  %5549 = vmatprep.subr.bf16.mxu1 %v7535_v52  ;;  %v7614_v12 = vld [vmem:[%s11224_s1 + $0x5a0] ss:$16 sps:$4 sm:$0xff]   ;;  %v7617_v52 = vld [vmem:[%s11224_s1 + $0x5a8] ss:$16 sps:$4 sm:$0xff]  }
  0x7f   :  { %5017 = vmatpush1.bf16.msra.mxu0 %v7530_v15  ;;  %5550 = vmatpush1.bf16.msra.mxu1 %v7533_v16  ;;  %v7622_v15 = vld [vmem:[%s11224_s1 + $0x5c4] ss:$16 sps:$4 sm:$0xff]   ;;  %v7625_v16 = vld [vmem:[%s11224_s1 + $0x5cc] ss:$16 sps:$4 sm:$0xff]  }
  0x80   :  { %5027 = vmatprep.subr.bf16.mxu0 %v7538_v17  ;;  %5560 = vmatprep.subr.bf16.mxu1 %v7541_v18  ;;  %v7620_v17 = vld [vmem:[%s11224_s1 + $0x5c0] ss:$16 sps:$4 sm:$0xff]   ;;  %v7623_v18 = vld [vmem:[%s11224_s1 + $0x5c8] ss:$16 sps:$4 sm:$0xff]  }
  0x82   :  { %5019 = vmatmul.mubr.bf16.vlgmr.msra.gmra.mrb[0].mxu0 %v881_v21  ;;  %5552 = vmatmul.mubr.bf16.vlgmr.msra.gmra.mrb[0].mxu1 %v881_v21  ;;  %v7626_v21 = vld [vmem:[%s11224_s1 + $0x5e0] ss:$16 sps:$4 sm:$0xff]  }
  0x83   :  { %5028 = vmatpush1.bf16.msra.mxu0 %v7536_v20  ;;  %5561 = vmatpush1.bf16.msra.mxu1 %v7539_v22  ;;  %v7631_v20 = vld [vmem:[%s11224_s1 + $0x5ec] ss:$16 sps:$4 sm:$0xff]   ;;  %v7629_v22 = vld [vmem:[%s11224_s1 + $0x5e8] ss:$16 sps:$4 sm:$0xff]  }
  0x84   :  { %5029 = vmatprep.subr.bf16.mxu0 %v7544_v23  ;;  %5562 = vmatprep.subr.bf16.mxu1 %v7547_v24  ;;  %v7635_v23 = vld [vmem:[%s11224_s1 + $0x604] ss:$16 sps:$4 sm:$0xff]   ;;  %v7638_v24 = vld [vmem:[%s11224_s1 + $0x60c] ss:$16 sps:$4 sm:$0xff]  }
  0x85   :  { %5059 = vmatprep.mubr.bf16.mxu0 %v9044_v25  ;;  %5592 = vmatprep.mubr.bf16.mxu1 %v9044_v25 }
  0x87   :  { %5030 = vmatpush1.bf16.msra.mxu0 %v7542_v13  ;;  %5563 = vmatpush1.bf16.msra.mxu1 %v7545_v26  ;;  %v7633_v13 = vld [vmem:[%s11224_s1 + $0x600] ss:$16 sps:$4 sm:$0xff]   ;;  %v9233_v26 = vrot.slane %v9013_v14, %v8749_v49  ;;  %v884_v14 = vcombine.high %v9044_v25, %v9044_v25  ;;  %v7647_v25 = vld [vmem:[%s11224_s1 + $0x644] ss:$16 sps:$4 sm:$0xff]  }
  0x88   :  { %5031 = vmatprep.subr.bf16.mxu0 %v7550_v27  ;;  %5564 = vmatprep.subr.bf16.mxu1 %v7553_v28  ;;  %v7636_v27 = vld [vmem:[%s11224_s1 + $0x608] ss:$16 sps:$4 sm:$0xff]   ;;  %v7641_v28 = vld [vmem:[%s11224_s1 + $0x624] ss:$16 sps:$4 sm:$0xff]  }
  0x8b   :  { %5032 = vmatpush1.bf16.msra.mxu0 %v7548_v29  ;;  %5565 = vmatpush1.bf16.msra.mxu1 %v7551_v30  ;;  %v7644_v29 = vld [vmem:[%s11224_s1 + $0x62c] ss:$16 sps:$4 sm:$0xff]   ;;  %v7639_v30 = vld [vmem:[%s11224_s1 + $0x620] ss:$16 sps:$4 sm:$0xff]  }
  0x8c   :  { %5033 = vmatprep.subr.bf16.mxu0 %v7556_v31  ;;  %5566 = vmatprep.subr.bf16.mxu1 %v7559_v32  ;;  %v7642_v31 = vld [vmem:[%s11224_s1 + $0x628] ss:$16 sps:$4 sm:$0xff]   ;;  %v7650_v32 = vld [vmem:[%s11224_s1 + $0x64c] ss:$16 sps:$4 sm:$0xff]  }
  0x8f   :  { %5034 = vmatpush1.bf16.msra.mxu0 %v7554_v33  ;;  %5567 = vmatpush1.bf16.msra.mxu1 %v7557_v34  ;;  %v7645_v33 = vld [vmem:[%s11224_s1 + $0x640] ss:$16 sps:$4 sm:$0xff]   ;;  %v7648_v34 = vld [vmem:[%s11224_s1 + $0x648] ss:$16 sps:$4 sm:$0xff]  }
  0x90   :  { %5035 = vmatprep.subr.bf16.mxu0 %v7562_v35  ;;  %5568 = vmatprep.subr.bf16.mxu1 %v7565_v36  ;;  %v7653_v35 = vld [vmem:[%s11224_s1 + $0x664] ss:$16 sps:$4 sm:$0xff]   ;;  %v7656_v36 = vld [vmem:[%s11224_s1 + $0x66c] ss:$16 sps:$4 sm:$0xff]  }
  0x93   :  { %5036 = vmatpush1.bf16.msra.mxu0 %v7560_v37  ;;  %5569 = vmatpush1.bf16.msra.mxu1 %v7563_v38  ;;  %v7651_v37 = vld [vmem:[%s11224_s1 + $0x660] ss:$16 sps:$4 sm:$0xff]   ;;  %v7654_v38 = vld [vmem:[%s11224_s1 + $0x668] ss:$16 sps:$4 sm:$0xff]  }
  0x94   :  { %5037 = vmatprep.subr.bf16.mxu0 %v7568_v39  ;;  %5570 = vmatprep.subr.bf16.mxu1 %v7571_v40  ;;  %v7659_v39 = vld [vmem:[%s11224_s1 + $0x684] ss:$16 sps:$4 sm:$0xff]   ;;  %v7662_v40 = vld [vmem:[%s11224_s1 + $0x68c] ss:$16 sps:$4 sm:$0xff]  }
  0x97   :  { %5038 = vmatpush1.bf16.msra.mxu0 %v7566_v41  ;;  %5571 = vmatpush1.bf16.msra.mxu1 %v7569_v43  ;;  %v7657_v41 = vld [vmem:[%s11224_s1 + $0x680] ss:$16 sps:$4 sm:$0xff]   ;;  %v7660_v43 = vld [vmem:[%s11224_s1 + $0x688] ss:$16 sps:$4 sm:$0xff]  }
  0x98   :  { %5039 = vmatprep.subr.bf16.mxu0 %v7574_v44  ;;  %5572 = vmatprep.subr.bf16.mxu1 %v7577_v45  ;;  %v7665_v44 = vld [vmem:[%s11224_s1 + $0x6a4] ss:$16 sps:$4 sm:$0xff]   ;;  %v7668_v45 = vld [vmem:[%s11224_s1 + $0x6ac] ss:$16 sps:$4 sm:$0xff]  }
  0x9b   :  { %5040 = vmatpush1.bf16.msra.mxu0 %v7572_v46  ;;  %5573 = vmatpush1.bf16.msra.mxu1 %v7575_v47  ;;  %v7663_v46 = vld [vmem:[%s11224_s1 + $0x6a0] ss:$16 sps:$4 sm:$0xff]   ;;  %v7666_v47 = vld [vmem:[%s11224_s1 + $0x6a8] ss:$16 sps:$4 sm:$0xff]  }
  0x9c   :  { %5041 = vmatprep.subr.bf16.mxu0 %v7580_v48  ;;  %5574 = vmatprep.subr.bf16.mxu1 %v7583_v50  ;;  %v7671_v48 = vld [vmem:[%s11224_s1 + $0x6c4] ss:$16 sps:$4 sm:$0xff]   ;;  %v7674_v50 = vld [vmem:[%s11224_s1 + $0x6cc] ss:$16 sps:$4 sm:$0xff]  }
  0x9f   :  { %5042 = vmatpush1.bf16.msra.mxu0 %v7578_v51  ;;  %5575 = vmatpush1.bf16.msra.mxu1 %v7581_v53  ;;  %v7669_v51 = vld [vmem:[%s11224_s1 + $0x6c0] ss:$16 sps:$4 sm:$0xff]   ;;  %v7672_v53 = vld [vmem:[%s11224_s1 + $0x6c8] ss:$16 sps:$4 sm:$0xff]  }
  0xa0   :  { %5043 = vmatprep.subr.bf16.mxu0 %v7586_v54  ;;  %5576 = vmatprep.subr.bf16.mxu1 %v7589_v55  ;;  %v7677_v54 = vld [vmem:[%s11224_s1 + $0x6e4] ss:$16 sps:$4 sm:$0xff]   ;;  %v7680_v55 = vld [vmem:[%s11224_s1 + $0x6ec] ss:$16 sps:$4 sm:$0xff]  }
  0xa3   :  { %5044 = vmatpush1.bf16.msra.mxu0 %v7584_v56  ;;  %5577 = vmatpush1.bf16.msra.mxu1 %v7587_v57  ;;  %v7675_v56 = vld [vmem:[%s11224_s1 + $0x6e0] ss:$16 sps:$4 sm:$0xff]   ;;  %v7678_v57 = vld [vmem:[%s11224_s1 + $0x6e8] ss:$16 sps:$4 sm:$0xff]  }
  0xa4   :  { %5045 = vmatprep.subr.bf16.mxu0 %v7592_v58  ;;  %5578 = vmatprep.subr.bf16.mxu1 %v7595_v59  ;;  %v7683_v58 = vld [vmem:[%s11224_s1 + $0x704] ss:$16 sps:$4 sm:$0xff]   ;;  %v7686_v59 = vld [vmem:[%s11224_s1 + $0x70c] ss:$16 sps:$4 sm:$0xff]  }
  0xa7   :  { %5046 = vmatpush1.bf16.msra.mxu0 %v7590_v60  ;;  %5579 = vmatpush1.bf16.msra.mxu1 %v7593_v61  ;;  %v7681_v60 = vld [vmem:[%s11224_s1 + $0x700] ss:$16 sps:$4 sm:$0xff]   ;;  %v7684_v61 = vld [vmem:[%s11224_s1 + $0x708] ss:$16 sps:$4 sm:$0xff]  }
  0xa8   :  { %5047 = vmatprep.subr.bf16.mxu0 %v7598_v62  ;;  %5580 = vmatprep.subr.bf16.mxu1 %v7601_v63  ;;  %v7689_v62 = vld [vmem:[%s11224_s1 + $0x724] ss:$16 sps:$4 sm:$0xff]   ;;  %v7692_v63 = vld [vmem:[%s11224_s1 + $0x72c] ss:$16 sps:$4 sm:$0xff]  }
  0xab   :  { %5048 = vmatpush1.bf16.msra.mxu0 %v7596_v0  ;;  %5581 = vmatpush1.bf16.msra.mxu1 %v7599_v1  ;;  %v7687_v0 = vld [vmem:[%s11224_s1 + $0x720] ss:$16 sps:$4 sm:$0xff]   ;;  %v7690_v1 = vld [vmem:[%s11224_s1 + $0x728] ss:$16 sps:$4 sm:$0xff]  }
  0xac   :  { %5049 = vmatprep.subr.bf16.mxu0 %v7604_v2  ;;  %5582 = vmatprep.subr.bf16.mxu1 %v7607_v3  ;;  %v7695_v2 = vld [vmem:[%s11224_s1 + $0x744] ss:$16 sps:$4 sm:$0xff]   ;;  %v7698_v3 = vld [vmem:[%s11224_s1 + $0x74c] ss:$16 sps:$4 sm:$0xff]  }
  0xaf   :  { %5050 = vmatpush1.bf16.msra.mxu0 %v7602_v4  ;;  %5583 = vmatpush1.bf16.msra.mxu1 %v7605_v5  ;;  %v7693_v4 = vld [vmem:[%s11224_s1 + $0x740] ss:$16 sps:$4 sm:$0xff]   ;;  %v7696_v5 = vld [vmem:[%s11224_s1 + $0x748] ss:$16 sps:$4 sm:$0xff]  }
  0xb0   :  { %5051 = vmatprep.subr.bf16.mxu0 %v7610_v6  ;;  %5584 = vmatprep.subr.bf16.mxu1 %v7613_v7  ;;  %v7701_v6 = vld [vmem:[%s11224_s1 + $0x764] ss:$16 sps:$4 sm:$0xff]   ;;  %v7704_v7 = vld [vmem:[%s11224_s1 + $0x76c] ss:$16 sps:$4 sm:$0xff]  }
  0xb3   :  { %5052 = vmatpush1.bf16.msra.mxu0 %v7608_v8  ;;  %5585 = vmatpush1.bf16.msra.mxu1 %v7611_v9  ;;  %v7699_v8 = vld [vmem:[%s11224_s1 + $0x760] ss:$16 sps:$4 sm:$0xff]   ;;  %v7702_v9 = vld [vmem:[%s11224_s1 + $0x768] ss:$16 sps:$4 sm:$0xff]  }
  0xb4   :  { %5053 = vmatprep.subr.bf16.mxu0 %v7616_v10  ;;  %5586 = vmatprep.subr.bf16.mxu1 %v7619_v11  ;;  %v7707_v10 = vld [vmem:[%s11224_s1 + $0x784] ss:$16 sps:$4 sm:$0xff]   ;;  %v7710_v11 = vld [vmem:[%s11224_s1 + $0x78c] ss:$16 sps:$4 sm:$0xff]  }
  0xb7   :  { %5054 = vmatpush1.bf16.msra.mxu0 %v7614_v12  ;;  %5587 = vmatpush1.bf16.msra.mxu1 %v7617_v52  ;;  %v7705_v12 = vld [vmem:[%s11224_s1 + $0x780] ss:$16 sps:$4 sm:$0xff]   ;;  %v7708_v52 = vld [vmem:[%s11224_s1 + $0x788] ss:$16 sps:$4 sm:$0xff]  }
  0xb8   :  { %5055 = vmatprep.subr.bf16.mxu0 %v7622_v15  ;;  %5588 = vmatprep.subr.bf16.mxu1 %v7625_v16  ;;  %v7713_v15 = vld [vmem:[%s11224_s1 + $0x7a4] ss:$16 sps:$4 sm:$0xff]   ;;  %v7716_v16 = vld [vmem:[%s11224_s1 + $0x7ac] ss:$16 sps:$4 sm:$0xff]  }
  0xbb   :  { %5056 = vmatpush1.bf16.msra.mxu0 %v7620_v17  ;;  %5589 = vmatpush1.bf16.msra.mxu1 %v7623_v18  ;;  %v7711_v17 = vld [vmem:[%s11224_s1 + $0x7a0] ss:$16 sps:$4 sm:$0xff]   ;;  %v7714_v18 = vld [vmem:[%s11224_s1 + $0x7a8] ss:$16 sps:$4 sm:$0xff]  }
  0xbc   :  { %5057 = vmatprep.subr.bf16.mxu0 %v7628_v19  ;;  %5590 = vmatprep.subr.bf16.mxu1 %v7631_v20  ;;  %v7719_v19 = vld [vmem:[%s11224_s1 + $0x7c4] ss:$16 sps:$4 sm:$0xff]   ;;  %v7722_v20 = vld [vmem:[%s11224_s1 + $0x7cc] ss:$16 sps:$4 sm:$0xff]  }
  0xbf   :  { %5058 = vmatpush1.bf16.msra.mxu0 %v7626_v21  ;;  %5591 = vmatpush1.bf16.msra.mxu1 %v7629_v22  ;;  %v9407_v21 = vld.sshfl [vmem:[%s11223_s0 + $0x8] sm:$0xff pattern:$0x75316420]  ;;  %v7717_v22 = vld [vmem:[%s11224_s1 + $0x7c0] ss:$16 sps:$4 sm:$0xff]  }
  0xc0   :  { %5068 = vmatprep.subr.bf16.mxu0 %v7635_v23  ;;  %5601 = vmatprep.subr.bf16.mxu1 %v7638_v24  ;;  %v7720_v23 = vld [vmem:[%s11224_s1 + $0x7c8] ss:$16 sps:$4 sm:$0xff]   ;;  %v7725_v24 = vld [vmem:[%s11224_s1 + $0x7e4] ss:$16 sps:$4 sm:$0xff]  }
  0xc2   :  { %5060 = vmatmul.mubr.bf16.vlgmr.msra.gmra.mrb[0].mxu0 %v9233_v26  ;;  %5593 = vmatmul.mubr.bf16.vlgmr.msra.gmra.mrb[0].mxu1 %v9233_v26 }
  0xc3   :  { %5069 = vmatpush1.bf16.msra.mxu0 %v7633_v13  ;;  %5602 = vmatpush1.bf16.msra.mxu1 %v7636_v27  ;;  %v7728_v13 = vld [vmem:[%s11224_s1 + $0x7ec] ss:$16 sps:$4 sm:$0xff]   ;;  %v7723_v27 = vld [vmem:[%s11224_s1 + $0x7e0] ss:$16 sps:$4 sm:$0xff]  }
  0xc4   :  { %5070 = vmatprep.subr.bf16.mxu0 %v7641_v28  ;;  %5603 = vmatprep.subr.bf16.mxu1 %v7644_v29  ;;  %v7726_v28 = vld [vmem:[%s11224_s1 + $0x7e8] ss:$16 sps:$4 sm:$0xff]   ;;  %v7731_v29 = vld [vmem:[%s11224_s1 + $0x804] ss:$16 sps:$4 sm:$0xff]  }
  0xc5   :  { %5100 = vmatprep.mubr.bf16.mxu0 %v884_v14  ;;  %5633 = vmatprep.mubr.bf16.mxu1 %v884_v14  ;;  %v7734_v14 = vld [vmem:[%s11224_s1 + $0x80c] ss:$16 sps:$4 sm:$0xff]  }
  0xc7   :  { %5071 = vmatpush1.bf16.msra.mxu0 %v7639_v30  ;;  %5604 = vmatpush1.bf16.msra.mxu1 %v7642_v31  ;;  %v900_v30 = vcombine.high %v9407_v21, %v9407_v21  ;;  %v882_v31 = vcombine.high %v9233_v26, %v9233_v26  ;;  %v7740_v26 = vld [vmem:[%s11224_s1 + $0x82c] ss:$16 sps:$4 sm:$0xff]  }
  0xc8   :  { %5072 = vmatprep.subr.bf16.mxu0 %v7647_v25  ;;  %5605 = vmatprep.subr.bf16.mxu1 %v7650_v32  ;;  %v7729_v25 = vld [vmem:[%s11224_s1 + $0x800] ss:$16 sps:$4 sm:$0xff]   ;;  %v7732_v32 = vld [vmem:[%s11224_s1 + $0x808] ss:$16 sps:$4 sm:$0xff]  }
  0xcb   :  { %5073 = vmatpush1.bf16.msra.mxu0 %v7645_v33  ;;  %5606 = vmatpush1.bf16.msra.mxu1 %v7648_v34  ;;  %v7737_v33 = vld [vmem:[%s11224_s1 + $0x824] ss:$16 sps:$4 sm:$0xff]   ;;  %v9450_v34 = vrot.slane %v900_v30, %v8749_v49 }
  0xcc   :  { %5074 = vmatprep.subr.bf16.mxu0 %v7653_v35  ;;  %5607 = vmatprep.subr.bf16.mxu1 %v7656_v36  ;;  %v7735_v35 = vld [vmem:[%s11224_s1 + $0x820] ss:$16 sps:$4 sm:$0xff]   ;;  %v7738_v36 = vld [vmem:[%s11224_s1 + $0x828] ss:$16 sps:$4 sm:$0xff]   ;;  %v7821_v30 = vld [vmem:[%s11224_s1 + $0x9e4] ss:$16 sps:$4 sm:$0xff]  }
  0xcf   :  { %5075 = vmatpush1.bf16.msra.mxu0 %v7651_v37  ;;  %5608 = vmatpush1.bf16.msra.mxu1 %v7654_v38  ;;  %v7743_v37 = vld [vmem:[%s11224_s1 + $0x844] ss:$16 sps:$4 sm:$0xff]   ;;  %v7746_v38 = vld [vmem:[%s11224_s1 + $0x84c] ss:$16 sps:$4 sm:$0xff]  }
  0xd0   :  { %5076 = vmatprep.subr.bf16.mxu0 %v7659_v39  ;;  %5609 = vmatprep.subr.bf16.mxu1 %v7662_v40  ;;  %v7741_v39 = vld [vmem:[%s11224_s1 + $0x840] ss:$16 sps:$4 sm:$0xff]   ;;  %v7744_v40 = vld [vmem:[%s11224_s1 + $0x848] ss:$16 sps:$4 sm:$0xff]  }
  0xd3   :  { %5077 = vmatpush1.bf16.msra.mxu0 %v7657_v41  ;;  %5610 = vmatpush1.bf16.msra.mxu1 %v7660_v43  ;;  %v7749_v41 = vld [vmem:[%s11224_s1 + $0x864] ss:$16 sps:$4 sm:$0xff]   ;;  %v7752_v43 = vld [vmem:[%s11224_s1 + $0x86c] ss:$16 sps:$4 sm:$0xff]  }
  0xd4   :  { %5078 = vmatprep.subr.bf16.mxu0 %v7665_v44  ;;  %5611 = vmatprep.subr.bf16.mxu1 %v7668_v45  ;;  %v7747_v44 = vld [vmem:[%s11224_s1 + $0x860] ss:$16 sps:$4 sm:$0xff]   ;;  %v7750_v45 = vld [vmem:[%s11224_s1 + $0x868] ss:$16 sps:$4 sm:$0xff]  }
  0xd7   :  { %5079 = vmatpush1.bf16.msra.mxu0 %v7663_v46  ;;  %5612 = vmatpush1.bf16.msra.mxu1 %v7666_v47  ;;  %v7755_v46 = vld [vmem:[%s11224_s1 + $0x884] ss:$16 sps:$4 sm:$0xff]   ;;  %v7758_v47 = vld [vmem:[%s11224_s1 + $0x88c] ss:$16 sps:$4 sm:$0xff]  }
  0xd8   :  { %5080 = vmatprep.subr.bf16.mxu0 %v7671_v48  ;;  %5613 = vmatprep.subr.bf16.mxu1 %v7674_v50  ;;  %v7753_v48 = vld [vmem:[%s11224_s1 + $0x880] ss:$16 sps:$4 sm:$0xff]   ;;  %v7756_v50 = vld [vmem:[%s11224_s1 + $0x888] ss:$16 sps:$4 sm:$0xff]  }
  0xdb   :  { %5081 = vmatpush1.bf16.msra.mxu0 %v7669_v51  ;;  %5614 = vmatpush1.bf16.msra.mxu1 %v7672_v53  ;;  %v7761_v51 = vld [vmem:[%s11224_s1 + $0x8a4] ss:$16 sps:$4 sm:$0xff]   ;;  %v7764_v53 = vld [vmem:[%s11224_s1 + $0x8ac] ss:$16 sps:$4 sm:$0xff]  }
  0xdc   :  { %5082 = vmatprep.subr.bf16.mxu0 %v7677_v54  ;;  %5615 = vmatprep.subr.bf16.mxu1 %v7680_v55  ;;  %v7759_v54 = vld [vmem:[%s11224_s1 + $0x8a0] ss:$16 sps:$4 sm:$0xff]   ;;  %v7762_v55 = vld [vmem:[%s11224_s1 + $0x8a8] ss:$16 sps:$4 sm:$0xff]  }
  0xdf   :  { %5083 = vmatpush1.bf16.msra.mxu0 %v7675_v56  ;;  %5616 = vmatpush1.bf16.msra.mxu1 %v7678_v57  ;;  %v7767_v56 = vld [vmem:[%s11224_s1 + $0x8c4] ss:$16 sps:$4 sm:$0xff]   ;;  %v7770_v57 = vld [vmem:[%s11224_s1 + $0x8cc] ss:$16 sps:$4 sm:$0xff]  }
  0xe0   :  { %5084 = vmatprep.subr.bf16.mxu0 %v7683_v58  ;;  %5617 = vmatprep.subr.bf16.mxu1 %v7686_v59  ;;  %v7765_v58 = vld [vmem:[%s11224_s1 + $0x8c0] ss:$16 sps:$4 sm:$0xff]   ;;  %v7768_v59 = vld [vmem:[%s11224_s1 + $0x8c8] ss:$16 sps:$4 sm:$0xff]  }
  0xe3   :  { %5085 = vmatpush1.bf16.msra.mxu0 %v7681_v60  ;;  %5618 = vmatpush1.bf16.msra.mxu1 %v7684_v61  ;;  %v7773_v60 = vld [vmem:[%s11224_s1 + $0x8e4] ss:$16 sps:$4 sm:$0xff]   ;;  %v7776_v61 = vld [vmem:[%s11224_s1 + $0x8ec] ss:$16 sps:$4 sm:$0xff]  }
  0xe4   :  { %5086 = vmatprep.subr.bf16.mxu0 %v7689_v62  ;;  %5619 = vmatprep.subr.bf16.mxu1 %v7692_v63  ;;  %v7771_v62 = vld [vmem:[%s11224_s1 + $0x8e0] ss:$16 sps:$4 sm:$0xff]   ;;  %v7774_v63 = vld [vmem:[%s11224_s1 + $0x8e8] ss:$16 sps:$4 sm:$0xff]  }
  0xe7   :  { %5087 = vmatpush1.bf16.msra.mxu0 %v7687_v0  ;;  %5620 = vmatpush1.bf16.msra.mxu1 %v7690_v1  ;;  %v7779_v0 = vld [vmem:[%s11224_s1 + $0x904] ss:$16 sps:$4 sm:$0xff]   ;;  %v7782_v1 = vld [vmem:[%s11224_s1 + $0x90c] ss:$16 sps:$4 sm:$0xff]  }
  0xe8   :  { %5088 = vmatprep.subr.bf16.mxu0 %v7695_v2  ;;  %5621 = vmatprep.subr.bf16.mxu1 %v7698_v3  ;;  %v7777_v2 = vld [vmem:[%s11224_s1 + $0x900] ss:$16 sps:$4 sm:$0xff]   ;;  %v7780_v3 = vld [vmem:[%s11224_s1 + $0x908] ss:$16 sps:$4 sm:$0xff]  }
  0xeb   :  { %5089 = vmatpush1.bf16.msra.mxu0 %v7693_v4  ;;  %5622 = vmatpush1.bf16.msra.mxu1 %v7696_v5  ;;  %v7785_v4 = vld [vmem:[%s11224_s1 + $0x924] ss:$16 sps:$4 sm:$0xff]   ;;  %v7788_v5 = vld [vmem:[%s11224_s1 + $0x92c] ss:$16 sps:$4 sm:$0xff]  }
  0xec   :  { %5090 = vmatprep.subr.bf16.mxu0 %v7701_v6  ;;  %5623 = vmatprep.subr.bf16.mxu1 %v7704_v7  ;;  %v7783_v6 = vld [vmem:[%s11224_s1 + $0x920] ss:$16 sps:$4 sm:$0xff]   ;;  %v7786_v7 = vld [vmem:[%s11224_s1 + $0x928] ss:$16 sps:$4 sm:$0xff]  }
  0xef   :  { %5091 = vmatpush1.bf16.msra.mxu0 %v7699_v8  ;;  %5624 = vmatpush1.bf16.msra.mxu1 %v7702_v9  ;;  %v7791_v8 = vld [vmem:[%s11224_s1 + $0x944] ss:$16 sps:$4 sm:$0xff]   ;;  %v7794_v9 = vld [vmem:[%s11224_s1 + $0x94c] ss:$16 sps:$4 sm:$0xff]  }
  0xf0   :  { %5092 = vmatprep.subr.bf16.mxu0 %v7707_v10  ;;  %5625 = vmatprep.subr.bf16.mxu1 %v7710_v11  ;;  %v7789_v10 = vld [vmem:[%s11224_s1 + $0x940] ss:$16 sps:$4 sm:$0xff]   ;;  %v7792_v11 = vld [vmem:[%s11224_s1 + $0x948] ss:$16 sps:$4 sm:$0xff]  }
  0xf3   :  { %5093 = vmatpush1.bf16.msra.mxu0 %v7705_v12  ;;  %5626 = vmatpush1.bf16.msra.mxu1 %v7708_v52  ;;  %v7797_v12 = vld [vmem:[%s11224_s1 + $0x964] ss:$16 sps:$4 sm:$0xff]   ;;  %v7800_v52 = vld [vmem:[%s11224_s1 + $0x96c] ss:$16 sps:$4 sm:$0xff]  }
  0xf4   :  { %5094 = vmatprep.subr.bf16.mxu0 %v7713_v15  ;;  %5627 = vmatprep.subr.bf16.mxu1 %v7716_v16  ;;  %v7795_v15 = vld [vmem:[%s11224_s1 + $0x960] ss:$16 sps:$4 sm:$0xff]   ;;  %v7798_v16 = vld [vmem:[%s11224_s1 + $0x968] ss:$16 sps:$4 sm:$0xff]  }
  0xf7   :  { %5095 = vmatpush1.bf16.msra.mxu0 %v7711_v17  ;;  %5628 = vmatpush1.bf16.msra.mxu1 %v7714_v18  ;;  %v7803_v17 = vld [vmem:[%s11224_s1 + $0x984] ss:$16 sps:$4 sm:$0xff]   ;;  %v7806_v18 = vld [vmem:[%s11224_s1 + $0x98c] ss:$16 sps:$4 sm:$0xff]  }
  0xf8   :  { %5096 = vmatprep.subr.bf16.mxu0 %v7719_v19  ;;  %5629 = vmatprep.subr.bf16.mxu1 %v7722_v20  ;;  %v7801_v19 = vld [vmem:[%s11224_s1 + $0x980] ss:$16 sps:$4 sm:$0xff]   ;;  %v7804_v20 = vld [vmem:[%s11224_s1 + $0x988] ss:$16 sps:$4 sm:$0xff]  }
  0xfb   :  { %5097 = vmatpush1.bf16.msra.mxu0 %v7717_v22  ;;  %5630 = vmatpush1.bf16.msra.mxu1 %v7720_v23  ;;  %v7809_v22 = vld [vmem:[%s11224_s1 + $0x9a4] ss:$16 sps:$4 sm:$0xff]   ;;  %v7812_v23 = vld [vmem:[%s11224_s1 + $0x9ac] ss:$16 sps:$4 sm:$0xff]  }
  0xfc   :  { %5098 = vmatprep.subr.bf16.mxu0 %v7725_v24  ;;  %5631 = vmatprep.subr.bf16.mxu1 %v7728_v13  ;;  %v7807_v24 = vld [vmem:[%s11224_s1 + $0x9a0] ss:$16 sps:$4 sm:$0xff]   ;;  %v7810_v13 = vld [vmem:[%s11224_s1 + $0x9a8] ss:$16 sps:$4 sm:$0xff]  }
  0xff   :  { %5099 = vmatpush1.bf16.msra.mxu0 %v7723_v27  ;;  %5632 = vmatpush1.bf16.msra.mxu1 %v7726_v28  ;;  %v7815_v27 = vld [vmem:[%s11224_s1 + $0x9c4] ss:$16 sps:$4 sm:$0xff]   ;;  %v7818_v28 = vld [vmem:[%s11224_s1 + $0x9cc] ss:$16 sps:$4 sm:$0xff]  }
 0x100   :  { %5109 = vmatprep.subr.bf16.mxu0 %v7731_v29  ;;  %5642 = vmatprep.subr.bf16.mxu1 %v7734_v14  ;;  %v7813_v29 = vld [vmem:[%s11224_s1 + $0x9c0] ss:$16 sps:$4 sm:$0xff]   ;;  %v7816_v14 = vld [vmem:[%s11224_s1 + $0x9c8] ss:$16 sps:$4 sm:$0xff]  }
 0x102   :  { %5101 = vmatmul.mubr.bf16.vlgmr.msra.gmra.mrb[0].mxu0 %v882_v31  ;;  %5634 = vmatmul.mubr.bf16.vlgmr.msra.gmra.mrb[0].mxu1 %v882_v31  ;;  %v7824_v31 = vld [vmem:[%s11224_s1 + $0x9ec] ss:$16 sps:$4 sm:$0xff]  }
 0x103   :  { %5110 = vmatpush1.bf16.msra.mxu0 %v7729_v25  ;;  %5643 = vmatpush1.bf16.msra.mxu1 %v7732_v32  ;;  %v7819_v25 = vld [vmem:[%s11224_s1 + $0x9e0] ss:$16 sps:$4 sm:$0xff]   ;;  %v7822_v32 = vld [vmem:[%s11224_s1 + $0x9e8] ss:$16 sps:$4 sm:$0xff]  }
 0x104   :  { %5111 = vmatprep.subr.bf16.mxu0 %v7737_v33  ;;  %5644 = vmatprep.subr.bf16.mxu1 %v7740_v26  ;;  %v7827_v33 = vld [vmem:[%s11224_s1 + $0xa04] ss:$16 sps:$4 sm:$0xff]   ;;  %v7830_v26 = vld [vmem:[%s11224_s1 + $0xa0c] ss:$16 sps:$4 sm:$0xff]  }
 0x105   :  { %5141 = vmatprep.mubr.bf16.mxu0 %v9450_v34  ;;  %5674 = vmatprep.mubr.bf16.mxu1 %v9450_v34 }
 0x107   :  { %5112 = vmatpush1.bf16.msra.mxu0 %v7735_v35  ;;  %5645 = vmatpush1.bf16.msra.mxu1 %v7738_v36  ;;  %v9636_v35 = vrot.slane %v9407_v21, %v8749_v49  ;;  %v7825_v36 = vld [vmem:[%s11224_s1 + $0xa00] ss:$16 sps:$4 sm:$0xff]   ;;  %v7836_v21 = vld [vmem:[%s11224_s1 + $0xa2c] ss:$16 sps:$4 sm:$0xff]  }
 0x108   :  { %5113 = vmatprep.subr.bf16.mxu0 %v7743_v37  ;;  %5646 = vmatprep.subr.bf16.mxu1 %v7746_v38  ;;  %v7828_v37 = vld [vmem:[%s11224_s1 + $0xa08] ss:$16 sps:$4 sm:$0xff]   ;;  %v7833_v38 = vld [vmem:[%s11224_s1 + $0xa24] ss:$16 sps:$4 sm:$0xff]  }
 0x10b   :  { %5114 = vmatpush1.bf16.msra.mxu0 %v7741_v39  ;;  %5647 = vmatpush1.bf16.msra.mxu1 %v7744_v40  ;;  %v932_v39 = vcombine.high %v9450_v34, %v9450_v34  ;;  %v7831_v40 = vld [vmem:[%s11224_s1 + $0xa20] ss:$16 sps:$4 sm:$0xff]   ;;  %v7839_v34 = vld [vmem:[%s11224_s1 + $0xa44] ss:$16 sps:$4 sm:$0xff]  }
 0x10c   :  { %5115 = vmatprep.subr.bf16.mxu0 %v7749_v41  ;;  %5648 = vmatprep.subr.bf16.mxu1 %v7752_v43  ;;  %v7834_v41 = vld [vmem:[%s11224_s1 + $0xa28] ss:$16 sps:$4 sm:$0xff]   ;;  %v7842_v43 = vld [vmem:[%s11224_s1 + $0xa4c] ss:$16 sps:$4 sm:$0xff]  }
 0x10f   :  { %5116 = vmatpush1.bf16.msra.mxu0 %v7747_v44  ;;  %5649 = vmatpush1.bf16.msra.mxu1 %v7750_v45  ;;  %v7837_v44 = vld [vmem:[%s11224_s1 + $0xa40] ss:$16 sps:$4 sm:$0xff]   ;;  %v7840_v45 = vld [vmem:[%s11224_s1 + $0xa48] ss:$16 sps:$4 sm:$0xff]  }
 0x110   :  { %5117 = vmatprep.subr.bf16.mxu0 %v7755_v46  ;;  %5650 = vmatprep.subr.bf16.mxu1 %v7758_v47  ;;  %v7845_v46 = vld [vmem:[%s11224_s1 + $0xa64] ss:$16 sps:$4 sm:$0xff]   ;;  %v7848_v47 = vld [vmem:[%s11224_s1 + $0xa6c] ss:$16 sps:$4 sm:$0xff]  }
 0x113   :  { %5118 = vmatpush1.bf16.msra.mxu0 %v7753_v48  ;;  %5651 = vmatpush1.bf16.msra.mxu1 %v7756_v50  ;;  %v7843_v48 = vld [vmem:[%s11224_s1 + $0xa60] ss:$16 sps:$4 sm:$0xff]   ;;  %v7846_v50 = vld [vmem:[%s11224_s1 + $0xa68] ss:$16 sps:$4 sm:$0xff]  }
 0x114   :  { %5119 = vmatprep.subr.bf16.mxu0 %v7761_v51  ;;  %5652 = vmatprep.subr.bf16.mxu1 %v7764_v53  ;;  %v7851_v51 = vld [vmem:[%s11224_s1 + $0xa84] ss:$16 sps:$4 sm:$0xff]   ;;  %v7854_v53 = vld [vmem:[%s11224_s1 + $0xa8c] ss:$16 sps:$4 sm:$0xff]  }
 0x117   :  { %5120 = vmatpush1.bf16.msra.mxu0 %v7759_v54  ;;  %5653 = vmatpush1.bf16.msra.mxu1 %v7762_v55  ;;  %v7849_v54 = vld [vmem:[%s11224_s1 + $0xa80] ss:$16 sps:$4 sm:$0xff]   ;;  %v7852_v55 = vld [vmem:[%s11224_s1 + $0xa88] ss:$16 sps:$4 sm:$0xff]  }
 0x118   :  { %5121 = vmatprep.subr.bf16.mxu0 %v7767_v56  ;;  %5654 = vmatprep.subr.bf16.mxu1 %v7770_v57  ;;  %v7857_v56 = vld [vmem:[%s11224_s1 + $0xaa4] ss:$16 sps:$4 sm:$0xff]   ;;  %v7860_v57 = vld [vmem:[%s11224_s1 + $0xaac] ss:$16 sps:$4 sm:$0xff]  }
 0x11b   :  { %5122 = vmatpush1.bf16.msra.mxu0 %v7765_v58  ;;  %5655 = vmatpush1.bf16.msra.mxu1 %v7768_v59  ;;  %v7855_v58 = vld [vmem:[%s11224_s1 + $0xaa0] ss:$16 sps:$4 sm:$0xff]   ;;  %v7858_v59 = vld [vmem:[%s11224_s1 + $0xaa8] ss:$16 sps:$4 sm:$0xff]  }
 0x11c   :  { %5123 = vmatprep.subr.bf16.mxu0 %v7773_v60  ;;  %5656 = vmatprep.subr.bf16.mxu1 %v7776_v61  ;;  %v7863_v60 = vld [vmem:[%s11224_s1 + $0xac4] ss:$16 sps:$4 sm:$0xff]   ;;  %v7866_v61 = vld [vmem:[%s11224_s1 + $0xacc] ss:$16 sps:$4 sm:$0xff]  }
 0x11f   :  { %5124 = vmatpush1.bf16.msra.mxu0 %v7771_v62  ;;  %5657 = vmatpush1.bf16.msra.mxu1 %v7774_v63  ;;  %v7861_v62 = vld [vmem:[%s11224_s1 + $0xac0] ss:$16 sps:$4 sm:$0xff]   ;;  %v7864_v63 = vld [vmem:[%s11224_s1 + $0xac8] ss:$16 sps:$4 sm:$0xff]  }
 0x120   :  { %5125 = vmatprep.subr.bf16.mxu0 %v7779_v0  ;;  %5658 = vmatprep.subr.bf16.mxu1 %v7782_v1  ;;  %v7869_v0 = vld [vmem:[%s11224_s1 + $0xae4] ss:$16 sps:$4 sm:$0xff]   ;;  %v7872_v1 = vld [vmem:[%s11224_s1 + $0xaec] ss:$16 sps:$4 sm:$0xff]  }
 0x123   :  { %5126 = vmatpush1.bf16.msra.mxu0 %v7777_v2  ;;  %5659 = vmatpush1.bf16.msra.mxu1 %v7780_v3  ;;  %v7867_v2 = vld [vmem:[%s11224_s1 + $0xae0] ss:$16 sps:$4 sm:$0xff]   ;;  %v7870_v3 = vld [vmem:[%s11224_s1 + $0xae8] ss:$16 sps:$4 sm:$0xff]  }
 0x124   :  { %5127 = vmatprep.subr.bf16.mxu0 %v7785_v4  ;;  %5660 = vmatprep.subr.bf16.mxu1 %v7788_v5  ;;  %v7875_v4 = vld [vmem:[%s11224_s1 + $0xb04] ss:$16 sps:$4 sm:$0xff]   ;;  %v7878_v5 = vld [vmem:[%s11224_s1 + $0xb0c] ss:$16 sps:$4 sm:$0xff]  }
 0x127   :  { %5128 = vmatpush1.bf16.msra.mxu0 %v7783_v6  ;;  %5661 = vmatpush1.bf16.msra.mxu1 %v7786_v7  ;;  %v7873_v6 = vld [vmem:[%s11224_s1 + $0xb00] ss:$16 sps:$4 sm:$0xff]   ;;  %v7876_v7 = vld [vmem:[%s11224_s1 + $0xb08] ss:$16 sps:$4 sm:$0xff]  }
 0x128   :  { %5129 = vmatprep.subr.bf16.mxu0 %v7791_v8  ;;  %5662 = vmatprep.subr.bf16.mxu1 %v7794_v9  ;;  %v7881_v8 = vld [vmem:[%s11224_s1 + $0xb24] ss:$16 sps:$4 sm:$0xff]   ;;  %v7884_v9 = vld [vmem:[%s11224_s1 + $0xb2c] ss:$16 sps:$4 sm:$0xff]  }
 0x12b   :  { %5130 = vmatpush1.bf16.msra.mxu0 %v7789_v10  ;;  %5663 = vmatpush1.bf16.msra.mxu1 %v7792_v11  ;;  %v7879_v10 = vld [vmem:[%s11224_s1 + $0xb20] ss:$16 sps:$4 sm:$0xff]   ;;  %v7882_v11 = vld [vmem:[%s11224_s1 + $0xb28] ss:$16 sps:$4 sm:$0xff]  }
 0x12c   :  { %5131 = vmatprep.subr.bf16.mxu0 %v7797_v12  ;;  %5664 = vmatprep.subr.bf16.mxu1 %v7800_v52  ;;  %v7887_v12 = vld [vmem:[%s11224_s1 + $0xb44] ss:$16 sps:$4 sm:$0xff]   ;;  %v7890_v52 = vld [vmem:[%s11224_s1 + $0xb4c] ss:$16 sps:$4 sm:$0xff]  }
 0x12f   :  { %5132 = vmatpush1.bf16.msra.mxu0 %v7795_v15  ;;  %5665 = vmatpush1.bf16.msra.mxu1 %v7798_v16  ;;  %v7885_v15 = vld [vmem:[%s11224_s1 + $0xb40] ss:$16 sps:$4 sm:$0xff]   ;;  %v7888_v16 = vld [vmem:[%s11224_s1 + $0xb48] ss:$16 sps:$4 sm:$0xff]  }
 0x130   :  { %5133 = vmatprep.subr.bf16.mxu0 %v7803_v17  ;;  %5666 = vmatprep.subr.bf16.mxu1 %v7806_v18  ;;  %v7893_v17 = vld [vmem:[%s11224_s1 + $0xb64] ss:$16 sps:$4 sm:$0xff]   ;;  %v7896_v18 = vld [vmem:[%s11224_s1 + $0xb6c] ss:$16 sps:$4 sm:$0xff]  }
 0x133   :  { %5134 = vmatpush1.bf16.msra.mxu0 %v7801_v19  ;;  %5667 = vmatpush1.bf16.msra.mxu1 %v7804_v20  ;;  %v7891_v19 = vld [vmem:[%s11224_s1 + $0xb60] ss:$16 sps:$4 sm:$0xff]   ;;  %v7894_v20 = vld [vmem:[%s11224_s1 + $0xb68] ss:$16 sps:$4 sm:$0xff]  }
 0x134   :  { %5135 = vmatprep.subr.bf16.mxu0 %v7809_v22  ;;  %5668 = vmatprep.subr.bf16.mxu1 %v7812_v23  ;;  %v7899_v22 = vld [vmem:[%s11224_s1 + $0xb84] ss:$16 sps:$4 sm:$0xff]   ;;  %v7902_v23 = vld [vmem:[%s11224_s1 + $0xb8c] ss:$16 sps:$4 sm:$0xff]  }
 0x137   :  { %5136 = vmatpush1.bf16.msra.mxu0 %v7807_v24  ;;  %5669 = vmatpush1.bf16.msra.mxu1 %v7810_v13  ;;  %v7897_v24 = vld [vmem:[%s11224_s1 + $0xb80] ss:$16 sps:$4 sm:$0xff]   ;;  %v7900_v13 = vld [vmem:[%s11224_s1 + $0xb88] ss:$16 sps:$4 sm:$0xff]  }
 0x138   :  { %5137 = vmatprep.subr.bf16.mxu0 %v7815_v27  ;;  %5670 = vmatprep.subr.bf16.mxu1 %v7818_v28  ;;  %v7905_v27 = vld [vmem:[%s11224_s1 + $0xba4] ss:$16 sps:$4 sm:$0xff]   ;;  %v7908_v28 = vld [vmem:[%s11224_s1 + $0xbac] ss:$16 sps:$4 sm:$0xff]  }
 0x13b   :  { %5138 = vmatpush1.bf16.msra.mxu0 %v7813_v29  ;;  %5671 = vmatpush1.bf16.msra.mxu1 %v7816_v14  ;;  %v7903_v29 = vld [vmem:[%s11224_s1 + $0xba0] ss:$16 sps:$4 sm:$0xff]   ;;  %v7906_v14 = vld [vmem:[%s11224_s1 + $0xba8] ss:$16 sps:$4 sm:$0xff]  }
 0x13c   :  { %5139 = vmatprep.subr.bf16.mxu0 %v7821_v30  ;;  %5672 = vmatprep.subr.bf16.mxu1 %v7824_v31  ;;  %v7911_v30 = vld [vmem:[%s11224_s1 + $0xbc4] ss:$16 sps:$4 sm:$0xff]   ;;  %v7914_v31 = vld [vmem:[%s11224_s1 + $0xbcc] ss:$16 sps:$4 sm:$0xff]  }
 0x13f   :  { %5140 = vmatpush1.bf16.msra.mxu0 %v7819_v25  ;;  %5673 = vmatpush1.bf16.msra.mxu1 %v7822_v32  ;;  %v8555_v25 = vld [vmem:[%s11223_s0 + $0x8] sm:$0xff] }
 0x140   :  { %5150 = vmatprep.subr.bf16.mxu0 %v7827_v33  ;;  %5683 = vmatprep.subr.bf16.mxu1 %v7830_v26  ;;  %v885_v32 = vcombine.high %v8555_v25, %v8555_v25  ;;  %v7909_v33 = vld [vmem:[%s11224_s1 + $0xbc0] ss:$16 sps:$4 sm:$0xff]   ;;  %v7912_v26 = vld [vmem:[%s11224_s1 + $0xbc8] ss:$16 sps:$4 sm:$0xff]  }
 0x141   :  { %v7993_v25 = vld [vmem:[%s11224_s1 + $0xd80] ss:$16 sps:$4 sm:$0xff]  }
 0x142   :  { %5142 = vmatmul.mubr.bf16.vlgmr.msra.gmra.mrb[0].mxu0 %v9636_v35  ;;  %5675 = vmatmul.mubr.bf16.vlgmr.msra.gmra.mrb[0].mxu1 %v9636_v35 }
 0x143   :  { %5151 = vmatpush1.bf16.msra.mxu0 %v7825_v36  ;;  %5684 = vmatpush1.bf16.msra.mxu1 %v7828_v37  ;;  %v7917_v36 = vld [vmem:[%s11224_s1 + $0xbe4] ss:$16 sps:$4 sm:$0xff]   ;;  %v7920_v37 = vld [vmem:[%s11224_s1 + $0xbec] ss:$16 sps:$4 sm:$0xff]  }
 0x144   :  { %5152 = vmatprep.subr.bf16.mxu0 %v7833_v38  ;;  %5685 = vmatprep.subr.bf16.mxu1 %v7836_v21  ;;  %v9826_v38 = vrot.slane %v885_v32, %v8749_v49  ;;  %v7915_v21 = vld [vmem:[%s11224_s1 + $0xbe0] ss:$16 sps:$4 sm:$0xff]   ;;  %v7996_v32 = vld [vmem:[%s11224_s1 + $0xd88] ss:$16 sps:$4 sm:$0xff]  }
 0x145   :  { %5182 = vmatprep.mubr.bf16.mxu0 %v932_v39  ;;  %5715 = vmatprep.mubr.bf16.mxu1 %v932_v39  ;;  %v7918_v39 = vld [vmem:[%s11224_s1 + $0xbe8] ss:$16 sps:$4 sm:$0xff]  }
 0x147   :  { %5153 = vmatpush1.bf16.msra.mxu0 %v7831_v40  ;;  %5686 = vmatpush1.bf16.msra.mxu1 %v7834_v41  ;;  %v7923_v40 = vld [vmem:[%s11224_s1 + $0xc04] ss:$16 sps:$4 sm:$0xff]   ;;  %v7926_v41 = vld [vmem:[%s11224_s1 + $0xc0c] ss:$16 sps:$4 sm:$0xff]  }
 0x148   :  { %5154 = vmatprep.subr.bf16.mxu0 %v7839_v34  ;;  %5687 = vmatprep.subr.bf16.mxu1 %v7842_v43  ;;  %v901_v34 = vcombine.high %v9826_v38, %v9826_v38  ;;  %v930_v43 = vcombine.high %v9636_v35, %v9636_v35  ;;  %v7932_v35 = vld [vmem:[%s11224_s1 + $0xc2c] ss:$16 sps:$4 sm:$0xff]  }
 0x14b   :  { %5155 = vmatpush1.bf16.msra.mxu0 %v7837_v44  ;;  %5688 = vmatpush1.bf16.msra.mxu1 %v7840_v45  ;;  %v7921_v44 = vld [vmem:[%s11224_s1 + $0xc00] ss:$16 sps:$4 sm:$0xff]   ;;  %v7924_v45 = vld [vmem:[%s11224_s1 + $0xc08] ss:$16 sps:$4 sm:$0xff]  }
 0x14c   :  { %5156 = vmatprep.subr.bf16.mxu0 %v7845_v46  ;;  %5689 = vmatprep.subr.bf16.mxu1 %v7848_v47  ;;  %v7929_v46 = vld [vmem:[%s11224_s1 + $0xc24] ss:$16 sps:$4 sm:$0xff]   ;;  %v9857_v47 = vrot.slane %v901_v34, %v8749_v49 }
 0x14d   :  { %v8013_v34 = vld [vmem:[%s11224_s1 + $0xde4] ss:$16 sps:$4 sm:$0xff]  }
 0x14f   :  { %5157 = vmatpush1.bf16.msra.mxu0 %v7843_v48  ;;  %5690 = vmatpush1.bf16.msra.mxu1 %v7846_v50  ;;  %v7927_v48 = vld [vmem:[%s11224_s1 + $0xc20] ss:$16 sps:$4 sm:$0xff]   ;;  %v7930_v50 = vld [vmem:[%s11224_s1 + $0xc28] ss:$16 sps:$4 sm:$0xff]  }
 0x150   :  { %5158 = vmatprep.subr.bf16.mxu0 %v7851_v51  ;;  %5691 = vmatprep.subr.bf16.mxu1 %v7854_v53  ;;  %v7935_v51 = vld [vmem:[%s11224_s1 + $0xc44] ss:$16 sps:$4 sm:$0xff]   ;;  %v7938_v53 = vld [vmem:[%s11224_s1 + $0xc4c] ss:$16 sps:$4 sm:$0xff]  }
 0x153   :  { %5159 = vmatpush1.bf16.msra.mxu0 %v7849_v54  ;;  %5692 = vmatpush1.bf16.msra.mxu1 %v7852_v55  ;;  %v7933_v54 = vld [vmem:[%s11224_s1 + $0xc40] ss:$16 sps:$4 sm:$0xff]   ;;  %v7936_v55 = vld [vmem:[%s11224_s1 + $0xc48] ss:$16 sps:$4 sm:$0xff]  }
 0x154   :  { %5160 = vmatprep.subr.bf16.mxu0 %v7857_v56  ;;  %5693 = vmatprep.subr.bf16.mxu1 %v7860_v57  ;;  %v7941_v56 = vld [vmem:[%s11224_s1 + $0xc64] ss:$16 sps:$4 sm:$0xff]   ;;  %v7944_v57 = vld [vmem:[%s11224_s1 + $0xc6c] ss:$16 sps:$4 sm:$0xff]  }
 0x157   :  { %5161 = vmatpush1.bf16.msra.mxu0 %v7855_v58  ;;  %5694 = vmatpush1.bf16.msra.mxu1 %v7858_v59  ;;  %v7939_v58 = vld [vmem:[%s11224_s1 + $0xc60] ss:$16 sps:$4 sm:$0xff]   ;;  %v7942_v59 = vld [vmem:[%s11224_s1 + $0xc68] ss:$16 sps:$4 sm:$0xff]  }
 0x158   :  { %5162 = vmatprep.subr.bf16.mxu0 %v7863_v60  ;;  %5695 = vmatprep.subr.bf16.mxu1 %v7866_v61  ;;  %v7947_v60 = vld [vmem:[%s11224_s1 + $0xc84] ss:$16 sps:$4 sm:$0xff]   ;;  %v7950_v61 = vld [vmem:[%s11224_s1 + $0xc8c] ss:$16 sps:$4 sm:$0xff]  }
 0x15b   :  { %5163 = vmatpush1.bf16.msra.mxu0 %v7861_v62  ;;  %5696 = vmatpush1.bf16.msra.mxu1 %v7864_v63  ;;  %v7945_v62 = vld [vmem:[%s11224_s1 + $0xc80] ss:$16 sps:$4 sm:$0xff]   ;;  %v7948_v63 = vld [vmem:[%s11224_s1 + $0xc88] ss:$16 sps:$4 sm:$0xff]  }
 0x15c   :  { %5164 = vmatprep.subr.bf16.mxu0 %v7869_v0  ;;  %5697 = vmatprep.subr.bf16.mxu1 %v7872_v1  ;;  %v7953_v0 = vld [vmem:[%s11224_s1 + $0xca4] ss:$16 sps:$4 sm:$0xff]   ;;  %v7956_v1 = vld [vmem:[%s11224_s1 + $0xcac] ss:$16 sps:$4 sm:$0xff]  }
 0x15f   :  { %5165 = vmatpush1.bf16.msra.mxu0 %v7867_v2  ;;  %5698 = vmatpush1.bf16.msra.mxu1 %v7870_v3  ;;  %v7951_v2 = vld [vmem:[%s11224_s1 + $0xca0] ss:$16 sps:$4 sm:$0xff]   ;;  %v7954_v3 = vld [vmem:[%s11224_s1 + $0xca8] ss:$16 sps:$4 sm:$0xff]  }
 0x160   :  { %5166 = vmatprep.subr.bf16.mxu0 %v7875_v4  ;;  %5699 = vmatprep.subr.bf16.mxu1 %v7878_v5  ;;  %v7959_v4 = vld [vmem:[%s11224_s1 + $0xcc4] ss:$16 sps:$4 sm:$0xff]   ;;  %v7962_v5 = vld [vmem:[%s11224_s1 + $0xccc] ss:$16 sps:$4 sm:$0xff]  }
 0x163   :  { %5167 = vmatpush1.bf16.msra.mxu0 %v7873_v6  ;;  %5700 = vmatpush1.bf16.msra.mxu1 %v7876_v7  ;;  %v7957_v6 = vld [vmem:[%s11224_s1 + $0xcc0] ss:$16 sps:$4 sm:$0xff]   ;;  %v7960_v7 = vld [vmem:[%s11224_s1 + $0xcc8] ss:$16 sps:$4 sm:$0xff]  }
 0x164   :  { %5168 = vmatprep.subr.bf16.mxu0 %v7881_v8  ;;  %5701 = vmatprep.subr.bf16.mxu1 %v7884_v9  ;;  %v7965_v8 = vld [vmem:[%s11224_s1 + $0xce4] ss:$16 sps:$4 sm:$0xff]   ;;  %v7968_v9 = vld [vmem:[%s11224_s1 + $0xcec] ss:$16 sps:$4 sm:$0xff]  }
 0x167   :  { %5169 = vmatpush1.bf16.msra.mxu0 %v7879_v10  ;;  %5702 = vmatpush1.bf16.msra.mxu1 %v7882_v11  ;;  %v7963_v10 = vld [vmem:[%s11224_s1 + $0xce0] ss:$16 sps:$4 sm:$0xff]   ;;  %v7966_v11 = vld [vmem:[%s11224_s1 + $0xce8] ss:$16 sps:$4 sm:$0xff]  }
 0x168   :  { %5170 = vmatprep.subr.bf16.mxu0 %v7887_v12  ;;  %5703 = vmatprep.subr.bf16.mxu1 %v7890_v52  ;;  %v7971_v12 = vld [vmem:[%s11224_s1 + $0xd04] ss:$16 sps:$4 sm:$0xff]   ;;  %v7974_v52 = vld [vmem:[%s11224_s1 + $0xd0c] ss:$16 sps:$4 sm:$0xff]  }
 0x16b   :  { %5171 = vmatpush1.bf16.msra.mxu0 %v7885_v15  ;;  %5704 = vmatpush1.bf16.msra.mxu1 %v7888_v16  ;;  %v7969_v15 = vld [vmem:[%s11224_s1 + $0xd00] ss:$16 sps:$4 sm:$0xff]   ;;  %v7972_v16 = vld [vmem:[%s11224_s1 + $0xd08] ss:$16 sps:$4 sm:$0xff]  }
 0x16c   :  { %5172 = vmatprep.subr.bf16.mxu0 %v7893_v17  ;;  %5705 = vmatprep.subr.bf16.mxu1 %v7896_v18  ;;  %v7977_v17 = vld [vmem:[%s11224_s1 + $0xd24] ss:$16 sps:$4 sm:$0xff]   ;;  %v7980_v18 = vld [vmem:[%s11224_s1 + $0xd2c] ss:$16 sps:$4 sm:$0xff]  }
 0x16f   :  { %5173 = vmatpush1.bf16.msra.mxu0 %v7891_v19  ;;  %5706 = vmatpush1.bf16.msra.mxu1 %v7894_v20  ;;  %v7975_v19 = vld [vmem:[%s11224_s1 + $0xd20] ss:$16 sps:$4 sm:$0xff]   ;;  %v7978_v20 = vld [vmem:[%s11224_s1 + $0xd28] ss:$16 sps:$4 sm:$0xff]  }
 0x170   :  { %5174 = vmatprep.subr.bf16.mxu0 %v7899_v22  ;;  %5707 = vmatprep.subr.bf16.mxu1 %v7902_v23  ;;  %v7983_v22 = vld [vmem:[%s11224_s1 + $0xd44] ss:$16 sps:$4 sm:$0xff]   ;;  %v7986_v23 = vld [vmem:[%s11224_s1 + $0xd4c] ss:$16 sps:$4 sm:$0xff]  }
 0x173   :  { %5175 = vmatpush1.bf16.msra.mxu0 %v7897_v24  ;;  %5708 = vmatpush1.bf16.msra.mxu1 %v7900_v13  ;;  %v7981_v24 = vld [vmem:[%s11224_s1 + $0xd40] ss:$16 sps:$4 sm:$0xff]   ;;  %v7984_v13 = vld [vmem:[%s11224_s1 + $0xd48] ss:$16 sps:$4 sm:$0xff]  }
 0x174   :  { %5176 = vmatprep.subr.bf16.mxu0 %v7905_v27  ;;  %5709 = vmatprep.subr.bf16.mxu1 %v7908_v28  ;;  %v7989_v27 = vld [vmem:[%s11224_s1 + $0xd64] ss:$16 sps:$4 sm:$0xff]   ;;  %v7992_v28 = vld [vmem:[%s11224_s1 + $0xd6c] ss:$16 sps:$4 sm:$0xff]  }
 0x177   :  { %5177 = vmatpush1.bf16.msra.mxu0 %v7903_v29  ;;  %5710 = vmatpush1.bf16.msra.mxu1 %v7906_v14  ;;  %v7987_v29 = vld [vmem:[%s11224_s1 + $0xd60] ss:$16 sps:$4 sm:$0xff]   ;;  %v7990_v14 = vld [vmem:[%s11224_s1 + $0xd68] ss:$16 sps:$4 sm:$0xff]  }
 0x178   :  { %5178 = vmatprep.subr.bf16.mxu0 %v7911_v30  ;;  %5711 = vmatprep.subr.bf16.mxu1 %v7914_v31  ;;  %v7995_v30 = vld [vmem:[%s11224_s1 + $0xd84] ss:$16 sps:$4 sm:$0xff]   ;;  %v7998_v31 = vld [vmem:[%s11224_s1 + $0xd8c] ss:$16 sps:$4 sm:$0xff]  }
 0x17b   :  { %5179 = vmatpush1.bf16.msra.mxu0 %v7909_v33  ;;  %5712 = vmatpush1.bf16.msra.mxu1 %v7912_v26  ;;  %v8001_v33 = vld [vmem:[%s11224_s1 + $0xda4] ss:$16 sps:$4 sm:$0xff]   ;;  %v8004_v26 = vld [vmem:[%s11224_s1 + $0xdac] ss:$16 sps:$4 sm:$0xff]  }
 0x17c   :  { %5180 = vmatprep.subr.bf16.mxu0 %v7917_v36  ;;  %5713 = vmatprep.subr.bf16.mxu1 %v7920_v37  ;;  %v7999_v36 = vld [vmem:[%s11224_s1 + $0xda0] ss:$16 sps:$4 sm:$0xff]   ;;  %v8002_v37 = vld [vmem:[%s11224_s1 + $0xda8] ss:$16 sps:$4 sm:$0xff]  }
 0x17f   :  { %5181 = vmatpush1.bf16.msra.mxu0 %v7915_v21  ;;  %5714 = vmatpush1.bf16.msra.mxu1 %v7918_v39  ;;  %v8007_v21 = vld [vmem:[%s11224_s1 + $0xdc4] ss:$16 sps:$4 sm:$0xff]   ;;  %v8010_v39 = vld [vmem:[%s11224_s1 + $0xdcc] ss:$16 sps:$4 sm:$0xff]  }
 0x180   :  { %5191 = vmatprep.subr.bf16.mxu0 %v7923_v40  ;;  %5724 = vmatprep.subr.bf16.mxu1 %v7926_v41  ;;  %v8005_v40 = vld [vmem:[%s11224_s1 + $0xdc0] ss:$16 sps:$4 sm:$0xff]   ;;  %v8008_v41 = vld [vmem:[%s11224_s1 + $0xdc8] ss:$16 sps:$4 sm:$0xff]  }
 0x182   :  { %5183 = vmatmul.mubr.bf16.vlgmr.msra.gmra.mrb[0].mxu0 %v930_v43  ;;  %5716 = vmatmul.mubr.bf16.vlgmr.msra.gmra.mrb[0].mxu1 %v930_v43  ;;  %v8016_v43 = vld [vmem:[%s11224_s1 + $0xdec] ss:$16 sps:$4 sm:$0xff]  }
 0x183   :  { %5192 = vmatpush1.bf16.msra.mxu0 %v7921_v44  ;;  %5725 = vmatpush1.bf16.msra.mxu1 %v7924_v45  ;;  %v8011_v44 = vld [vmem:[%s11224_s1 + $0xde0] ss:$16 sps:$4 sm:$0xff]   ;;  %v8014_v45 = vld [vmem:[%s11224_s1 + $0xde8] ss:$16 sps:$4 sm:$0xff]  }
 0x184   :  { %5193 = vmatprep.subr.bf16.mxu0 %v7929_v46  ;;  %5726 = vmatprep.subr.bf16.mxu1 %v7932_v35  ;;  %v8020_v46 = vld [vmem:[%s11224_s1 + $0xe04] ss:$16 sps:$4 sm:$0xff]   ;;  %v8023_v35 = vld [vmem:[%s11224_s1 + $0xe0c] ss:$16 sps:$4 sm:$0xff]  }
 0x185   :  { %5223 = vmatprep.mubr.bf16.mxu0 %v9857_v47  ;;  %5756 = vmatprep.mubr.bf16.mxu1 %v9857_v47 }
 0x187   :  { %5194 = vmatpush1.bf16.msra.mxu0 %v7927_v48  ;;  %5727 = vmatpush1.bf16.msra.mxu1 %v7930_v50  ;;  %v10043_v48 = vrot.slane %v9826_v38, %v8749_v49  ;;  %v8018_v50 = vld [vmem:[%s11224_s1 + $0xe00] ss:$16 sps:$4 sm:$0xff]   ;;  %v8029_v38 = vld [vmem:[%s11224_s1 + $0xe2c] ss:$16 sps:$4 sm:$0xff]  }
 0x188   :  { %5195 = vmatprep.subr.bf16.mxu0 %v7935_v51  ;;  %5728 = vmatprep.subr.bf16.mxu1 %v7938_v53  ;;  %v8021_v51 = vld [vmem:[%s11224_s1 + $0xe08] ss:$16 sps:$4 sm:$0xff]   ;;  %v8026_v53 = vld [vmem:[%s11224_s1 + $0xe24] ss:$16 sps:$4 sm:$0xff]  }
 0x18b   :  { %5196 = vmatpush1.bf16.msra.mxu0 %v7933_v54  ;;  %5729 = vmatpush1.bf16.msra.mxu1 %v7936_v55  ;;  %v933_v54 = vcombine.high %v9857_v47, %v9857_v47  ;;  %v8024_v55 = vld [vmem:[%s11224_s1 + $0xe20] ss:$16 sps:$4 sm:$0xff]   ;;  %v8032_v47 = vld [vmem:[%s11224_s1 + $0xe44] ss:$16 sps:$4 sm:$0xff]  }
 0x18c   :  { %5197 = vmatprep.subr.bf16.mxu0 %v7941_v56  ;;  %5730 = vmatprep.subr.bf16.mxu1 %v7944_v57  ;;  %v8027_v56 = vld [vmem:[%s11224_s1 + $0xe28] ss:$16 sps:$4 sm:$0xff]   ;;  %v8035_v57 = vld [vmem:[%s11224_s1 + $0xe4c] ss:$16 sps:$4 sm:$0xff]  }
 0x18f   :  { %5198 = vmatpush1.bf16.msra.mxu0 %v7939_v58  ;;  %5731 = vmatpush1.bf16.msra.mxu1 %v7942_v59  ;;  %v8030_v58 = vld [vmem:[%s11224_s1 + $0xe40] ss:$16 sps:$4 sm:$0xff]   ;;  %v8033_v59 = vld [vmem:[%s11224_s1 + $0xe48] ss:$16 sps:$4 sm:$0xff]  }
 0x190   :  { %5199 = vmatprep.subr.bf16.mxu0 %v7947_v60  ;;  %5732 = vmatprep.subr.bf16.mxu1 %v7950_v61  ;;  %v8038_v60 = vld [vmem:[%s11224_s1 + $0xe64] ss:$16 sps:$4 sm:$0xff]   ;;  %v8041_v61 = vld [vmem:[%s11224_s1 + $0xe6c] ss:$16 sps:$4 sm:$0xff]  }
 0x193   :  { %5200 = vmatpush1.bf16.msra.mxu0 %v7945_v62  ;;  %5733 = vmatpush1.bf16.msra.mxu1 %v7948_v63  ;;  %v8036_v62 = vld [vmem:[%s11224_s1 + $0xe60] ss:$16 sps:$4 sm:$0xff]   ;;  %v8039_v63 = vld [vmem:[%s11224_s1 + $0xe68] ss:$16 sps:$4 sm:$0xff]  }
 0x194   :  { %5201 = vmatprep.subr.bf16.mxu0 %v7953_v0  ;;  %5734 = vmatprep.subr.bf16.mxu1 %v7956_v1  ;;  %v8044_v0 = vld [vmem:[%s11224_s1 + $0xe84] ss:$16 sps:$4 sm:$0xff]   ;;  %v8047_v1 = vld [vmem:[%s11224_s1 + $0xe8c] ss:$16 sps:$4 sm:$0xff]  }
 0x197   :  { %5202 = vmatpush1.bf16.msra.mxu0 %v7951_v2  ;;  %5735 = vmatpush1.bf16.msra.mxu1 %v7954_v3  ;;  %v8042_v2 = vld [vmem:[%s11224_s1 + $0xe80] ss:$16 sps:$4 sm:$0xff]   ;;  %v8045_v3 = vld [vmem:[%s11224_s1 + $0xe88] ss:$16 sps:$4 sm:$0xff]  }
 0x198   :  { %5203 = vmatprep.subr.bf16.mxu0 %v7959_v4  ;;  %5736 = vmatprep.subr.bf16.mxu1 %v7962_v5  ;;  %v8050_v4 = vld [vmem:[%s11224_s1 + $0xea4] ss:$16 sps:$4 sm:$0xff]   ;;  %v8053_v5 = vld [vmem:[%s11224_s1 + $0xeac] ss:$16 sps:$4 sm:$0xff]  }
 0x19b   :  { %5204 = vmatpush1.bf16.msra.mxu0 %v7957_v6  ;;  %5737 = vmatpush1.bf16.msra.mxu1 %v7960_v7  ;;  %v8048_v6 = vld [vmem:[%s11224_s1 + $0xea0] ss:$16 sps:$4 sm:$0xff]   ;;  %v8051_v7 = vld [vmem:[%s11224_s1 + $0xea8] ss:$16 sps:$4 sm:$0xff]  }
 0x19c   :  { %5205 = vmatprep.subr.bf16.mxu0 %v7965_v8  ;;  %5738 = vmatprep.subr.bf16.mxu1 %v7968_v9  ;;  %v8056_v8 = vld [vmem:[%s11224_s1 + $0xec4] ss:$16 sps:$4 sm:$0xff]   ;;  %v8059_v9 = vld [vmem:[%s11224_s1 + $0xecc] ss:$16 sps:$4 sm:$0xff]  }
 0x19f   :  { %5206 = vmatpush1.bf16.msra.mxu0 %v7963_v10  ;;  %5739 = vmatpush1.bf16.msra.mxu1 %v7966_v11  ;;  %v8054_v10 = vld [vmem:[%s11224_s1 + $0xec0] ss:$16 sps:$4 sm:$0xff]   ;;  %v8057_v11 = vld [vmem:[%s11224_s1 + $0xec8] ss:$16 sps:$4 sm:$0xff]  }
 0x1a0   :  { %5207 = vmatprep.subr.bf16.mxu0 %v7971_v12  ;;  %5740 = vmatprep.subr.bf16.mxu1 %v7974_v52  ;;  %v8062_v12 = vld [vmem:[%s11224_s1 + $0xee4] ss:$16 sps:$4 sm:$0xff]   ;;  %v8065_v52 = vld [vmem:[%s11224_s1 + $0xeec] ss:$16 sps:$4 sm:$0xff]  }
 0x1a3   :  { %5208 = vmatpush1.bf16.msra.mxu0 %v7969_v15  ;;  %5741 = vmatpush1.bf16.msra.mxu1 %v7972_v16  ;;  %v8060_v15 = vld [vmem:[%s11224_s1 + $0xee0] ss:$16 sps:$4 sm:$0xff]   ;;  %v8063_v16 = vld [vmem:[%s11224_s1 + $0xee8] ss:$16 sps:$4 sm:$0xff]  }
 0x1a4   :  { %5209 = vmatprep.subr.bf16.mxu0 %v7977_v17  ;;  %5742 = vmatprep.subr.bf16.mxu1 %v7980_v18  ;;  %v8068_v17 = vld [vmem:[%s11224_s1 + $0xf04] ss:$16 sps:$4 sm:$0xff]   ;;  %v8071_v18 = vld [vmem:[%s11224_s1 + $0xf0c] ss:$16 sps:$4 sm:$0xff]  }
 0x1a7   :  { %5210 = vmatpush1.bf16.msra.mxu0 %v7975_v19  ;;  %5743 = vmatpush1.bf16.msra.mxu1 %v7978_v20  ;;  %v8066_v19 = vld [vmem:[%s11224_s1 + $0xf00] ss:$16 sps:$4 sm:$0xff]   ;;  %v8069_v20 = vld [vmem:[%s11224_s1 + $0xf08] ss:$16 sps:$4 sm:$0xff]  }
 0x1a8   :  { %5211 = vmatprep.subr.bf16.mxu0 %v7983_v22  ;;  %5744 = vmatprep.subr.bf16.mxu1 %v7986_v23  ;;  %v8074_v22 = vld [vmem:[%s11224_s1 + $0xf24] ss:$16 sps:$4 sm:$0xff]   ;;  %v8077_v23 = vld [vmem:[%s11224_s1 + $0xf2c] ss:$16 sps:$4 sm:$0xff]  }
 0x1ab   :  { %5212 = vmatpush1.bf16.msra.mxu0 %v7981_v24  ;;  %5745 = vmatpush1.bf16.msra.mxu1 %v7984_v13  ;;  %v8072_v24 = vld [vmem:[%s11224_s1 + $0xf20] ss:$16 sps:$4 sm:$0xff]   ;;  %v8075_v13 = vld [vmem:[%s11224_s1 + $0xf28] ss:$16 sps:$4 sm:$0xff]  }
 0x1ac   :  { %5213 = vmatprep.subr.bf16.mxu0 %v7989_v27  ;;  %5746 = vmatprep.subr.bf16.mxu1 %v7992_v28  ;;  %v8080_v27 = vld [vmem:[%s11224_s1 + $0xf44] ss:$16 sps:$4 sm:$0xff]   ;;  %v8083_v28 = vld [vmem:[%s11224_s1 + $0xf4c] ss:$16 sps:$4 sm:$0xff]  }
 0x1af   :  { %5214 = vmatpush1.bf16.msra.mxu0 %v7987_v29  ;;  %5747 = vmatpush1.bf16.msra.mxu1 %v7990_v14  ;;  %v8078_v29 = vld [vmem:[%s11224_s1 + $0xf40] ss:$16 sps:$4 sm:$0xff]   ;;  %v8081_v14 = vld [vmem:[%s11224_s1 + $0xf48] ss:$16 sps:$4 sm:$0xff]  }
 0x1b0   :  { %5215 = vmatprep.subr.bf16.mxu0 %v7995_v30  ;;  %5748 = vmatprep.subr.bf16.mxu1 %v7998_v31  ;;  %v8086_v30 = vld [vmem:[%s11224_s1 + $0xf64] ss:$16 sps:$4 sm:$0xff]   ;;  %v8089_v31 = vld [vmem:[%s11224_s1 + $0xf6c] ss:$16 sps:$4 sm:$0xff]  }
 0x1b3   :  { %5216 = vmatpush1.bf16.msra.mxu0 %v7993_v25  ;;  %5749 = vmatpush1.bf16.msra.mxu1 %v7996_v32 }
 0x1b4   :  { %5217 = vmatprep.subr.bf16.mxu0 %v8001_v33  ;;  %5750 = vmatprep.subr.bf16.mxu1 %v8004_v26 }
 0x1b7   :  { %5218 = vmatpush1.bf16.msra.mxu0 %v7999_v36  ;;  %5751 = vmatpush1.bf16.msra.mxu1 %v8002_v37 }
 0x1b8   :  { %5219 = vmatprep.subr.bf16.mxu0 %v8007_v21  ;;  %5752 = vmatprep.subr.bf16.mxu1 %v8010_v39 }
 0x1bb   :  { %5220 = vmatpush1.bf16.msra.mxu0 %v8005_v40  ;;  %5753 = vmatpush1.bf16.msra.mxu1 %v8008_v41 }
 0x1bc   :  { %5221 = vmatprep.subr.bf16.mxu0 %v8013_v34  ;;  %5754 = vmatprep.subr.bf16.mxu1 %v8016_v43 }
 0x1bf   :  { %5222 = vmatpush1.bf16.msra.mxu0 %v8011_v44  ;;  %5755 = vmatpush1.bf16.msra.mxu1 %v8014_v45 }
 0x1c0   :  { %5232 = vmatprep.subr.bf16.mxu0 %v8020_v46  ;;  %5765 = vmatprep.subr.bf16.mxu1 %v8023_v35 }
 0x1c2   :  { %5224 = vmatmul.mubr.bf16.vlgmr.msra.gmra.mrb[0].mxu0 %v10043_v48  ;;  %5757 = vmatmul.mubr.bf16.vlgmr.msra.gmra.mrb[0].mxu1 %v10043_v48 }
 0x1c3   :  { %5233 = vmatpush1.bf16.msra.mxu0 %v8018_v50  ;;  %5766 = vmatpush1.bf16.msra.mxu1 %v8021_v51 }
 0x1c4   :  { %5234 = vmatprep.subr.bf16.mxu0 %v8026_v53  ;;  %5767 = vmatprep.subr.bf16.mxu1 %v8029_v38 }
 0x1c5   :  { %5264 = vmatprep.mubr.bf16.mxu0 %v933_v54  ;;  %5797 = vmatprep.mubr.bf16.mxu1 %v933_v54 }
 0x1c7   :  { %5235 = vmatpush1.bf16.msra.mxu0 %v8024_v55  ;;  %5768 = vmatpush1.bf16.msra.mxu1 %v8027_v56 }
 0x1c8   :  { %5236 = vmatprep.subr.bf16.mxu0 %v8032_v47  ;;  %5769 = vmatprep.subr.bf16.mxu1 %v8035_v57 }
 0x1cb   :  { %5237 = vmatpush1.bf16.msra.mxu0 %v8030_v58  ;;  %5770 = vmatpush1.bf16.msra.mxu1 %v8033_v59 }
 0x1cc   :  { %5238 = vmatprep.subr.bf16.mxu0 %v8038_v60  ;;  %5771 = vmatprep.subr.bf16.mxu1 %v8041_v61 }
 0x1cf   :  { %5239 = vmatpush1.bf16.msra.mxu0 %v8036_v62  ;;  %5772 = vmatpush1.bf16.msra.mxu1 %v8039_v63 }
 0x1d0   :  { %5240 = vmatprep.subr.bf16.mxu0 %v8044_v0  ;;  %5773 = vmatprep.subr.bf16.mxu1 %v8047_v1 }
 0x1d3   :  { %5241 = vmatpush1.bf16.msra.mxu0 %v8042_v2  ;;  %5774 = vmatpush1.bf16.msra.mxu1 %v8045_v3 }
 0x1d4   :  { %5242 = vmatprep.subr.bf16.mxu0 %v8050_v4  ;;  %5775 = vmatprep.subr.bf16.mxu1 %v8053_v5 }
 0x1d7   :  { %5243 = vmatpush1.bf16.msra.mxu0 %v8048_v6  ;;  %5776 = vmatpush1.bf16.msra.mxu1 %v8051_v7 }
 0x1d8   :  { %5244 = vmatprep.subr.bf16.mxu0 %v8056_v8  ;;  %5777 = vmatprep.subr.bf16.mxu1 %v8059_v9 }
 0x1db   :  { %5245 = vmatpush1.bf16.msra.mxu0 %v8054_v10  ;;  %5778 = vmatpush1.bf16.msra.mxu1 %v8057_v11 }
 0x1dc   :  { %5246 = vmatprep.subr.bf16.mxu0 %v8062_v12  ;;  %5779 = vmatprep.subr.bf16.mxu1 %v8065_v52 }
 0x1df   :  { %5247 = vmatpush1.bf16.msra.mxu0 %v8060_v15  ;;  %5780 = vmatpush1.bf16.msra.mxu1 %v8063_v16 }
 0x1e0   :  { %5248 = vmatprep.subr.bf16.mxu0 %v8068_v17  ;;  %5781 = vmatprep.subr.bf16.mxu1 %v8071_v18 }
 0x1e3   :  { %5249 = vmatpush1.bf16.msra.mxu0 %v8066_v19  ;;  %5782 = vmatpush1.bf16.msra.mxu1 %v8069_v20 }
 0x1e4   :  { %5250 = vmatprep.subr.bf16.mxu0 %v8074_v22  ;;  %5783 = vmatprep.subr.bf16.mxu1 %v8077_v23 }
 0x1e7   :  { %5251 = vmatpush1.bf16.msra.mxu0 %v8072_v24  ;;  %5784 = vmatpush1.bf16.msra.mxu1 %v8075_v13 }
 0x1e8   :  { %5252 = vmatprep.subr.bf16.mxu0 %v8080_v27  ;;  %5785 = vmatprep.subr.bf16.mxu1 %v8083_v28 }
 0x1e9   :  { %10 = vsyncpa [#allocation3], 0  ;;  %v8084_v25 = vld [vmem:[%s11224_s1 + $0xf60] ss:$16 sps:$4 sm:$0xff]   ;;  %v8087_v32 = vld [vmem:[%s11224_s1 + $0xf68] ss:$16 sps:$4 sm:$0xff]   ;;  %v931_v47 = vcombine.high %v10043_v48, %v10043_v48 }
 0x1ea   :  { %v8092_v33 = vld [vmem:[%s11224_s1 + $0xf84] ss:$16 sps:$4 sm:$0xff]   ;;  %v8095_v26 = vld [vmem:[%s11224_s1 + $0xf8c] ss:$16 sps:$4 sm:$0xff]   ;;  %v8090_v36 = vld [vmem:[%s11224_s1 + $0xf80] ss:$16 sps:$4 sm:$0xff]  }
 0x1eb   :  { %5253 = vmatpush1.bf16.msra.mxu0 %v8078_v29  ;;  %5786 = vmatpush1.bf16.msra.mxu1 %v8081_v14  ;;  %v8093_v37 = vld [vmem:[%s11224_s1 + $0xf88] ss:$16 sps:$4 sm:$0xff]   ;;  %v8098_v21 = vld [vmem:[%s11224_s1 + $0xfa4] ss:$16 sps:$4 sm:$0xff]   ;;  %v8101_v39 = vld [vmem:[%s11224_s1 + $0xfac] ss:$16 sps:$4 sm:$0xff]  }
 0x1ec   :  { %5254 = vmatprep.subr.bf16.mxu0 %v8086_v30  ;;  %5787 = vmatprep.subr.bf16.mxu1 %v8089_v31  ;;  %v8096_v40 = vld [vmem:[%s11224_s1 + $0xfa0] ss:$16 sps:$4 sm:$0xff]   ;;  %v8099_v41 = vld [vmem:[%s11224_s1 + $0xfa8] ss:$16 sps:$4 sm:$0xff]   ;;  %v8104_v34 = vld [vmem:[%s11224_s1 + $0xfc4] ss:$16 sps:$4 sm:$0xff]  }
 0x1ed   :  { %v8107_v43 = vld [vmem:[%s11224_s1 + $0xfcc] ss:$16 sps:$4 sm:$0xff]   ;;  %v10220_v44 = vld [vmem:[%s11223_s0 + $0x10] sm:$0xff]  ;;  %v8105_v46 = vld [vmem:[%s11224_s1 + $0xfc8] ss:$16 sps:$4 sm:$0xff]   ;;  %vm4941_vm0 = vcmask 523264  }
 0x1ee   :  { %v8102_v45 = vld [vmem:[%s11224_s1 + $0xfc0] ss:$16 sps:$4 sm:$0xff]   ;;  %v8110_v35 = vld [vmem:[%s11224_s1 + $0xfe4] ss:$16 sps:$4 sm:$0xff]   ;;  %v8113_v50 = vld [vmem:[%s11224_s1 + $0xfec] ss:$16 sps:$4 sm:$0xff]   ;;  %v10236_v51 = vrot.slane %v10220_v44, %v8749_v49 }
 0x1ef   :  { %5255 = vmatpush1.bf16.msra.mxu0 %v8084_v25  ;;  %5788 = vmatpush1.bf16.msra.mxu1 %v8087_v32  ;;  %v8108_v53 = vld [vmem:[%s11224_s1 + $0xfe0] ss:$16 sps:$4 sm:$0xff]   ;;  %v8111_v38 = vld [vmem:[%s11224_s1 + $0xfe8] ss:$16 sps:$4 sm:$0xff]   ;;  %v8116_v54 = vld [vmem:[%s11224_s1 + $0x1004] ss:$16 sps:$4 sm:$0xff]  }
 0x1f0   :  { %5256 = vmatprep.subr.bf16.mxu0 %v8092_v33  ;;  %5789 = vmatprep.subr.bf16.mxu1 %v8095_v26  ;;  %v8119_v55 = vld [vmem:[%s11224_s1 + $0x100c] ss:$16 sps:$4 sm:$0xff]   ;;  %v949_v56 = vcombine.high %v10236_v51, %v10236_v51  ;;  %v8114_v57 = vld [vmem:[%s11224_s1 + $0x1000] ss:$16 sps:$4 sm:$0xff]   ;;  %v8117_v58 = vld [vmem:[%s11224_s1 + $0x1008] ss:$16 sps:$4 sm:$0xff]  }
 0x1f1   :  { %v8122_v59 = vld [vmem:[%s11224_s1 + $0x1024] ss:$16 sps:$4 sm:$0xff]   ;;  %v8125_v48 = vld [vmem:[%s11224_s1 + $0x102c] ss:$16 sps:$4 sm:$0xff]   ;;  %v8120_v61 = vld [vmem:[%s11224_s1 + $0x1020] ss:$16 sps:$4 sm:$0xff]  }
 0x1f2   :  { %v10267_v60 = vrot.slane %v949_v56, %v8749_v49  ;;  %v8123_v62 = vld [vmem:[%s11224_s1 + $0x1028] ss:$16 sps:$4 sm:$0xff]   ;;  %v8128_v63 = vld [vmem:[%s11224_s1 + $0x1044] ss:$16 sps:$4 sm:$0xff]   ;;  %v8131_v0 = vld [vmem:[%s11224_s1 + $0x104c] ss:$16 sps:$4 sm:$0xff]  }
 0x1f3   :  { %5257 = vmatpush1.bf16.msra.mxu0 %v8090_v36  ;;  %5790 = vmatpush1.bf16.msra.mxu1 %v8093_v37  ;;  %v8126_v1 = vld [vmem:[%s11224_s1 + $0x1040] ss:$16 sps:$4 sm:$0xff]   ;;  %v8129_v2 = vld [vmem:[%s11224_s1 + $0x1048] ss:$16 sps:$4 sm:$0xff]   ;;  %v8134_v3 = vld [vmem:[%s11224_s1 + $0x1064] ss:$16 sps:$4 sm:$0xff]  }
 0x1f4   :  { %5258 = vmatprep.subr.bf16.mxu0 %v8098_v21  ;;  %5791 = vmatprep.subr.bf16.mxu1 %v8101_v39  ;;  %v8137_v4 = vld [vmem:[%s11224_s1 + $0x106c] ss:$16 sps:$4 sm:$0xff]   ;;  %v8132_v5 = vld [vmem:[%s11224_s1 + $0x1060] ss:$16 sps:$4 sm:$0xff]   ;;  %v8135_v6 = vld [vmem:[%s11224_s1 + $0x1068] ss:$16 sps:$4 sm:$0xff]  }
 0x1f5   :  { %v8140_v7 = vld [vmem:[%s11224_s1 + $0x1084] ss:$16 sps:$4 sm:$0xff]   ;;  %v8143_v8 = vld [vmem:[%s11224_s1 + $0x108c] ss:$16 sps:$4 sm:$0xff]   ;;  %v8138_v9 = vld [vmem:[%s11224_s1 + $0x1080] ss:$16 sps:$4 sm:$0xff]  }
 0x1f6   :  { %v8141_v10 = vld [vmem:[%s11224_s1 + $0x1088] ss:$16 sps:$4 sm:$0xff]   ;;  %v8146_v11 = vld [vmem:[%s11224_s1 + $0x10a4] ss:$16 sps:$4 sm:$0xff]   ;;  %v8149_v12 = vld [vmem:[%s11224_s1 + $0x10ac] ss:$16 sps:$4 sm:$0xff]  }
 0x1f7   :  { %5259 = vmatpush1.bf16.msra.mxu0 %v8096_v40  ;;  %5792 = vmatpush1.bf16.msra.mxu1 %v8099_v41  ;;  %v8144_v52 = vld [vmem:[%s11224_s1 + $0x10a0] ss:$16 sps:$4 sm:$0xff]   ;;  %v8147_v15 = vld [vmem:[%s11224_s1 + $0x10a8] ss:$16 sps:$4 sm:$0xff]   ;;  %v8152_v16 = vld [vmem:[%s11224_s1 + $0x10c4] ss:$16 sps:$4 sm:$0xff]  }
 0x1f8   :  { %5260 = vmatprep.subr.bf16.mxu0 %v8104_v34  ;;  %5793 = vmatprep.subr.bf16.mxu1 %v8107_v43  ;;  %v8155_v17 = vld [vmem:[%s11224_s1 + $0x10cc] ss:$16 sps:$4 sm:$0xff]   ;;  %v8150_v18 = vld [vmem:[%s11224_s1 + $0x10c0] ss:$16 sps:$4 sm:$0xff]   ;;  %v8153_v19 = vld [vmem:[%s11224_s1 + $0x10c8] ss:$16 sps:$4 sm:$0xff]  }
 0x1f9   :  { %v8158_v20 = vld [vmem:[%s11224_s1 + $0x10e4] ss:$16 sps:$4 sm:$0xff]   ;;  %v8161_v22 = vld [vmem:[%s11224_s1 + $0x10ec] ss:$16 sps:$4 sm:$0xff]   ;;  %v8156_v23 = vld [vmem:[%s11224_s1 + $0x10e0] ss:$16 sps:$4 sm:$0xff]  }
 0x1fa   :  { %v8159_v24 = vld [vmem:[%s11224_s1 + $0x10e8] ss:$16 sps:$4 sm:$0xff]   ;;  %v8164_v13 = vld [vmem:[%s11224_s1 + $0x1104] ss:$16 sps:$4 sm:$0xff]   ;;  %v8167_v27 = vld [vmem:[%s11224_s1 + $0x110c] ss:$16 sps:$4 sm:$0xff]  }
 0x1fb   :  { %5261 = vmatpush1.bf16.msra.mxu0 %v8102_v45  ;;  %5794 = vmatpush1.bf16.msra.mxu1 %v8105_v46  ;;  %v8162_v28 = vld [vmem:[%s11224_s1 + $0x1100] ss:$16 sps:$4 sm:$0xff]   ;;  %v8165_v29 = vld [vmem:[%s11224_s1 + $0x1108] ss:$16 sps:$4 sm:$0xff]   ;;  %v8170_v14 = vld [vmem:[%s11224_s1 + $0x1124] ss:$16 sps:$4 sm:$0xff]  }
 0x1fc   :  { %5262 = vmatprep.subr.bf16.mxu0 %v8110_v35  ;;  %5795 = vmatprep.subr.bf16.mxu1 %v8113_v50  ;;  %v8173_v30 = vld [vmem:[%s11224_s1 + $0x112c] ss:$16 sps:$4 sm:$0xff]   ;;  %v8168_v31 = vld [vmem:[%s11224_s1 + $0x1120] ss:$16 sps:$4 sm:$0xff]   ;;  %v8171_v25 = vld [vmem:[%s11224_s1 + $0x1128] ss:$16 sps:$4 sm:$0xff]  }
 0x1fd   :  { %v8176_v32 = vld [vmem:[%s11224_s1 + $0x1144] ss:$16 sps:$4 sm:$0xff]   ;;  %v8179_v33 = vld [vmem:[%s11224_s1 + $0x114c] ss:$16 sps:$4 sm:$0xff]   ;;  %v8174_v26 = vld [vmem:[%s11224_s1 + $0x1140] ss:$16 sps:$4 sm:$0xff]  }
 0x1fe   :  { %v8177_v36 = vld [vmem:[%s11224_s1 + $0x1148] ss:$16 sps:$4 sm:$0xff]   ;;  %v8182_v37 = vld [vmem:[%s11224_s1 + $0x1164] ss:$16 sps:$4 sm:$0xff]   ;;  %v8185_v21 = vld [vmem:[%s11224_s1 + $0x116c] ss:$16 sps:$4 sm:$0xff]  }
 0x1ff   :  { %5263 = vmatpush1.bf16.msra.mxu0 %v8108_v53  ;;  %5796 = vmatpush1.bf16.msra.mxu1 %v8111_v38  ;;  %v8180_v39 = vld [vmem:[%s11224_s1 + $0x1160] ss:$16 sps:$4 sm:$0xff]   ;;  %v8183_v40 = vld [vmem:[%s11224_s1 + $0x1168] ss:$16 sps:$4 sm:$0xff]   ;;  %v8188_v41 = vld [vmem:[%s11224_s1 + $0x1184] ss:$16 sps:$4 sm:$0xff]  }
 0x200   :  { %5273 = vmatprep.subr.bf16.mxu0 %v8116_v54  ;;  %5806 = vmatprep.subr.bf16.mxu1 %v8119_v55  ;;  %v8191_v34 = vld [vmem:[%s11224_s1 + $0x118c] ss:$16 sps:$4 sm:$0xff]   ;;  %v8186_v43 = vld [vmem:[%s11224_s1 + $0x1180] ss:$16 sps:$4 sm:$0xff]   ;;  %v8189_v45 = vld [vmem:[%s11224_s1 + $0x1188] ss:$16 sps:$4 sm:$0xff]  }
 0x201   :  { %v8194_v46 = vld [vmem:[%s11224_s1 + $0x11a4] ss:$16 sps:$4 sm:$0xff]   ;;  %v8197_v35 = vld [vmem:[%s11224_s1 + $0x11ac] ss:$16 sps:$4 sm:$0xff]   ;;  %v8192_v50 = vld [vmem:[%s11224_s1 + $0x11a0] ss:$16 sps:$4 sm:$0xff]  }
 0x202   :  { %5265 = vmatmul.mubr.bf16.vlgmr.msra.gmra.mrb[0].mxu0 %v931_v47  ;;  %5798 = vmatmul.mubr.bf16.vlgmr.msra.gmra.mrb[0].mxu1 %v931_v47  ;;  %v8195_v53 = vld [vmem:[%s11224_s1 + $0x11a8] ss:$16 sps:$4 sm:$0xff]   ;;  %v8200_v38 = vld [vmem:[%s11224_s1 + $0x11c4] ss:$16 sps:$4 sm:$0xff]   ;;  %v8203_v54 = vld [vmem:[%s11224_s1 + $0x11cc] ss:$16 sps:$4 sm:$0xff]  }
 0x203   :  { %5274 = vmatpush1.bf16.msra.mxu0 %v8114_v57  ;;  %5807 = vmatpush1.bf16.msra.mxu1 %v8117_v58  ;;  %v8198_v55 = vld [vmem:[%s11224_s1 + $0x11c0] ss:$16 sps:$4 sm:$0xff]   ;;  %v8201_v56 = vld [vmem:[%s11224_s1 + $0x11c8] ss:$16 sps:$4 sm:$0xff]   ;;  %v8206_v47 = vld [vmem:[%s11224_s1 + $0x11e4] ss:$16 sps:$4 sm:$0xff]  }
 0x204   :  { %5275 = vmatprep.subr.bf16.mxu0 %v8122_v59  ;;  %5808 = vmatprep.subr.bf16.mxu1 %v8125_v48  ;;  %v8209_v57 = vld [vmem:[%s11224_s1 + $0x11ec] ss:$16 sps:$4 sm:$0xff]   ;;  %v8204_v58 = vld [vmem:[%s11224_s1 + $0x11e0] ss:$16 sps:$4 sm:$0xff]   ;;  %v8207_v59 = vld [vmem:[%s11224_s1 + $0x11e8] ss:$16 sps:$4 sm:$0xff]  }
 0x205   :  { %5305 = vmatprep.mubr.bf16.mxu0 %v10267_v60  ;;  %5838 = vmatprep.mubr.bf16.mxu1 %v10267_v60  ;;  %v8212_v48 = vld [vmem:[%s11224_s1 + $0x1204] ss:$16 sps:$4 sm:$0xff]   ;;  %s8583_s6 = smov [#allocation2]  }
 0x206   :  { %s6369_s7 = sshll.u32 %s8583_s6, 4  ;;  %s6370_s7 = int_to_ptr.vmem [resolvable:$true] %s6369_s7 }
 0x207   :  { %5276 = vmatpush1.bf16.msra.mxu0 %v8120_v61  ;;  %5809 = vmatpush1.bf16.msra.mxu1 %v8123_v62  ;;  %v8215_v61 = vld [vmem:[%s11224_s1 + $0x120c] ss:$16 sps:$4 sm:$0xff]   ;;  %v10453_v62 = vrot.slane %v10236_v51, %v8749_v49  ;;  %s8557_s8 = scalar_lea.vmem %s6370_s7, 32  ;;  %p8562_p1 = scmp.lt.s32.totalorder %s6370_s7, %s6370_s7 }
 0x208   :  { %5277 = vmatprep.subr.bf16.mxu0 %v8128_v63  ;;  %5810 = vmatprep.subr.bf16.mxu1 %v8131_v0  ;;  %v8210_v63 = vld [vmem:[%s11224_s1 + $0x1200] ss:$16 sps:$4 sm:$0xff]   ;;  %v8213_v0 = vld [vmem:[%s11224_s1 + $0x1208] ss:$16 sps:$4 sm:$0xff]   ;;  %v8221_v51 = vld [vmem:[%s11224_s1 + $0x122c] ss:$16 sps:$4 sm:$0xff]   ;;  %p8558_p0 = scmp.ne.s32.totalorder %s6370_s7, %s8557_s8  ;;  %p8563_p2 = scmp.lt.s32.totalorder %s8557_s8, %s8557_s8 }
 0x20a   :  { %p8564_p3 = por %p8563_p2, %p8562_p1 }
 0x20b   :  { %5278 = vmatpush1.bf16.msra.mxu0 %v8126_v1  ;;  %5811 = vmatpush1.bf16.msra.mxu1 %v8129_v2  ;;  %v8218_v1 = vld [vmem:[%s11224_s1 + $0x1224] ss:$16 sps:$4 sm:$0xff]   ;;  %v981_v2 = vcombine.high %v10267_v60, %v10267_v60 }
 0x20c   :  { %5279 = vmatprep.subr.bf16.mxu0 %v8134_v3  ;;  %5812 = vmatprep.subr.bf16.mxu1 %v8137_v4  ;;  %v8216_v3 = vld [vmem:[%s11224_s1 + $0x1220] ss:$16 sps:$4 sm:$0xff]   ;;  %v8219_v4 = vld [vmem:[%s11224_s1 + $0x1228] ss:$16 sps:$4 sm:$0xff]   ;;  %v8224_v60 = vld [vmem:[%s11224_s1 + $0x1244] ss:$16 sps:$4 sm:$0xff]   ;;  %p8565_p4 = pnand %p8564_p3, %p8558_p0 }
 0x20f   :  { %5280 = vmatpush1.bf16.msra.mxu0 %v8132_v5  ;;  %5813 = vmatpush1.bf16.msra.mxu1 %v8135_v6  ;;  %v8227_v5 = vld [vmem:[%s11224_s1 + $0x124c] ss:$16 sps:$4 sm:$0xff]   ;;  %v8222_v6 = vld [vmem:[%s11224_s1 + $0x1240] ss:$16 sps:$4 sm:$0xff]  }
 0x210   :  { %5281 = vmatprep.subr.bf16.mxu0 %v8140_v7  ;;  %5814 = vmatprep.subr.bf16.mxu1 %v8143_v8  ;;  %v8225_v7 = vld [vmem:[%s11224_s1 + $0x1248] ss:$16 sps:$4 sm:$0xff]   ;;  %v8230_v8 = vld [vmem:[%s11224_s1 + $0x1264] ss:$16 sps:$4 sm:$0xff]  }
 0x213   :  { %5282 = vmatpush1.bf16.msra.mxu0 %v8138_v9  ;;  %5815 = vmatpush1.bf16.msra.mxu1 %v8141_v10  ;;  %v8233_v9 = vld [vmem:[%s11224_s1 + $0x126c] ss:$16 sps:$4 sm:$0xff]   ;;  %v8228_v10 = vld [vmem:[%s11224_s1 + $0x1260] ss:$16 sps:$4 sm:$0xff]  }
 0x214   :  { %5283 = vmatprep.subr.bf16.mxu0 %v8146_v11  ;;  %5816 = vmatprep.subr.bf16.mxu1 %v8149_v12  ;;  %v8231_v11 = vld [vmem:[%s11224_s1 + $0x1268] ss:$16 sps:$4 sm:$0xff]   ;;  %v8236_v12 = vld [vmem:[%s11224_s1 + $0x1284] ss:$16 sps:$4 sm:$0xff]  }
 0x217   :  { %5284 = vmatpush1.bf16.msra.mxu0 %v8144_v52  ;;  %5817 = vmatpush1.bf16.msra.mxu1 %v8147_v15  ;;  %v8239_v52 = vld [vmem:[%s11224_s1 + $0x128c] ss:$16 sps:$4 sm:$0xff]   ;;  %v8234_v15 = vld [vmem:[%s11224_s1 + $0x1280] ss:$16 sps:$4 sm:$0xff]  }
 0x218   :  { %5285 = vmatprep.subr.bf16.mxu0 %v8152_v16  ;;  %5818 = vmatprep.subr.bf16.mxu1 %v8155_v17  ;;  %v8237_v16 = vld [vmem:[%s11224_s1 + $0x1288] ss:$16 sps:$4 sm:$0xff]   ;;  %v8242_v17 = vld [vmem:[%s11224_s1 + $0x12a4] ss:$16 sps:$4 sm:$0xff]  }
 0x21b   :  { %5286 = vmatpush1.bf16.msra.mxu0 %v8150_v18  ;;  %5819 = vmatpush1.bf16.msra.mxu1 %v8153_v19  ;;  %v8245_v18 = vld [vmem:[%s11224_s1 + $0x12ac] ss:$16 sps:$4 sm:$0xff]   ;;  %v8240_v19 = vld [vmem:[%s11224_s1 + $0x12a0] ss:$16 sps:$4 sm:$0xff]  }
 0x21c   :  { %5287 = vmatprep.subr.bf16.mxu0 %v8158_v20  ;;  %5820 = vmatprep.subr.bf16.mxu1 %v8161_v22  ;;  %v8243_v20 = vld [vmem:[%s11224_s1 + $0x12a8] ss:$16 sps:$4 sm:$0xff]   ;;  %v8248_v22 = vld [vmem:[%s11224_s1 + $0x12c4] ss:$16 sps:$4 sm:$0xff]  }
 0x21f   :  { %5288 = vmatpush1.bf16.msra.mxu0 %v8156_v23  ;;  %5821 = vmatpush1.bf16.msra.mxu1 %v8159_v24  ;;  %v8251_v23 = vld [vmem:[%s11224_s1 + $0x12cc] ss:$16 sps:$4 sm:$0xff]   ;;  %v8246_v24 = vld [vmem:[%s11224_s1 + $0x12c0] ss:$16 sps:$4 sm:$0xff]  }
 0x220   :  { %5289 = vmatprep.subr.bf16.mxu0 %v8164_v13  ;;  %5822 = vmatprep.subr.bf16.mxu1 %v8167_v27  ;;  %v8249_v13 = vld [vmem:[%s11224_s1 + $0x12c8] ss:$16 sps:$4 sm:$0xff]   ;;  %v8254_v27 = vld [vmem:[%s11224_s1 + $0x12e4] ss:$16 sps:$4 sm:$0xff]  }
 0x223   :  { %5290 = vmatpush1.bf16.msra.mxu0 %v8162_v28  ;;  %5823 = vmatpush1.bf16.msra.mxu1 %v8165_v29  ;;  %v8257_v28 = vld [vmem:[%s11224_s1 + $0x12ec] ss:$16 sps:$4 sm:$0xff]   ;;  %v8252_v29 = vld [vmem:[%s11224_s1 + $0x12e0] ss:$16 sps:$4 sm:$0xff]  }
 0x224   :  { %5291 = vmatprep.subr.bf16.mxu0 %v8170_v14  ;;  %5824 = vmatprep.subr.bf16.mxu1 %v8173_v30  ;;  %v8255_v14 = vld [vmem:[%s11224_s1 + $0x12e8] ss:$16 sps:$4 sm:$0xff]   ;;  %v8260_v30 = vld [vmem:[%s11224_s1 + $0x1304] ss:$16 sps:$4 sm:$0xff]  }
 0x227   :  { %5292 = vmatpush1.bf16.msra.mxu0 %v8168_v31  ;;  %5825 = vmatpush1.bf16.msra.mxu1 %v8171_v25  ;;  %v8263_v31 = vld [vmem:[%s11224_s1 + $0x130c] ss:$16 sps:$4 sm:$0xff]   ;;  %v8258_v25 = vld [vmem:[%s11224_s1 + $0x1300] ss:$16 sps:$4 sm:$0xff]  }
 0x228   :  { %5293 = vmatprep.subr.bf16.mxu0 %v8176_v32  ;;  %5826 = vmatprep.subr.bf16.mxu1 %v8179_v33  ;;  %v8261_v32 = vld [vmem:[%s11224_s1 + $0x1308] ss:$16 sps:$4 sm:$0xff]   ;;  %v8266_v33 = vld [vmem:[%s11224_s1 + $0x1324] ss:$16 sps:$4 sm:$0xff]  }
 0x22b   :  { %5294 = vmatpush1.bf16.msra.mxu0 %v8174_v26  ;;  %5827 = vmatpush1.bf16.msra.mxu1 %v8177_v36  ;;  %v8269_v26 = vld [vmem:[%s11224_s1 + $0x132c] ss:$16 sps:$4 sm:$0xff]   ;;  %v8264_v36 = vld [vmem:[%s11224_s1 + $0x1320] ss:$16 sps:$4 sm:$0xff]  }
 0x22c   :  { %5295 = vmatprep.subr.bf16.mxu0 %v8182_v37  ;;  %5828 = vmatprep.subr.bf16.mxu1 %v8185_v21  ;;  %v8267_v37 = vld [vmem:[%s11224_s1 + $0x1328] ss:$16 sps:$4 sm:$0xff]   ;;  %v8272_v21 = vld [vmem:[%s11224_s1 + $0x1344] ss:$16 sps:$4 sm:$0xff]  }
 0x22f   :  { %5296 = vmatpush1.bf16.msra.mxu0 %v8180_v39  ;;  %5829 = vmatpush1.bf16.msra.mxu1 %v8183_v40  ;;  %v8275_v39 = vld [vmem:[%s11224_s1 + $0x134c] ss:$16 sps:$4 sm:$0xff]   ;;  %v8270_v40 = vld [vmem:[%s11224_s1 + $0x1340] ss:$16 sps:$4 sm:$0xff]  }
 0x230   :  { %5297 = vmatprep.subr.bf16.mxu0 %v8188_v41  ;;  %5830 = vmatprep.subr.bf16.mxu1 %v8191_v34  ;;  %v8273_v41 = vld [vmem:[%s11224_s1 + $0x1348] ss:$16 sps:$4 sm:$0xff]   ;;  %v8278_v34 = vld [vmem:[%s11224_s1 + $0x1364] ss:$16 sps:$4 sm:$0xff]  }
 0x233   :  { %5298 = vmatpush1.bf16.msra.mxu0 %v8186_v43  ;;  %5831 = vmatpush1.bf16.msra.mxu1 %v8189_v45  ;;  %v8281_v43 = vld [vmem:[%s11224_s1 + $0x136c] ss:$16 sps:$4 sm:$0xff]   ;;  %v8276_v45 = vld [vmem:[%s11224_s1 + $0x1360] ss:$16 sps:$4 sm:$0xff]  }
 0x234   :  { %5299 = vmatprep.subr.bf16.mxu0 %v8194_v46  ;;  %5832 = vmatprep.subr.bf16.mxu1 %v8197_v35  ;;  %v8279_v46 = vld [vmem:[%s11224_s1 + $0x1368] ss:$16 sps:$4 sm:$0xff]   ;;  %v8284_v35 = vld [vmem:[%s11224_s1 + $0x1384] ss:$16 sps:$4 sm:$0xff]  }
 0x237   :  { %5300 = vmatpush1.bf16.msra.mxu0 %v8192_v50  ;;  %5833 = vmatpush1.bf16.msra.mxu1 %v8195_v53  ;;  %v8287_v50 = vld [vmem:[%s11224_s1 + $0x138c] ss:$16 sps:$4 sm:$0xff]   ;;  %v8282_v53 = vld [vmem:[%s11224_s1 + $0x1380] ss:$16 sps:$4 sm:$0xff]  }
 0x238   :  { %5301 = vmatprep.subr.bf16.mxu0 %v8200_v38  ;;  %5834 = vmatprep.subr.bf16.mxu1 %v8203_v54  ;;  %v8285_v38 = vld [vmem:[%s11224_s1 + $0x1388] ss:$16 sps:$4 sm:$0xff]   ;;  %v8290_v54 = vld [vmem:[%s11224_s1 + $0x13a4] ss:$16 sps:$4 sm:$0xff]  }
 0x23b   :  { %5302 = vmatpush1.bf16.msra.mxu0 %v8198_v55  ;;  %5835 = vmatpush1.bf16.msra.mxu1 %v8201_v56  ;;  %v8293_v55 = vld [vmem:[%s11224_s1 + $0x13ac] ss:$16 sps:$4 sm:$0xff]   ;;  %v8288_v56 = vld [vmem:[%s11224_s1 + $0x13a0] ss:$16 sps:$4 sm:$0xff]  }
 0x23c   :  { %5303 = vmatprep.subr.bf16.mxu0 %v8206_v47  ;;  %5836 = vmatprep.subr.bf16.mxu1 %v8209_v57  ;;  %v8291_v47 = vld [vmem:[%s11224_s1 + $0x13a8] ss:$16 sps:$4 sm:$0xff]   ;;  %v8296_v57 = vld [vmem:[%s11224_s1 + $0x13c4] ss:$16 sps:$4 sm:$0xff]  }
 0x23f   :  { %5304 = vmatpush1.bf16.msra.mxu0 %v8204_v58  ;;  %5837 = vmatpush1.bf16.msra.mxu1 %v8207_v59  ;;  %v8299_v58 = vld [vmem:[%s11224_s1 + $0x13cc] ss:$16 sps:$4 sm:$0xff]   ;;  %v934_v59 = vcombine.high %v10220_v44, %v10220_v44 }
 0x240   :  { %5314 = vmatprep.subr.bf16.mxu0 %v8212_v48  ;;  %5847 = vmatprep.subr.bf16.mxu1 %v8215_v61  ;;  %v8294_v48 = vld [vmem:[%s11224_s1 + $0x13c0] ss:$16 sps:$4 sm:$0xff]   ;;  %v8297_v61 = vld [vmem:[%s11224_s1 + $0x13c8] ss:$16 sps:$4 sm:$0xff]   ;;  %v8305_v44 = vld [vmem:[%s11224_s1 + $0x13ec] ss:$16 sps:$4 sm:$0xff]  }
 0x242   :  { %5306 = vmatmul.mubr.bf16.vlgmr.msra.gmra.mrb[0].mxu0 %v10453_v62  ;;  %5839 = vmatmul.mubr.bf16.vlgmr.msra.gmra.mrb[0].mxu1 %v10453_v62 }
 0x243   :  { %5315 = vmatpush1.bf16.msra.mxu0 %v8210_v63  ;;  %5848 = vmatpush1.bf16.msra.mxu1 %v8213_v0  ;;  %v8302_v63 = vld [vmem:[%s11224_s1 + $0x13e4] ss:$16 sps:$4 sm:$0xff]   ;;  %v10642_v0 = vrot.slane %v934_v59, %v8749_v49  ;;  %v8381_v59 = vld [vmem:[%s11224_s1 + $0x1588] ss:$16 sps:$4 sm:$0xff]  }
 0x244   :  { %5316 = vmatprep.subr.bf16.mxu0 %v8218_v1  ;;  %5849 = vmatprep.subr.bf16.mxu1 %v8221_v51  ;;  %v8300_v1 = vld [vmem:[%s11224_s1 + $0x13e0] ss:$16 sps:$4 sm:$0xff]   ;;  %v8303_v51 = vld [vmem:[%s11224_s1 + $0x13e8] ss:$16 sps:$4 sm:$0xff]  }
 0x245   :  { %5346 = vmatprep.mubr.bf16.mxu0 %v981_v2  ;;  %5879 = vmatprep.mubr.bf16.mxu1 %v981_v2  ;;  %v8308_v2 = vld [vmem:[%s11224_s1 + $0x1404] ss:$16 sps:$4 sm:$0xff]  }
 0x247   :  { %5317 = vmatpush1.bf16.msra.mxu0 %v8216_v3  ;;  %5850 = vmatpush1.bf16.msra.mxu1 %v8219_v4  ;;  %v8311_v3 = vld [vmem:[%s11224_s1 + $0x140c] ss:$16 sps:$4 sm:$0xff]   ;;  %v950_v4 = vcombine.high %v10642_v0, %v10642_v0 }
 0x248   :  { %5318 = vmatprep.subr.bf16.mxu0 %v8224_v60  ;;  %5851 = vmatprep.subr.bf16.mxu1 %v8227_v5  ;;  %v979_v60 = vcombine.high %v10453_v62, %v10453_v62  ;;  %v8306_v5 = vld [vmem:[%s11224_s1 + $0x1400] ss:$16 sps:$4 sm:$0xff]   ;;  %v8317_v62 = vld [vmem:[%s11224_s1 + $0x142c] ss:$16 sps:$4 sm:$0xff]  }
 0x24b   :  { %5319 = vmatpush1.bf16.msra.mxu0 %v8222_v6  ;;  %5852 = vmatpush1.bf16.msra.mxu1 %v8225_v7  ;;  %v8309_v6 = vld [vmem:[%s11224_s1 + $0x1408] ss:$16 sps:$4 sm:$0xff]   ;;  %v8314_v7 = vld [vmem:[%s11224_s1 + $0x1424] ss:$16 sps:$4 sm:$0xff]  }
 0x24c   :  { %5320 = vmatprep.subr.bf16.mxu0 %v8230_v8  ;;  %5853 = vmatprep.subr.bf16.mxu1 %v8233_v9  ;;  %v10673_v8 = vrot.slane %v950_v4, %v8749_v49  ;;  %v8312_v9 = vld [vmem:[%s11224_s1 + $0x1420] ss:$16 sps:$4 sm:$0xff]   ;;  %v8398_v4 = vld [vmem:[%s11224_s1 + $0x15e4] ss:$16 sps:$4 sm:$0xff]  }
 0x24f   :  { %5321 = vmatpush1.bf16.msra.mxu0 %v8228_v10  ;;  %5854 = vmatpush1.bf16.msra.mxu1 %v8231_v11  ;;  %v8315_v10 = vld [vmem:[%s11224_s1 + $0x1428] ss:$16 sps:$4 sm:$0xff]   ;;  %v8320_v11 = vld [vmem:[%s11224_s1 + $0x1444] ss:$16 sps:$4 sm:$0xff]  }
 0x250   :  { %5322 = vmatprep.subr.bf16.mxu0 %v8236_v12  ;;  %5855 = vmatprep.subr.bf16.mxu1 %v8239_v52  ;;  %v8323_v12 = vld [vmem:[%s11224_s1 + $0x144c] ss:$16 sps:$4 sm:$0xff]   ;;  %v8318_v52 = vld [vmem:[%s11224_s1 + $0x1440] ss:$16 sps:$4 sm:$0xff]  }
 0x253   :  { %5323 = vmatpush1.bf16.msra.mxu0 %v8234_v15  ;;  %5856 = vmatpush1.bf16.msra.mxu1 %v8237_v16  ;;  %v8321_v15 = vld [vmem:[%s11224_s1 + $0x1448] ss:$16 sps:$4 sm:$0xff]   ;;  %v8326_v16 = vld [vmem:[%s11224_s1 + $0x1464] ss:$16 sps:$4 sm:$0xff]  }
 0x254   :  { %5324 = vmatprep.subr.bf16.mxu0 %v8242_v17  ;;  %5857 = vmatprep.subr.bf16.mxu1 %v8245_v18  ;;  %v8329_v17 = vld [vmem:[%s11224_s1 + $0x146c] ss:$16 sps:$4 sm:$0xff]   ;;  %v8324_v18 = vld [vmem:[%s11224_s1 + $0x1460] ss:$16 sps:$4 sm:$0xff]  }
 0x257   :  { %5325 = vmatpush1.bf16.msra.mxu0 %v8240_v19  ;;  %5858 = vmatpush1.bf16.msra.mxu1 %v8243_v20  ;;  %v8327_v19 = vld [vmem:[%s11224_s1 + $0x1468] ss:$16 sps:$4 sm:$0xff]   ;;  %v8332_v20 = vld [vmem:[%s11224_s1 + $0x1484] ss:$16 sps:$4 sm:$0xff]  }
 0x258   :  { %5326 = vmatprep.subr.bf16.mxu0 %v8248_v22  ;;  %5859 = vmatprep.subr.bf16.mxu1 %v8251_v23  ;;  %v8335_v22 = vld [vmem:[%s11224_s1 + $0x148c] ss:$16 sps:$4 sm:$0xff]   ;;  %v8330_v23 = vld [vmem:[%s11224_s1 + $0x1480] ss:$16 sps:$4 sm:$0xff]  }
 0x25b   :  { %5327 = vmatpush1.bf16.msra.mxu0 %v8246_v24  ;;  %5860 = vmatpush1.bf16.msra.mxu1 %v8249_v13  ;;  %v8333_v24 = vld [vmem:[%s11224_s1 + $0x1488] ss:$16 sps:$4 sm:$0xff]   ;;  %v8338_v13 = vld [vmem:[%s11224_s1 + $0x14a4] ss:$16 sps:$4 sm:$0xff]  }
 0x25c   :  { %5328 = vmatprep.subr.bf16.mxu0 %v8254_v27  ;;  %5861 = vmatprep.subr.bf16.mxu1 %v8257_v28  ;;  %v8341_v27 = vld [vmem:[%s11224_s1 + $0x14ac] ss:$16 sps:$4 sm:$0xff]   ;;  %v8336_v28 = vld [vmem:[%s11224_s1 + $0x14a0] ss:$16 sps:$4 sm:$0xff]  }
 0x25f   :  { %5329 = vmatpush1.bf16.msra.mxu0 %v8252_v29  ;;  %5862 = vmatpush1.bf16.msra.mxu1 %v8255_v14  ;;  %v8339_v29 = vld [vmem:[%s11224_s1 + $0x14a8] ss:$16 sps:$4 sm:$0xff]   ;;  %v8344_v14 = vld [vmem:[%s11224_s1 + $0x14c4] ss:$16 sps:$4 sm:$0xff]  }
 0x260   :  { %5330 = vmatprep.subr.bf16.mxu0 %v8260_v30  ;;  %5863 = vmatprep.subr.bf16.mxu1 %v8263_v31  ;;  %v8347_v30 = vld [vmem:[%s11224_s1 + $0x14cc] ss:$16 sps:$4 sm:$0xff]   ;;  %v8342_v31 = vld [vmem:[%s11224_s1 + $0x14c0] ss:$16 sps:$4 sm:$0xff]  }
 0x263   :  { %5331 = vmatpush1.bf16.msra.mxu0 %v8258_v25  ;;  %5864 = vmatpush1.bf16.msra.mxu1 %v8261_v32  ;;  %v8345_v25 = vld [vmem:[%s11224_s1 + $0x14c8] ss:$16 sps:$4 sm:$0xff]   ;;  %v8350_v32 = vld [vmem:[%s11224_s1 + $0x14e4] ss:$16 sps:$4 sm:$0xff]  }
 0x264   :  { %5332 = vmatprep.subr.bf16.mxu0 %v8266_v33  ;;  %5865 = vmatprep.subr.bf16.mxu1 %v8269_v26  ;;  %v8353_v33 = vld [vmem:[%s11224_s1 + $0x14ec] ss:$16 sps:$4 sm:$0xff]   ;;  %v8348_v26 = vld [vmem:[%s11224_s1 + $0x14e0] ss:$16 sps:$4 sm:$0xff]  }
 0x267   :  { %5333 = vmatpush1.bf16.msra.mxu0 %v8264_v36  ;;  %5866 = vmatpush1.bf16.msra.mxu1 %v8267_v37  ;;  %v8351_v36 = vld [vmem:[%s11224_s1 + $0x14e8] ss:$16 sps:$4 sm:$0xff]   ;;  %v8356_v37 = vld [vmem:[%s11224_s1 + $0x1504] ss:$16 sps:$4 sm:$0xff]  }
 0x268   :  { %5334 = vmatprep.subr.bf16.mxu0 %v8272_v21  ;;  %5867 = vmatprep.subr.bf16.mxu1 %v8275_v39  ;;  %v8359_v21 = vld [vmem:[%s11224_s1 + $0x150c] ss:$16 sps:$4 sm:$0xff]   ;;  %v8354_v39 = vld [vmem:[%s11224_s1 + $0x1500] ss:$16 sps:$4 sm:$0xff]  }
 0x26b   :  { %5335 = vmatpush1.bf16.msra.mxu0 %v8270_v40  ;;  %5868 = vmatpush1.bf16.msra.mxu1 %v8273_v41  ;;  %v8357_v40 = vld [vmem:[%s11224_s1 + $0x1508] ss:$16 sps:$4 sm:$0xff]   ;;  %v8362_v41 = vld [vmem:[%s11224_s1 + $0x1524] ss:$16 sps:$4 sm:$0xff]  }
 0x26c   :  { %5336 = vmatprep.subr.bf16.mxu0 %v8278_v34  ;;  %5869 = vmatprep.subr.bf16.mxu1 %v8281_v43  ;;  %v8365_v34 = vld [vmem:[%s11224_s1 + $0x152c] ss:$16 sps:$4 sm:$0xff]   ;;  %v8360_v43 = vld [vmem:[%s11224_s1 + $0x1520] ss:$16 sps:$4 sm:$0xff]  }
 0x26f   :  { %5337 = vmatpush1.bf16.msra.mxu0 %v8276_v45  ;;  %5870 = vmatpush1.bf16.msra.mxu1 %v8279_v46  ;;  %v8363_v45 = vld [vmem:[%s11224_s1 + $0x1528] ss:$16 sps:$4 sm:$0xff]   ;;  %v8368_v46 = vld [vmem:[%s11224_s1 + $0x1544] ss:$16 sps:$4 sm:$0xff]  }
 0x270   :  { %5338 = vmatprep.subr.bf16.mxu0 %v8284_v35  ;;  %5871 = vmatprep.subr.bf16.mxu1 %v8287_v50  ;;  %v8371_v35 = vld [vmem:[%s11224_s1 + $0x154c] ss:$16 sps:$4 sm:$0xff]   ;;  %v8366_v50 = vld [vmem:[%s11224_s1 + $0x1540] ss:$16 sps:$4 sm:$0xff]  }
 0x273   :  { %5339 = vmatpush1.bf16.msra.mxu0 %v8282_v53  ;;  %5872 = vmatpush1.bf16.msra.mxu1 %v8285_v38  ;;  %v8369_v53 = vld [vmem:[%s11224_s1 + $0x1548] ss:$16 sps:$4 sm:$0xff]   ;;  %v8374_v38 = vld [vmem:[%s11224_s1 + $0x1564] ss:$16 sps:$4 sm:$0xff]  }
 0x274   :  { %5340 = vmatprep.subr.bf16.mxu0 %v8290_v54  ;;  %5873 = vmatprep.subr.bf16.mxu1 %v8293_v55  ;;  %v8377_v54 = vld [vmem:[%s11224_s1 + $0x156c] ss:$16 sps:$4 sm:$0xff]   ;;  %v8372_v55 = vld [vmem:[%s11224_s1 + $0x1560] ss:$16 sps:$4 sm:$0xff]  }
 0x277   :  { %5341 = vmatpush1.bf16.msra.mxu0 %v8288_v56  ;;  %5874 = vmatpush1.bf16.msra.mxu1 %v8291_v47  ;;  %v8375_v56 = vld [vmem:[%s11224_s1 + $0x1568] ss:$16 sps:$4 sm:$0xff]   ;;  %v8380_v47 = vld [vmem:[%s11224_s1 + $0x1584] ss:$16 sps:$4 sm:$0xff]  }
 0x278   :  { %5342 = vmatprep.subr.bf16.mxu0 %v8296_v57  ;;  %5875 = vmatprep.subr.bf16.mxu1 %v8299_v58  ;;  %v8383_v57 = vld [vmem:[%s11224_s1 + $0x158c] ss:$16 sps:$4 sm:$0xff]   ;;  %v8378_v58 = vld [vmem:[%s11224_s1 + $0x1580] ss:$16 sps:$4 sm:$0xff]  }
 0x27b   :  { %5343 = vmatpush1.bf16.msra.mxu0 %v8294_v48  ;;  %5876 = vmatpush1.bf16.msra.mxu1 %v8297_v61  ;;  %v8386_v48 = vld [vmem:[%s11224_s1 + $0x15a4] ss:$16 sps:$4 sm:$0xff]   ;;  %v8389_v61 = vld [vmem:[%s11224_s1 + $0x15ac] ss:$16 sps:$4 sm:$0xff]  }
 0x27c   :  { %5344 = vmatprep.subr.bf16.mxu0 %v8302_v63  ;;  %5877 = vmatprep.subr.bf16.mxu1 %v8305_v44  ;;  %v8384_v63 = vld [vmem:[%s11224_s1 + $0x15a0] ss:$16 sps:$4 sm:$0xff]   ;;  %v8387_v44 = vld [vmem:[%s11224_s1 + $0x15a8] ss:$16 sps:$4 sm:$0xff]  }
 0x27f   :  { %5345 = vmatpush1.bf16.msra.mxu0 %v8300_v1  ;;  %5878 = vmatpush1.bf16.msra.mxu1 %v8303_v51  ;;  %v8392_v1 = vld [vmem:[%s11224_s1 + $0x15c4] ss:$16 sps:$4 sm:$0xff]   ;;  %v8395_v51 = vld [vmem:[%s11224_s1 + $0x15cc] ss:$16 sps:$4 sm:$0xff]  }
 0x280   :  { %5355 = vmatprep.subr.bf16.mxu0 %v8308_v2  ;;  %5888 = vmatprep.subr.bf16.mxu1 %v8311_v3  ;;  %v8390_v2 = vld [vmem:[%s11224_s1 + $0x15c0] ss:$16 sps:$4 sm:$0xff]   ;;  %v8393_v3 = vld [vmem:[%s11224_s1 + $0x15c8] ss:$16 sps:$4 sm:$0xff]  }
 0x282   :  { %5347 = vmatmul.mubr.bf16.vlgmr.msra.gmra.mrb[0].mxu0 %v979_v60  ;;  %5880 = vmatmul.mubr.bf16.vlgmr.msra.gmra.mrb[0].mxu1 %v979_v60  ;;  %v8401_v60 = vld [vmem:[%s11224_s1 + $0x15ec] ss:$16 sps:$4 sm:$0xff]  }
 0x283   :  { %5356 = vmatpush1.bf16.msra.mxu0 %v8306_v5  ;;  %5889 = vmatpush1.bf16.msra.mxu1 %v8309_v6  ;;  %v8396_v5 = vld [vmem:[%s11224_s1 + $0x15e0] ss:$16 sps:$4 sm:$0xff]   ;;  %v8399_v6 = vld [vmem:[%s11224_s1 + $0x15e8] ss:$16 sps:$4 sm:$0xff]  }
 0x284   :  { %5357 = vmatprep.subr.bf16.mxu0 %v8314_v7  ;;  %5890 = vmatprep.subr.bf16.mxu1 %v8317_v62  ;;  %v8405_v7 = vld [vmem:[%s11224_s1 + $0x1604] ss:$16 sps:$4 sm:$0xff]   ;;  %v8408_v62 = vld [vmem:[%s11224_s1 + $0x160c] ss:$16 sps:$4 sm:$0xff]  }
 0x285   :  { %5387 = vmatprep.mubr.bf16.mxu0 %v10673_v8  ;;  %5920 = vmatprep.mubr.bf16.mxu1 %v10673_v8 }
 0x287   :  { %5358 = vmatpush1.bf16.msra.mxu0 %v8312_v9  ;;  %5891 = vmatpush1.bf16.msra.mxu1 %v8315_v10  ;;  %v10859_v9 = vrot.slane %v10642_v0, %v8749_v49  ;;  %v8403_v10 = vld [vmem:[%s11224_s1 + $0x1600] ss:$16 sps:$4 sm:$0xff]   ;;  %v8414_v0 = vld [vmem:[%s11224_s1 + $0x162c] ss:$16 sps:$4 sm:$0xff]  }
 0x288   :  { %5359 = vmatprep.subr.bf16.mxu0 %v8320_v11  ;;  %5892 = vmatprep.subr.bf16.mxu1 %v8323_v12  ;;  %v8406_v11 = vld [vmem:[%s11224_s1 + $0x1608] ss:$16 sps:$4 sm:$0xff]   ;;  %v8411_v12 = vld [vmem:[%s11224_s1 + $0x1624] ss:$16 sps:$4 sm:$0xff]  }
 0x28b   :  { %5360 = vmatpush1.bf16.msra.mxu0 %v8318_v52  ;;  %5893 = vmatpush1.bf16.msra.mxu1 %v8321_v15  ;;  %v982_v52 = vcombine.high %v10673_v8, %v10673_v8  ;;  %v8409_v15 = vld [vmem:[%s11224_s1 + $0x1620] ss:$16 sps:$4 sm:$0xff]   ;;  %v8417_v8 = vld [vmem:[%s11224_s1 + $0x1644] ss:$16 sps:$4 sm:$0xff]  }
 0x28c   :  { %5361 = vmatprep.subr.bf16.mxu0 %v8326_v16  ;;  %5894 = vmatprep.subr.bf16.mxu1 %v8329_v17  ;;  %v8412_v16 = vld [vmem:[%s11224_s1 + $0x1628] ss:$16 sps:$4 sm:$0xff]   ;;  %v8420_v17 = vld [vmem:[%s11224_s1 + $0x164c] ss:$16 sps:$4 sm:$0xff]  }
 0x28f   :  { %5362 = vmatpush1.bf16.msra.mxu0 %v8324_v18  ;;  %5895 = vmatpush1.bf16.msra.mxu1 %v8327_v19  ;;  %v8415_v18 = vld [vmem:[%s11224_s1 + $0x1640] ss:$16 sps:$4 sm:$0xff]   ;;  %v8418_v19 = vld [vmem:[%s11224_s1 + $0x1648] ss:$16 sps:$4 sm:$0xff]  }
 0x290   :  { %5363 = vmatprep.subr.bf16.mxu0 %v8332_v20  ;;  %5896 = vmatprep.subr.bf16.mxu1 %v8335_v22  ;;  %v8423_v20 = vld [vmem:[%s11224_s1 + $0x1664] ss:$16 sps:$4 sm:$0xff]   ;;  %v8426_v22 = vld [vmem:[%s11224_s1 + $0x166c] ss:$16 sps:$4 sm:$0xff]  }
 0x293   :  { %5364 = vmatpush1.bf16.msra.mxu0 %v8330_v23  ;;  %5897 = vmatpush1.bf16.msra.mxu1 %v8333_v24  ;;  %v8421_v23 = vld [vmem:[%s11224_s1 + $0x1660] ss:$16 sps:$4 sm:$0xff]   ;;  %v8424_v24 = vld [vmem:[%s11224_s1 + $0x1668] ss:$16 sps:$4 sm:$0xff]  }
 0x294   :  { %5365 = vmatprep.subr.bf16.mxu0 %v8338_v13  ;;  %5898 = vmatprep.subr.bf16.mxu1 %v8341_v27  ;;  %v8429_v13 = vld [vmem:[%s11224_s1 + $0x1684] ss:$16 sps:$4 sm:$0xff]   ;;  %v8432_v27 = vld [vmem:[%s11224_s1 + $0x168c] ss:$16 sps:$4 sm:$0xff]  }
 0x297   :  { %5366 = vmatpush1.bf16.msra.mxu0 %v8336_v28  ;;  %5899 = vmatpush1.bf16.msra.mxu1 %v8339_v29  ;;  %v8427_v28 = vld [vmem:[%s11224_s1 + $0x1680] ss:$16 sps:$4 sm:$0xff]   ;;  %v8430_v29 = vld [vmem:[%s11224_s1 + $0x1688] ss:$16 sps:$4 sm:$0xff]  }
 0x298   :  { %5367 = vmatprep.subr.bf16.mxu0 %v8344_v14  ;;  %5900 = vmatprep.subr.bf16.mxu1 %v8347_v30  ;;  %v8435_v14 = vld [vmem:[%s11224_s1 + $0x16a4] ss:$16 sps:$4 sm:$0xff]   ;;  %v8438_v30 = vld [vmem:[%s11224_s1 + $0x16ac] ss:$16 sps:$4 sm:$0xff]  }
 0x29b   :  { %5368 = vmatpush1.bf16.msra.mxu0 %v8342_v31  ;;  %5901 = vmatpush1.bf16.msra.mxu1 %v8345_v25  ;;  %v8433_v31 = vld [vmem:[%s11224_s1 + $0x16a0] ss:$16 sps:$4 sm:$0xff]   ;;  %v8436_v25 = vld [vmem:[%s11224_s1 + $0x16a8] ss:$16 sps:$4 sm:$0xff]  }
 0x29c   :  { %5369 = vmatprep.subr.bf16.mxu0 %v8350_v32  ;;  %5902 = vmatprep.subr.bf16.mxu1 %v8353_v33  ;;  %v8441_v32 = vld [vmem:[%s11224_s1 + $0x16c4] ss:$16 sps:$4 sm:$0xff]   ;;  %v8444_v33 = vld [vmem:[%s11224_s1 + $0x16cc] ss:$16 sps:$4 sm:$0xff]  }
 0x29f   :  { %5370 = vmatpush1.bf16.msra.mxu0 %v8348_v26  ;;  %5903 = vmatpush1.bf16.msra.mxu1 %v8351_v36  ;;  %v8439_v26 = vld [vmem:[%s11224_s1 + $0x16c0] ss:$16 sps:$4 sm:$0xff]   ;;  %v8442_v36 = vld [vmem:[%s11224_s1 + $0x16c8] ss:$16 sps:$4 sm:$0xff]  }
 0x2a0   :  { %5371 = vmatprep.subr.bf16.mxu0 %v8356_v37  ;;  %5904 = vmatprep.subr.bf16.mxu1 %v8359_v21  ;;  %v8447_v37 = vld [vmem:[%s11224_s1 + $0x16e4] ss:$16 sps:$4 sm:$0xff]   ;;  %v8450_v21 = vld [vmem:[%s11224_s1 + $0x16ec] ss:$16 sps:$4 sm:$0xff]  }
 0x2a3   :  { %5372 = vmatpush1.bf16.msra.mxu0 %v8354_v39  ;;  %5905 = vmatpush1.bf16.msra.mxu1 %v8357_v40  ;;  %v8445_v39 = vld [vmem:[%s11224_s1 + $0x16e0] ss:$16 sps:$4 sm:$0xff]   ;;  %v8448_v40 = vld [vmem:[%s11224_s1 + $0x16e8] ss:$16 sps:$4 sm:$0xff]  }
 0x2a4   :  { %5373 = vmatprep.subr.bf16.mxu0 %v8362_v41  ;;  %5906 = vmatprep.subr.bf16.mxu1 %v8365_v34  ;;  %v8453_v41 = vld [vmem:[%s11224_s1 + $0x1704] ss:$16 sps:$4 sm:$0xff]   ;;  %v8456_v34 = vld [vmem:[%s11224_s1 + $0x170c] ss:$16 sps:$4 sm:$0xff]  }
 0x2a7   :  { %5374 = vmatpush1.bf16.msra.mxu0 %v8360_v43  ;;  %5907 = vmatpush1.bf16.msra.mxu1 %v8363_v45  ;;  %v8451_v43 = vld [vmem:[%s11224_s1 + $0x1700] ss:$16 sps:$4 sm:$0xff]   ;;  %v8454_v45 = vld [vmem:[%s11224_s1 + $0x1708] ss:$16 sps:$4 sm:$0xff]  }
 0x2a8   :  { %5375 = vmatprep.subr.bf16.mxu0 %v8368_v46  ;;  %5908 = vmatprep.subr.bf16.mxu1 %v8371_v35  ;;  %v8459_v46 = vld [vmem:[%s11224_s1 + $0x1724] ss:$16 sps:$4 sm:$0xff]   ;;  %v8462_v35 = vld [vmem:[%s11224_s1 + $0x172c] ss:$16 sps:$4 sm:$0xff]  }
 0x2ab   :  { %5376 = vmatpush1.bf16.msra.mxu0 %v8366_v50  ;;  %5909 = vmatpush1.bf16.msra.mxu1 %v8369_v53  ;;  %v8457_v50 = vld [vmem:[%s11224_s1 + $0x1720] ss:$16 sps:$4 sm:$0xff]   ;;  %v8460_v53 = vld [vmem:[%s11224_s1 + $0x1728] ss:$16 sps:$4 sm:$0xff]  }
 0x2ac   :  { %5377 = vmatprep.subr.bf16.mxu0 %v8374_v38  ;;  %5910 = vmatprep.subr.bf16.mxu1 %v8377_v54  ;;  %v8465_v38 = vld [vmem:[%s11224_s1 + $0x1744] ss:$16 sps:$4 sm:$0xff]   ;;  %v8468_v54 = vld [vmem:[%s11224_s1 + $0x174c] ss:$16 sps:$4 sm:$0xff]  }
 0x2af   :  { %5378 = vmatpush1.bf16.msra.mxu0 %v8372_v55  ;;  %5911 = vmatpush1.bf16.msra.mxu1 %v8375_v56  ;;  %v8463_v55 = vld [vmem:[%s11224_s1 + $0x1740] ss:$16 sps:$4 sm:$0xff]   ;;  %v8466_v56 = vld [vmem:[%s11224_s1 + $0x1748] ss:$16 sps:$4 sm:$0xff]  }
 0x2b0   :  { %5379 = vmatprep.subr.bf16.mxu0 %v8380_v47  ;;  %5912 = vmatprep.subr.bf16.mxu1 %v8383_v57  ;;  %v8471_v47 = vld [vmem:[%s11224_s1 + $0x1764] ss:$16 sps:$4 sm:$0xff]   ;;  %v8474_v57 = vld [vmem:[%s11224_s1 + $0x176c] ss:$16 sps:$4 sm:$0xff]  }
 0x2b3   :  { %5380 = vmatpush1.bf16.msra.mxu0 %v8378_v58  ;;  %5913 = vmatpush1.bf16.msra.mxu1 %v8381_v59  ;;  %v8469_v58 = vld [vmem:[%s11224_s1 + $0x1760] ss:$16 sps:$4 sm:$0xff]   ;;  %v8472_v59 = vld [vmem:[%s11224_s1 + $0x1768] ss:$16 sps:$4 sm:$0xff]  }
 0x2b4   :  { %5381 = vmatprep.subr.bf16.mxu0 %v8386_v48  ;;  %5914 = vmatprep.subr.bf16.mxu1 %v8389_v61  ;;  %v8477_v48 = vld [vmem:[%s11224_s1 + $0x1784] ss:$16 sps:$4 sm:$0xff]   ;;  %v8480_v61 = vld [vmem:[%s11224_s1 + $0x178c] ss:$16 sps:$4 sm:$0xff]  }
 0x2b7   :  { %5382 = vmatpush1.bf16.msra.mxu0 %v8384_v63  ;;  %5915 = vmatpush1.bf16.msra.mxu1 %v8387_v44  ;;  %v8475_v63 = vld [vmem:[%s11224_s1 + $0x1780] ss:$16 sps:$4 sm:$0xff]   ;;  %v8478_v44 = vld [vmem:[%s11224_s1 + $0x1788] ss:$16 sps:$4 sm:$0xff]  }
 0x2b8   :  { %5383 = vmatprep.subr.bf16.mxu0 %v8392_v1  ;;  %5916 = vmatprep.subr.bf16.mxu1 %v8395_v51  ;;  %v8483_v1 = vld [vmem:[%s11224_s1 + $0x17a4] ss:$16 sps:$4 sm:$0xff]   ;;  %v8486_v51 = vld [vmem:[%s11224_s1 + $0x17ac] ss:$16 sps:$4 sm:$0xff]  }
 0x2bb   :  { %5384 = vmatpush1.bf16.msra.mxu0 %v8390_v2  ;;  %5917 = vmatpush1.bf16.msra.mxu1 %v8393_v3  ;;  %v8481_v2 = vld [vmem:[%s11224_s1 + $0x17a0] ss:$16 sps:$4 sm:$0xff]   ;;  %v8484_v3 = vld [vmem:[%s11224_s1 + $0x17a8] ss:$16 sps:$4 sm:$0xff]  }
 0x2bc   :  { %5385 = vmatprep.subr.bf16.mxu0 %v8398_v4  ;;  %5918 = vmatprep.subr.bf16.mxu1 %v8401_v60  ;;  %v8489_v4 = vld [vmem:[%s11224_s1 + $0x17c4] ss:$16 sps:$4 sm:$0xff]   ;;  %v8492_v60 = vld [vmem:[%s11224_s1 + $0x17cc] ss:$16 sps:$4 sm:$0xff]  }
 0x2bf   :  { %5386 = vmatpush1.bf16.msra.mxu0 %v8396_v5  ;;  %5919 = vmatpush1.bf16.msra.mxu1 %v8399_v6  ;;  %v8487_v5 = vld [vmem:[%s11224_s1 + $0x17c0] ss:$16 sps:$4 sm:$0xff]   ;;  %v8490_v6 = vld [vmem:[%s11224_s1 + $0x17c8] ss:$16 sps:$4 sm:$0xff]  }
 0x2c0   :  { %5396 = vmatprep.subr.bf16.mxu0 %v8405_v7  ;;  %5929 = vmatprep.subr.bf16.mxu1 %v8408_v62  ;;  %v8495_v7 = vld [vmem:[%s11224_s1 + $0x17e4] ss:$16 sps:$4 sm:$0xff]   ;;  %v8498_v62 = vld [vmem:[%s11224_s1 + $0x17ec] ss:$16 sps:$4 sm:$0xff]  }
 0x2c2   :  { %5388 = vmatmul.mubr.bf16.vlgmr.msra.gmra.mrb[0].mxu0 %v10859_v9  ;;  %5921 = vmatmul.mubr.bf16.vlgmr.msra.gmra.mrb[0].mxu1 %v10859_v9 }
 0x2c3   :  { %5397 = vmatpush1.bf16.msra.mxu0 %v8403_v10  ;;  %5930 = vmatpush1.bf16.msra.mxu1 %v8406_v11  ;;  %v8493_v10 = vld [vmem:[%s11224_s1 + $0x17e0] ss:$16 sps:$4 sm:$0xff]   ;;  %v8496_v11 = vld [vmem:[%s11224_s1 + $0x17e8] ss:$16 sps:$4 sm:$0xff]  }
 0x2c4   :  { %5398 = vmatprep.subr.bf16.mxu0 %v8411_v12  ;;  %5931 = vmatprep.subr.bf16.mxu1 %v8414_v0  ;;  %v8501_v12 = vld [vmem:[%s11224_s1 + $0x1804] ss:$16 sps:$4 sm:$0xff]   ;;  %v8504_v0 = vld [vmem:[%s11224_s1 + $0x180c] ss:$16 sps:$4 sm:$0xff]  }
 0x2c5   :  { %5428 = vmatprep.mubr.bf16.mxu0 %v982_v52  ;;  %5961 = vmatprep.mubr.bf16.mxu1 %v982_v52  ;;  %v980_v52 = vcombine.high %v10859_v9, %v10859_v9  ;;  %v8510_v9 = vld [vmem:[%s11224_s1 + $0x182c] ss:$16 sps:$4 sm:$0xff]  }
 0x2c7   :  { %5399 = vmatpush1.bf16.msra.mxu0 %v8409_v15  ;;  %5932 = vmatpush1.bf16.msra.mxu1 %v8412_v16  ;;  %v8499_v15 = vld [vmem:[%s11224_s1 + $0x1800] ss:$16 sps:$4 sm:$0xff]   ;;  %v8502_v16 = vld [vmem:[%s11224_s1 + $0x1808] ss:$16 sps:$4 sm:$0xff]  }
 0x2c8   :  { %5400 = vmatprep.subr.bf16.mxu0 %v8417_v8  ;;  %5933 = vmatprep.subr.bf16.mxu1 %v8420_v17  ;;  %v8507_v8 = vld [vmem:[%s11224_s1 + $0x1824] ss:$16 sps:$4 sm:$0xff]   ;;  %v8505_v17 = vld [vmem:[%s11224_s1 + $0x1820] ss:$16 sps:$4 sm:$0xff]  }
 0x2cb   :  { %5401 = vmatpush1.bf16.msra.mxu0 %v8415_v18  ;;  %5934 = vmatpush1.bf16.msra.mxu1 %v8418_v19  ;;  %v8508_v18 = vld [vmem:[%s11224_s1 + $0x1828] ss:$16 sps:$4 sm:$0xff]   ;;  %v8513_v19 = vld [vmem:[%s11224_s1 + $0x1844] ss:$16 sps:$4 sm:$0xff]  }
 0x2cc   :  { %5402 = vmatprep.subr.bf16.mxu0 %v8423_v20  ;;  %5935 = vmatprep.subr.bf16.mxu1 %v8426_v22  ;;  %v8516_v20 = vld [vmem:[%s11224_s1 + $0x184c] ss:$16 sps:$4 sm:$0xff]   ;;  %v8582_v22 = vmov 0  }
 0x2cf   :  { %5403 = vmatpush1.bf16.msra.mxu0 %v8421_v23  ;;  %5936 = vmatpush1.bf16.msra.mxu1 %v8424_v24  ;;  %v8511_v23 = vld [vmem:[%s11224_s1 + $0x1840] ss:$16 sps:$4 sm:$0xff]   ;;  %v8514_v24 = vld [vmem:[%s11224_s1 + $0x1848] ss:$16 sps:$4 sm:$0xff]  }
 0x2d0   :  { %5404 = vmatprep.subr.bf16.mxu0 %v8429_v13  ;;  %5937 = vmatprep.subr.bf16.mxu1 %v8432_v27  ;;  %v8519_v13 = vld [vmem:[%s11224_s1 + $0x1864] ss:$16 sps:$4 sm:$0xff]   ;;  %v8522_v27 = vld [vmem:[%s11224_s1 + $0x186c] ss:$16 sps:$4 sm:$0xff]  }
 0x2d3   :  { %5405 = vmatpush1.bf16.msra.mxu0 %v8427_v28  ;;  %5938 = vmatpush1.bf16.msra.mxu1 %v8430_v29  ;;  %v8517_v28 = vld [vmem:[%s11224_s1 + $0x1860] ss:$16 sps:$4 sm:$0xff]   ;;  %v8520_v29 = vld [vmem:[%s11224_s1 + $0x1868] ss:$16 sps:$4 sm:$0xff]  }
 0x2d4   :  { %5406 = vmatprep.subr.bf16.mxu0 %v8435_v14  ;;  %5939 = vmatprep.subr.bf16.mxu1 %v8438_v30  ;;  %v6377_v14 = vld.sshfl [vmem:[%s11223_s0 + $0x18] sm:$0x1 pattern:$0x75316420]  ;;  %v8523_v30 = vld [vmem:[%s11226_s3 + $0x40] sm:$0xff]  }
 0x2d7   :  { %5407 = vmatpush1.bf16.msra.mxu0 %v8433_v31  ;;  %5940 = vmatpush1.bf16.msra.mxu1 %v8436_v25  ;;  %v8524_v31 = vld [vmem:[%s11226_s3 + $0xc0] sm:$0xff]   ;;  %v996_v25 = vrot.slane %v6377_v14, %v8749_v49  ;;  %v8528_v49 = vld [vmem:[%s11226_s3 + $0xc8] sm:$0xff]  }
 0x2d8   :  { %5408 = vmatprep.subr.bf16.mxu0 %v8441_v32  ;;  %5941 = vmatprep.subr.bf16.mxu1 %v8444_v33  ;;  %v8525_v32 = vld [vmem:[%s11226_s3] sm:$0xff]  }
 0x2d9   :  { %v8526_v33 = vld [vmem:[%s11226_s3 + $0x80] sm:$0xff]  }
 0x2db   :  { %5409 = vmatpush1.bf16.msra.mxu0 %v8439_v26  ;;  %5942 = vmatpush1.bf16.msra.mxu1 %v8442_v36  ;;  %v8527_v26 = vld [vmem:[%s11226_s3 + $0x48] sm:$0xff]  }
 0x2dc   :  { %5410 = vmatprep.subr.bf16.mxu0 %v8447_v37  ;;  %5943 = vmatprep.subr.bf16.mxu1 %v8450_v21  ;;  %v8529_v36 = vld [vmem:[%s11226_s3 + $0x8] sm:$0xff]   ;;  %v8531_v21 = vld [vmem:[%s11226_s3 + $0x50] sm:$0xff]  }
 0x2dd   :  { %v8530_v37 = vld [vmem:[%s11226_s3 + $0x88] sm:$0xff]  }
 0x2df   :  { %5411 = vmatpush1.bf16.msra.mxu0 %v8445_v39  ;;  %5944 = vmatpush1.bf16.msra.mxu1 %v8448_v40  ;;  %v8532_v39 = vld [vmem:[%s11226_s3 + $0xd0] sm:$0xff]  }
 0x2e0   :  { %5412 = vmatprep.subr.bf16.mxu0 %v8453_v41  ;;  %5945 = vmatprep.subr.bf16.mxu1 %v8456_v34  ;;  %v8533_v40 = vld [vmem:[%s11226_s3 + $0x10] sm:$0xff]   ;;  %v8535_v34 = vld [vmem:[%s11226_s3 + $0x58] sm:$0xff]  }
 0x2e1   :  { %v8534_v41 = vld [vmem:[%s11226_s3 + $0x90] sm:$0xff]  }
 0x2e3   :  { %5413 = vmatpush1.bf16.msra.mxu0 %v8451_v43  ;;  %5946 = vmatpush1.bf16.msra.mxu1 %v8454_v45  ;;  %v8536_v43 = vld [vmem:[%s11226_s3 + $0xd8] sm:$0xff]  }
 0x2e4   :  { %5414 = vmatprep.subr.bf16.mxu0 %v8459_v46  ;;  %5947 = vmatprep.subr.bf16.mxu1 %v8462_v35  ;;  %v8537_v45 = vld [vmem:[%s11226_s3 + $0x18] sm:$0xff]   ;;  %v8539_v35 = vld [vmem:[%s11226_s3 + $0x60] sm:$0xff]  }
 0x2e5   :  { %v8538_v46 = vld [vmem:[%s11226_s3 + $0x98] sm:$0xff]  }
 0x2e7   :  { %5415 = vmatpush1.bf16.msra.mxu0 %v8457_v50  ;;  %5948 = vmatpush1.bf16.msra.mxu1 %v8460_v53  ;;  %v8540_v50 = vld [vmem:[%s11226_s3 + $0xe0] sm:$0xff]  }
 0x2e8   :  { %5416 = vmatprep.subr.bf16.mxu0 %v8465_v38  ;;  %5949 = vmatprep.subr.bf16.mxu1 %v8468_v54  ;;  %v8541_v53 = vld [vmem:[%s11226_s3 + $0x20] sm:$0xff]   ;;  %v8543_v54 = vld [vmem:[%s11226_s3 + $0x68] sm:$0xff]  }
 0x2e9   :  { %v8542_v38 = vld [vmem:[%s11226_s3 + $0xa0] sm:$0xff]  }
 0x2eb   :  { %5417 = vmatpush1.bf16.msra.mxu0 %v8463_v55  ;;  %5950 = vmatpush1.bf16.msra.mxu1 %v8466_v56  ;;  %v8544_v55 = vld [vmem:[%s11226_s3 + $0xe8] sm:$0xff]  }
 0x2ec   :  { %5418 = vmatprep.subr.bf16.mxu0 %v8471_v47  ;;  %5951 = vmatprep.subr.bf16.mxu1 %v8474_v57  ;;  %v8545_v56 = vld [vmem:[%s11226_s3 + $0x28] sm:$0xff]   ;;  %v8547_v57 = vld [vmem:[%s11226_s3 + $0x70] sm:$0xff]  }
 0x2ed   :  { %v8546_v47 = vld [vmem:[%s11226_s3 + $0xa8] sm:$0xff]  }
 0x2ef   :  { %5419 = vmatpush1.bf16.msra.mxu0 %v8469_v58  ;;  %5952 = vmatpush1.bf16.msra.mxu1 %v8472_v59  ;;  %v8548_v58 = vld [vmem:[%s11226_s3 + $0xf0] sm:$0xff]  }
 0x2f0   :  { %5420 = vmatprep.subr.bf16.mxu0 %v8477_v48  ;;  %5953 = vmatprep.subr.bf16.mxu1 %v8480_v61  ;;  %v8549_v59 = vld [vmem:[%s11226_s3 + $0x30] sm:$0xff]   ;;  %v8551_v61 = vld [vmem:[%s11226_s3 + $0x78] sm:$0xff]  }
 0x2f1   :  { %v8550_v48 = vld [vmem:[%s11226_s3 + $0xb0] sm:$0xff]  }
 0x2f3   :  { %5421 = vmatpush1.bf16.msra.mxu0 %v8475_v63  ;;  %5954 = vmatpush1.bf16.msra.mxu1 %v8478_v44  ;;  %v8552_v63 = vld [vmem:[%s11226_s3 + $0xf8] sm:$0xff]  }
 0x2f4   :  { %5422 = vmatprep.subr.bf16.mxu0 %v8483_v1  ;;  %5955 = vmatprep.subr.bf16.mxu1 %v8486_v51  ;;  %v8553_v44 = vld [vmem:[%s11226_s3 + $0x38] sm:$0xff]   ;;  %v814_v51 = vsub.s32 0, %v8731_v42 }
 0x2f5   :  { %v8554_v1 = vld [vmem:[%s11226_s3 + $0xb8] sm:$0xff]  }
 0x2f7   :  { %5423 = vmatpush1.bf16.msra.mxu0 %v8481_v2  ;;  %5956 = vmatpush1.bf16.msra.mxu1 %v8484_v3  ;;  %v822_v2 = vsub.s32 2, %v8731_v42  ;;  %v810_v3 = vld [vmem:[%s11225_s2] sm:$0xf] }
 0x2f8   :  { %5424 = vmatprep.subr.bf16.mxu0 %v8489_v4  ;;  %5957 = vmatprep.subr.bf16.mxu1 %v8492_v60  ;;  %v818_v4 = vsub.s32 1, %v8731_v42  ;;  %v826_v60 = vsub.s32 3, %v8731_v42 }
 0x2fb   :  { %5425 = vmatpush1.bf16.msra.mxu0 %v8487_v5  ;;  %5958 = vmatpush1.bf16.msra.mxu1 %v8490_v6  ;;  %v815_v5 = vrot.slane %v810_v3, %v814_v51  ;;  %v823_v6 = vrot.slane %v810_v3, %v822_v2 }
 0x2fc   :  { %5426 = vmatprep.subr.bf16.mxu0 %v8495_v7  ;;  %5959 = vmatprep.subr.bf16.mxu1 %v8498_v62  ;;  %v819_v7 = vrot.slane %v810_v3, %v818_v4  ;;  %v827_v62 = vrot.slane %v810_v3, %v826_v60 }
 0x2ff   :  { %5427 = vmatpush1.bf16.msra.mxu0 %v8493_v10  ;;  %5960 = vmatpush1.bf16.msra.mxu1 %v8496_v11 }
 0x300   :  { %5437 = vmatprep.subr.bf16.mxu0 %v8501_v12  ;;  %5970 = vmatprep.subr.bf16.mxu1 %v8504_v0 }
 0x302   :  { %5429 = vmatmul.mubr.bf16.vlgmr.msra.gmra.mrb[0].mxu0 %v980_v52  ;;  %5962 = vmatmul.mubr.bf16.vlgmr.msra.gmra.mrb[0].mxu1 %v980_v52 }
 0x303   :  { %5438 = vmatpush1.bf16.msra.mxu0 %v8499_v15  ;;  %5971 = vmatpush1.bf16.msra.mxu1 %v8502_v16 }
 0x304   :  { %5439 = vmatprep.subr.bf16.mxu0 %v8507_v8  ;;  %5972 = vmatprep.subr.bf16.mxu1 %v8510_v9 }
 0x305   :  { %5469 = vmatprep.mubr.bf16.mxu0 %v8582_v22  ;;  %6002 = vmatprep.mubr.bf16.mxu1 %v8582_v22 }
 0x307   :  { %5440 = vmatpush1.bf16.msra.mxu0 %v8505_v17  ;;  %5973 = vmatpush1.bf16.msra.mxu1 %v8508_v18 }
 0x308   :  { %5441 = vmatprep.subr.bf16.mxu0 %v8513_v19  ;;  %5974 = vmatprep.subr.bf16.mxu1 %v8516_v20 }
 0x30b   :  { %5442 = vmatpush1.bf16.msra.mxu0 %v8511_v23  ;;  %5975 = vmatpush1.bf16.msra.mxu1 %v8514_v24 }
 0x30c   :  { %5443 = vmatprep.subr.bf16.mxu0 %v8519_v13  ;;  %5976 = vmatprep.subr.bf16.mxu1 %v8522_v27 }
 0x30f   :  { %5444 = vmatpush1.bf16.msra.mxu0 %v8517_v28  ;;  %5977 = vmatpush1.bf16.msra.mxu1 %v8520_v29 }
 0x310   :  { %7197 = vmatprep.subr.bf16.mxu0 %v8523_v30  ;;  %7219 = vmatprep.subr.bf16.mxu1 %v8524_v31  ;;  %v7164_v30 = vld [vmem:[%s11227_s4] ss:$0 sm:$0xff] }
 0x312   :  { %7162 = vmatmul.mubr.msk.bf16.vlgmr.msra.gmra.mrb[0].mxu0 %vm4941_vm0, %v996_v25  ;;  %7163 = vmatmul.mubr.msk.bf16.vlgmr.msra.gmra.mrb[0].mxu1 %vm4941_vm0, %v996_v25 }
 0x313   :  { %7198 = vmatpush3.bf16.msra.mxu0 %v8525_v32  ;;  %7220 = vmatpush3.bf16.msra.mxu1 %v8526_v33 }
 0x314   :  { %7199 = vmatprep.subr.bf16.mxu0 %v8527_v26  ;;  %7221 = vmatprep.subr.bf16.mxu1 %v8528_v49 }
 0x317   :  { %7200 = vmatpush3.bf16.msra.mxu0 %v8529_v36  ;;  %7222 = vmatpush3.bf16.msra.mxu1 %v8530_v37 }
 0x318   :  { %7201 = vmatprep.subr.bf16.mxu0 %v8531_v21  ;;  %7223 = vmatprep.subr.bf16.mxu1 %v8532_v39 }
 0x31b   :  { %7202 = vmatpush3.bf16.msra.mxu0 %v8533_v40  ;;  %7224 = vmatpush3.bf16.msra.mxu1 %v8534_v41 }
 0x31c   :  { %7203 = vmatprep.subr.bf16.mxu0 %v8535_v34  ;;  %7225 = vmatprep.subr.bf16.mxu1 %v8536_v43 }
 0x31f   :  { %7204 = vmatpush3.bf16.msra.mxu0 %v8537_v45  ;;  %7226 = vmatpush3.bf16.msra.mxu1 %v8538_v46 }
 0x320   :  { %7205 = vmatprep.subr.bf16.mxu0 %v8539_v35  ;;  %7227 = vmatprep.subr.bf16.mxu1 %v8540_v50 }
 0x323   :  { %7206 = vmatpush3.bf16.msra.mxu0 %v8541_v53  ;;  %7228 = vmatpush3.bf16.msra.mxu1 %v8542_v38 }
 0x324   :  { %7207 = vmatprep.subr.bf16.mxu0 %v8543_v54  ;;  %7229 = vmatprep.subr.bf16.mxu1 %v8544_v55 }
 0x327   :  { %7208 = vmatpush3.bf16.msra.mxu0 %v8545_v56  ;;  %7230 = vmatpush3.bf16.msra.mxu1 %v8546_v47 }
 0x328   :  { %7209 = vmatprep.subr.bf16.mxu0 %v8547_v57  ;;  %7231 = vmatprep.subr.bf16.mxu1 %v8548_v58 }
 0x32b   :  { %7210 = vmatpush3.bf16.msra.mxu0 %v8549_v59  ;;  %7232 = vmatpush3.bf16.msra.mxu1 %v8550_v48 }
 0x32c   :  { %7211 = vmatprep.subr.bf16.mxu0 %v8551_v61  ;;  %7233 = vmatprep.subr.bf16.mxu1 %v8552_v63 }
 0x32f   :  { %7212 = vmatpush3.bf16.msra.mxu0 %v8553_v44  ;;  %7234 = vmatpush3.bf16.msra.mxu1 %v8554_v1 }
 0x3e5   :  { %v5471_v10 = vpop.f32.mrb[0].mxu0  ;;  %v6004_v11 = vpop.f32.mrb[0].mxu1 }
 0x3e6   :  { %v7241_v12 = vadd.f32 %v5471_v10, %v815_v5  ;;  %v7243_v0 = vadd.f32 %v6004_v11, %v823_v6  ;;  %v5473_v52 = vpop.f32.mrb[1].mxu0  ;;  %v6006_v15 = vpop.f32.mrb[1].mxu1 }
 0x3e7   :  { %v7242_v16 = vadd.f32 %v5473_v52, %v819_v7  ;;  %v7244_v8 = vadd.f32 %v6006_v15, %v827_v62  ;;  %v5475_v9 = vpop.f32.mrb[2].mxu0  ;;  %v6008_v17 = vpop.f32.mrb[2].mxu1 }
 0x3e8   :  { %v6011_v18 = vmax.f32 %v7241_v12, 0.0  ;;  %v6013_v19 = vmax.f32 %v7243_v0, 0.0  ;;  %v5476_v20 = vpop.f32.mrb[3].mxu0  ;;  %v6009_v22 = vpop.f32.mrb[3].mxu1 }
 0x3e9   :  { %v6012_v23 = vmax.f32 %v7242_v16, 0.0  ;;  %v6014_v42 = vmax.f32 %v7244_v8, 0.0 }
 0x3ea   :  { %v6015_v27 = vpack.c.bf16 %v6011_v18, %v6011_v18  ;;  %v6017_v28 = vpack.c.bf16 %v6013_v19, %v6013_v19 }
 0x3eb   :  { %v6016_v24 = vpack.c.bf16 %v6012_v23, %v6012_v23  ;;  %v6018_v13 = vpack.c.bf16 %v6014_v42, %v6014_v42 }
 0x3ed   :  { %6314 = vmatprep.mubr.bf16.mxu0 %v6016_v24  ;;  %6354 = vmatprep.mubr.bf16.mxu1 %v6018_v13 }
 0x3ee   :  { %6315 = vmatmul.mubr.bf16.vlgmr.msra.gmra.mrb[4].mxu0 %v6015_v27  ;;  %6355 = vmatmul.mubr.bf16.vlgmr.msra.gmra.mrb[4].mxu1 %v6017_v28 }
 0x4c1   :  { %v7213_v29 = vpop.f32.mrb[4].mxu0  ;;  %v7235_v14 = vpop.f32.mrb[4].mxu1 }
 0x4c2   :  { %v7214_v31 = vpop.f32.mrb[5].mxu0  ;;  %v7236_v25 = vpop.f32.mrb[5].mxu1 }
 0x4c3   :  { %v7215_v32 = vadd.f32 %v7214_v31, %v7213_v29  ;;  %v7237_v33 = vadd.f32 %v7236_v25, %v7235_v14  ;;  %v7216_v26 = vpop.f32.mrb[6].mxu0  ;;  %v7238_v49 = vpop.f32.mrb[6].mxu1 }
 0x4c4   :  { %v7217_v36 = vpop.f32.mrb[7].mxu0  ;;  %v7239_v37 = vpop.f32.mrb[7].mxu1 }
 0x4c5   :  { %v6317_v21 = vadd.f32 %v7215_v32, %v7164_v30 }
 0x4c7   :  { %v6357_v39 = vadd.f32 %v7237_v33, %v6317_v21 }
 0x4c9   :  { %6362 = vst [vmem:[#allocation2] sm:$0x3] %v6357_v39 }
 0x4ca   :  { %8568 = shalt.err (!%p8565_p4)
}
 0x4cb   :  { %s8569_s10 = scalar_lea.hbm %s11228_s5, 32 }
 0x4cc   :  { %p8570_p5 = scmp.ne.s32.totalorder %s11228_s5, %s8569_s10  ;;  %p8573_p6 = scmp.lt.u32.totalorder %s8569_s10, %s11228_s5 }
 0x4ce   :  { %p8575_p7 = pnand %p8573_p6, %p8570_p5 }
 0x4d0   :  { %8578 = shalt.err (!%p8575_p7)
}
 0x4d1   :  { %6372 = dma.vmem_to_hbm [thread:$0]  %s6370_s7, 32, %s11228_s5, [#allocation3]  }
 0x4d2   :  { %8579 = dma.done.wait [#allocation3], 32  }
 0x4d3   :  { %8580 = vsyncadd [#allocation3], 4294967264 }
 0x4d4   :  { %6376 = vsyncpa [#allocation3], 1 }

</bundles_post_ra>
